<compile_context>
chip_gen: v6e
topology: v6e:2x2x1
jax: 0.10.0
libtpu: 0.0.40
codegen_flags: <defaults>
</compile_context>

<pallas_src>
import functools
import math
from typing import Optional

import jax
import jax.numpy as jnp
from jax import lax
from jax.experimental import pallas as pl
from jax.experimental.pallas import tpu as pltpu


LN_EPS = 1e-5  # PyTorch nn.LayerNorm default


# ----------------------------- small helpers ---------------------------------


def _gelu(x, approximate):
    if approximate:
        # tanh approximation: routes most of the work to the EUP (idle slot when the
        # kernel is MXU/VALU bound).  NOTE: changes numerics vs PyTorch exact GELU.
        return jax.nn.gelu(x, approximate=True)
    # Exact erf GELU == PyTorch nn.GELU() default.  erf is evaluated in f32 for safe
    # Mosaic lowering on all generations; the gating adds/muls stay in x.dtype.
    # TODO(synk): move erf fully to bf16 once bf16 erf lowering is guaranteed.
    erf = lax.erf(x.astype(jnp.float32) * (1.0 / math.sqrt(2.0))).astype(x.dtype)
    return 0.5 * x * (1.0 + erf)


def _device_kind() -> str:
    try:
        return jax.devices()[0].device_kind.lower()
    except Exception:
        return ""


@functools.lru_cache(maxsize=1)
def _chip_info():
    """(vmem_capacity_bytes, is_multi_tensorcore, has_bf16_vpu) with safe fallbacks."""
    kind = _device_kind()
    vmem = None
    try:
        info = pltpu.get_tpu_info()
        vmem = int(getattr(info, "vmem_capacity_bytes"))
    except Exception:
        vmem = None
    if not vmem:
        if "v7" in kind:
            vmem = 64 << 20
        elif any(t in kind for t in ("v4", "v5", "v6")):
            vmem = 128 << 20
        else:
            vmem = 64 << 20          # conservative default for unknown parts
    multi_tc = any(t in kind for t in ("v7", "v4", "v5p"))
    bf16_vpu = any(t in kind for t in ("v6", "v7"))
    return vmem, multi_tc, bf16_vpu


@functools.lru_cache(maxsize=1)
def _single_buffer_supported() -> bool:
    """Explicit capability probe: BlockSpec(pipeline_mode=pl.Buffered(1)).

    The broad exception handling is confined to this tiny probe kernel, so lowering
    errors in the real kernel are never swallowed.
    """
    if not hasattr(pl, "Buffered"):
        return False
    try:
        spec = pl.BlockSpec((8, 128), lambda i: (0, 0), pipeline_mode=pl.Buffered(1))
    except TypeError:
        return False
    try:
        def _probe(a_ref, b_ref, o_ref):
            o_ref[...] = a_ref[...] + b_ref[...]
        z = jnp.zeros((8, 128), jnp.float32)
        out = pl.pallas_call(
            _probe,
            out_shape=jax.ShapeDtypeStruct((8, 128), jnp.float32),
            grid=(1,),
            in_specs=[pl.BlockSpec((8, 128), lambda i: (0, 0)), spec],
            out_specs=pl.BlockSpec((8, 128), lambda i: (0, 0)),
        )(z, z)
        jax.block_until_ready(out)
        return True
    except Exception:
        return False


def _pick_tm(m, tm_max, multi_tc, prefer_256):
    """Largest 128-aligned row tile; prefer divisors of m (avoids a host-side pad copy)."""
    tm_max = max(128, (int(tm_max) // 128) * 128)
    cap = max(128, min(tm_max, (max(m, 128) // 128) * 128))

    def largest_divisor(step):
        t = (min(cap, m) // step) * step
        while t >= step:
            if m % t == 0:
                return t
            t -= step
        return None

    tm = largest_divisor(256) if prefer_256 else None   # 256-wide MXU (v6e/v7x)
    if tm is None:
        tm = largest_divisor(128)
    if tm is None:
        # Ragged M: fall back to padding.
        # TODO(synk): handle the ragged tail with a second small pallas_call instead.
        return cap
    if multi_tc and m // tm < 2:
        # >=2 grid steps only helps megacore sharding on 2-TC parts (v7x/v4/v5p).
        half = ((m // 2) // 128) * 128
        if half >= 128 and m % half == 0:
            tm = half
    return tm


# ------------------------------- kernels --------------------------------------


def _ffn_resident_kernel(x_ref, g_ref, be_ref, w1_ref, b1_ref, w2_ref, b2_ref, o_ref,
                         *, ln_eps, epilogue_dtype, gelu_approximate):
    # x_ref: (tm, D)      g/be: (1, D) f32     w1: (D, H)    b1: (1, H) f32
    # w2: (H, D)          b2: (1, D) f32       o_ref: (tm, D)
    x = x_ref[...].astype(jnp.float32)

    # LayerNorm (norm_2) in f32 (biased variance == nn.LayerNorm).
    mean = jnp.mean(x, axis=-1, keepdims=True)
    xc = x - mean
    var = jnp.mean(xc * xc, axis=-1, keepdims=True)
    ln = xc * lax.rsqrt(var + ln_eps) * g_ref[...] + be_ref[...]

    # fc1: low-precision MXU operands, f32 accumulation.
    h = jnp.dot(ln.astype(w1_ref.dtype), w1_ref[...],
                preferred_element_type=jnp.float32)
    # fc1 epilogue (bias + GELU) in epilogue_dtype (bf16 on v6e/v7x, f32 on v5e).
    h = _gelu(h.astype(epilogue_dtype) + b1_ref[...].astype(epilogue_dtype),
              gelu_approximate)

    # fc2 + residual add (Dropout / DropPath are identity at p=0).
    y = jnp.dot(h.astype(w2_ref.dtype), w2_ref[...],
                preferred_element_type=jnp.float32)
    y = y + b2_ref[...]
    o_ref[...] = (x + y).astype(o_ref.dtype)


def _ffn_hblocked_kernel(x_ref, g_ref, be_ref, w1_ref, b1_ref, w2_ref, b2_ref, o_ref,
                         ln_ref, acc_ref, *, ln_eps, epilogue_dtype, gelu_approximate):
    # Grid: (row tiles, hidden chunks).  w1: (D, th), b1: (1, th), w2: (th, D).
    # ln_ref: (tm, D) cached LayerNorm output;  acc_ref: (tm, D) f32 fc2 accumulator.
    j = pl.program_id(1)

    @pl.when(j == 0)
    def _():
        x = x_ref[...].astype(jnp.float32)
        mean = jnp.mean(x, axis=-1, keepdims=True)
        xc = x - mean
        var = jnp.mean(xc * xc, axis=-1, keepdims=True)
        ln = xc * lax.rsqrt(var + ln_eps) * g_ref[...] + be_ref[...]
        ln_ref[...] = ln.astype(ln_ref.dtype)
        acc_ref[...] = jnp.zeros_like(acc_ref)

    h = jnp.dot(ln_ref[...], w1_ref[...], preferred_element_type=jnp.float32)
    h = _gelu(h.astype(epilogue_dtype) + b1_ref[...].astype(epilogue_dtype),
              gelu_approximate)
    acc_ref[...] += jnp.dot(h.astype(w2_ref.dtype), w2_ref[...],
                            preferred_element_type=jnp.float32)

    @pl.when(j == pl.num_programs(1) - 1)
    def _():
        x = x_ref[...].astype(jnp.float32)
        o_ref[...] = (x + acc_ref[...] + b2_ref[...]).astype(o_ref.dtype)


# ------------------------------- wrapper ---------------------------------------


def block_ffn_residual(x, ln_gamma, ln_beta, w1, b1, w2, b2, *,
                       tm=512, compute_dtype=jnp.bfloat16, out_dtype=None,
                       epilogue_dtype=None, gelu_approximate=False,
                       hidden_block: Optional[int] = None, ln_eps=LN_EPS):
    """x + Mlp(LayerNorm(x)).  x: (..., D).  w1: (D, H), w2: (H, D)."""
    orig_shape = x.shape
    d = orig_shape[-1]
    hidden = w1.shape[-1]
    assert w1.shape == (d, hidden) and w2.shape == (hidden, d)
    assert b1.shape[-1] == hidden and b2.shape[-1] == d

    out_dtype = x.dtype if out_dtype is None else out_dtype
    vmem_cap, multi_tc, bf16_vpu = _chip_info()
    if epilogue_dtype is None:
        # Packed-bf16 VALU halves the GELU-epilogue cost on v6e/v7x; v5e stays f32.
        epilogue_dtype = jnp.bfloat16 if bf16_vpu else jnp.float32

    x2d = x.reshape(-1, d)
    m = x2d.shape[0]
    tm_ = _pick_tm(m, tm, multi_tc, prefer_256=bf16_vpu)
    m_pad = pl.cdiv(m, tm_) * tm_
    if m_pad != m:
        x2d = jnp.pad(x2d, ((0, m_pad - m), (0, 0)))

    # Weights used as passed when already in compute_dtype (store them bf16 upstream
    # to avoid a per-call cast pass over HBM).  Biases / LN params stay f32.
    w1c = w1 if w1.dtype == compute_dtype else w1.astype(compute_dtype)
    w2c = w2 if w2.dtype == compute_dtype else w2.astype(compute_dtype)
    g_2d = ln_gamma.reshape(1, d).astype(jnp.float32)
    be_2d = ln_beta.reshape(1, d).astype(jnp.float32)
    b1_2d = b1.reshape(1, hidden).astype(jnp.float32)
    b2_2d = b2.reshape(1, d).astype(jnp.float32)

    xb = jnp.dtype(x2d.dtype).itemsize
    ob = jnp.dtype(out_dtype).itemsize
    wb = jnp.dtype(compute_dtype).itemsize

    single_buf = _single_buffer_supported()
    const_buf = 1 if single_buf else 2
    budget = vmem_cap - (8 << 20)                 # leave headroom for compiler scratch

    def resident_bytes():
        act = 2 * tm_ * d * xb + 2 * tm_ * d * ob             # x/out, double-buffered
        wts = const_buf * 2 * d * hidden * wb                  # W1 + W2 (resident)
        small = const_buf * (3 * d + hidden) * 4               # LN params + biases
        inter = tm_ * d * 4 + tm_ * hidden * 4 + 2 * tm_ * d * 4
        return act + wts + small + inter, wts

    def blocked_bytes(th_):
        act = 2 * tm_ * d * xb + 2 * tm_ * d * ob
        wts = 2 * 2 * d * th_ * wb                             # W1/W2 chunks, 2 bufs
        small = 2 * (3 * d + th_) * 4
        scratch = tm_ * d * wb + tm_ * d * 4                   # LN cache + f32 acc
        inter = tm_ * th_ * 4 + 2 * tm_ * d * 4
        return act + wts + small + scratch + inter

    # ---- choose resident-weight vs hidden-dim-blocked strategy -------------------
    use_blocked = False
    th = None
    if hidden_block is not None:
        th = int(hidden_block)
        assert hidden % th == 0 and (th % 128 == 0 or th == hidden)
        use_blocked = th != hidden
    else:
        est_res, res_wbytes = resident_bytes()
        if (est_res > 0.75 * budget or res_wbytes > 0.5 * budget) and hidden % 128 == 0:
            use_blocked = True
            th = 128
            cand = hidden
            while cand >= 128:                     # largest H chunk that fits the budget
                if hidden % cand == 0 and blocked_bytes(cand) <= 0.75 * budget:
                    th = cand
                    break
                cand -= 128

    est = blocked_bytes(th) if use_blocked else resident_bytes()[0]
    vmem_limit = int(min(budget, max(int(est * 1.5) + (4 << 20), 32 << 20)))

    cost = pl.CostEstimate(
        flops=int(4 * m_pad * d * hidden + 10 * m_pad * (d + hidden)),
        transcendentals=int(m_pad * hidden),                   # one erf per hidden elem
        bytes_accessed=int(m_pad * d * (xb + ob) + 2 * d * hidden * wb
                           + (3 * d + hidden) * 4),
    )

    # Constant-index (grid-resident) blocks need only a single buffer when supported.
    const_kw = {"pipeline_mode": pl.Buffered(1)} if single_buf else {}
    args = (x2d, g_2d, be_2d, w1c, b1_2d, w2c, b2_2d)

    if not use_blocked:
        kernel = functools.partial(_ffn_resident_kernel, ln_eps=ln_eps,
                                   epilogue_dtype=epilogue_dtype,
                                   gelu_approximate=gelu_approximate)
        out = pl.pallas_call(
            kernel,
            out_shape=jax.ShapeDtypeStruct((m_pad, d), out_dtype),
            grid_spec=pltpu.PrefetchScalarGridSpec(
                num_scalar_prefetch=0,
                grid=(m_pad // tm_,),
                in_specs=[
                    pl.BlockSpec((tm_, d), lambda i: (i, 0)),               # x tile
                    pl.BlockSpec((1, d), lambda i: (0, 0), **const_kw),     # LN gamma
                    pl.BlockSpec((1, d), lambda i: (0, 0), **const_kw),     # LN beta
                    pl.BlockSpec((d, hidden), lambda i: (0, 0), **const_kw),  # W1
                    pl.BlockSpec((1, hidden), lambda i: (0, 0), **const_kw),  # b1
                    pl.BlockSpec((hidden, d), lambda i: (0, 0), **const_kw),  # W2
                    pl.BlockSpec((1, d), lambda i: (0, 0), **const_kw),     # b2
                ],
                out_specs=pl.BlockSpec((tm_, d), lambda i: (i, 0)),
            ),
            compiler_params=pltpu.CompilerParams(
                dimension_semantics=("parallel",),
                vmem_limit_bytes=vmem_limit,
            ),
            cost_estimate=cost,
        )(*args)
    else:
        kernel = functools.partial(_ffn_hblocked_kernel, ln_eps=ln_eps,
                                   epilogue_dtype=epilogue_dtype,
                                   gelu_approximate=gelu_approximate)
        out = pl.pallas_call(
            kernel,
            out_shape=jax.ShapeDtypeStruct((m_pad, d), out_dtype),
            grid_spec=pltpu.PrefetchScalarGridSpec(
                num_scalar_prefetch=0,
                grid=(m_pad // tm_, hidden // th),
                in_specs=[
                    pl.BlockSpec((tm_, d), lambda i, j: (i, 0)),            # x (resident over j)
                    pl.BlockSpec((1, d), lambda i, j: (0, 0), **const_kw),  # LN gamma
                    pl.BlockSpec((1, d), lambda i, j: (0, 0), **const_kw),  # LN beta
                    pl.BlockSpec((d, th), lambda i, j: (0, j)),             # W1 chunk
                    pl.BlockSpec((1, th), lambda i, j: (0, j)),             # b1 chunk
                    pl.BlockSpec((th, d), lambda i, j: (j, 0)),             # W2 chunk
                    pl.BlockSpec((1, d), lambda i, j: (0, 0), **const_kw),  # b2
                ],
                out_specs=pl.BlockSpec((tm_, d), lambda i, j: (i, 0)),
                scratch_shapes=[
                    pltpu.VMEM((tm_, d), compute_dtype),                    # LN(x) cache
                    pltpu.VMEM((tm_, d), jnp.float32),                      # fc2 accumulator
                ],
            ),
            compiler_params=pltpu.CompilerParams(
                dimension_semantics=("parallel", "arbitrary"),
                vmem_limit_bytes=vmem_limit,
            ),
            cost_estimate=cost,
        )(*args)

    if m_pad != m:
        out = out[:m]
    return out.reshape(orig_shape[:-1] + (d,))


# ------------------------------- reference -------------------------------------


def block_ffn_reference(x, ln_gamma, ln_beta, w1, b1, w2, b2, *,
                        matmul_dtype=jnp.float32, epilogue_dtype=jnp.float32,
                        gelu_approximate=False, ln_eps=LN_EPS):
    """Pure-JAX reference: x + Mlp(LayerNorm(x)) with configurable matmul/epilogue dtypes."""
    xf = x.astype(jnp.float32)
    mean = jnp.mean(xf, axis=-1, keepdims=True)
    var = jnp.mean(jnp.square(xf - mean), axis=-1, keepdims=True)
    ln = (xf - mean) * lax.rsqrt(var + ln_eps) * ln_gamma.astype(jnp.float32) \
         + ln_beta.astype(jnp.float32)
    h = jnp.dot(ln.astype(matmul_dtype), w1.astype(matmul_dtype),
                preferred_element_type=jnp.float32)
    h = _gelu(h.astype(epilogue_dtype) + b1.astype(epilogue_dtype), gelu_approximate)
    y = jnp.dot(h.astype(matmul_dtype), w2.astype(matmul_dtype),
                preferred_element_type=jnp.float32) + b2.astype(jnp.float32)
    return xf + y


if __name__ == "__main__":
    # Small transformer-block shapes: batch=2, seq=128, dim=256, mlp_ratio=4 (H=1024).
    B, N, DIM = 2, 128, 256
    MLP_RATIO = 4
    HIDDEN = MLP_RATIO * DIM

    key = jax.random.PRNGKey(0)
    kx, kg, kb, k1, k2, k3, k4 = jax.random.split(key, 7)

    x = jax.random.normal(kx, (B, N, DIM), dtype=jnp.float32)
    ln_gamma = 1.0 + 0.1 * jax.random.normal(kg, (DIM,), dtype=jnp.float32)
    ln_beta = 0.1 * jax.random.normal(kb, (DIM,), dtype=jnp.float32)

    bound1 = 1.0 / math.sqrt(DIM)
    bound2 = 1.0 / math.sqrt(HIDDEN)
    w1 = jax.random.uniform(k1, (DIM, HIDDEN), jnp.float32, -bound1, bound1)
    b1 = jax.random.uniform(k2, (HIDDEN,), jnp.float32, -bound1, bound1)
    w2 = jax.random.uniform(k3, (HIDDEN, DIM), jnp.float32, -bound2, bound2)
    b2 = jax.random.uniform(k4, (DIM,), jnp.float32, -bound2, bound2)

    # Store weights bf16 upstream (once) so the kernel never pays a per-call cast pass.
    w1_bf16 = w1.astype(jnp.bfloat16)
    w2_bf16 = w2.astype(jnp.bfloat16)

    # 1) Resident-weight path, f32 epilogue (tight, device-independent check).
    out = block_ffn_residual(x, ln_gamma, ln_beta, w1_bf16, b1, w2_bf16, b2,
                             epilogue_dtype=jnp.float32)
    out = jax.block_until_ready(out)
    assert out.shape == x.shape and out.dtype == x.dtype
    ref = block_ffn_reference(x, ln_gamma, ln_beta, w1, b1, w2, b2,
                              matmul_dtype=jnp.bfloat16, epilogue_dtype=jnp.float32)
    assert jnp.allclose(out, ref, atol=2e-3, rtol=2e-3), "resident path mismatch"
    ref_f32 = block_ffn_reference(x, ln_gamma, ln_beta, w1, b1, w2, b2)
    assert jnp.allclose(out, ref_f32, atol=2e-1, rtol=2e-1), "f32 reference mismatch"

    # 2) bf16 fc1 epilogue (bias + GELU) — the v6e/v7x fast path.
    out_bf16_epi = jax.block_until_ready(
        block_ffn_residual(x, ln_gamma, ln_beta, w1_bf16, b1, w2_bf16, b2,
                           epilogue_dtype=jnp.bfloat16))
    ref_bf16_epi = block_ffn_reference(x, ln_gamma, ln_beta, w1, b1, w2, b2,
                                       matmul_dtype=jnp.bfloat16,
                                       epilogue_dtype=jnp.bfloat16)
    assert jnp.allclose(out_bf16_epi, ref_bf16_epi, atol=1.5e-2, rtol=1.5e-2), \
        "bf16-epilogue path mismatch"

    # 3) Hidden-dim-blocked path (forced small H chunk; the large-D / v7x strategy).
    out_blk = jax.block_until_ready(
        block_ffn_residual(x, ln_gamma, ln_beta, w1_bf16, b1, w2_bf16, b2,
                           epilogue_dtype=jnp.float32, hidden_block=256))
    assert jnp.allclose(out_blk, ref, atol=2e-3, rtol=2e-3), "H-blocked path mismatch"

    print("KERNEL_OK")
</pallas_src>

<mosaic_0001>
module attributes {stable_mosaic.version = 11 : i64} {
  func.func @_probe(%arg0: i32, %arg1: memref<8x128xf32, #tpu.memory_space<vmem>>, %arg2: memref<8x128xf32, #tpu.memory_space<vmem>>, %arg3: memref<8x128xf32, #tpu.memory_space<vmem>>) attributes {dimension_semantics = [#tpu.dimension_semantics<arbitrary>], iteration_bounds = array<i64: 1>, scalar_prefetch = 0 : i64, scratch_operands = 0 : i64, tpu.core_type = #tpu.core_type<tc>, window_params = [{pipeline_mode = #tpu.pipeline_mode<synchronous>, transform_indices = @transform_0, window_bounds = array<i64: 8, 128>}, {pipeline_mode = #tpu.pipeline_mode<synchronous>, transform_indices = @transform_1, window_bounds = array<i64: 8, 128>}, {pipeline_mode = #tpu.pipeline_mode<synchronous>, transform_indices = @transform_2, window_bounds = array<i64: 8, 128>}]} {
    %c0 = arith.constant 0 : index
    %c0_0 = arith.constant 0 : index
    %0 = vector.load %arg1[%c0, %c0_0] : memref<8x128xf32, #tpu.memory_space<vmem>>, vector<8x128xf32>
    %c0_1 = arith.constant 0 : index
    %c0_2 = arith.constant 0 : index
    %1 = vector.load %arg2[%c0_1, %c0_2] : memref<8x128xf32, #tpu.memory_space<vmem>>, vector<8x128xf32>
    %2 = arith.addf %0, %1 : vector<8x128xf32>
    %c0_3 = arith.constant 0 : index
    %c0_4 = arith.constant 0 : index
    %3 = vector.load %arg3[%c0_3, %c0_4] : memref<8x128xf32, #tpu.memory_space<vmem>>, vector<8x128xf32>
    tpu.vector_store %arg3[%c0_3, %c0_4], %2 {strides = array<i32>} : memref<8x128xf32, #tpu.memory_space<vmem>>, vector<8x128xf32>,
    return
  }
  func.func @transform_0(%arg0: i32) -> (i32, i32) {
    %c0_i32 = arith.constant 0 : i32
    %c0_i32_0 = arith.constant 0 : i32
    %c0_i32_1 = arith.constant 0 : i32
    return %c0_i32, %c0_i32_0 : i32, i32
  }
  func.func @transform_1(%arg0: i32) -> (i32, i32) {
    %c0_i32 = arith.constant 0 : i32
    %c0_i32_0 = arith.constant 0 : i32
    %c0_i32_1 = arith.constant 0 : i32
    return %c0_i32, %c0_i32_0 : i32, i32
  }
  func.func @transform_2(%arg0: i32) -> (i32, i32) {
    %c0_i32 = arith.constant 0 : i32
    %c0_i32_0 = arith.constant 0 : i32
    %c0_i32_1 = arith.constant 0 : i32
    return %c0_i32, %c0_i32_0 : i32, i32
  }
}

module attributes {stable_mosaic.version = 11 : i64} {
  func.func @_ffn_resident_kernel(%arg0: i32, %arg1: memref<256x256xf32, #tpu.memory_space<vmem>>, %arg2: memref<1x256xf32, #tpu.memory_space<vmem>>, %arg3: memref<1x256xf32, #tpu.memory_space<vmem>>, %arg4: memref<256x1024xbf16, #tpu.memory_space<vmem>>, %arg5: memref<1x1024xf32, #tpu.memory_space<vmem>>, %arg6: memref<1024x256xbf16, #tpu.memory_space<vmem>>, %arg7: memref<1x256xf32, #tpu.memory_space<vmem>>, %arg8: memref<256x256xf32, #tpu.memory_space<vmem>>) attributes {dimension_semantics = [#tpu.dimension_semantics<parallel>], iteration_bounds = array<i64: 1>, scalar_prefetch = 0 : i64, scratch_operands = 0 : i64, tpu.core_type = #tpu.core_type<tc>, window_params = [{transform_indices = @transform_0, window_bounds = array<i64: 256, 256>}, {pipeline_mode = #tpu.pipeline_mode<synchronous>, transform_indices = @transform_1, window_bounds = array<i64: 1, 256>}, {pipeline_mode = #tpu.pipeline_mode<synchronous>, transform_indices = @transform_2, window_bounds = array<i64: 1, 256>}, {pipeline_mode = #tpu.pipeline_mode<synchronous>, transform_indices = @transform_3, window_bounds = array<i64: 256, 1024>}, {pipeline_mode = #tpu.pipeline_mode<synchronous>, transform_indices = @transform_4, window_bounds = array<i64: 1, 1024>}, {pipeline_mode = #tpu.pipeline_mode<synchronous>, transform_indices = @transform_5, window_bounds = array<i64: 1024, 256>}, {pipeline_mode = #tpu.pipeline_mode<synchronous>, transform_indices = @transform_6, window_bounds = array<i64: 1, 256>}, {transform_indices = @transform_7, window_bounds = array<i64: 256, 256>}]} {
    %c0 = arith.constant 0 : index
    %c0_0 = arith.constant 0 : index
    %0 = vector.load %arg1[%c0, %c0_0] : memref<256x256xf32, #tpu.memory_space<vmem>>, vector<256x256xf32>
    %cst = arith.constant dense<0.000000e+00> : vector<256xf32>
    %1 = vector.multi_reduction <add>, %0, %cst [1] : vector<256x256xf32> to vector<256xf32>
    %2 = vector.shape_cast %1 : vector<256xf32> to vector<256x1xf32>
    %cst_1 = arith.constant 2.560000e+02 : f32
    %3 = vector.broadcast %cst_1 : f32 to vector<256x1xf32>
    %4 = arith.divf %2, %3 : vector<256x1xf32>
    %5 = vector.broadcast %4 : vector<256x1xf32> to vector<256x256xf32>
    %6 = arith.subf %0, %5 : vector<256x256xf32>
    %7 = arith.mulf %6, %6 : vector<256x256xf32>
    %cst_2 = arith.constant dense<0.000000e+00> : vector<256xf32>
    %8 = vector.multi_reduction <add>, %7, %cst_2 [1] : vector<256x256xf32> to vector<256xf32>
    %9 = vector.shape_cast %8 : vector<256xf32> to vector<256x1xf32>
    %cst_3 = arith.constant 2.560000e+02 : f32
    %10 = vector.broadcast %cst_3 : f32 to vector<256x1xf32>
    %11 = arith.divf %9, %10 : vector<256x1xf32>
    %cst_4 = arith.constant 9.99999974E-6 : f32
    %12 = vector.broadcast %cst_4 : f32 to vector<256x1xf32>
    %13 = arith.addf %11, %12 : vector<256x1xf32>
    %14 = math.rsqrt %13 : vector<256x1xf32>
    %15 = vector.broadcast %14 : vector<256x1xf32> to vector<256x256xf32>
    %16 = arith.mulf %6, %15 : vector<256x256xf32>
    %c0_5 = arith.constant 0 : index
    %c0_6 = arith.constant 0 : index
    %17 = vector.load %arg2[%c0_5, %c0_6] : memref<1x256xf32, #tpu.memory_space<vmem>>, vector<1x256xf32>
    %18 = vector.broadcast %17 : vector<1x256xf32> to vector<256x256xf32>
    %19 = arith.mulf %16, %18 : vector<256x256xf32>
    %c0_7 = arith.constant 0 : index
    %c0_8 = arith.constant 0 : index
    %20 = vector.load %arg3[%c0_7, %c0_8] : memref<1x256xf32, #tpu.memory_space<vmem>>, vector<1x256xf32>
    %21 = vector.broadcast %20 : vector<1x256xf32> to vector<256x256xf32>
    %22 = arith.addf %19, %21 : vector<256x256xf32>
    %23 = arith.truncf %22 : vector<256x256xf32> to vector<256x256xbf16>
    %c0_9 = arith.constant 0 : index
    %c0_10 = arith.constant 0 : index
    %24 = vector.load %arg4[%c0_9, %c0_10] : memref<256x1024xbf16, #tpu.memory_space<vmem>>, vector<256x1024xbf16>
    %cst_11 = arith.constant dense<0.000000e+00> : vector<256x1024xf32>
    %25 = tpu.matmul %23, %24, %cst_11 {dimension_numbers = #tpu.dot_dimension_numbers<[1], [0], [0], [1], [0, 0, 1, 1], [], []>} : vector<256x256xbf16>, vector<256x1024xbf16>, vector<256x1024xf32> -> vector<256x1024xf32>
    %c0_12 = arith.constant 0 : index
    %c0_13 = arith.constant 0 : index
    %26 = vector.load %arg5[%c0_12, %c0_13] : memref<1x1024xf32, #tpu.memory_space<vmem>>, vector<1x1024xf32>
    %27 = vector.broadcast %26 : vector<1x1024xf32> to vector<256x1024xf32>
    %28 = arith.addf %25, %27 : vector<256x1024xf32>
    %cst_14 = arith.constant 0.707106769 : f32
    %29 = vector.broadcast %cst_14 : f32 to vector<256x1024xf32>
    %30 = arith.mulf %28, %29 : vector<256x1024xf32>
    %31 = math.erf %30 : vector<256x1024xf32>
    %cst_15 = arith.constant 5.000000e-01 : f32
    %32 = vector.broadcast %cst_15 : f32 to vector<256x1024xf32>
    %33 = arith.mulf %32, %28 : vector<256x1024xf32>
    %cst_16 = arith.constant 1.000000e+00 : f32
    %34 = vector.broadcast %cst_16 : f32 to vector<256x1024xf32>
    %35 = arith.addf %34, %31 : vector<256x1024xf32>
    %36 = arith.mulf %33, %35 : vector<256x1024xf32>
    %37 = arith.truncf %36 : vector<256x1024xf32> to vector<256x1024xbf16>
    %c0_17 = arith.constant 0 : index
    %c0_18 = arith.constant 0 : index
    %38 = vector.load %arg6[%c0_17, %c0_18] : memref<1024x256xbf16, #tpu.memory_space<vmem>>, vector<1024x256xbf16>
    %cst_19 = arith.constant dense<0.000000e+00> : vector<256x256xf32>
    %39 = tpu.matmul %37, %38, %cst_19 {dimension_numbers = #tpu.dot_dimension_numbers<[1], [0], [0], [1], [0, 0, 1, 1], [], []>} : vector<256x1024xbf16>, vector<1024x256xbf16>, vector<256x256xf32> -> vector<256x256xf32>
    %c0_20 = arith.constant 0 : index
    %c0_21 = arith.constant 0 : index
    %40 = vector.load %arg7[%c0_20, %c0_21] : memref<1x256xf32, #tpu.memory_space<vmem>>, vector<1x256xf32>
    %41 = vector.broadcast %40 : vector<1x256xf32> to vector<256x256xf32>
    %42 = arith.addf %39, %41 : vector<256x256xf32>
    %43 = arith.addf %0, %42 : vector<256x256xf32>
    %c0_22 = arith.constant 0 : index
    %c0_23 = arith.constant 0 : index
    %44 = vector.load %arg8[%c0_22, %c0_23] : memref<256x256xf32, #tpu.memory_space<vmem>>, vector<256x256xf32>
    tpu.vector_store %arg8[%c0_22, %c0_23], %43 {strides = array<i32>} : memref<256x256xf32, #tpu.memory_space<vmem>>, vector<256x256xf32>,
    return
  }
  func.func @transform_0(%arg0: i32) -> (i32, i32) {
    %c0_i32 = arith.constant 0 : i32
    %c0_i32_0 = arith.constant 0 : i32
    return %arg0, %c0_i32 : i32, i32
  }
  func.func @transform_1(%arg0: i32) -> (i32, i32) {
    %c0_i32 = arith.constant 0 : i32
    %c0_i32_0 = arith.constant 0 : i32
    %c0_i32_1 = arith.constant 0 : i32
    return %c0_i32, %c0_i32_0 : i32, i32
  }
  func.func @transform_2(%arg0: i32) -> (i32, i32) {
    %c0_i32 = arith.constant 0 : i32
    %c0_i32_0 = arith.constant 0 : i32
    %c0_i32_1 = arith.constant 0 : i32
    return %c0_i32, %c0_i32_0 : i32, i32
  }
  func.func @transform_3(%arg0: i32) -> (i32, i32) {
    %c0_i32 = arith.constant 0 : i32
    %c0_i32_0 = arith.constant 0 : i32
    %c0_i32_1 = arith.constant 0 : i32
    return %c0_i32, %c0_i32_0 : i32, i32
  }
  func.func @transform_4(%arg0: i32) -> (i32, i32) {
    %c0_i32 = arith.constant 0 : i32
    %c0_i32_0 = arith.constant 0 : i32
    %c0_i32_1 = arith.constant 0 : i32
    return %c0_i32, %c0_i32_0 : i32, i32
  }
  func.func @transform_5(%arg0: i32) -> (i32, i32) {
    %c0_i32 = arith.constant 0 : i32
    %c0_i32_0 = arith.constant 0 : i32
    %c0_i32_1 = arith.constant 0 : i32
    return %c0_i32, %c0_i32_0 : i32, i32
  }
  func.func @transform_6(%arg0: i32) -> (i32, i32) {
    %c0_i32 = arith.constant 0 : i32
    %c0_i32_0 = arith.constant 0 : i32
    %c0_i32_1 = arith.constant 0 : i32
    return %c0_i32, %c0_i32_0 : i32, i32
  }
  func.func @transform_7(%arg0: i32) -> (i32, i32) {
    %c0_i32 = arith.constant 0 : i32
    %c0_i32_0 = arith.constant 0 : i32
    return %arg0, %c0_i32 : i32, i32
  }
}

</mosaic_0001>

<bundles_post_ra>
// kernel: tpu_custom_call.1
= control target key start
LH: loop header
LB: loop body
LE: loop exit
PB: predicated region body
PF: predicated region fallthrough
CT: control target
= control target key end

     0   :  { %7 = vsyncpa [#allocation3], 0  ;;  %s152_s0 = inlined_call_operand.hbm [shape: f32[8,128], index: 0, kind: input, shape index: {}]   ;;  %s153_s1 = inlined_call_operand.hbm [shape: f32[8,128], index: 1, kind: input, shape index: {}]   ;;  %s154_s2 = inlined_call_operand.hbm [shape: f32[8,128], index: 2, kind: output, shape index: {}]  }
   0x1   :  { %8 = vsyncpa [#allocation6], 0 }
   0x2   :  { %9 = vsyncpa [#allocation4], 0  ;;  %s125_s9 = smov [#allocation2]   ;;  %s126_s11 = smov [#allocation5]  }
   0x3   :  { %s16_s10 = sshll.u32 %s125_s9, 4  ;;  %s26_s12 = sshll.u32 %s126_s11, 4  ;;  %s17_s10 = int_to_ptr.vmem [resolvable:$true] %s16_s10  ;;  %s27_s12 = int_to_ptr.vmem [resolvable:$true] %s26_s12 }
   0x4   :  { %s67_s13 = scalar_lea.vmem %s17_s10, 128  ;;  %p72_p1 = scmp.lt.s32.totalorder %s17_s10, %s17_s10 }
   0x5   :  { %p68_p0 = scmp.ne.s32.totalorder %s17_s10, %s67_s13  ;;  %p73_p2 = scmp.lt.s32.totalorder %s67_s13, %s67_s13 }
   0x7   :  { %p74_p3 = por %p73_p2, %p72_p1 }
   0x9   :  { %p75_p4 = pnand %p74_p3, %p68_p0 }
   0xb   :  { %78 = shalt.err (!%p75_p4)
}
   0xc   :  { %19 = dma.hbm_to_vmem [thread:$0]  %s152_s0, 128, %s17_s10, [#allocation3]  }
   0xd   :  { %s87_s16 = scalar_lea.vmem %s27_s12, 128  ;;  %p92_p6 = scmp.lt.s32.totalorder %s27_s12, %s27_s12 }
   0xe   :  { %p88_p5 = scmp.ne.s32.totalorder %s27_s12, %s87_s16  ;;  %p93_p7 = scmp.lt.s32.totalorder %s87_s16, %s87_s16 }
  0x10   :  { %p94_p8 = por %p93_p7, %p92_p6 }
  0x12   :  { %p95_p9 = pnand %p94_p8, %p88_p5 }
  0x14   :  { %98 = shalt.err (!%p95_p9)
}
  0x15   :  { %29 = dma.hbm_to_vmem [thread:$0]  %s153_s1, 128, %s27_s12, [#allocation6]  }
  0x16   :  { %119 = dma.done.wait [#allocation3], 128  }
  0x17   :  { %120 = vsyncadd [#allocation3], 4294967168 }
  0x18   :  { %121 = dma.done.wait [#allocation6], 128  }
  0x19   :  { %122 = vsyncadd [#allocation6], 4294967168  ;;  %s127_s19 = smov [#allocation7]   ;;  %v36_v0 = vld [vmem:[#allocation2] sm:$0xff]  ;;  %v37_v1 = vld [vmem:[#allocation5] sm:$0xff] }
  0x1a   :  { %s46_s20 = sshll.u32 %s127_s19, 4  ;;  %v38_v2 = vadd.f32 %v37_v1, %v36_v0  ;;  %s47_s20 = int_to_ptr.vmem [resolvable:$true] %s46_s20 }
  0x1b   :  { %s99_s0 = scalar_lea.vmem %s47_s20, 128  ;;  %p104_p11 = scmp.lt.s32.totalorder %s47_s20, %s47_s20 }
  0x1c   :  { %39 = vst [vmem:[#allocation7] sm:$0xff] %v38_v2  ;;  %p100_p10 = scmp.ne.s32.totalorder %s47_s20, %s99_s0  ;;  %p105_p12 = scmp.lt.s32.totalorder %s99_s0, %s99_s0 }
  0x1e   :  { %p106_p13 = por %p105_p12, %p104_p11 }
  0x20   :  { %p107_p0 = pnand %p106_p13, %p100_p10 }
  0x22   :  { %110 = shalt.err (!%p107_p0)
}
  0x23   :  { %49 = dma.vmem_to_hbm [thread:$0]  %s47_s20, 128, %s154_s2, [#allocation4]  }
  0x24   :  { %123 = dma.done.wait [#allocation4], 128  }
  0x25   :  { %124 = vsyncadd [#allocation4], 4294967168 }
  0x26   :  { %53 = vsyncpa [#allocation3], 1 }
  0x27   :  { %54 = vsyncpa [#allocation6], 1 }
  0x28   :  { %55 = vsyncpa [#allocation4], 1 }

// kernel: tpu_custom_call.1
= control target key start
LH: loop header
LB: loop body
LE: loop exit
PB: predicated region body
PF: predicated region fallthrough
CT: control target
= control target key end

     0   :  { %12 = vsyncpa [#allocation3], 0  ;;  %s11765_s0 = inlined_call_operand.hbm [shape: f32[256,256], index: 0, kind: input, shape index: {}]   ;;  %s11766_s1 = inlined_call_operand.hbm [shape: f32[1,256], index: 1, kind: input, shape index: {}]   ;;  %s11767_s2 = inlined_call_operand.vmem [shape: f32[1,256], index: 2, kind: input, shape index: {}]   ;;  %s11768_s3 = inlined_call_operand.hbm [shape: bf16[256,1024], index: 3, kind: input, shape index: {}]   ;;  %s11769_s4 = inlined_call_operand.hbm [shape: f32[1,1024], index: 4, kind: input, shape index: {}]   ;;  %s11770_s5 = inlined_call_operand.hbm [shape: bf16[1024,256], index: 5, kind: input, shape index: {}]   ;;  %s11771_s6 = inlined_call_operand.vmem [shape: f32[1,256], index: 6, kind: input, shape index: {}]   ;;  %s11772_s7 = inlined_call_operand.hbm [shape: f32[256,256], index: 7, kind: output, shape index: {}]  }
   0x1   :  { %13 = vsyncpa [#allocation6], 0 }
   0x2   :  { %14 = vsyncpa [#allocation9], 0 }
   0x3   :  { %15 = vsyncpa [#allocation4], 0  ;;  %s6770_s24 = smov [#allocation5]   ;;  %s6771_s26 = smov [#allocation8]  }
   0x4   :  { %s34_s25 = sshll.u32 %s6770_s24, 4  ;;  %s58_s27 = sshll.u32 %s6771_s26, 4  ;;  %s35_s25 = int_to_ptr.vmem [resolvable:$true] %s34_s25  ;;  %s59_s27 = int_to_ptr.vmem [resolvable:$true] %s58_s27 }
   0x5   :  { %s6650_s28 = scalar_lea.vmem %s35_s25, 32  ;;  %p6655_p1 = scmp.lt.s32.totalorder %s35_s25, %s35_s25 }
   0x6   :  { %p6651_p0 = scmp.ne.s32.totalorder %s35_s25, %s6650_s28  ;;  %p6656_p2 = scmp.lt.s32.totalorder %s6650_s28, %s6650_s28 }
   0x8   :  { %p6657_p3 = por %p6656_p2, %p6655_p1 }
   0xa   :  { %p6658_p4 = pnand %p6657_p3, %p6651_p0 }
   0xc   :  { %6661 = shalt.err (!%p6658_p4)
}
   0xd   :  { %37 = dma.hbm_to_vmem [thread:$0]  %s11766_s1, 32, %s35_s25, [#allocation6]  }
   0xe   :  { %s6670_s8 = scalar_lea.vmem %s59_s27, 128  ;;  %p6675_p6 = scmp.lt.s32.totalorder %s59_s27, %s59_s27 }
   0xf   :  { %p6671_p5 = scmp.ne.s32.totalorder %s59_s27, %s6670_s8  ;;  %p6676_p7 = scmp.lt.s32.totalorder %s6670_s8, %s6670_s8 }
  0x11   :  { %p6677_p8 = por %p6676_p7, %p6675_p6 }
  0x13   :  { %p6678_p9 = pnand %p6677_p8, %p6671_p5 }
  0x15   :  { %6681 = shalt.err (!%p6678_p9)
}
  0x16   :  { %61 = dma.hbm_to_vmem [thread:$0]  %s11769_s4, 128, %s59_s27, [#allocation9]  }
  0x17   :  { %s6772_s11 = smov [#allocation2]  }
  0x18   :  { %s21_s12 = sshll.u32 %s6772_s11, 4  ;;  %s22_s12 = int_to_ptr.vmem [resolvable:$true] %s21_s12 }
  0x19   :  { %s6690_s13 = scalar_lea.vmem %s22_s12, 8192  ;;  %p6695_p11 = scmp.lt.s32.totalorder %s22_s12, %s22_s12 }
  0x1a   :  { %p6691_p10 = scmp.ne.s32.totalorder %s22_s12, %s6690_s13  ;;  %p6696_p12 = scmp.lt.s32.totalorder %s6690_s13, %s6690_s13 }
  0x1c   :  { %p6697_p13 = por %p6696_p12, %p6695_p11 }
  0x1e   :  { %p6698_p0 = pnand %p6697_p13, %p6691_p10 }
  0x20   :  { %6701 = shalt.err (!%p6698_p0)
}
  0x21   :  { %s6773_s1 = smov 256   ;;  %s6774_s14 = smov 16  }
  0x22   :  { %27 = dma.hbm_to_vmem [thread:$0]  %s11765_s0, 8192, %s22_s12, [#allocation3], %s6773_s1, %s6773_s1, %s6774_s14  }
  0x23   :  { %s6775_s4 = smov [#allocation7]  }
  0x24   :  { %s45_s17 = sshll.u32 %s6775_s4, 4  ;;  %s46_s17 = int_to_ptr.vmem [resolvable:$true] %s45_s17 }
  0x25   :  { %s6710_s18 = scalar_lea.vmem %s46_s17, 16384  ;;  %p6715_p2 = scmp.lt.s32.totalorder %s46_s17, %s46_s17 }
  0x26   :  { %p6711_p1 = scmp.ne.s32.totalorder %s46_s17, %s6710_s18  ;;  %p6716_p3 = scmp.lt.s32.totalorder %s6710_s18, %s6710_s18 }
  0x28   :  { %p6717_p4 = por %p6716_p3, %p6715_p2 }
  0x2a   :  { %p6718_p5 = pnand %p6717_p4, %p6711_p1 }
  0x2c   :  { %6721 = shalt.err (!%p6718_p5)
}
  0x2d   :  { %s6776_s19 = smov 512   ;;  %s6777_s20 = smov 32  }
  0x2e   :  { %51 = dma.hbm_to_vmem [thread:$0]  %s11768_s3, 16384, %s46_s17, [#allocation6], %s6776_s19, %s6776_s19, %s6777_s20  }
  0x2f   :  { %s6778_s23 = smov [#allocation10]  }
  0x30   :  { %s67_s24 = sshll.u32 %s6778_s23, 4  ;;  %s68_s24 = int_to_ptr.vmem [resolvable:$true] %s67_s24 }
  0x31   :  { %s6730_s0 = scalar_lea.vmem %s68_s24, 16384  ;;  %p6735_p7 = scmp.lt.s32.totalorder %s68_s24, %s68_s24 }
  0x32   :  { %p6731_p6 = scmp.ne.s32.totalorder %s68_s24, %s6730_s0  ;;  %p6736_p8 = scmp.lt.s32.totalorder %s6730_s0, %s6730_s0 }
  0x34   :  { %p6737_p9 = por %p6736_p8, %p6735_p7 }
  0x36   :  { %p6738_p10 = pnand %p6737_p9, %p6731_p6 }
  0x38   :  { %6741 = shalt.err (!%p6738_p10)
}
  0x39   :  { %s6779_s25 = smov 128   ;;  %s6780_s26 = smov 8  }
  0x3a   :  { %73 = dma.hbm_to_vmem [thread:$0]  %s11770_s5, 16384, %s68_s24, [#allocation9], %s6779_s25, %s6779_s25, %s6780_s26  }
  0x3b   :  { %6762 = dma.done.wait [#allocation3], 8192  }
  0x3c   :  { %6763 = vsyncadd [#allocation3], 4294959104 }
  0x3d   :  { %6764 = dma.done.wait [#allocation6], 16416  }
  0x3e   :  { %6765 = vsyncadd [#allocation6], 4294950880 }
  0x3f   :  { %6766 = dma.done.wait [#allocation9], 16512  }
  0x40   :  { %6767 = vsyncadd [#allocation9], 4294950784  ;;  %v6840_v0 = vld [vmem:[#allocation2] sm:$0xff]  ;;  %v6842_v1 = vld [vmem:[#allocation2 + $0x8] sm:$0xff] }
  0x41   :  { %v6844_v2 = vld [vmem:[#allocation2 + $0x10] sm:$0xff]  ;;  %v155_v3 = vadd.f32 %v6842_v1, %v6840_v0  ;;  %v6848_v4 = vld [vmem:[#allocation2 + $0x18] sm:$0xff]  ;;  %v6850_v5 = vld [vmem:[#allocation2 + $0x20] sm:$0xff] }
  0x42   :  { %v6852_v6 = vld [vmem:[#allocation2 + $0x28] sm:$0xff]  ;;  %v6856_v8 = vld [vmem:[#allocation2 + $0x30] sm:$0xff]  ;;  %v6858_v9 = vld [vmem:[#allocation2 + $0x38] sm:$0xff]  ;;  %v158_v10 = vadd.f32 %v6848_v4, %v6844_v2 }
  0x43   :  { %v161_v7 = vadd.f32 %v6852_v6, %v6850_v5  ;;  %156 = vadd.xlane.f32.xlu0 %v155_v3  ;;  %v164_v11 = vadd.f32 %v6858_v9, %v6856_v8  ;;  %v6864_v12 = vld [vmem:[#allocation2 + $0x40] sm:$0xff]  ;;  %v6866_v13 = vld [vmem:[#allocation2 + $0x48] sm:$0xff]  ;;  %v6868_v14 = vld [vmem:[#allocation2 + $0x50] sm:$0xff] }
  0x44   :  { %v6870_v15 = vld [vmem:[#allocation2 + $0x58] sm:$0xff]  ;;  %v167_v16 = vadd.f32 %v6866_v13, %v6864_v12  ;;  %v6876_v18 = vld [vmem:[#allocation2 + $0x60] sm:$0xff]  ;;  %v6878_v19 = vld [vmem:[#allocation2 + $0x68] sm:$0xff] }
  0x45   :  { %162 = vadd.xlane.f32.xlu1 %v161_v7  ;;  %v170_v17 = vadd.f32 %v6870_v15, %v6868_v14  ;;  %v6880_v20 = vld [vmem:[#allocation2 + $0x70] sm:$0xff]  ;;  %v6882_v21 = vld [vmem:[#allocation2 + $0x78] sm:$0xff]  ;;  %v173_v22 = vadd.f32 %v6878_v19, %v6876_v18  ;;  %v6888_v24 = vld [vmem:[#allocation2 + $0x80] sm:$0xff] }
  0x46   :  { %v176_v23 = vadd.f32 %v6882_v21, %v6880_v20  ;;  %v6890_v25 = vld [vmem:[#allocation2 + $0x88] sm:$0xff]  ;;  %v6892_v26 = vld [vmem:[#allocation2 + $0x90] sm:$0xff]  ;;  %v6894_v27 = vld [vmem:[#allocation2 + $0x98] sm:$0xff] }
  0x47   :  { %159 = vadd.xlane.f32.xlu0 %v158_v10  ;;  %v6896_v28 = vld [vmem:[#allocation2 + $0xa0] sm:$0xff]  ;;  %v6898_v29 = vld [vmem:[#allocation2 + $0xa8] sm:$0xff]  ;;  %v179_v30 = vadd.f32 %v6890_v25, %v6888_v24  ;;  %v6902_v31 = vld [vmem:[#allocation2 + $0xb0] sm:$0xff]  ;;  %v182_v33 = vadd.f32 %v6894_v27, %v6892_v26 }
  0x48   :  { %v6904_v32 = vld [vmem:[#allocation2 + $0xb8] sm:$0xff]  ;;  %v6908_v34 = vld [vmem:[#allocation2 + $0xc0] sm:$0xff]  ;;  %v6910_v35 = vld [vmem:[#allocation2 + $0xc8] sm:$0xff]  ;;  %v185_v36 = vadd.f32 %v6898_v29, %v6896_v28 }
  0x49   :  { %165 = vadd.xlane.f32.xlu1 %v164_v11  ;;  %v188_v37 = vadd.f32 %v6904_v32, %v6902_v31  ;;  %v6916_v38 = vld [vmem:[#allocation2 + $0xd0] sm:$0xff]  ;;  %v6918_v39 = vld [vmem:[#allocation2 + $0xd8] sm:$0xff]  ;;  %v6920_v40 = vld [vmem:[#allocation2 + $0xe0] sm:$0xff]  ;;  %v191_v42 = vadd.f32 %v6910_v35, %v6908_v34 }
  0x4a   :  { %v6922_v41 = vld [vmem:[#allocation2 + $0xe8] sm:$0xff]  ;;  %v6926_v43 = vld [vmem:[#allocation2 + $0xf0] sm:$0xff]  ;;  %v6928_v44 = vld [vmem:[#allocation2 + $0xf8] sm:$0xff]  ;;  %v194_v45 = vadd.f32 %v6918_v39, %v6916_v38 }
  0x4b   :  { %168 = vadd.xlane.f32.xlu0 %v167_v16  ;;  %v6932_v46 = vld [vmem:[#allocation2 + $0x100] sm:$0xff]  ;;  %v6934_v47 = vld [vmem:[#allocation2 + $0x108] sm:$0xff]  ;;  %v197_v48 = vadd.f32 %v6922_v41, %v6920_v40  ;;  %v200_v49 = vadd.f32 %v6928_v44, %v6926_v43  ;;  %v6940_v50 = vld [vmem:[#allocation2 + $0x110] sm:$0xff] }
  0x4c   :  { %v6942_v51 = vld [vmem:[#allocation2 + $0x118] sm:$0xff]  ;;  %v6944_v52 = vld [vmem:[#allocation2 + $0x120] sm:$0xff]  ;;  %v6946_v53 = vld [vmem:[#allocation2 + $0x128] sm:$0xff]  ;;  %v203_v54 = vadd.f32 %v6934_v47, %v6932_v46 }
  0x4d   :  { %171 = vadd.xlane.f32.xlu1 %v170_v17  ;;  %v206_v55 = vadd.f32 %v6942_v51, %v6940_v50  ;;  %v6952_v56 = vld [vmem:[#allocation2 + $0x130] sm:$0xff]  ;;  %v6954_v57 = vld [vmem:[#allocation2 + $0x138] sm:$0xff]  ;;  %v209_v58 = vadd.f32 %v6946_v53, %v6944_v52  ;;  %v908_v60 = vld [vmem:[#allocation7 + $0x1c0] sm:$0xff] }
  0x4e   :  { %v212_v59 = vadd.f32 %v6954_v57, %v6952_v56  ;;  %v912_v61 = vld [vmem:[#allocation7 + $0x1e0] sm:$0xff]  ;;  %v909_v62 = vld [vmem:[#allocation7 + $0x1c8] sm:$0xff] }
  0x4f   :  { %174 = vadd.xlane.f32.xlu0 %v173_v22  ;;  %v5598_v63 = vcombine.high %v908_v60, %v912_v61  ;;  %v913_v3 = vld [vmem:[#allocation7 + $0x1e8] sm:$0xff]  ;;  %v5597_v7 = vcombine.low %v908_v60, %v912_v61  ;;  %v900_v10 = vld [vmem:[#allocation7 + $0x180] sm:$0xff] }
  0x50   :  { %v904_v11 = vld [vmem:[#allocation7 + $0x1a0] sm:$0xff]  ;;  %v5600_v16 = vcombine.high %v909_v62, %v913_v3  ;;  %v5599_v17 = vcombine.low %v909_v62, %v913_v3  ;;  %v885_v60 = vld [vmem:[#allocation7 + $0x108] sm:$0xff] }
  0x51   :  { %177 = vadd.xlane.f32.xlu1 %v176_v23  ;;  %v5590_v22 = vcombine.high %v900_v10, %v904_v11  ;;  %v901_v23 = vld [vmem:[#allocation7 + $0x188] sm:$0xff]  ;;  %1662 = vmatprep.subr.bf16.mxu0 %v5598_v63 }
  0x52   :  { %1855 = vmatprep.subr.bf16.mxu1 %v5600_v16  ;;  %1663 = vmatpush1.bf16.msra.mxu0 %v5597_v7  ;;  %v889_v61 = vld [vmem:[#allocation7 + $0x128] sm:$0xff]  ;;  %v876_v7 = vld [vmem:[#allocation7 + $0xc0] sm:$0xff] }
  0x53   :  { %180 = vadd.xlane.f32.xlu0 %v179_v30  ;;  %v905_v30 = vld [vmem:[#allocation7 + $0x1a8] sm:$0xff]  ;;  %1856 = vmatpush1.bf16.msra.mxu1 %v5599_v17  ;;  %v5576_v16 = vcombine.high %v885_v60, %v889_v61 }
  0x54   :  { %1664 = vmatprep.subr.bf16.mxu0 %v5590_v22  ;;  %v881_v17 = vld [vmem:[#allocation7 + $0xe8] sm:$0xff] }
  0x55   :  { %183 = vadd.xlane.f32.xlu1 %v182_v33  ;;  %v892_v33 = vld [vmem:[#allocation7 + $0x140] sm:$0xff] }
  0x57   :  { %186 = vadd.xlane.f32.xlu0 %v185_v36  ;;  %v5592_v36 = vcombine.high %v901_v23, %v905_v30 }
  0x59   :  { %189 = vadd.xlane.f32.xlu1 %v188_v37  ;;  %v896_v37 = vld [vmem:[#allocation7 + $0x160] sm:$0xff]  ;;  %1857 = vmatprep.subr.bf16.mxu1 %v5592_v36 }
  0x5a   :  { %v5581_v62 = vcombine.low %v892_v33, %v896_v37 }
  0x5b   :  { %192 = vadd.xlane.f32.xlu0 %v191_v42  ;;  %v893_v42 = vld [vmem:[#allocation7 + $0x148] sm:$0xff] }
  0x5d   :  { %195 = vadd.xlane.f32.xlu1 %v194_v45  ;;  %v897_v45 = vld [vmem:[#allocation7 + $0x168] sm:$0xff] }
  0x5e   :  { %v5583_v63 = vcombine.low %v893_v42, %v897_v45 }
  0x5f   :  { %198 = vadd.xlane.f32.xlu0 %v197_v48  ;;  %v5589_v48 = vcombine.low %v900_v10, %v904_v11  ;;  %v880_v10 = vld [vmem:[#allocation7 + $0xe0] sm:$0xff]  ;;  %v877_v11 = vld [vmem:[#allocation7 + $0xc8] sm:$0xff] }
  0x60   :  { %v5568_v36 = vcombine.high %v877_v11, %v881_v17 }
  0x61   :  { %201 = vadd.xlane.f32.xlu1 %v200_v49  ;;  %v5591_v49 = vcombine.low %v901_v23, %v905_v30  ;;  %1665 = vmatpush1.bf16.msra.mxu0 %v5589_v48  ;;  %v5575_v23 = vcombine.low %v885_v60, %v889_v61  ;;  %v5566_v30 = vcombine.high %v876_v7, %v880_v10  ;;  %v868_v48 = vld [vmem:[#allocation7 + $0x80] sm:$0xff] }
  0x63   :  { %204 = vadd.xlane.f32.xlu0 %v203_v54  ;;  %v5582_v54 = vcombine.high %v892_v33, %v896_v37  ;;  %1858 = vmatpush1.bf16.msra.mxu1 %v5591_v49  ;;  %v872_v33 = vld [vmem:[#allocation7 + $0xa0] sm:$0xff]  ;;  %v869_v37 = vld [vmem:[#allocation7 + $0x88] sm:$0xff] }
  0x64   :  { %v873_v49 = vld [vmem:[#allocation7 + $0xa8] sm:$0xff]  ;;  %v5557_v60 = vcombine.low %v868_v48, %v872_v33 }
  0x65   :  { %207 = vadd.xlane.f32.xlu1 %v206_v55  ;;  %v5584_v55 = vcombine.high %v893_v42, %v897_v45  ;;  %1666 = vmatprep.subr.bf16.mxu0 %v5582_v54  ;;  %v5565_v42 = vcombine.low %v876_v7, %v880_v10  ;;  %v5567_v45 = vcombine.low %v877_v11, %v881_v17  ;;  %v856_v7 = vld [vmem:[#allocation7 + $0x20] sm:$0xff]  ;;  %v853_v10 = vld [vmem:[#allocation7 + $0x8] sm:$0xff] }
  0x66   :  { %1667 = vmatpush1.bf16.msra.mxu0 %v5581_v62  ;;  %v5558_v54 = vcombine.high %v868_v48, %v872_v33  ;;  %v860_v62 = vld [vmem:[#allocation7 + $0x40] sm:$0xff]  ;;  %v5559_v61 = vcombine.low %v869_v37, %v873_v49  ;;  %v6964_v33 = vld [vmem:[#allocation7 + $0x3c8] sm:$0xff] }
  0x67   :  { %210 = vadd.xlane.f32.xlu0 %v209_v58  ;;  %v884_v58 = vld [vmem:[#allocation7 + $0x100] sm:$0xff]  ;;  %1859 = vmatprep.subr.bf16.mxu1 %v5584_v55  ;;  %v5560_v55 = vcombine.high %v869_v37, %v873_v49  ;;  %v6966_v37 = vld [vmem:[#allocation7 + $0x3e8] sm:$0xff] }
  0x68   :  { %1860 = vmatpush1.bf16.msra.mxu1 %v5583_v63  ;;  %v865_v63 = vld [vmem:[#allocation7 + $0x68] sm:$0xff]  ;;  %v6962_v48 = vld [vmem:[#allocation7 + $0x3e0] sm:$0xff] }
  0x69   :  { %213 = vadd.xlane.f32.xlu1 %v212_v59  ;;  %v888_v59 = vld [vmem:[#allocation7 + $0x120] sm:$0xff]  ;;  %1861 = vmatprep.subr.bf16.mxu1 %v5576_v16 }
  0x6a   :  { %v5574_v3 = vcombine.high %v884_v58, %v888_v59  ;;  %v5573_v22 = vcombine.low %v884_v58, %v888_v59  ;;  %v864_v58 = vld [vmem:[#allocation7 + $0x60] sm:$0xff]  ;;  %v861_v59 = vld [vmem:[#allocation7 + $0x48] sm:$0xff] }
  0x6b   :  { %v5552_v16 = vcombine.high %v861_v59, %v865_v63  ;;  %v5549_v11 = vcombine.low %v860_v62, %v864_v58  ;;  %v5551_v17 = vcombine.low %v861_v59, %v865_v63 }
  0x6c   :  { %1668 = vmatprep.subr.bf16.mxu0 %v5574_v3  ;;  %1862 = vmatpush1.bf16.msra.mxu1 %v5575_v23  ;;  %v5550_v3 = vcombine.high %v860_v62, %v864_v58  ;;  %v857_v23 = vld [vmem:[#allocation7 + $0x28] sm:$0xff] }
  0x6d   :  { %1669 = vmatpush1.bf16.msra.mxu0 %v5573_v22  ;;  %1863 = vmatprep.subr.bf16.mxu1 %v5568_v36  ;;  %v852_v22 = vld [vmem:[#allocation7] sm:$0xff]  ;;  %v5544_v36 = vcombine.high %v853_v10, %v857_v23 }
  0x6e   :  { %1670 = vmatprep.subr.bf16.mxu0 %v5566_v30  ;;  %v5542_v30 = vcombine.high %v852_v22, %v856_v7  ;;  %v5541_v49 = vcombine.low %v852_v22, %v856_v7 }
  0x70   :  { %1864 = vmatpush1.bf16.msra.mxu1 %v5567_v45  ;;  %v5543_v45 = vcombine.low %v853_v10, %v857_v23 }
  0x71   :  { %1671 = vmatpush1.bf16.msra.mxu0 %v5565_v42  ;;  %1865 = vmatprep.subr.bf16.mxu1 %v5560_v55  ;;  %v6960_v42 = vld [vmem:[#allocation7 + $0x3c0] sm:$0xff]  ;;  %v5664_v55 = vcombine.high %v6964_v33, %v6966_v37 }
  0x72   :  { %1672 = vmatprep.subr.bf16.mxu0 %v5558_v54  ;;  %v5662_v54 = vcombine.high %v6960_v42, %v6962_v48 }
  0x74   :  { %1866 = vmatpush1.bf16.msra.mxu1 %v5559_v61 }
  0x75   :  { %1673 = vmatpush1.bf16.msra.mxu0 %v5557_v60  ;;  %1867 = vmatprep.subr.bf16.mxu1 %v5552_v16 }
  0x76   :  { %1674 = vmatprep.subr.bf16.mxu0 %v5550_v3 }
  0x78   :  { %1868 = vmatpush1.bf16.msra.mxu1 %v5551_v17  ;;  %v6990_v17 = vld [vmem:[#allocation2 + $0x148] sm:$0xff] }
  0x79   :  { %1675 = vmatpush1.bf16.msra.mxu0 %v5549_v11  ;;  %1869 = vmatprep.subr.bf16.mxu1 %v5544_v36 }
  0x7a   :  { %1676 = vmatprep.subr.bf16.mxu0 %v5542_v30 }
  0x7c   :  { %1870 = vmatpush1.bf16.msra.mxu1 %v5543_v45 }
  0x7d   :  { %1677 = vmatpush1.bf16.msra.mxu0 %v5541_v49  ;;  %1871 = vmatprep.subr.bf16.mxu1 %v5664_v55 }
  0x7e   :  { %1678 = vmatprep.subr.bf16.mxu0 %v5662_v54 }
  0xcc   :  { %v157_v62 = vpop.xlane.xlu0 %156 }
  0xcd   :  { %v252_v58 = vmul.f32 0.00390625, %v157_v62 }
  0xce   :  { %v163_v59 = vpop.xlane.xlu1 %162 }
  0xcf   :  { %v254_v63 = vmul.f32 0.00390625, %v163_v59  ;;  %v6973_v60 = vsub.f32 %v6840_v0, %v252_v58  ;;  %v6976_v61 = vsub.f32 %v6842_v1, %v252_v58  ;;  %v6988_v0 = vld [vmem:[#allocation2 + $0x140] sm:$0xff]  ;;  %v7016_v58 = vld [vmem:[#allocation2 + $0x158] sm:$0xff] }
  0xd0   :  { %v160_v3 = vpop.xlane.xlu0 %159  ;;  %v215_v45 = vadd.f32 %v6990_v17, %v6988_v0 }
  0xd1   :  { %v6979_v16 = vsub.f32 %v6850_v5, %v254_v63  ;;  %v253_v22 = vmul.f32 0.00390625, %v160_v3  ;;  %v6982_v7 = vsub.f32 %v6852_v6, %v254_v63  ;;  %v348_v10 = vmul.f32 %v6973_v60, %v6973_v60 }
  0xd2   :  { %v349_v23 = vmul.f32 %v6976_v61, %v6976_v61  ;;  %v166_v11 = vpop.xlane.xlu1 %165 }
  0xd3   :  { %11927 = vst [vmem:[#allocation16_spill] sm:$0xff] %v6979_v16  ;;  %11928 = vst [vmem:[#allocation17_spill] sm:$0xff] %v6982_v7  ;;  %v255_v1 = vmul.f32 0.00390625, %v166_v11  ;;  %v6993_v30 = vsub.f32 %v6844_v2, %v253_v22  ;;  %v6996_v5 = vsub.f32 %v6848_v4, %v253_v22  ;;  %v352_v55 = vmul.f32 %v6979_v16, %v6979_v16 }
  0xd4   :  { %v412_v6 = vadd.f32 %v349_v23, %v348_v10  ;;  %v169_v54 = vpop.xlane.xlu0 %168  ;;  %v7020_v10 = vld [vmem:[#allocation2 + $0x160] sm:$0xff]  ;;  %v7022_v23 = vld [vmem:[#allocation2 + $0x168] sm:$0xff] }
  0xd5   :  { %11929 = vst [vmem:[#allocation18_spill] sm:$0xff] %v6993_v30  ;;  %11930 = vst [vmem:[#allocation19_spill] sm:$0xff] %v6996_v5  ;;  %v6999_v36 = vsub.f32 %v6856_v8, %v255_v1  ;;  %v7002_v49 = vsub.f32 %v6858_v9, %v255_v1  ;;  %v350_v2 = vmul.f32 %v6993_v30, %v6993_v30  ;;  %v256_v62 = vmul.f32 0.00390625, %v169_v54  ;;  %v7014_v9 = vld [vmem:[#allocation2 + $0x150] sm:$0xff]  ;;  %v956_v30 = vld [vmem:[#allocation7 + $0x340] sm:$0xff] }
  0xd6   :  { %413 = vadd.xlane.f32.xlu0 %v412_v6  ;;  %v351_v4 = vmul.f32 %v6996_v5, %v6996_v5  ;;  %v353_v8 = vmul.f32 %v6982_v7, %v6982_v7  ;;  %v172_v59 = vpop.xlane.xlu1 %171  ;;  %v218_v3 = vadd.f32 %v7016_v58, %v7014_v9  ;;  %v960_v5 = vld [vmem:[#allocation7 + $0x360] sm:$0xff] }
  0xd7   :  { %11931 = vst [vmem:[#allocation20_spill] sm:$0xff] %v6999_v36  ;;  %11932 = vst [vmem:[#allocation21_spill] sm:$0xff] %v7002_v49  ;;  %v257_v22 = vmul.f32 0.00390625, %v172_v59  ;;  %v354_v11 = vmul.f32 %v6999_v36, %v6999_v36  ;;  %v355_v1 = vmul.f32 %v7002_v49, %v7002_v49  ;;  %v7029_v6 = vsub.f32 %v6864_v12, %v256_v62  ;;  %v7044_v12 = vld [vmem:[#allocation2 + $0x178] sm:$0xff] }
  0xd8   :  { %v415_v63 = vadd.f32 %v351_v4, %v350_v2  ;;  %v7032_v54 = vsub.f32 %v6866_v13, %v256_v62  ;;  %v418_v2 = vadd.f32 %v353_v8, %v352_v55  ;;  %v175_v4 = vpop.xlane.xlu0 %174  ;;  %v221_v59 = vadd.f32 %v7022_v23, %v7020_v10 }
  0xd9   :  { %11933 = vst [vmem:[#allocation22_spill] sm:$0xff] %v7029_v6  ;;  %v7037_v16 = vsub.f32 %v6868_v14, %v257_v22  ;;  %v7040_v36 = vsub.f32 %v6870_v15, %v257_v22  ;;  %v421_v49 = vadd.f32 %v355_v1, %v354_v11  ;;  %v356_v13 = vmul.f32 %v7029_v6, %v7029_v6  ;;  %v964_v22 = vld [vmem:[#allocation7 + $0x380] sm:$0xff] }
  0xda   :  { %216 = vadd.xlane.f32.xlu0 %v215_v45  ;;  %416 = vadd.xlane.f32.xlu1 %v415_v63  ;;  %11934 = vst [vmem:[#allocation23_spill] sm:$0xff] %v7032_v54  ;;  %v258_v45 = vmul.f32 0.00390625, %v175_v4  ;;  %v7042_v63 = vld [vmem:[#allocation2 + $0x170] sm:$0xff]  ;;  %v178_v7 = vpop.xlane.xlu1 %177  ;;  %v357_v55 = vmul.f32 %v7032_v54, %v7032_v54  ;;  %v5661_v14 = vcombine.low %v6960_v42, %v6962_v48  ;;  %v968_v11 = vld [vmem:[#allocation7 + $0x3a0] sm:$0xff] }
  0xdb   :  { %11935 = vst [vmem:[#allocation24_spill] sm:$0xff] %v7037_v16  ;;  %11936 = vst [vmem:[#allocation25_spill] sm:$0xff] %v7040_v36  ;;  %v5663_v15 = vcombine.low %v6964_v33, %v6966_v37  ;;  %v224_v62 = vadd.f32 %v7044_v12, %v7042_v63  ;;  %v259_v8 = vmul.f32 0.00390625, %v178_v7  ;;  %v359_v42 = vmul.f32 %v7040_v36, %v7040_v36  ;;  %v7063_v48 = vld [vmem:[#allocation2 + $0x180] sm:$0xff]  ;;  %v7065_v33 = vld [vmem:[#allocation2 + $0x188] sm:$0xff] }
  0xdc   :  { %1679 = vmatpush2.bf16.msra.mxu0 %v5661_v14  ;;  %v7057_v1 = vsub.f32 %v6876_v18, %v258_v45  ;;  %v5654_v37 = vcombine.high %v964_v22, %v968_v11  ;;  %v969_v7 = vld [vmem:[#allocation7 + $0x3a8] sm:$0xff]  ;;  %v7068_v4 = vsub.f32 %v6878_v19, %v258_v45  ;;  %v424_v18 = vadd.f32 %v357_v55, %v356_v13  ;;  %v181_v14 = vpop.xlane.xlu0 %180  ;;  %v7080_v55 = vld [vmem:[#allocation2 + $0x198] sm:$0xff] }
  0xdd   :  { %1872 = vmatpush2.bf16.msra.mxu1 %v5663_v15  ;;  %v7071_v54 = vsub.f32 %v6880_v20, %v259_v8  ;;  %v227_v36 = vadd.f32 %v7065_v33, %v7063_v48  ;;  %v260_v45 = vmul.f32 0.00390625, %v181_v14  ;;  %v7078_v13 = vld [vmem:[#allocation2 + $0x190] sm:$0xff]  ;;  %11941 = vst [vmem:[#allocation30_spill] sm:$0xff] %v7080_v55  ;;  %v5646_v20 = vcombine.high %v956_v30, %v960_v5 }
  0xde   :  { %419 = vadd.xlane.f32.xlu0 %v418_v2  ;;  %219 = vadd.xlane.f32.xlu1 %v218_v3  ;;  %v965_v3 = vld [vmem:[#allocation7 + $0x388] sm:$0xff]  ;;  %11937 = vst [vmem:[#allocation26_spill] sm:$0xff] %v7057_v1  ;;  %v358_v2 = vmul.f32 %v7037_v16, %v7037_v16  ;;  %11938 = vst [vmem:[#allocation27_spill] sm:$0xff] %v7068_v4  ;;  %v5653_v16 = vcombine.low %v964_v22, %v968_v11  ;;  %v184_v22 = vpop.xlane.xlu1 %183 }
  0xdf   :  { %v5656_v6 = vcombine.high %v965_v3, %v969_v7  ;;  %1680 = vmatprep.subr.bf16.mxu0 %v5654_v37  ;;  %11939 = vst [vmem:[#allocation28_spill] sm:$0xff] %v7071_v54  ;;  %v5655_v15 = vcombine.low %v965_v3, %v969_v7  ;;  %v961_v11 = vld [vmem:[#allocation7 + $0x368] sm:$0xff]  ;;  %v361_v3 = vmul.f32 %v7068_v4, %v7068_v4  ;;  %v948_v37 = vld [vmem:[#allocation7 + $0x300] sm:$0xff]  ;;  %v7106_v4 = vld [vmem:[#allocation2 + $0x1b8] sm:$0xff] }
  0xe0   :  { %v427_v19 = vadd.f32 %v359_v42, %v358_v2  ;;  %1681 = vmatpush2.bf16.msra.mxu0 %v5653_v16  ;;  %v230_v2 = vadd.f32 %v7080_v55, %v7078_v13  ;;  %v261_v42 = vmul.f32 0.00390625, %v184_v22  ;;  %v952_v7 = vld [vmem:[#allocation7 + $0x320] sm:$0xff]  ;;  %v362_v14 = vmul.f32 %v7071_v54, %v7071_v54  ;;  %11945 = vst [vmem:[#allocation34_spill] sm:$0xff] %v7106_v4 }
  0xe1   :  { %1873 = vmatprep.subr.bf16.mxu1 %v5656_v6  ;;  %v360_v6 = vmul.f32 %v7057_v1, %v7057_v1  ;;  %1682 = vmatprep.subr.bf16.mxu0 %v5646_v20  ;;  %v7095_v20 = vld [vmem:[#allocation2 + $0x1a0] sm:$0xff]  ;;  %v5638_v22 = vcombine.high %v948_v37, %v952_v7  ;;  %v5637_v54 = vcombine.low %v948_v37, %v952_v7  ;;  %v941_v37 = vld [vmem:[#allocation7 + $0x2c8] sm:$0xff] }
  0xe2   :  { %222 = vadd.xlane.f32.xlu0 %v221_v59  ;;  %422 = vadd.xlane.f32.xlu1 %v421_v49  ;;  %v957_v59 = vld [vmem:[#allocation7 + $0x348] sm:$0xff]  ;;  %v7076_v49 = vsub.f32 %v6882_v21, %v259_v8  ;;  %v5645_v8 = vcombine.low %v956_v30, %v960_v5  ;;  %v187_v5 = vpop.xlane.xlu0 %186 }
  0xe3   :  { %v5648_v21 = vcombine.high %v957_v59, %v961_v11  ;;  %1874 = vmatpush2.bf16.msra.mxu1 %v5655_v15  ;;  %v5647_v16 = vcombine.low %v957_v59, %v961_v11  ;;  %v7097_v30 = vld [vmem:[#allocation2 + $0x1a8] sm:$0xff]  ;;  %v7100_v11 = vsub.f32 %v6890_v25, %v260_v45  ;;  %v7112_v25 = vsub.f32 %v6894_v27, %v261_v42 }
  0xe4   :  { %11940 = vst [vmem:[#allocation29_spill] sm:$0xff] %v7076_v49  ;;  %v363_v15 = vmul.f32 %v7076_v49, %v7076_v49  ;;  %1683 = vmatpush2.bf16.msra.mxu0 %v5645_v8  ;;  %v953_v59 = vld [vmem:[#allocation7 + $0x328] sm:$0xff]  ;;  %v233_v1 = vadd.f32 %v7097_v30, %v7095_v20  ;;  %v190_v8 = vpop.xlane.xlu1 %189 }
  0xe5   :  { %1875 = vmatprep.subr.bf16.mxu1 %v5648_v21  ;;  %11943 = vst [vmem:[#allocation32_spill] sm:$0xff] %v7100_v11  ;;  %1684 = vmatprep.subr.bf16.mxu0 %v5638_v22  ;;  %v7104_v49 = vld [vmem:[#allocation2 + $0x1b0] sm:$0xff]  ;;  %11947 = vst [vmem:[#allocation36_spill] sm:$0xff] %v7112_v25 }
  0xe6   :  { %225 = vadd.xlane.f32.xlu1 %v224_v62  ;;  %425 = vadd.xlane.f32.xlu0 %v424_v18  ;;  %v949_v62 = vld [vmem:[#allocation7 + $0x308] sm:$0xff]  ;;  %v7089_v18 = vsub.f32 %v6888_v24, %v260_v45  ;;  %v430_v24 = vadd.f32 %v361_v3, %v360_v6  ;;  %11944 = vst [vmem:[#allocation33_spill] sm:$0xff] %v7104_v49  ;;  %v262_v45 = vmul.f32 0.00390625, %v187_v5  ;;  %v193_v6 = vpop.xlane.xlu0 %192  ;;  %v940_v3 = vld [vmem:[#allocation7 + $0x2c0] sm:$0xff] }
  0xe7   :  { %v5640_v21 = vcombine.high %v949_v62, %v953_v59  ;;  %1876 = vmatpush2.bf16.msra.mxu1 %v5647_v16  ;;  %v5639_v55 = vcombine.low %v949_v62, %v953_v59  ;;  %v944_v16 = vld [vmem:[#allocation7 + $0x2e0] sm:$0xff]  ;;  %v365_v62 = vmul.f32 %v7100_v11, %v7100_v11  ;;  %v945_v22 = vld [vmem:[#allocation7 + $0x2e8] sm:$0xff] }
  0xe8   :  { %11942 = vst [vmem:[#allocation31_spill] sm:$0xff] %v7089_v18  ;;  %1685 = vmatpush2.bf16.msra.mxu0 %v5637_v54  ;;  %v364_v7 = vmul.f32 %v7089_v18, %v7089_v18  ;;  %v5632_v27 = vcombine.high %v941_v37, %v945_v22  ;;  %v7120_v54 = vld [vmem:[#allocation2 + $0x1c0] sm:$0xff]  ;;  %v5629_v5 = vcombine.low %v940_v3, %v944_v16  ;;  %v933_v11 = vld [vmem:[#allocation7 + $0x288] sm:$0xff] }
  0xe9   :  { %1877 = vmatprep.subr.bf16.mxu1 %v5640_v21  ;;  %v7125_v59 = vsub.f32 %v6896_v28, %v262_v45  ;;  %v5631_v21 = vcombine.low %v941_v37, %v945_v22  ;;  %v932_v18 = vld [vmem:[#allocation7 + $0x280] sm:$0xff]  ;;  %v937_v28 = vld [vmem:[#allocation7 + $0x2a8] sm:$0xff] }
  0xea   :  { %428 = vadd.xlane.f32.xlu1 %v427_v19  ;;  %228 = vadd.xlane.f32.xlu0 %v227_v36  ;;  %v7109_v36 = vsub.f32 %v6892_v26, %v261_v42  ;;  %v433_v19 = vadd.f32 %v363_v15, %v362_v14  ;;  %v5630_v26 = vcombine.high %v940_v3, %v944_v16  ;;  %v263_v14 = vmul.f32 0.00390625, %v190_v8  ;;  %v7122_v15 = vld [vmem:[#allocation2 + $0x1c8] sm:$0xff]  ;;  %v7139_v22 = vld [vmem:[#allocation2 + $0x1d0] sm:$0xff] }
  0xeb   :  { %1878 = vmatpush2.bf16.msra.mxu1 %v5639_v55  ;;  %v236_v42 = vadd.f32 %v7106_v4, %v7104_v49  ;;  %11948 = vst [vmem:[#allocation37_spill] sm:$0xff] %v7125_v59  ;;  %v367_v55 = vmul.f32 %v7112_v25, %v7112_v25  ;;  %v936_v8 = vld [vmem:[#allocation7 + $0x2a0] sm:$0xff]  ;;  %v7132_v4 = vsub.f32 %v6898_v29, %v262_v45 }
  0xec   :  { %11946 = vst [vmem:[#allocation35_spill] sm:$0xff] %v7109_v36  ;;  %1686 = vmatprep.subr.bf16.mxu0 %v5630_v26  ;;  %1879 = vmatprep.subr.bf16.mxu1 %v5632_v27  ;;  %v436_v3 = vadd.f32 %v365_v62, %v364_v7  ;;  %v5622_v16 = vcombine.high %v932_v18, %v936_v8  ;;  %v199_v26 = vpop.xlane.xlu0 %198  ;;  %v264_v7 = vmul.f32 0.00390625, %v193_v6  ;;  %v924_v27 = vld [vmem:[#allocation7 + $0x240] sm:$0xff] }
  0xed   :  { %11949 = vst [vmem:[#allocation38_spill] sm:$0xff] %v7132_v4  ;;  %1687 = vmatpush2.bf16.msra.mxu0 %v5629_v5  ;;  %v7135_v49 = vsub.f32 %v6902_v31, %v263_v14  ;;  %v239_v37 = vadd.f32 %v7122_v15, %v7120_v54  ;;  %v5621_v29 = vcombine.low %v932_v18, %v936_v8  ;;  %v928_v5 = vld [vmem:[#allocation7 + $0x260] sm:$0xff]  ;;  %v925_v31 = vld [vmem:[#allocation7 + $0x248] sm:$0xff] }
  0xee   :  { %231 = vadd.xlane.f32.xlu1 %v230_v2  ;;  %431 = vadd.xlane.f32.xlu0 %v430_v24  ;;  %v196_v2 = vpop.xlane.xlu1 %195  ;;  %v366_v24 = vmul.f32 %v7109_v36, %v7109_v36  ;;  %v5624_v36 = vcombine.high %v933_v11, %v937_v28  ;;  %v5623_v62 = vcombine.low %v933_v11, %v937_v28  ;;  %v916_v28 = vld [vmem:[#allocation7 + $0x200] sm:$0xff] }
  0xef   :  { %1880 = vmatpush2.bf16.msra.mxu1 %v5631_v21  ;;  %11950 = vst [vmem:[#allocation39_spill] sm:$0xff] %v7135_v49  ;;  %1688 = vmatprep.subr.bf16.mxu0 %v5622_v16  ;;  %v368_v21 = vmul.f32 %v7125_v59, %v7125_v59  ;;  %v369_v25 = vmul.f32 %v7132_v4, %v7132_v4  ;;  %v265_v16 = vmul.f32 0.00390625, %v196_v2  ;;  %v11986_v4 = vld [vmem:[#allocation16_spill] sm:$0xff] }
  0xf0   :  { %v439_v45 = vadd.f32 %v367_v55, %v366_v24  ;;  %1881 = vmatprep.subr.bf16.mxu1 %v5624_v36  ;;  %v5614_v8 = vcombine.high %v924_v27, %v928_v5  ;;  %v5613_v36 = vcombine.low %v924_v27, %v928_v5  ;;  %v7156_v24 = vsub.f32 %v6910_v35, %v264_v7  ;;  %v7165_v35 = vld [vmem:[#allocation2 + $0x1e0] sm:$0xff] }
  0xf1   :  { %1689 = vmatpush2.bf16.msra.mxu0 %v5621_v29  ;;  %v370_v2 = vmul.f32 %v7135_v49, %v7135_v49  ;;  %v920_v29 = vld [vmem:[#allocation7 + $0x220] sm:$0xff]  ;;  %v442_v27 = vadd.f32 %v369_v25, %v368_v21  ;;  %v266_v5 = vmul.f32 0.00390625, %v199_v26 }
  0xf2   :  { %434 = vadd.xlane.f32.xlu1 %v433_v19  ;;  %234 = vadd.xlane.f32.xlu0 %v233_v1  ;;  %v7141_v19 = vld [vmem:[#allocation2 + $0x1d8] sm:$0xff]  ;;  %v7144_v1 = vsub.f32 %v6904_v32, %v263_v14  ;;  %v202_v18 = vpop.xlane.xlu1 %201  ;;  %v929_v32 = vld [vmem:[#allocation7 + $0x268] sm:$0xff]  ;;  %v7153_v14 = vsub.f32 %v6908_v34, %v264_v7  ;;  %11953 = vst [vmem:[#allocation42_spill] sm:$0xff] %v7156_v24 }
  0xf3   :  { %1882 = vmatpush2.bf16.msra.mxu1 %v5623_v62  ;;  %v5616_v6 = vcombine.high %v925_v31, %v929_v32  ;;  %v242_v11 = vadd.f32 %v7141_v19, %v7139_v22  ;;  %1690 = vmatprep.subr.bf16.mxu0 %v5614_v8  ;;  %v917_v62 = vld [vmem:[#allocation7 + $0x208] sm:$0xff]  ;;  %v7163_v34 = vsub.f32 %v6916_v38, %v265_v16 }
  0xf4   :  { %11951 = vst [vmem:[#allocation40_spill] sm:$0xff] %v7144_v1  ;;  %11952 = vst [vmem:[#allocation41_spill] sm:$0xff] %v7153_v14  ;;  %v371_v55 = vmul.f32 %v7144_v1, %v7144_v1  ;;  %v7167_v7 = vld [vmem:[#allocation2 + $0x1e8] sm:$0xff]  ;;  %v7170_v1 = vsub.f32 %v6918_v39, %v265_v16  ;;  %v372_v21 = vmul.f32 %v7153_v14, %v7153_v14  ;;  %v7182_v16 = vld [vmem:[#allocation2 + $0x1f0] sm:$0xff] }
  0xf5   :  { %1883 = vmatprep.subr.bf16.mxu1 %v5616_v6  ;;  %11954 = vst [vmem:[#allocation43_spill] sm:$0xff] %v7163_v34  ;;  %v921_v8 = vld [vmem:[#allocation7 + $0x228] sm:$0xff]  ;;  %1691 = vmatpush2.bf16.msra.mxu0 %v5613_v36  ;;  %v5605_v6 = vcombine.low %v916_v28, %v920_v29  ;;  %v245_v26 = vadd.f32 %v7167_v7, %v7165_v35 }
  0xf6   :  { %237 = vadd.xlane.f32.xlu1 %v236_v42  ;;  %437 = vadd.xlane.f32.xlu0 %v436_v3  ;;  %v5615_v42 = vcombine.low %v925_v31, %v929_v32  ;;  %v205_v3 = vpop.xlane.xlu0 %204  ;;  %v5606_v31 = vcombine.high %v916_v28, %v920_v29  ;;  %v5608_v32 = vcombine.high %v917_v62, %v921_v8  ;;  %v208_v25 = vpop.xlane.xlu1 %207 }
  0xf7   :  { %v5607_v49 = vcombine.low %v917_v62, %v921_v8  ;;  %11955 = vst [vmem:[#allocation44_spill] sm:$0xff] %v7170_v1  ;;  %v445_v38 = vadd.f32 %v371_v55, %v370_v2  ;;  %v7177_v36 = vsub.f32 %v6920_v40, %v266_v5  ;;  %v7180_v39 = vsub.f32 %v6922_v41, %v266_v5 }
  0xf8   :  { %1884 = vmatpush2.bf16.msra.mxu1 %v5615_v42  ;;  %1692 = vmatprep.subr.bf16.mxu0 %v5606_v31  ;;  %v373_v42 = vmul.f32 %v7156_v24, %v7156_v24  ;;  %v374_v55 = vmul.f32 %v7163_v34, %v7163_v34  ;;  %v269_v41 = vmul.f32 0.00390625, %v208_v25  ;;  %v7383_v34 = vld [vmem:[#allocation7 + $0xb8] sm:$0xff] }
  0xf9   :  { %1885 = vmatprep.subr.bf16.mxu1 %v5608_v32  ;;  %11956 = vst [vmem:[#allocation45_spill] sm:$0xff] %v7177_v36  ;;  %11957 = vst [vmem:[#allocation46_spill] sm:$0xff] %v7180_v39  ;;  %1693 = vmatpush2.bf16.msra.mxu0 %v5605_v6 }
  0xfa   :  { %440 = vadd.xlane.f32.xlu1 %v439_v45  ;;  %240 = vadd.xlane.f32.xlu0 %v239_v37  ;;  %v267_v37 = vmul.f32 0.00390625, %v202_v18  ;;  %v268_v45 = vmul.f32 0.00390625, %v205_v3  ;;  %v7184_v18 = vld [vmem:[#allocation2 + $0x1f8] sm:$0xff]  ;;  %v211_v2 = vpop.xlane.xlu0 %210  ;;  %v375_v3 = vmul.f32 %v7170_v1, %v7170_v1  ;;  %v214_v5 = vpop.xlane.xlu1 %213  ;;  %v7218_v32 = vsub.f32 %v6942_v51, %v269_v41 }
  0xfb   :  { %v248_v62 = vadd.f32 %v7184_v18, %v7182_v16  ;;  %v271_v6 = vmul.f32 0.00390625, %v214_v5  ;;  %v7256_v5 = vld [vmem:[#allocation7 + $0x1f8] sm:$0xff] }
  0xfc   :  { %1886 = vmatpush2.bf16.msra.mxu1 %v5607_v49  ;;  %v7194_v40 = vsub.f32 %v6928_v44, %v267_v37  ;;  %v7199_v28 = vsub.f32 %v6932_v46, %v268_v45  ;;  %v7202_v29 = vsub.f32 %v6934_v47, %v268_v45  ;;  %v270_v49 = vmul.f32 0.00390625, %v211_v2  ;;  %11963 = vst [vmem:[#allocation52_spill] sm:$0xff] %v7218_v32 }
  0xfd   :  { %v376_v44 = vmul.f32 %v7177_v36, %v7177_v36  ;;  %v7211_v46 = vsub.f32 %v6940_v50, %v269_v41  ;;  %v451_v31 = vadd.f32 %v375_v3, %v374_v55  ;;  %v7231_v51 = vsub.f32 %v6952_v56, %v271_v6  ;;  %v7347_v36 = vld [vmem:[#allocation7 + $0xf0] sm:$0xff] }
  0xfe   :  { %243 = vadd.xlane.f32.xlu1 %v242_v11  ;;  %443 = vadd.xlane.f32.xlu0 %v442_v27  ;;  %v7191_v11 = vsub.f32 %v6926_v43, %v267_v37  ;;  %11959 = vst [vmem:[#allocation48_spill] sm:$0xff] %v7194_v40  ;;  %11960 = vst [vmem:[#allocation49_spill] sm:$0xff] %v7199_v28  ;;  %v448_v43 = vadd.f32 %v373_v42, %v372_v21 }
  0xff   :  { %11961 = vst [vmem:[#allocation50_spill] sm:$0xff] %v7202_v29  ;;  %v377_v27 = vmul.f32 %v7180_v39, %v7180_v39  ;;  %11962 = vst [vmem:[#allocation51_spill] sm:$0xff] %v7211_v46  ;;  %v379_v8 = vmul.f32 %v7194_v40, %v7194_v40  ;;  %v380_v37 = vmul.f32 %v7199_v28, %v7199_v28  ;;  %v7331_v28 = vld [vmem:[#allocation7 + $0x130] sm:$0xff]  ;;  %v7381_v39 = vld [vmem:[#allocation7 + $0x98] sm:$0xff] }
 0x100   :  { %11958 = vst [vmem:[#allocation47_spill] sm:$0xff] %v7191_v11  ;;  %v378_v47 = vmul.f32 %v7191_v11, %v7191_v11  ;;  %v381_v25 = vmul.f32 %v7202_v29, %v7202_v29  ;;  %v7225_v50 = vsub.f32 %v6944_v52, %v270_v49  ;;  %11966 = vst [vmem:[#allocation55_spill] sm:$0xff] %v7231_v51  ;;  %v7371_v11 = vld [vmem:[#allocation7 + $0xb0] sm:$0xff] }
 0x101   :  { %v382_v42 = vmul.f32 %v7211_v46, %v7211_v46  ;;  %v383_v2 = vmul.f32 %v7218_v32, %v7218_v32  ;;  %v7238_v52 = vsub.f32 %v6954_v57, %v271_v6  ;;  %v386_v3 = vmul.f32 %v7231_v51, %v7231_v51  ;;  %v7311_v51 = vld [vmem:[#allocation7 + $0x178] sm:$0xff] }
 0x102   :  { %446 = vadd.xlane.f32.xlu1 %v445_v38  ;;  %246 = vadd.xlane.f32.xlu0 %v245_v26  ;;  %11964 = vst [vmem:[#allocation53_spill] sm:$0xff] %v7225_v50  ;;  %v7228_v38 = vsub.f32 %v6946_v53, %v270_v49  ;;  %v454_v26 = vadd.f32 %v377_v27, %v376_v44  ;;  %v7250_v49 = vld [vmem:[#allocation7 + $0x1f0] sm:$0xff]  ;;  %v7252_v44 = vld [vmem:[#allocation7 + $0x1d8] sm:$0xff] }
 0x103   :  { %v457_v45 = vadd.f32 %v379_v8, %v378_v47  ;;  %v460_v21 = vadd.f32 %v381_v25, %v380_v37  ;;  %11967 = vst [vmem:[#allocation56_spill] sm:$0xff] %v7238_v52  ;;  %v384_v53 = vmul.f32 %v7225_v50, %v7225_v50  ;;  %v463_v56 = vadd.f32 %v383_v2, %v382_v42  ;;  %v668_v25 = vld [vmem:[#allocation5] sm:$0x3] }
 0x104   :  { %11965 = vst [vmem:[#allocation54_spill] sm:$0xff] %v7228_v38  ;;  %v385_v55 = vmul.f32 %v7228_v38, %v7228_v38  ;;  %v670_v47 = vlaneseq }
 0x106   :  { %249 = vadd.xlane.f32.xlu1 %v248_v62  ;;  %449 = vadd.xlane.f32.xlu0 %v448_v43  ;;  %v466_v41 = vadd.f32 %v385_v55, %v384_v53  ;;  %v387_v62 = vmul.f32 %v7238_v52, %v7238_v52  ;;  %v7248_v43 = vld [vmem:[#allocation7 + $0x1d0] sm:$0xff]  ;;  %v7260_v8 = vshrl.u32 %v670_v47, 7 }
 0x107   :  { %v5602_v27 = vcombine.high %v7248_v43, %v7250_v49 }
 0x108   :  { %v469_v57 = vadd.f32 %v387_v62, %v386_v3  ;;  %11968 = vst [vmem:[#allocation57_spill] sm:$0xff] %v7260_v8  ;;  %v7269_v42 = vsub.s32 0, %v7260_v8  ;;  %v7273_v3 = vld [vmem:[#allocation7 + $0x1b0] sm:$0xff] }
 0x109   :  { %2048 = vmatprep.subr.bf16.mxu0 %v5602_v27 }
 0x10a   :  { %452 = vadd.xlane.f32.xlu1 %v451_v31  ;;  %455 = vadd.xlane.f32.xlu0 %v454_v26  ;;  %v5604_v31 = vcombine.high %v7252_v44, %v7256_v5  ;;  %v7263_v26 = vsub.s32 1, %v7260_v8  ;;  %11970 = vst [vmem:[#allocation59_spill] sm:$0xff] %v7269_v42 }
 0x10c   :  { %2241 = vmatprep.subr.bf16.mxu1 %v5604_v31  ;;  %11969 = vst [vmem:[#allocation58_spill] sm:$0xff] %v7263_v26  ;;  %v7276_v62 = vrot.slane %v668_v25, %v7263_v26 }
 0x10e   :  { %458 = vadd.xlane.f32.xlu1 %v457_v45  ;;  %461 = vadd.xlane.f32.xlu0 %v460_v21  ;;  %v744_v21 = vld [vmem:[%s11767_s2] sm:$0x3] }
 0x10f   :  { %v7295_v8 = vrot.slane %v744_v21, %v7269_v42 }
 0x112   :  { %464 = vadd.xlane.f32.xlu1 %v463_v56  ;;  %467 = vadd.xlane.f32.xlu0 %v466_v41  ;;  %v7271_v41 = vld [vmem:[#allocation7 + $0x190] sm:$0xff] }
 0x116   :  { %470 = vadd.xlane.f32.xlu1 %v469_v57  ;;  %v7279_v57 = vrot.slane %v744_v21, %v7263_v26 }
 0x15f   :  { %v414_v6 = vpop.xlane.xlu0 %413 }
 0x160   :  { %v508_v37 = vmul.f32 0.00390625, %v414_v6  ;;  %v7288_v6 = vrot.slane %v668_v25, %v7269_v42  ;;  %v7303_v25 = vld [vmem:[#allocation7 + $0x150] sm:$0xff]  ;;  %v7309_v42 = vld [vmem:[#allocation7 + $0x158] sm:$0xff] }
 0x162   :  { %v540_v45 = vadd.f32 1e-05, %v508_v37  ;;  %v7290_v37 = vld [vmem:[#allocation7 + $0x198] sm:$0xff] }
 0x163   :  { %v417_v2 = vpop.xlane.xlu1 %416  ;;  %v217_v53 = vpop.xlane.xlu0 %216 }
 0x164   :  { %6001 = vrsqrt.f32 %v540_v45  ;;  %v509_v55 = vmul.f32 0.00390625, %v417_v2  ;;  %v272_v56 = vmul.f32 0.00390625, %v217_v53  ;;  %v7292_v45 = vld [vmem:[#allocation7 + $0x1b8] sm:$0xff] }
 0x166   :  { %v541_v27 = vadd.f32 1e-05, %v509_v55  ;;  %v7282_v31 = vsub.f32 %v6988_v0, %v272_v56  ;;  %v7285_v47 = vsub.f32 %v6990_v17, %v272_v56  ;;  %v7305_v56 = vld [vmem:[#allocation7 + $0x170] sm:$0xff]  ;;  %v7333_v17 = vld [vmem:[#allocation7 + $0x118] sm:$0xff] }
 0x167   :  { %v220_v2 = vpop.xlane.xlu1 %219  ;;  %v420_v53 = vpop.xlane.xlu0 %419  ;;  %v7335_v55 = vld [vmem:[#allocation7 + $0x138] sm:$0xff] }
 0x168   :  { %11971 = vst [vmem:[#allocation60_spill] sm:$0xff] %v7282_v31  ;;  %11972 = vst [vmem:[#allocation61_spill] sm:$0xff] %v7285_v47  ;;  %6003 = vrsqrt.f32 %v541_v27  ;;  %v273_v26 = vmul.f32 0.00390625, %v220_v2  ;;  %v510_v50 = vmul.f32 0.00390625, %v420_v53  ;;  %v388_v21 = vmul.f32 %v7282_v31, %v7282_v31  ;;  %v7321_v2 = vld [vmem:[#allocation7 + $0x110] sm:$0xff] }
 0x169   :  { %v389_v0 = vmul.f32 %v7285_v47, %v7285_v47 }
 0x16a   :  { %v7324_v53 = vsub.f32 %v7014_v9, %v273_v26  ;;  %v7327_v31 = vsub.f32 %v7016_v58, %v273_v26  ;;  %v542_v38 = vadd.f32 1e-05, %v510_v50  ;;  %v7343_v26 = vld [vmem:[#allocation7 + $0xd0] sm:$0xff] }
 0x16b   :  { %v423_v52 = vpop.xlane.xlu1 %422  ;;  %v223_v27 = vpop.xlane.xlu0 %222  ;;  %v472_v46 = vadd.f32 %v389_v0, %v388_v21  ;;  %v7349_v0 = vld [vmem:[#allocation7 + $0xd8] sm:$0xff] }
 0x16c   :  { %11973 = vst [vmem:[#allocation62_spill] sm:$0xff] %v7324_v53  ;;  %11974 = vst [vmem:[#allocation63_spill] sm:$0xff] %v7327_v31  ;;  %6005 = vrsqrt.f32 %v542_v38  ;;  %v511_v47 = vmul.f32 0.00390625, %v423_v52  ;;  %v274_v32 = vmul.f32 0.00390625, %v223_v27  ;;  %v390_v29 = vmul.f32 %v7324_v53, %v7324_v53  ;;  %v7351_v21 = vld [vmem:[#allocation7 + $0xf8] sm:$0xff] }
 0x16d   :  { %473 = vadd.xlane.f32.xlu0 %v472_v46  ;;  %v391_v58 = vmul.f32 %v7327_v31, %v7327_v31  ;;  %v7369_v31 = vld [vmem:[#allocation7 + $0x90] sm:$0xff] }
 0x16e   :  { %v543_v27 = vadd.f32 1e-05, %v511_v47  ;;  %v7362_v9 = vsub.f32 %v7020_v10, %v274_v32  ;;  %v7365_v53 = vsub.f32 %v7022_v23, %v274_v32 }
 0x16f   :  { %v226_v50 = vpop.xlane.xlu1 %225  ;;  %v426_v40 = vpop.xlane.xlu0 %425  ;;  %v475_v38 = vadd.f32 %v391_v58, %v390_v29 }
 0x170   :  { %11975 = vst [vmem:[#allocation64_spill] sm:$0xff] %v7362_v9  ;;  %11976 = vst [vmem:[#allocation65_spill] sm:$0xff] %v7365_v53  ;;  %6007 = vrsqrt.f32 %v543_v27  ;;  %v275_v32 = vmul.f32 0.00390625, %v226_v50  ;;  %v512_v47 = vmul.f32 0.00390625, %v426_v40  ;;  %v392_v46 = vmul.f32 %v7362_v9, %v7362_v9  ;;  %v7400_v9 = vld [vmem:[#allocation7 + $0x50] sm:$0xff] }
 0x171   :  { %v6002_v29 = vpop.eup %6001  ;;  %476 = vadd.xlane.f32.xlu1 %v475_v38  ;;  %v393_v58 = vmul.f32 %v7365_v53, %v7365_v53  ;;  %v7402_v53 = vld [vmem:[#allocation7 + $0x70] sm:$0xff] }
 0x172   :  { %v7394_v50 = vsub.f32 %v7042_v63, %v275_v32  ;;  %v7397_v23 = vsub.f32 %v7044_v12, %v275_v32  ;;  %v544_v10 = vadd.f32 1e-05, %v512_v47  ;;  %v605_v38 = vmul.f32 %v6002_v29, %v6976_v61  ;;  %11979 = vst [vmem:[#allocation68_spill] sm:$0xff] %v7402_v53 }
 0x173   :  { %v429_v52 = vpop.xlane.xlu1 %428  ;;  %v229_v1 = vpop.xlane.xlu0 %228  ;;  %v478_v14 = vadd.f32 %v393_v58, %v392_v46  ;;  %v604_v27 = vmul.f32 %v6002_v29, %v6973_v60 }
 0x174   :  { %11977 = vst [vmem:[#allocation66_spill] sm:$0xff] %v7394_v50  ;;  %11978 = vst [vmem:[#allocation67_spill] sm:$0xff] %v7397_v23  ;;  %6009 = vrsqrt.f32 %v544_v10  ;;  %v513_v12 = vmul.f32 0.00390625, %v429_v52  ;;  %v276_v32 = vmul.f32 0.00390625, %v229_v1  ;;  %v394_v61 = vmul.f32 %v7394_v50, %v7394_v50  ;;  %v11982_v52 = vld [vmem:[#allocation19_spill] sm:$0xff] }
 0x175   :  { %v6004_v47 = vpop.eup %6003  ;;  %479 = vadd.xlane.f32.xlu0 %v478_v14  ;;  %v395_v24 = vmul.f32 %v7397_v23, %v7397_v23  ;;  %v681_v46 = vmul.f32 %v7276_v62, %v605_v38  ;;  %v680_v60 = vmul.f32 %v7288_v6, %v604_v27  ;;  %v11983_v38 = vld [vmem:[#allocation18_spill] sm:$0xff] }
 0x176   :  { %v545_v58 = vadd.f32 1e-05, %v513_v12  ;;  %v7418_v10 = vsub.f32 %v7063_v48, %v276_v32  ;;  %v7421_v1 = vsub.f32 %v7065_v33, %v276_v32  ;;  %v607_v40 = vmul.f32 %v6004_v47, %v11982_v52 }
 0x177   :  { %v232_v14 = vpop.xlane.xlu1 %231  ;;  %v432_v63 = vpop.xlane.xlu0 %431  ;;  %v481_v50 = vadd.f32 %v395_v24, %v394_v61  ;;  %v757_v23 = vadd.f32 %v7279_v57, %v681_v46  ;;  %v606_v59 = vmul.f32 %v6004_v47, %v11983_v38  ;;  %v756_v47 = vadd.f32 %v7295_v8, %v680_v60 }
 0x178   :  { %11980 = vst [vmem:[#allocation69_spill] sm:$0xff] %v7418_v10  ;;  %11981 = vst [vmem:[#allocation70_spill] sm:$0xff] %v7421_v1  ;;  %6011 = vrsqrt.f32 %v545_v58  ;;  %v277_v12 = vmul.f32 0.00390625, %v232_v14  ;;  %v514_v29 = vmul.f32 0.00390625, %v432_v63  ;;  %v396_v48 = vmul.f32 %v7418_v10, %v7418_v10  ;;  %v11984_v58 = vld [vmem:[#allocation30_spill] sm:$0xff]  ;;  %v11985_v14 = vld [vmem:[#allocation17_spill] sm:$0xff] }
 0x179   :  { %v6006_v33 = vpop.eup %6005  ;;  %482 = vadd.xlane.f32.xlu1 %v481_v50  ;;  %v397_v32 = vmul.f32 %v7421_v1, %v7421_v1  ;;  %v683_v24 = vmul.f32 %v7276_v62, %v607_v40  ;;  %v682_v61 = vmul.f32 %v7288_v6, %v606_v59 }
 0x17a   :  { %v7436_v46 = vsub.f32 %v7078_v13, %v277_v12  ;;  %v7439_v52 = vsub.f32 %v11984_v58, %v277_v12  ;;  %v546_v63 = vadd.f32 1e-05, %v514_v29  ;;  %v609_v38 = vmul.f32 %v6006_v33, %v11985_v14 }
 0x17b   :  { %v435_v27 = vpop.xlane.xlu1 %434  ;;  %v235_v50 = vpop.xlane.xlu0 %234  ;;  %v484_v10 = vadd.f32 %v397_v32, %v396_v48  ;;  %v759_v1 = vadd.f32 %v7279_v57, %v683_v24  ;;  %v758_v40 = vadd.f32 %v7295_v8, %v682_v61  ;;  %v608_v59 = vmul.f32 %v6006_v33, %v11986_v4  ;;  %v11988_v33 = vld [vmem:[#allocation21_spill] sm:$0xff] }
 0x17c   :  { %6013 = vrsqrt.f32 %v546_v63  ;;  %v515_v60 = vmul.f32 0.00390625, %v435_v27  ;;  %v278_v53 = vmul.f32 0.00390625, %v235_v50  ;;  %v398_v13 = vmul.f32 %v7436_v46, %v7436_v46  ;;  %v11989_v63 = vld [vmem:[#allocation20_spill] sm:$0xff] }
 0x17d   :  { %v6008_v12 = vpop.eup %6007  ;;  %485 = vadd.xlane.f32.xlu0 %v484_v10  ;;  %v7447_v29 = vpack.c.bf16 %v759_v1, %v757_v23  ;;  %v7449_v58 = vpack.c.bf16 %v758_v40, %v756_v47  ;;  %v399_v48 = vmul.f32 %v7439_v52, %v7439_v52  ;;  %v685_v32 = vmul.f32 %v7276_v62, %v609_v38 }
 0x17e   :  { %v547_v24 = vadd.f32 1e-05, %v515_v60  ;;  %v7455_v4 = vsub.f32 %v7095_v20, %v278_v53  ;;  %v7458_v27 = vsub.f32 %v7097_v30, %v278_v53  ;;  %v611_v61 = vmul.f32 %v6008_v12, %v11988_v33 }
 0x17f   :  { %11987 = vst [vmem:[#allocation19_spill] sm:$0xff] %v7449_v58  ;;  %1694 = vmatprep.mubr.bf16.mxu0 %v7447_v29  ;;  %1887 = vmatprep.mubr.bf16.mxu1 %v7447_v29  ;;  %v238_v23 = vpop.xlane.xlu1 %237  ;;  %v438_v10 = vpop.xlane.xlu0 %437  ;;  %v487_v1 = vadd.f32 %v399_v48, %v398_v13  ;;  %v761_v47 = vadd.f32 %v7279_v57, %v685_v32  ;;  %v11991_v32 = vld [vmem:[#allocation34_spill] sm:$0xff] }
 0x180   :  { %v610_v14 = vmul.f32 %v6008_v12, %v11989_v63  ;;  %6015 = vrsqrt.f32 %v547_v24  ;;  %v279_v38 = vmul.f32 0.00390625, %v238_v23  ;;  %1695 = vmatmul.mubr.bf16.vlgmr.msra.gmra.mxu0 %v7449_v58  ;;  %1888 = vmatmul.mubr.bf16.vlgmr.msra.gmra.mxu1 %v7449_v58  ;;  %v516_v20 = vmul.f32 0.00390625, %v438_v10  ;;  %v11990_v12 = vld [vmem:[#allocation33_spill] sm:$0xff]  ;;  %v11992_v23 = vld [vmem:[#allocation23_spill] sm:$0xff] }
 0x181   :  { %v400_v30 = vmul.f32 %v7455_v4, %v7455_v4  ;;  %v6010_v53 = vpop.eup %6009  ;;  %488 = vadd.xlane.f32.xlu1 %v487_v1  ;;  %v401_v50 = vmul.f32 %v7458_v27, %v7458_v27  ;;  %v687_v40 = vmul.f32 %v7276_v62, %v611_v61  ;;  %v684_v60 = vmul.f32 %v7288_v6, %v608_v59 }
 0x182   :  { %v686_v13 = vmul.f32 %v7288_v6, %v610_v14  ;;  %v7475_v48 = vsub.f32 %v11990_v12, %v279_v38  ;;  %v7478_v24 = vsub.f32 %v11991_v32, %v279_v38  ;;  %v548_v33 = vadd.f32 1e-05, %v516_v20 }
 0x183   :  { %v613_v10 = vmul.f32 %v6010_v53, %v11992_v23  ;;  %v11993_v1 = vcombine.low %v7248_v43, %v7250_v49  ;;  %v11994_v61 = vcombine.low %v7252_v44, %v7256_v5  ;;  %v441_v59 = vpop.xlane.xlu1 %440  ;;  %v241_v63 = vpop.xlane.xlu0 %240  ;;  %v490_v14 = vadd.f32 %v401_v50, %v400_v30 }
 0x184   :  { %v763_v12 = vadd.f32 %v7279_v57, %v687_v40  ;;  %v760_v58 = vadd.f32 %v7295_v8, %v684_v60  ;;  %v762_v38 = vadd.f32 %v7295_v8, %v686_v13  ;;  %v11995_v20 = vcombine.high %v7271_v41, %v7273_v3 }
 0x185   :  { %2049 = vmatpush1.bf16.msra.mxu0 %v11993_v1  ;;  %2242 = vmatpush1.bf16.msra.mxu1 %v11994_v61  ;;  %6017 = vrsqrt.f32 %v548_v33  ;;  %v517_v43 = vmul.f32 0.00390625, %v441_v59  ;;  %v280_v49 = vmul.f32 0.00390625, %v241_v63  ;;  %v402_v44 = vmul.f32 %v7475_v48, %v7475_v48  ;;  %v6012_v30 = vpop.eup %6011  ;;  %v11997_v1 = vld [vmem:[#allocation25_spill] sm:$0xff]  ;;  %v12000_v63 = vld [vmem:[#allocation22_spill] sm:$0xff] }
 0x186   :  { %2050 = vmatprep.subr.bf16.mxu0 %v11995_v20  ;;  %v11996_v5 = vcombine.high %v7290_v37, %v7292_v45  ;;  %491 = vadd.xlane.f32.xlu0 %v490_v14  ;;  %v7498_v50 = vpack.c.bf16 %v763_v12, %v761_v47  ;;  %v7500_v40 = vpack.c.bf16 %v762_v38, %v760_v58  ;;  %v12001_v20 = vld [vmem:[#allocation24_spill] sm:$0xff] }
 0x187   :  { %v403_v60 = vmul.f32 %v7478_v24, %v7478_v24  ;;  %v689_v13 = vmul.f32 %v7276_v62, %v613_v10  ;;  %v549_v32 = vadd.f32 1e-05, %v517_v43  ;;  %v7506_v33 = vsub.f32 %v7120_v54, %v280_v49  ;;  %v244_v10 = vpop.xlane.xlu1 %243  ;;  %v444_v54 = vpop.xlane.xlu0 %443 }
 0x188   :  { %2243 = vmatprep.subr.bf16.mxu1 %v11996_v5  ;;  %v7509_v23 = vsub.f32 %v7122_v15, %v280_v49  ;;  %v615_v61 = vmul.f32 %v6012_v30, %v11997_v1  ;;  %v11998_v47 = vcombine.low %v7271_v41, %v7273_v3  ;;  %v11999_v58 = vcombine.low %v7290_v37, %v7292_v45 }
 0x189   :  { %1704 = vmatprep.mubr.bf16.mxu0 %v7498_v50  ;;  %1897 = vmatprep.mubr.bf16.mxu1 %v7498_v50  ;;  %v493_v59 = vadd.f32 %v403_v60, %v402_v44  ;;  %v765_v15 = vadd.f32 %v7279_v57, %v689_v13  ;;  %v612_v14 = vmul.f32 %v6010_v53, %v12000_v63  ;;  %6019 = vrsqrt.f32 %v549_v32  ;;  %v6014_v37 = vpop.eup %6013  ;;  %v12002_v60 = vld [vmem:[#allocation27_spill] sm:$0xff] }
 0x18a   :  { %2051 = vmatpush1.bf16.msra.mxu0 %v11998_v47  ;;  %2244 = vmatpush1.bf16.msra.mxu1 %v11999_v58  ;;  %v281_v12 = vmul.f32 0.00390625, %v244_v10  ;;  %v518_v41 = vmul.f32 0.00390625, %v444_v54  ;;  %v404_v3 = vmul.f32 %v7506_v33, %v7506_v33  ;;  %v405_v45 = vmul.f32 %v7509_v23, %v7509_v23 }
 0x18b   :  { %1705 = vmatmul.mubr.bf16.gmra.mxu0 %v7500_v40  ;;  %1898 = vmatmul.mubr.bf16.gmra.mxu1 %v7500_v40  ;;  %v691_v38 = vmul.f32 %v7276_v62, %v615_v61  ;;  %v614_v43 = vmul.f32 %v6012_v30, %v12001_v20  ;;  %v688_v53 = vmul.f32 %v7288_v6, %v612_v14  ;;  %v447_v30 = vpop.xlane.xlu1 %446  ;;  %v247_v61 = vpop.xlane.xlu0 %246 }
 0x18c   :  { %494 = vadd.xlane.f32.xlu1 %v493_v59  ;;  %v7532_v49 = vsub.f32 %v7139_v22, %v281_v12  ;;  %v7535_v44 = vsub.f32 %v7141_v19, %v281_v12  ;;  %v550_v5 = vadd.f32 1e-05, %v518_v41  ;;  %v617_v13 = vmul.f32 %v6014_v37, %v12002_v60 }
 0x18d   :  { %v12003_v32 = vcombine.high %v7303_v25, %v7305_v56  ;;  %v12004_v1 = vcombine.high %v7309_v42, %v7311_v51  ;;  %v496_v47 = vadd.f32 %v405_v45, %v404_v3  ;;  %v767_v22 = vadd.f32 %v7279_v57, %v691_v38  ;;  %v6016_v41 = vpop.eup %6015 }
 0x18e   :  { %v690_v58 = vmul.f32 %v7288_v6, %v614_v43  ;;  %v764_v19 = vadd.f32 %v7295_v8, %v688_v53  ;;  %v12005_v10 = vcombine.low %v7303_v25, %v7305_v56  ;;  %6021 = vrsqrt.f32 %v550_v5 }
 0x18f   :  { %2052 = vmatprep.subr.bf16.mxu0 %v12003_v32  ;;  %2245 = vmatprep.subr.bf16.mxu1 %v12004_v1  ;;  %v519_v54 = vmul.f32 0.00390625, %v447_v30  ;;  %v282_v59 = vmul.f32 0.00390625, %v247_v61  ;;  %v406_v63 = vmul.f32 %v7532_v49, %v7532_v49  ;;  %v12006_v14 = vcombine.low %v7309_v42, %v7311_v51  ;;  %v12008_v42 = vld [vmem:[#allocation29_spill] sm:$0xff]  ;;  %v250_v53 = vpop.xlane.xlu1 %249  ;;  %v450_v60 = vpop.xlane.xlu0 %449 }
 0x190   :  { %2053 = vmatpush1.bf16.msra.mxu0 %v12005_v10  ;;  %v12007_v12 = vcombine.high %v7321_v2, %v7331_v28  ;;  %497 = vadd.xlane.f32.xlu0 %v496_v47  ;;  %v7558_v3 = vpack.c.bf16 %v767_v22, %v765_v15  ;;  %v766_v25 = vadd.f32 %v7295_v8, %v690_v58  ;;  %v520_v32 = vmul.f32 0.00390625, %v450_v60 }
 0x191   :  { %2246 = vmatpush1.bf16.msra.mxu1 %v12006_v14  ;;  %v407_v56 = vmul.f32 %v7535_v44, %v7535_v44  ;;  %v693_v45 = vmul.f32 %v7276_v62, %v617_v13  ;;  %v551_v38 = vadd.f32 1e-05, %v519_v54  ;;  %v7565_v20 = vsub.f32 %v7165_v35, %v282_v59 }
 0x192   :  { %2054 = vmatprep.subr.bf16.mxu0 %v12007_v12  ;;  %v7568_v51 = vsub.f32 %v7167_v7, %v282_v59  ;;  %v619_v43 = vmul.f32 %v6016_v41, %v12008_v42  ;;  %v12009_v15 = vcombine.high %v7333_v17, %v7335_v55  ;;  %1714 = vmatprep.mubr.bf16.mxu0 %v7558_v3  ;;  %v283_v7 = vmul.f32 0.00390625, %v250_v53  ;;  %v6018_v47 = vpop.eup %6017 }
 0x193   :  { %1907 = vmatprep.mubr.bf16.mxu1 %v7558_v3  ;;  %v7576_v5 = vpack.c.bf16 %v766_v25, %v764_v19  ;;  %v499_v13 = vadd.f32 %v407_v56, %v406_v63  ;;  %v769_v35 = vadd.f32 %v7279_v57, %v693_v45  ;;  %6023 = vrsqrt.f32 %v551_v38  ;;  %v12012_v19 = vld [vmem:[#allocation26_spill] sm:$0xff]  ;;  %v453_v63 = vpop.xlane.xlu1 %452  ;;  %v456_v14 = vpop.xlane.xlu0 %455 }
 0x194   :  { %2247 = vmatprep.subr.bf16.mxu1 %v12009_v15  ;;  %v408_v1 = vmul.f32 %v7565_v20, %v7565_v20  ;;  %v12010_v30 = vcombine.low %v7321_v2, %v7331_v28  ;;  %v12011_v61 = vcombine.low %v7333_v17, %v7335_v55  ;;  %v409_v22 = vmul.f32 %v7568_v51, %v7568_v51  ;;  %v12013_v17 = vld [vmem:[#allocation28_spill] sm:$0xff] }
 0x195   :  { %1715 = vmatmul.mubr.bf16.gmra.mxu0 %v7576_v5  ;;  %1908 = vmatmul.mubr.bf16.gmra.mxu1 %v7576_v5  ;;  %v695_v58 = vmul.f32 %v7276_v62, %v619_v43  ;;  %v616_v10 = vmul.f32 %v6014_v37, %v12012_v19  ;;  %v7594_v54 = vsub.f32 %v7182_v16, %v283_v7  ;;  %v552_v55 = vadd.f32 1e-05, %v520_v32  ;;  %v12015_v16 = vld [vmem:[#allocation32_spill] sm:$0xff]  ;;  %v12022_v19 = vld [vmem:[#allocation31_spill] sm:$0xff] }
 0x196   :  { %2055 = vmatpush1.bf16.msra.mxu0 %v12010_v30  ;;  %2248 = vmatpush1.bf16.msra.mxu1 %v12011_v61  ;;  %v7597_v28 = vsub.f32 %v7184_v18, %v283_v7  ;;  %v618_v2 = vmul.f32 %v6016_v41, %v12013_v17  ;;  %v12014_v59 = vcombine.high %v7343_v26, %v7347_v36  ;;  %v521_v45 = vmul.f32 0.00390625, %v453_v63  ;;  %v6020_v15 = vpop.eup %6019 }
 0x197   :  { %500 = vadd.xlane.f32.xlu1 %v499_v13  ;;  %v502_v12 = vadd.f32 %v409_v22, %v408_v1  ;;  %v771_v25 = vadd.f32 %v7279_v57, %v695_v58  ;;  %v692_v37 = vmul.f32 %v7288_v6, %v616_v10  ;;  %v621_v56 = vmul.f32 %v6018_v47, %v12015_v16  ;;  %v462_v61 = vpop.xlane.xlu0 %461 }
 0x198   :  { %2056 = vmatprep.subr.bf16.mxu0 %v12014_v59  ;;  %v12016_v18 = vcombine.high %v7349_v0, %v7351_v21  ;;  %6025 = vrsqrt.f32 %v552_v55  ;;  %v522_v41 = vmul.f32 0.00390625, %v456_v14  ;;  %v694_v38 = vmul.f32 %v7288_v6, %v618_v2 }
 0x199   :  { %v12017_v42 = vcombine.low %v7343_v26, %v7347_v36  ;;  %v12018_v43 = vcombine.low %v7349_v0, %v7351_v21  ;;  %503 = vadd.xlane.f32.xlu0 %v502_v12  ;;  %v7616_v53 = vpack.c.bf16 %v771_v25, %v769_v35  ;;  %v768_v60 = vadd.f32 %v7295_v8, %v692_v37  ;;  %v12019_v26 = vld [vmem:[#allocation36_spill] sm:$0xff]  ;;  %v459_v35 = vpop.xlane.xlu1 %458  ;;  %v12025_v25 = vld [vmem:[#allocation35_spill] sm:$0xff] }
 0x19a   :  { %2249 = vmatprep.subr.bf16.mxu1 %v12016_v18  ;;  %v410_v13 = vmul.f32 %v7594_v54, %v7594_v54  ;;  %v411_v7 = vmul.f32 %v7597_v28, %v7597_v28  ;;  %v553_v32 = vadd.f32 1e-05, %v521_v45  ;;  %v554_v1 = vadd.f32 1e-05, %v522_v41  ;;  %v12026_v37 = vld [vmem:[#allocation68_spill] sm:$0xff] }
 0x19b   :  { %2057 = vmatpush1.bf16.msra.mxu0 %v12017_v42  ;;  %2250 = vmatpush1.bf16.msra.mxu1 %v12018_v43  ;;  %v770_v36 = vadd.f32 %v7295_v8, %v694_v38  ;;  %v623_v30 = vmul.f32 %v6020_v15, %v12019_v26  ;;  %v12020_v0 = vcombine.high %v7369_v31, %v7371_v11  ;;  %v523_v55 = vmul.f32 0.00390625, %v459_v35  ;;  %v6022_v14 = vpop.eup %6021  ;;  %v468_v45 = vpop.xlane.xlu0 %467  ;;  %v12029_v43 = vld [vmem:[#allocation37_spill] sm:$0xff] }
 0x19c   :  { %v12021_v21 = vcombine.high %v7381_v39, %v7383_v34  ;;  %1724 = vmatprep.mubr.bf16.mxu0 %v7616_v53  ;;  %1917 = vmatprep.mubr.bf16.mxu1 %v7616_v53  ;;  %v505_v22 = vadd.f32 %v411_v7, %v410_v13  ;;  %v697_v58 = vmul.f32 %v7276_v62, %v621_v56  ;;  %6027 = vrsqrt.f32 %v553_v32 }
 0x19d   :  { %2058 = vmatprep.subr.bf16.mxu0 %v12020_v0  ;;  %v620_v10 = vmul.f32 %v6018_v47, %v12022_v19  ;;  %v7635_v17 = vpack.c.bf16 %v770_v36, %v768_v60  ;;  %v524_v2 = vmul.f32 0.00390625, %v462_v61  ;;  %v12023_v59 = vcombine.low %v7369_v31, %v7371_v11  ;;  %v465_v18 = vpop.xlane.xlu1 %464  ;;  %v867_v36 = vld [vmem:[#allocation7 + $0x78] sm:$0xff]  ;;  %v12031_v61 = vld [vmem:[#allocation40_spill] sm:$0xff] }
 0x19e   :  { %2251 = vmatprep.subr.bf16.mxu1 %v12021_v21  ;;  %v12024_v63 = vcombine.low %v7381_v39, %v7383_v34  ;;  %6029 = vrsqrt.f32 %v554_v1  ;;  %506 = vadd.xlane.f32.xlu1 %v505_v22  ;;  %v699_v12 = vmul.f32 %v7276_v62, %v623_v30  ;;  %v622_v47 = vmul.f32 %v6020_v15, %v12025_v25  ;;  %v12028_v39 = vld [vmem:[#allocation38_spill] sm:$0xff]  ;;  %v858_v25 = vld [vmem:[#allocation7 + $0x30] sm:$0xff] }
 0x19f   :  { %2059 = vmatpush1.bf16.msra.mxu0 %v12023_v59  ;;  %v12027_v16 = vcombine.high %v7400_v9, %v12026_v37  ;;  %v555_v56 = vadd.f32 1e-05, %v523_v55  ;;  %1918 = vmatmul.mubr.bf16.gmra.mxu1 %v7635_v17  ;;  %v556_v11 = vadd.f32 1e-05, %v524_v2  ;;  %v696_v34 = vmul.f32 %v7288_v6, %v620_v10  ;;  %v863_v1 = vld [vmem:[#allocation7 + $0x58] sm:$0xff]  ;;  %v854_v59 = vld [vmem:[#allocation7 + $0x10] sm:$0xff] }
 0x1a0   :  { %2252 = vmatpush1.bf16.msra.mxu1 %v12024_v63  ;;  %1725 = vmatmul.mubr.bf16.gmra.mxu0 %v7635_v17  ;;  %v625_v31 = vmul.f32 %v6022_v14, %v12028_v39  ;;  %v773_v41 = vadd.f32 %v7279_v57, %v697_v58  ;;  %v775_v38 = vadd.f32 %v7279_v57, %v699_v12  ;;  %v525_v60 = vmul.f32 0.00390625, %v465_v18  ;;  %v6024_v26 = vpop.eup %6023  ;;  %v12032_v58 = vld [vmem:[#allocation39_spill] sm:$0xff] }
 0x1a1   :  { %2060 = vmatprep.subr.bf16.mxu0 %v12027_v16  ;;  %v698_v42 = vmul.f32 %v7288_v6, %v622_v47  ;;  %v624_v15 = vmul.f32 %v6022_v14, %v12029_v43  ;;  %6031 = vrsqrt.f32 %v555_v56  ;;  %v526_v13 = vmul.f32 0.00390625, %v468_v45  ;;  %v855_v47 = vld [vmem:[#allocation7 + $0x18] sm:$0xff]  ;;  %v12034_v43 = vld [vmem:[#allocation41_spill] sm:$0xff] }
 0x1a2   :  { %v772_v7 = vadd.f32 %v7295_v8, %v696_v34  ;;  %v12030_v32 = vcombine.low %v7400_v9, %v12026_v37  ;;  %6033 = vrsqrt.f32 %v556_v11  ;;  %v7660_v30 = vpack.c.bf16 %v775_v38, %v773_v41  ;;  %v471_v9 = vpop.xlane.xlu1 %470  ;;  %v859_v37 = vld [vmem:[#allocation7 + $0x38] sm:$0xff]  ;;  %v974_v38 = vld [vmem:[#allocation7 + $0x3d0] sm:$0xff] }
 0x1a3   :  { %v774_v0 = vadd.f32 %v7295_v8, %v698_v42  ;;  %v701_v21 = vmul.f32 %v7276_v62, %v625_v31  ;;  %v557_v35 = vadd.f32 1e-05, %v525_v60  ;;  %v627_v22 = vmul.f32 %v6024_v26, %v12031_v61  ;;  %v12033_v45 = vld [vmem:[#allocation42_spill] sm:$0xff]  ;;  %v978_v42 = vld [vmem:[#allocation7 + $0x3f0] sm:$0xff] }
 0x1a4   :  { %2061 = vmatpush1.bf16.msra.mxu0 %v12030_v32  ;;  %v626_v19 = vmul.f32 %v6024_v26, %v12032_v58  ;;  %1734 = vmatprep.mubr.bf16.mxu0 %v7660_v30  ;;  %v700_v55 = vmul.f32 %v7288_v6, %v624_v15  ;;  %v5555_v2 = vcombine.low %v863_v1, %v867_v36  ;;  %v527_v63 = vmul.f32 0.00390625, %v471_v9  ;;  %v979_v61 = vld [vmem:[#allocation7 + $0x3f8] sm:$0xff] }
 0x1a5   :  { %1927 = vmatprep.mubr.bf16.mxu1 %v7660_v30  ;;  %v7668_v10 = vpack.c.bf16 %v774_v0, %v772_v7  ;;  %6035 = vrsqrt.f32 %v557_v35  ;;  %v703_v14 = vmul.f32 %v7276_v62, %v627_v22  ;;  %v6026_v16 = vpop.eup %6025  ;;  %v558_v56 = vadd.f32 1e-05, %v526_v13  ;;  %v975_v35 = vld [vmem:[#allocation7 + $0x3d8] sm:$0xff] }
 0x1a6   :  { %v702_v12 = vmul.f32 %v7288_v6, %v626_v19  ;;  %v777_v11 = vadd.f32 %v7279_v57, %v701_v21  ;;  %v5556_v34 = vcombine.high %v863_v1, %v867_v36  ;;  %v559_v39 = vadd.f32 1e-05, %v527_v63  ;;  %v12035_v19 = vld [vmem:[#allocation44_spill] sm:$0xff]  ;;  %v970_v63 = vld [vmem:[#allocation7 + $0x3b0] sm:$0xff] }
 0x1a7   :  { %1928 = vmatmul.mubr.bf16.gmra.mxu1 %v7668_v10  ;;  %v779_v31 = vadd.f32 %v7279_v57, %v703_v14  ;;  %v629_v41 = vmul.f32 %v6026_v16, %v12033_v45  ;;  %v628_v15 = vmul.f32 %v6026_v16, %v12034_v43  ;;  %v5545_v60 = vcombine.low %v854_v59, %v858_v25 }
 0x1a8   :  { %1735 = vmatmul.mubr.bf16.gmra.mxu0 %v7668_v10  ;;  %v778_v18 = vadd.f32 %v7295_v8, %v702_v12  ;;  %2253 = vmatprep.subr.bf16.mxu1 %v5556_v34  ;;  %v5546_v13 = vcombine.high %v854_v59, %v858_v25  ;;  %v5548_v7 = vcombine.high %v855_v47, %v859_v37  ;;  %6037 = vrsqrt.f32 %v559_v39  ;;  %v966_v59 = vld [vmem:[#allocation7 + $0x390] sm:$0xff]  ;;  %v12037_v12 = vld [vmem:[#allocation46_spill] sm:$0xff] }
 0x1a9   :  { %v7680_v32 = vpack.c.bf16 %v779_v31, %v777_v11  ;;  %v776_v1 = vadd.f32 %v7295_v8, %v700_v55  ;;  %2254 = vmatpush1.bf16.msra.mxu1 %v5555_v2  ;;  %v5547_v36 = vcombine.low %v855_v47, %v859_v37  ;;  %v6028_v26 = vpop.eup %6027  ;;  %v705_v0 = vmul.f32 %v7276_v62, %v629_v41  ;;  %v12036_v55 = vld [vmem:[#allocation43_spill] sm:$0xff] }
 0x1aa   :  { %2062 = vmatprep.subr.bf16.mxu0 %v5546_v13  ;;  %2255 = vmatprep.subr.bf16.mxu1 %v5548_v7  ;;  %v5666_v21 = vcombine.high %v974_v38, %v978_v42  ;;  %v631_v9 = vmul.f32 %v6028_v26, %v12035_v19  ;;  %v630_v2 = vmul.f32 %v6028_v26, %v12036_v55  ;;  %6039 = vrsqrt.f32 %v558_v56 }
 0x1ab   :  { %v6030_v22 = vpop.eup %6029  ;;  %1744 = vmatprep.mubr.bf16.mxu0 %v7680_v32  ;;  %1937 = vmatprep.mubr.bf16.mxu1 %v7680_v32  ;;  %v7686_v58 = vpack.c.bf16 %v778_v18, %v776_v1  ;;  %v704_v14 = vmul.f32 %v7288_v6, %v628_v15  ;;  %v5665_v47 = vcombine.low %v974_v38, %v978_v42  ;;  %v12038_v42 = vld [vmem:[#allocation48_spill] sm:$0xff]  ;;  %v12039_v15 = vld [vmem:[#allocation47_spill] sm:$0xff] }
 0x1ac   :  { %v633_v25 = vmul.f32 %v6030_v22, %v12037_v12  ;;  %2063 = vmatpush1.bf16.msra.mxu0 %v5545_v60  ;;  %v707_v37 = vmul.f32 %v7276_v62, %v631_v9  ;;  %v706_v16 = vmul.f32 %v7288_v6, %v630_v2  ;;  %v5668_v11 = vcombine.high %v975_v35, %v979_v61  ;;  %v12042_v2 = vld [vmem:[#allocation52_spill] sm:$0xff] }
 0x1ad   :  { %2256 = vmatpush1.bf16.msra.mxu1 %v5547_v36  ;;  %2064 = vmatprep.subr.bf16.mxu0 %v5666_v21  ;;  %v781_v39 = vadd.f32 %v7279_v57, %v705_v0  ;;  %v5667_v18 = vcombine.low %v975_v35, %v979_v61  ;;  %v5658_v56 = vcombine.high %v966_v59, %v970_v63  ;;  %v12040_v21 = vld [vmem:[#allocation45_spill] sm:$0xff]  ;;  %v12041_v61 = vld [vmem:[#allocation50_spill] sm:$0xff] }
 0x1ae   :  { %v6032_v34 = vpop.eup %6031  ;;  %v709_v31 = vmul.f32 %v7276_v62, %v633_v25  ;;  %v783_v41 = vadd.f32 %v7279_v57, %v707_v37  ;;  %v782_v38 = vadd.f32 %v7295_v8, %v706_v16  ;;  %v5657_v13 = vcombine.low %v966_v59, %v970_v63  ;;  %2257 = vmatprep.subr.bf16.mxu1 %v5668_v11  ;;  %v967_v63 = vld [vmem:[#allocation7 + $0x398] sm:$0xff]  ;;  %v958_v11 = vld [vmem:[#allocation7 + $0x350] sm:$0xff] }
 0x1af   :  { %v6034_v45 = vpop.eup %6033  ;;  %1938 = vmatmul.mubr.bf16.gmra.mxu1 %v7686_v58  ;;  %v635_v43 = vmul.f32 %v6032_v34, %v12038_v42  ;;  %v634_v60 = vmul.f32 %v6032_v34, %v12039_v15  ;;  %v780_v1 = vadd.f32 %v7295_v8, %v704_v14  ;;  %v632_v35 = vmul.f32 %v6030_v22, %v12040_v21  ;;  %v971_v14 = vld [vmem:[#allocation7 + $0x3b8] sm:$0xff]  ;;  %v962_v34 = vld [vmem:[#allocation7 + $0x370] sm:$0xff] }
 0x1b0   :  { %1745 = vmatmul.mubr.bf16.gmra.mxu0 %v7686_v58  ;;  %v7702_v7 = vpack.c.bf16 %v783_v41, %v781_v39  ;;  %v785_v0 = vadd.f32 %v7279_v57, %v709_v31  ;;  %v637_v19 = vmul.f32 %v6034_v45, %v12041_v61  ;;  %v5659_v37 = vcombine.low %v967_v63, %v971_v14  ;;  %v954_v15 = vld [vmem:[#allocation7 + $0x330] sm:$0xff] }
 0x1b1   :  { %2065 = vmatpush2.bf16.msra.mxu0 %v5665_v47  ;;  %v711_v36 = vmul.f32 %v7276_v62, %v635_v43  ;;  %2258 = vmatpush2.bf16.msra.mxu1 %v5667_v18  ;;  %v7711_v9 = vpack.c.bf16 %v782_v38, %v780_v1  ;;  %v710_v12 = vmul.f32 %v7288_v6, %v634_v60  ;;  %v959_v18 = vld [vmem:[#allocation7 + $0x358] sm:$0xff]  ;;  %v12044_v38 = vld [vmem:[#allocation51_spill] sm:$0xff]  ;;  %v950_v43 = vld [vmem:[#allocation7 + $0x310] sm:$0xff] }
 0x1b2   :  { %v6036_v26 = vpop.eup %6035  ;;  %2066 = vmatprep.subr.bf16.mxu0 %v5658_v56  ;;  %1754 = vmatprep.mubr.bf16.mxu0 %v7702_v7  ;;  %v708_v47 = vmul.f32 %v7288_v6, %v632_v35  ;;  %v5660_v16 = vcombine.high %v967_v63, %v971_v14  ;;  %v713_v31 = vmul.f32 %v7276_v62, %v637_v19  ;;  %v963_v56 = vld [vmem:[#allocation7 + $0x378] sm:$0xff] }
 0x1b3   :  { %1947 = vmatprep.mubr.bf16.mxu1 %v7702_v7  ;;  %v787_v55 = vadd.f32 %v7279_v57, %v711_v36  ;;  %v639_v59 = vmul.f32 %v6036_v26, %v12042_v2  ;;  %v786_v41 = vadd.f32 %v7295_v8, %v710_v12  ;;  %v638_v42 = vmul.f32 %v6036_v26, %v12044_v38  ;;  %v951_v19 = vld [vmem:[#allocation7 + $0x318] sm:$0xff]  ;;  %v942_v12 = vld [vmem:[#allocation7 + $0x2d0] sm:$0xff] }
 0x1b4   :  { %2259 = vmatprep.subr.bf16.mxu1 %v5660_v16  ;;  %v5649_v1 = vcombine.low %v958_v11, %v962_v34  ;;  %v784_v36 = vadd.f32 %v7295_v8, %v708_v47  ;;  %v5650_v35 = vcombine.high %v958_v11, %v962_v34  ;;  %v5651_v61 = vcombine.low %v959_v18, %v963_v56  ;;  %v946_v38 = vld [vmem:[#allocation7 + $0x2f0] sm:$0xff]  ;;  %v12047_v47 = vld [vmem:[#allocation54_spill] sm:$0xff] }
 0x1b5   :  { %2067 = vmatpush2.bf16.msra.mxu0 %v5657_v13  ;;  %v7716_v22 = vpack.c.bf16 %v787_v55, %v785_v0  ;;  %v715_v25 = vmul.f32 %v7276_v62, %v639_v59  ;;  %v6038_v39 = vpop.eup %6037  ;;  %v12045_v0 = vld [vmem:[#allocation56_spill] sm:$0xff]  ;;  %2260 = vmatpush2.bf16.msra.mxu1 %v5659_v37  ;;  %v955_v55 = vld [vmem:[#allocation7 + $0x338] sm:$0xff]  ;;  %v789_v2 = vadd.f32 %v7279_v57, %v713_v31  ;;  %v12046_v59 = vld [vmem:[#allocation49_spill] sm:$0xff] }
 0x1b6   :  { %v643_v21 = vmul.f32 %v6038_v39, %v12045_v0  ;;  %v636_v26 = vmul.f32 %v6034_v45, %v12046_v59  ;;  %v5652_v63 = vcombine.high %v959_v18, %v963_v56  ;;  %v5642_v14 = vcombine.high %v950_v43, %v954_v15  ;;  %2068 = vmatprep.subr.bf16.mxu0 %v5650_v35  ;;  %v943_v37 = vld [vmem:[#allocation7 + $0x2d8] sm:$0xff] }
 0x1b7   :  { %12043 = vst [vmem:[#allocation18_spill] sm:$0xff] %v7716_v22  ;;  %1948 = vmatmul.mubr.bf16.gmra.mxu1 %v7711_v9  ;;  %v6040_v60 = vpop.eup %6039  ;;  %v791_v13 = vadd.f32 %v7279_v57, %v715_v25  ;;  %v7732_v25 = vpack.c.bf16 %v786_v41, %v784_v36  ;;  %v714_v16 = vmul.f32 %v7288_v6, %v638_v42  ;;  %v947_v11 = vld [vmem:[#allocation7 + $0x2f8] sm:$0xff]  ;;  %v934_v36 = vld [vmem:[#allocation7 + $0x290] sm:$0xff] }
 0x1b8   :  { %1755 = vmatmul.mubr.bf16.gmra.mxu0 %v7711_v9  ;;  %1957 = vmatprep.mubr.bf16.mxu1 %v7716_v22  ;;  %v5641_v31 = vcombine.low %v950_v43, %v954_v15  ;;  %v5644_v0 = vcombine.high %v951_v19, %v955_v55  ;;  %v719_v45 = vmul.f32 %v7276_v62, %v643_v21  ;;  %v939_v59 = vld [vmem:[#allocation7 + $0x2b8] sm:$0xff] }
 0x1b9   :  { %1764 = vmatprep.mubr.bf16.mxu0 %v7716_v22  ;;  %v641_v22 = vmul.f32 %v6040_v60, %v12047_v47  ;;  %v7736_v34 = vpack.c.bf16 %v791_v13, %v789_v2  ;;  %2069 = vmatpush2.bf16.msra.mxu0 %v5649_v1  ;;  %v5643_v18 = vcombine.low %v951_v19, %v955_v55  ;;  %v938_v13 = vld [vmem:[#allocation7 + $0x2b0] sm:$0xff]  ;;  %v12048_v1 = vld [vmem:[#allocation55_spill] sm:$0xff]  ;;  %v935_v2 = vld [vmem:[#allocation7 + $0x298] sm:$0xff] }
 0x1ba   :  { %2261 = vmatprep.subr.bf16.mxu1 %v5652_v63  ;;  %2070 = vmatprep.subr.bf16.mxu0 %v5642_v14  ;;  %v5634_v56 = vcombine.high %v942_v12, %v946_v38  ;;  %v712_v41 = vmul.f32 %v7288_v6, %v636_v26  ;;  %v5636_v42 = vcombine.high %v943_v37, %v947_v11  ;;  %v12049_v63 = vld [vmem:[#allocation53_spill] sm:$0xff]  ;;  %v927_v47 = vld [vmem:[#allocation7 + $0x258] sm:$0xff] }
 0x1bb   :  { %2262 = vmatpush2.bf16.msra.mxu1 %v5651_v61  ;;  %v717_v43 = vmul.f32 %v7276_v62, %v641_v22  ;;  %v790_v15 = vadd.f32 %v7295_v8, %v714_v16  ;;  %v642_v21 = vmul.f32 %v6038_v39, %v12048_v1  ;;  %v5633_v35 = vcombine.low %v942_v12, %v946_v38  ;;  %v926_v22 = vld [vmem:[#allocation7 + $0x250] sm:$0xff] }
 0x1bc   :  { %2263 = vmatprep.subr.bf16.mxu1 %v5644_v0  ;;  %v795_v61 = vadd.f32 %v7279_v57, %v719_v45  ;;  %v5635_v19 = vcombine.low %v943_v37, %v947_v11  ;;  %v5626_v55 = vcombine.high %v934_v36, %v938_v13  ;;  %v788_v26 = vadd.f32 %v7295_v8, %v712_v41  ;;  %v930_v16 = vld [vmem:[#allocation7 + $0x270] sm:$0xff] }
 0x1bd   :  { %2071 = vmatpush2.bf16.msra.mxu0 %v5641_v31  ;;  %v640_v14 = vmul.f32 %v6040_v60, %v12049_v63  ;;  %v793_v39 = vadd.f32 %v7279_v57, %v717_v43  ;;  %v931_v31 = vld [vmem:[#allocation7 + $0x278] sm:$0xff]  ;;  %v718_v38 = vmul.f32 %v7288_v6, %v642_v21  ;;  %v5625_v37 = vcombine.low %v934_v36, %v938_v13  ;;  %v918_v41 = vld [vmem:[#allocation7 + $0x210] sm:$0xff] }
 0x1be   :  { %2072 = vmatprep.subr.bf16.mxu0 %v5634_v56  ;;  %v7751_v12 = vpack.c.bf16 %v790_v15, %v788_v26  ;;  %v5628_v11 = vcombine.high %v935_v2, %v939_v59  ;;  %v5627_v45 = vcombine.low %v935_v2, %v939_v59  ;;  %v5618_v60 = vcombine.high %v926_v22, %v930_v16  ;;  %v919_v43 = vld [vmem:[#allocation7 + $0x218] sm:$0xff] }
 0x1bf   :  { %1958 = vmatmul.mubr.bf16.gmra.mxu1 %v7732_v25  ;;  %v7754_v0 = vpack.c.bf16 %v795_v61, %v793_v39  ;;  %v5620_v56 = vcombine.high %v927_v47, %v931_v31  ;;  %v794_v36 = vadd.f32 %v7295_v8, %v718_v38  ;;  %v5617_v13 = vcombine.low %v926_v22, %v930_v16  ;;  %v923_v15 = vld [vmem:[#allocation7 + $0x238] sm:$0xff] }
 0x1c0   :  { %1765 = vmatmul.mubr.bf16.gmra.mxu0 %v7732_v25  ;;  %1967 = vmatprep.mubr.bf16.mxu1 %v7736_v34  ;;  %v5619_v1 = vcombine.low %v927_v47, %v931_v31  ;;  %v5612_v61 = vcombine.high %v919_v43, %v923_v15  ;;  %v5611_v2 = vcombine.low %v919_v43, %v923_v15  ;;  %v5811_v59 = vld [vmem:[#allocation10 + $0x74] ss:$8 sps:$4 sm:$0xff]   ;;  %v12051_v43 = vld [vmem:[#allocation60_spill] sm:$0xff] }
 0x1c1   :  { %1774 = vmatprep.mubr.bf16.mxu0 %v7736_v34  ;;  %2264 = vmatpush2.bf16.msra.mxu1 %v5643_v18  ;;  %v716_v18 = vmul.f32 %v7288_v6, %v640_v14  ;;  %v5814_v26 = vld [vmem:[#allocation10 + $0x174] ss:$8 sps:$4 sm:$0xff]  }
 0x1c2   :  { %2265 = vmatprep.subr.bf16.mxu1 %v5636_v42  ;;  %2073 = vmatpush2.bf16.msra.mxu0 %v5633_v35  ;;  %v922_v42 = vld [vmem:[#allocation7 + $0x230] sm:$0xff] }
 0x1c3   :  { %2074 = vmatprep.subr.bf16.mxu0 %v5626_v55  ;;  %v5610_v21 = vcombine.high %v918_v41, %v922_v42  ;;  %v792_v35 = vadd.f32 %v7295_v8, %v716_v18  ;;  %v5609_v55 = vcombine.low %v918_v41, %v922_v42 }
 0x1c5   :  { %2266 = vmatpush2.bf16.msra.mxu1 %v5635_v19  ;;  %v7763_v19 = vpack.c.bf16 %v794_v36, %v792_v35  ;;  %v12050_v36 = vld [vmem:[#allocation61_spill] sm:$0xff] }
 0x1c6   :  { %2075 = vmatpush2.bf16.msra.mxu0 %v5625_v37  ;;  %2267 = vmatprep.subr.bf16.mxu1 %v5628_v11 }
 0x1c7   :  { %1968 = vmatmul.mubr.bf16.gmra.mxu1 %v7751_v12  ;;  %2076 = vmatprep.subr.bf16.mxu0 %v5618_v60 }
 0x1c8   :  { %1775 = vmatmul.mubr.bf16.gmra.mxu0 %v7751_v12  ;;  %1977 = vmatprep.mubr.bf16.mxu1 %v7754_v0 }
 0x1c9   :  { %1784 = vmatprep.mubr.bf16.mxu0 %v7754_v0  ;;  %2268 = vmatpush2.bf16.msra.mxu1 %v5627_v45 }
 0x1ca   :  { %2269 = vmatprep.subr.bf16.mxu1 %v5620_v56  ;;  %2077 = vmatpush2.bf16.msra.mxu0 %v5617_v13 }
 0x1cb   :  { %2078 = vmatprep.subr.bf16.mxu0 %v5610_v21 }
 0x1cd   :  { %2270 = vmatpush2.bf16.msra.mxu1 %v5619_v1 }
 0x1ce   :  { %2271 = vmatprep.subr.bf16.mxu1 %v5612_v61  ;;  %2079 = vmatpush2.bf16.msra.mxu0 %v5609_v55 }
 0x1cf   :  { %1978 = vmatmul.mubr.bf16.gmra.mxu1 %v7763_v19  ;;  %4622 = vmatprep.subr.bf16.mxu0 %v5811_v59  ;;  %v12052_v59 = vld [vmem:[#allocation63_spill] sm:$0xff] }
 0x1d0   :  { %1785 = vmatmul.mubr.bf16.gmra.mxu0 %v7763_v19 }
 0x1d1   :  { %2272 = vmatpush2.bf16.msra.mxu1 %v5611_v2 }
 0x1d2   :  { %4815 = vmatprep.subr.bf16.mxu1 %v5814_v26 }
 0x1f6   :  { %v474_v63 = vpop.xlane.xlu0 %473 }
 0x1f7   :  { %v528_v14 = vmul.f32 0.00390625, %v474_v63  ;;  %v12053_v63 = vld [vmem:[#allocation62_spill] sm:$0xff] }
 0x1f9   :  { %v560_v22 = vadd.f32 1e-05, %v528_v14 }
 0x1fa   :  { %v477_v16 = vpop.xlane.xlu1 %476 }
 0x1fb   :  { %6041 = vrsqrt.f32 %v560_v22  ;;  %v529_v39 = vmul.f32 0.00390625, %v477_v16 }
 0x1fd   :  { %v561_v47 = vadd.f32 1e-05, %v529_v39 }
 0x1fe   :  { %v480_v31 = vpop.xlane.xlu0 %479 }
 0x1ff   :  { %6043 = vrsqrt.f32 %v561_v47  ;;  %v530_v38 = vmul.f32 0.00390625, %v480_v31 }
 0x201   :  { %v562_v37 = vadd.f32 1e-05, %v530_v38 }
 0x202   :  { %v483_v11 = vpop.xlane.xlu1 %482 }
 0x203   :  { %6045 = vrsqrt.f32 %v562_v37  ;;  %v531_v45 = vmul.f32 0.00390625, %v483_v11 }
 0x205   :  { %v563_v60 = vadd.f32 1e-05, %v531_v45 }
 0x206   :  { %v486_v18 = vpop.xlane.xlu0 %485 }
 0x207   :  { %6047 = vrsqrt.f32 %v563_v60  ;;  %v532_v56 = vmul.f32 0.00390625, %v486_v18  ;;  %v12054_v18 = vld [vmem:[#allocation65_spill] sm:$0xff] }
 0x208   :  { %v6042_v41 = vpop.eup %6041 }
 0x209   :  { %v564_v42 = vadd.f32 1e-05, %v532_v56  ;;  %v645_v13 = vmul.f32 %v6042_v41, %v12050_v36  ;;  %v644_v15 = vmul.f32 %v6042_v41, %v12051_v43 }
 0x20a   :  { %v489_v1 = vpop.xlane.xlu1 %488 }
 0x20b   :  { %6049 = vrsqrt.f32 %v564_v42  ;;  %v533_v21 = vmul.f32 0.00390625, %v489_v1  ;;  %v721_v61 = vmul.f32 %v7276_v62, %v645_v13  ;;  %v720_v55 = vmul.f32 %v7288_v6, %v644_v15  ;;  %v12055_v42 = vld [vmem:[#allocation64_spill] sm:$0xff] }
 0x20c   :  { %v6044_v35 = vpop.eup %6043 }
 0x20d   :  { %v565_v2 = vadd.f32 1e-05, %v533_v21  ;;  %v647_v26 = vmul.f32 %v6044_v35, %v12052_v59  ;;  %v646_v14 = vmul.f32 %v6044_v35, %v12053_v63  ;;  %v797_v38 = vadd.f32 %v7279_v57, %v721_v61  ;;  %v12058_v59 = vld [vmem:[#allocation66_spill] sm:$0xff] }
 0x20e   :  { %v796_v37 = vadd.f32 %v7295_v8, %v720_v55  ;;  %v12057_v55 = vld [vmem:[#allocation67_spill] sm:$0xff] }
 0x20f   :  { %v492_v22 = vpop.xlane.xlu0 %491  ;;  %6051 = vrsqrt.f32 %v565_v2  ;;  %v723_v39 = vmul.f32 %v7276_v62, %v647_v26  ;;  %v722_v47 = vmul.f32 %v7288_v6, %v646_v14 }
 0x210   :  { %v534_v16 = vmul.f32 0.00390625, %v492_v22  ;;  %v6046_v31 = vpop.eup %6045 }
 0x211   :  { %v799_v45 = vadd.f32 %v7279_v57, %v723_v39  ;;  %v798_v60 = vadd.f32 %v7295_v8, %v722_v47  ;;  %v649_v56 = vmul.f32 %v6046_v31, %v12054_v18  ;;  %v648_v36 = vmul.f32 %v6046_v31, %v12055_v42  ;;  %v12060_v18 = vld [vmem:[#allocation69_spill] sm:$0xff] }
 0x212   :  { %v566_v11 = vadd.f32 1e-05, %v534_v16 }
 0x213   :  { %v7781_v43 = vpack.c.bf16 %v799_v45, %v797_v38  ;;  %v7783_v15 = vpack.c.bf16 %v798_v60, %v796_v37  ;;  %v725_v21 = vmul.f32 %v7276_v62, %v649_v56  ;;  %v724_v35 = vmul.f32 %v7288_v6, %v648_v36  ;;  %v12059_v45 = vld [vmem:[#allocation70_spill] sm:$0xff] }
 0x214   :  { %6053 = vrsqrt.f32 %v566_v11  ;;  %v6048_v1 = vpop.eup %6047 }
 0x215   :  { %v495_v41 = vpop.xlane.xlu1 %494  ;;  %12056 = vst [vmem:[#allocation30_spill] sm:$0xff] %v7783_v15  ;;  %1794 = vmatprep.mubr.bf16.mxu0 %v7781_v43  ;;  %1987 = vmatprep.mubr.bf16.mxu1 %v7781_v43  ;;  %v651_v2 = vmul.f32 %v6048_v1, %v12057_v55  ;;  %v650_v26 = vmul.f32 %v6048_v1, %v12058_v59 }
 0x216   :  { %v535_v13 = vmul.f32 0.00390625, %v495_v41  ;;  %1795 = vmatmul.mubr.bf16.gmra.mxu0 %v7783_v15  ;;  %1988 = vmatmul.mubr.bf16.gmra.mxu1 %v7783_v15  ;;  %v801_v47 = vadd.f32 %v7279_v57, %v725_v21  ;;  %v800_v31 = vadd.f32 %v7295_v8, %v724_v35 }
 0x217   :  { %v727_v22 = vmul.f32 %v7276_v62, %v651_v2  ;;  %v726_v16 = vmul.f32 %v7288_v6, %v650_v26 }
 0x218   :  { %v567_v61 = vadd.f32 1e-05, %v535_v13  ;;  %v6050_v39 = vpop.eup %6049 }
 0x219   :  { %v498_v63 = vpop.xlane.xlu0 %497  ;;  %v803_v37 = vadd.f32 %v7279_v57, %v727_v22  ;;  %v802_v11 = vadd.f32 %v7295_v8, %v726_v16  ;;  %v653_v60 = vmul.f32 %v6050_v39, %v12059_v45  ;;  %v652_v56 = vmul.f32 %v6050_v39, %v12060_v18 }
 0x21a   :  { %6055 = vrsqrt.f32 %v567_v61  ;;  %v536_v14 = vmul.f32 0.00390625, %v498_v63 }
 0x21b   :  { %v7801_v42 = vpack.c.bf16 %v803_v37, %v801_v47  ;;  %v7803_v36 = vpack.c.bf16 %v802_v11, %v800_v31  ;;  %v729_v21 = vmul.f32 %v7276_v62, %v653_v60  ;;  %v728_v35 = vmul.f32 %v7288_v6, %v652_v56 }
 0x21c   :  { %v568_v38 = vadd.f32 1e-05, %v536_v14  ;;  %v6052_v13 = vpop.eup %6051 }
 0x21d   :  { %12061 = vst [vmem:[#allocation17_spill] sm:$0xff] %v7801_v42  ;;  %12062 = vst [vmem:[#allocation16_spill] sm:$0xff] %v7803_v36  ;;  %1804 = vmatprep.mubr.bf16.mxu0 %v7801_v42  ;;  %1997 = vmatprep.mubr.bf16.mxu1 %v7801_v42  ;;  %v655_v61 = vmul.f32 %v6052_v13, %v7439_v52  ;;  %v654_v55 = vmul.f32 %v6052_v13, %v7436_v46 }
 0x21e   :  { %6057 = vrsqrt.f32 %v568_v38  ;;  %1805 = vmatmul.mubr.bf16.gmra.mxu0 %v7803_v36  ;;  %1998 = vmatmul.mubr.bf16.gmra.mxu1 %v7803_v36  ;;  %v805_v16 = vadd.f32 %v7279_v57, %v729_v21  ;;  %v804_v39 = vadd.f32 %v7295_v8, %v728_v35 }
 0x21f   :  { %v731_v63 = vmul.f32 %v7276_v62, %v655_v61  ;;  %v730_v14 = vmul.f32 %v7288_v6, %v654_v55 }
 0x220   :  { %v501_v41 = vpop.xlane.xlu1 %500 }
 0x221   :  { %v537_v1 = vmul.f32 0.00390625, %v501_v41  ;;  %v6054_v22 = vpop.eup %6053  ;;  %v807_v46 = vadd.f32 %v7279_v57, %v731_v63  ;;  %v806_v47 = vadd.f32 %v7295_v8, %v730_v14 }
 0x222   :  { %v504_v59 = vpop.xlane.xlu0 %503  ;;  %v657_v31 = vmul.f32 %v6054_v22, %v7458_v27  ;;  %v656_v37 = vmul.f32 %v6054_v22, %v7455_v4 }
 0x223   :  { %v569_v2 = vadd.f32 1e-05, %v537_v1  ;;  %v538_v26 = vmul.f32 0.00390625, %v504_v59  ;;  %v7821_v45 = vpack.c.bf16 %v807_v46, %v805_v16  ;;  %v7823_v60 = vpack.c.bf16 %v806_v47, %v804_v39 }
 0x224   :  { %v733_v56 = vmul.f32 %v7276_v62, %v657_v31  ;;  %v732_v4 = vmul.f32 %v7288_v6, %v656_v37 }
 0x225   :  { %6059 = vrsqrt.f32 %v569_v2  ;;  %v570_v52 = vadd.f32 1e-05, %v538_v26  ;;  %12063 = vst [vmem:[#allocation21_spill] sm:$0xff] %v7821_v45  ;;  %12064 = vst [vmem:[#allocation20_spill] sm:$0xff] %v7823_v60  ;;  %1814 = vmatprep.mubr.bf16.mxu0 %v7821_v45  ;;  %2007 = vmatprep.mubr.bf16.mxu1 %v7821_v45 }
 0x226   :  { %1815 = vmatmul.mubr.bf16.gmra.mxu0 %v7823_v60  ;;  %2008 = vmatmul.mubr.bf16.gmra.mxu1 %v7823_v60  ;;  %v809_v61 = vadd.f32 %v7279_v57, %v733_v56  ;;  %v5898_v60 = vld [vmem:[#allocation10 + $0x194] ss:$8 sps:$4 sm:$0xff]  }
 0x227   :  { %v507_v38 = vpop.xlane.xlu1 %506  ;;  %6061 = vrsqrt.f32 %v570_v52  ;;  %v6056_v18 = vpop.eup %6055 }
 0x228   :  { %v539_v11 = vmul.f32 0.00390625, %v507_v38  ;;  %v659_v13 = vmul.f32 %v6056_v18, %v7478_v24  ;;  %v658_v27 = vmul.f32 %v6056_v18, %v7475_v48  ;;  %v808_v24 = vadd.f32 %v7295_v8, %v732_v4 }
 0x22a   :  { %v571_v41 = vadd.f32 1e-05, %v539_v11  ;;  %v735_v1 = vmul.f32 %v7276_v62, %v659_v13  ;;  %v734_v21 = vmul.f32 %v7288_v6, %v658_v27 }
 0x22b   :  { %v6058_v35 = vpop.eup %6057 }
 0x22c   :  { %6063 = vrsqrt.f32 %v571_v41  ;;  %v811_v55 = vadd.f32 %v7279_v57, %v735_v1  ;;  %v810_v48 = vadd.f32 %v7295_v8, %v734_v21  ;;  %v661_v2 = vmul.f32 %v6058_v35, %v7509_v23 }
 0x22d   :  { %v660_v59 = vmul.f32 %v6058_v35, %v7506_v33 }
 0x22e   :  { %v7841_v26 = vpack.c.bf16 %v811_v55, %v809_v61  ;;  %v7843_v63 = vpack.c.bf16 %v810_v48, %v808_v24  ;;  %v737_v22 = vmul.f32 %v7276_v62, %v661_v2  ;;  %v5809_v48 = vld [vmem:[#allocation10 + $0x70] ss:$8 sps:$4 sm:$0xff]  }
 0x22f   :  { %v736_v33 = vmul.f32 %v7288_v6, %v660_v59  ;;  %v5812_v2 = vld [vmem:[#allocation10 + $0x170] ss:$8 sps:$4 sm:$0xff]  }
 0x230   :  { %12065 = vst [vmem:[#allocation33_spill] sm:$0xff] %v7841_v26  ;;  %12066 = vst [vmem:[#allocation34_spill] sm:$0xff] %v7843_v63  ;;  %1824 = vmatprep.mubr.bf16.mxu0 %v7841_v26  ;;  %2017 = vmatprep.mubr.bf16.mxu1 %v7841_v26  ;;  %v813_v38 = vadd.f32 %v7279_v57, %v737_v22  ;;  %v5817_v22 = vld [vmem:[#allocation10 + $0x64] ss:$8 sps:$4 sm:$0xff]  }
 0x231   :  { %1825 = vmatmul.mubr.bf16.gmra.mxu0 %v7843_v63  ;;  %2018 = vmatmul.mubr.bf16.gmra.mxu1 %v7843_v63  ;;  %v812_v11 = vadd.f32 %v7295_v8, %v736_v33  ;;  %v5889_v63 = vld [vmem:[#allocation10 + $0xa4] ss:$8 sps:$4 sm:$0xff]  }
 0x232   :  { %v6060_v14 = vpop.eup %6059 }
 0x233   :  { %v663_v16 = vmul.f32 %v6060_v14, %v7535_v44  ;;  %v662_v23 = vmul.f32 %v6060_v14, %v7532_v49 }
 0x234   :  { %v6062_v39 = vpop.eup %6061 }
 0x235   :  { %v739_v52 = vmul.f32 %v7276_v62, %v663_v16  ;;  %v738_v46 = vmul.f32 %v7288_v6, %v662_v23  ;;  %v665_v47 = vmul.f32 %v6062_v39, %v7568_v51  ;;  %v664_v31 = vmul.f32 %v6062_v39, %v7565_v20  ;;  %v12071_v16 = vld [vmem:[#allocation19_spill] sm:$0xff]  ;;  %v5815_v39 = vld [vmem:[#allocation10 + $0x60] ss:$8 sps:$4 sm:$0xff]  }
 0x237   :  { %v815_v37 = vadd.f32 %v7279_v57, %v739_v52  ;;  %v814_v44 = vadd.f32 %v7295_v8, %v738_v46  ;;  %v741_v13 = vmul.f32 %v7276_v62, %v665_v47  ;;  %v740_v20 = vmul.f32 %v7288_v6, %v664_v31  ;;  %v5818_v52 = vld [vmem:[#allocation10 + $0x160] ss:$8 sps:$4 sm:$0xff]   ;;  %v5823_v46 = vld [vmem:[#allocation10 + $0x54] ss:$8 sps:$4 sm:$0xff]  }
 0x238   :  { %v5826_v47 = vld [vmem:[#allocation10 + $0x154] ss:$8 sps:$4 sm:$0xff]  }
 0x239   :  { %v6064_v49 = vpop.eup %6063  ;;  %v7861_v18 = vpack.c.bf16 %v815_v37, %v813_v38  ;;  %v7863_v56 = vpack.c.bf16 %v814_v44, %v812_v11  ;;  %v5821_v37 = vld [vmem:[#allocation10 + $0x50] ss:$8 sps:$4 sm:$0xff]   ;;  %v5829_v44 = vld [vmem:[#allocation10 + $0x44] ss:$8 sps:$4 sm:$0xff]  }
 0x23a   :  { %v667_v41 = vmul.f32 %v6064_v49, %v7597_v28  ;;  %v666_v51 = vmul.f32 %v6064_v49, %v7594_v54  ;;  %v817_v28 = vadd.f32 %v7279_v57, %v741_v13  ;;  %v816_v54 = vadd.f32 %v7295_v8, %v740_v20  ;;  %v5824_v11 = vld [vmem:[#allocation10 + $0x150] ss:$8 sps:$4 sm:$0xff]   ;;  %v5832_v49 = vld [vmem:[#allocation10 + $0x144] ss:$8 sps:$4 sm:$0xff]   ;;  %v5827_v13 = vld [vmem:[#allocation10 + $0x40] ss:$8 sps:$4 sm:$0xff]  }
 0x23b   :  { %12067 = vst [vmem:[#allocation23_spill] sm:$0xff] %v7861_v18  ;;  %12068 = vst [vmem:[#allocation25_spill] sm:$0xff] %v7863_v56  ;;  %1834 = vmatprep.mubr.bf16.mxu0 %v7861_v18  ;;  %2027 = vmatprep.mubr.bf16.mxu1 %v7861_v18  ;;  %v5835_v20 = vld [vmem:[#allocation10 + $0x34] ss:$8 sps:$4 sm:$0xff]  }
 0x23c   :  { %1835 = vmatmul.mubr.bf16.gmra.mxu0 %v7863_v56  ;;  %2028 = vmatmul.mubr.bf16.gmra.mxu1 %v7863_v56  ;;  %v743_v27 = vmul.f32 %v7276_v62, %v667_v41  ;;  %v742_v4 = vmul.f32 %v7288_v6, %v666_v51  ;;  %v5830_v51 = vld [vmem:[#allocation10 + $0x140] ss:$8 sps:$4 sm:$0xff]   ;;  %v5880_v56 = vld [vmem:[#allocation10 + $0x1c4] ss:$8 sps:$4 sm:$0xff]  }
 0x23e   :  { %v819_v1 = vadd.f32 %v7279_v57, %v743_v27  ;;  %v818_v21 = vadd.f32 %v7295_v8, %v742_v4  ;;  %v5838_v27 = vld [vmem:[#allocation10 + $0x134] ss:$8 sps:$4 sm:$0xff]  }
 0x240   :  { %v7879_v35 = vpack.c.bf16 %v819_v1, %v817_v28  ;;  %v7881_v61 = vpack.c.bf16 %v818_v21, %v816_v54  ;;  %v7889_v62 = vpop.f32.mrf.mxu0  ;;  %v7891_v57 = vpop.f32.mrf.mxu1  ;;  %v5836_v1 = vld [vmem:[#allocation10 + $0x130] ss:$8 sps:$4 sm:$0xff]   ;;  %v5841_v54 = vld [vmem:[#allocation10 + $0x24] ss:$8 sps:$4 sm:$0xff]  }
 0x242   :  { %12069 = vst [vmem:[#allocation22_spill] sm:$0xff] %v7879_v35  ;;  %12070 = vst [vmem:[#allocation24_spill] sm:$0xff] %v7881_v61  ;;  %1844 = vmatprep.mubr.bf16.mxu0 %v7879_v35  ;;  %2037 = vmatprep.mubr.bf16.mxu1 %v7879_v35  ;;  %v7893_v8 = vpop.f32.mrf.mxu0  ;;  %v7895_v6 = vpop.f32.mrf.mxu1  ;;  %v5877_v35 = vld [vmem:[#allocation10 + $0xc4] ss:$8 sps:$4 sm:$0xff]  }
 0x244   :  { %1845 = vmatmul.mubr.bf16.gmra.mxu0 %v7881_v61  ;;  %2038 = vmatmul.mubr.bf16.gmra.mxu1 %v7881_v61  ;;  %v7897_v55 = vpop.f32.mrf.mxu0  ;;  %v7899_v24 = vpop.f32.mrf.mxu1 }
 0x245   :  { %2080 = vmatprep.mubr.bf16.mxu0 %v7447_v29  ;;  %2273 = vmatprep.mubr.bf16.mxu1 %v7447_v29  ;;  %v5820_v29 = vld [vmem:[#allocation10 + $0x164] ss:$8 sps:$4 sm:$0xff]  }
 0x246   :  { %v7901_v59 = vpop.f32.mrf.mxu0  ;;  %v7903_v14 = vpop.f32.mrf.mxu1 }
 0x24b   :  { %v7908_v23 = vpop.f32.mrf.mxu0  ;;  %v7910_v33 = vpop.f32.mrf.mxu1 }
 0x24c   :  { %2081 = vmatmul.mubr.bf16.vlgmr.msra.gmra.mxu0 %v12071_v16  ;;  %2274 = vmatmul.mubr.bf16.vlgmr.msra.gmra.mxu1 %v12071_v16  ;;  %v5850_v16 = vld [vmem:[#allocation10 + $0x114] ss:$8 sps:$4 sm:$0xff]  }
 0x24d   :  { %4623 = vmatpush1.bf16.msra.mxu0 %v5809_v48  ;;  %2090 = vmatprep.mubr.bf16.mxu0 %v7498_v50  ;;  %v7913_v31 = vpop.f32.mrf.mxu0  ;;  %v7915_v38 = vpop.f32.mrf.mxu1 }
 0x24e   :  { %2283 = vmatprep.mubr.bf16.mxu1 %v7498_v50  ;;  %4816 = vmatpush1.bf16.msra.mxu1 %v5812_v2  ;;  %v5839_v2 = vld [vmem:[#allocation10 + $0x20] ss:$8 sps:$4 sm:$0xff]  }
 0x24f   :  { %4624 = vmatprep.subr.bf16.mxu0 %v5817_v22  ;;  %4817 = vmatprep.subr.bf16.mxu1 %v5820_v29  ;;  %v7919_v50 = vpop.f32.mrf.mxu0  ;;  %v7921_v41 = vpop.f32.mrf.mxu1  ;;  %v5842_v22 = vld [vmem:[#allocation10 + $0x120] ss:$8 sps:$4 sm:$0xff]   ;;  %v5847_v29 = vld [vmem:[#allocation10 + $0x14] ss:$8 sps:$4 sm:$0xff]  }
 0x251   :  { %4625 = vmatpush1.bf16.msra.mxu0 %v5815_v39  ;;  %v7925_v4 = vpop.f32.mrf.mxu0  ;;  %v7927_v28 = vpop.f32.mrf.mxu1  ;;  %v980_v39 = vld [vmem:[#allocation8] sm:$0xff] }
 0x252   :  { %4818 = vmatpush1.bf16.msra.mxu1 %v5818_v52  ;;  %4626 = vmatprep.subr.bf16.mxu0 %v5823_v46  ;;  %v12072_v52 = vld [vmem:[#allocation57_spill] sm:$0xff] }
 0x253   :  { %4819 = vmatprep.subr.bf16.mxu1 %v5826_v47  ;;  %v992_v46 = vsub.s32 2, %v12072_v52 }
 0x254   :  { %2091 = vmatmul.mubr.bf16.gmra.mxu0 %v7500_v40  ;;  %2284 = vmatmul.mubr.bf16.gmra.mxu1 %v7500_v40  ;;  %v5833_v40 = vld [vmem:[#allocation10 + $0x30] ss:$8 sps:$4 sm:$0xff]  }
 0x255   :  { %2100 = vmatprep.mubr.bf16.mxu0 %v7558_v3  ;;  %2293 = vmatprep.mubr.bf16.mxu1 %v7558_v3  ;;  %v5844_v3 = vld [vmem:[#allocation10 + $0x124] ss:$8 sps:$4 sm:$0xff]   ;;  %v7931_v21 = vpop.f32.mrf.mxu0  ;;  %v7933_v48 = vpop.f32.mrf.mxu1 }
 0x256   :  { %4627 = vmatpush1.bf16.msra.mxu0 %v5821_v37  ;;  %4820 = vmatpush1.bf16.msra.mxu1 %v5824_v11  ;;  %v5845_v37 = vld [vmem:[#allocation10 + $0x10] ss:$8 sps:$4 sm:$0xff]  }
 0x257   :  { %4628 = vmatprep.subr.bf16.mxu0 %v5829_v44  ;;  %4821 = vmatprep.subr.bf16.mxu1 %v5832_v49  ;;  %v7940_v47 = vpop.f32.mrf.mxu1  ;;  %v5848_v11 = vld [vmem:[#allocation10 + $0x110] ss:$8 sps:$4 sm:$0xff]   ;;  %v5856_v44 = vld [vmem:[#allocation10 + $0x104] ss:$8 sps:$4 sm:$0xff]  }
 0x258   :  { %v12073_v49 = vld [vmem:[#allocation59_spill] sm:$0xff] }
 0x25a   :  { %4629 = vmatpush1.bf16.msra.mxu0 %v5827_v13  ;;  %4822 = vmatpush1.bf16.msra.mxu1 %v5830_v51  ;;  %v7943_v13 = vrot.slane %v980_v39, %v12073_v49  ;;  %v996_v51 = vsub.s32 3, %v12072_v52  ;;  %v5871_v49 = vld [vmem:[#allocation10 + $0xd4] ss:$8 sps:$4 sm:$0xff]  }
 0x25b   :  { %4630 = vmatprep.subr.bf16.mxu0 %v5835_v20  ;;  %4823 = vmatprep.subr.bf16.mxu1 %v5838_v27  ;;  %v7948_v20 = vrot.slane %v980_v39, %v992_v46  ;;  %v5874_v52 = vld [vmem:[#allocation10 + $0x1d4] ss:$8 sps:$4 sm:$0xff]  }
 0x25c   :  { %2101 = vmatmul.mubr.bf16.gmra.mxu0 %v7576_v5  ;;  %2294 = vmatmul.mubr.bf16.gmra.mxu1 %v7576_v5  ;;  %v7938_v5 = vpop.f32.mrf.mxu0 }
 0x25d   :  { %2110 = vmatprep.mubr.bf16.mxu0 %v7616_v53  ;;  %2303 = vmatprep.mubr.bf16.mxu1 %v7616_v53  ;;  %v5853_v53 = vld [vmem:[#allocation10 + $0x4] ss:$8 sps:$4 sm:$0xff]  }
 0x25e   :  { %4631 = vmatpush1.bf16.msra.mxu0 %v5833_v40  ;;  %4824 = vmatpush1.bf16.msra.mxu1 %v5836_v1  ;;  %v7950_v27 = vpop.f32.mrf.mxu0  ;;  %v7952_v40 = vpop.f32.mrf.mxu1  ;;  %v12074_v1 = vld [vmem:[#allocation58_spill] sm:$0xff] }
 0x25f   :  { %4632 = vmatprep.subr.bf16.mxu0 %v5841_v54  ;;  %4825 = vmatprep.subr.bf16.mxu1 %v5844_v3  ;;  %v7957_v54 = vrot.slane %v980_v39, %v12074_v1  ;;  %v5851_v3 = vld [vmem:[#allocation10] ss:$8 sps:$4 sm:$0xff]  }
 0x260   :  { %v7969_v46 = vpop.f32.mrf.mxu0 }
 0x262   :  { %4633 = vmatpush1.bf16.msra.mxu0 %v5839_v2  ;;  %4826 = vmatpush1.bf16.msra.mxu1 %v5842_v22  ;;  %v5854_v2 = vld [vmem:[#allocation10 + $0x100] ss:$8 sps:$4 sm:$0xff]   ;;  %v5862_v22 = vld [vmem:[#allocation10 + $0x1f4] ss:$8 sps:$4 sm:$0xff]  }
 0x263   :  { %4634 = vmatprep.subr.bf16.mxu0 %v5847_v29  ;;  %4827 = vmatprep.subr.bf16.mxu1 %v5850_v16  ;;  %v7961_v29 = vadd.f32 %v7889_v62, %v7943_v13  ;;  %v7963_v16 = vrot.slane %v980_v39, %v996_v51  ;;  %v7979_v62 = vadd.f32 %v7897_v55, %v7943_v13  ;;  %v5868_v39 = vld [vmem:[#allocation10 + $0x1e4] ss:$8 sps:$4 sm:$0xff]  }
 0x264   :  { %2111 = vmatmul.mubr.bf16.gmra.mxu0 %v7635_v17  ;;  %2304 = vmatmul.mubr.bf16.gmra.mxu1 %v7635_v17  ;;  %v5859_v17 = vld [vmem:[#allocation10 + $0xf4] ss:$8 sps:$4 sm:$0xff]   ;;  %v7991_v55 = vadd.f32 %v7899_v24, %v7948_v20  ;;  %v8003_v24 = vadd.f32 %v7901_v59, %v7957_v54 }
 0x265   :  { %2120 = vmatprep.mubr.bf16.mxu0 %v7660_v30  ;;  %2313 = vmatprep.mubr.bf16.mxu1 %v7660_v30  ;;  %12075 = vst [vmem:[#allocation27_spill] sm:$0xff] %v7963_v16  ;;  %v7967_v30 = vadd.f32 %v7891_v57, %v7948_v20  ;;  %v5865_v57 = vld [vmem:[#allocation10 + $0xe4] ss:$8 sps:$4 sm:$0xff]   ;;  %v2434_v51 = vmul.f32 0.70710677, %v7961_v29  ;;  %v7984_v1 = vadd.f32 %v7895_v6, %v7963_v16  ;;  %v8054_v18 = vmul.f32 0.5, %v7961_v29 }
 0x266   :  { %4635 = vmatpush1.bf16.msra.mxu0 %v5845_v37  ;;  %4828 = vmatpush1.bf16.msra.mxu1 %v5848_v11  ;;  %v7971_v37 = vpop.f32.mrf.mxu1  ;;  %v7975_v11 = vadd.f32 %v7893_v8, %v7957_v54  ;;  %v8074_v26 = vmul.f32 0.5, %v7979_v62 }
 0x267   :  { %4636 = vmatprep.subr.bf16.mxu0 %v5853_v53  ;;  %4829 = vmatprep.subr.bf16.mxu1 %v5856_v44  ;;  %v5857_v53 = vld [vmem:[#allocation10 + $0xf0] ss:$8 sps:$4 sm:$0xff]   ;;  %v2436_v8 = vmul.f32 0.70710677, %v7967_v30  ;;  %6065 = verf.f32 %v2434_v51  ;;  %v2437_v61 = vmul.f32 0.70710677, %v7984_v1 }
 0x268   :  { %v5860_v44 = vld [vmem:[#allocation10 + $0x1f0] ss:$8 sps:$4 sm:$0xff]   ;;  %v2435_v6 = vmul.f32 0.70710677, %v7975_v11  ;;  %v8066_v29 = vmul.f32 0.5, %v7975_v11  ;;  %v1906_v11 = vadd.f32 %v7927_v28, %v7963_v16 }
 0x269   :  { %6067 = verf.f32 %v2436_v8  ;;  %v5872_v51 = vld [vmem:[#allocation10 + $0x1d0] ss:$8 sps:$4 sm:$0xff]   ;;  %v2443_v8 = vmul.f32 0.70710677, %v8003_v24 }
 0x26a   :  { %4637 = vmatpush1.bf16.msra.mxu0 %v5851_v3  ;;  %4830 = vmatpush1.bf16.msra.mxu1 %v5854_v2  ;;  %v7993_v3 = vpop.f32.mrf.mxu0  ;;  %v7995_v2 = vpop.f32.mrf.mxu1  ;;  %6069 = verf.f32 %v2435_v6  ;;  %v12078_v28 = vld [vmem:[#allocation18_spill] sm:$0xff] }
 0x26b   :  { %4638 = vmatprep.subr.bf16.mxu0 %v5859_v17  ;;  %4831 = vmatprep.subr.bf16.mxu1 %v5862_v22  ;;  %v5863_v17 = vld [vmem:[#allocation10 + $0xe0] ss:$8 sps:$4 sm:$0xff]   ;;  %v2442_v22 = vmul.f32 0.70710677, %v7979_v62 }
 0x26c   :  { %2121 = vmatmul.mubr.bf16.gmra.mxu0 %v7668_v10  ;;  %2314 = vmatmul.mubr.bf16.gmra.mxu1 %v7668_v10  ;;  %v5866_v10 = vld [vmem:[#allocation10 + $0x1e0] ss:$8 sps:$4 sm:$0xff]   ;;  %v8015_v59 = vpop.f32.mrf.mxu0 }
 0x26d   :  { %2130 = vmatprep.mubr.bf16.mxu0 %v7680_v32  ;;  %2323 = vmatprep.mubr.bf16.mxu1 %v7680_v32  ;;  %v8008_v32 = vadd.f32 %v7903_v14, %v7963_v16  ;;  %v5869_v14 = vld [vmem:[#allocation10 + $0xd0] ss:$8 sps:$4 sm:$0xff]   ;;  %6071 = verf.f32 %v2442_v22  ;;  %v5883_v22 = vld [vmem:[#allocation10 + $0xb4] ss:$8 sps:$4 sm:$0xff]  }
 0x26e   :  { %4639 = vmatpush2.bf16.msra.mxu0 %v5857_v53  ;;  %4832 = vmatpush2.bf16.msra.mxu1 %v5860_v44  ;;  %v2444_v53 = vmul.f32 0.70710677, %v7991_v55  ;;  %v8013_v44 = vadd.f32 %v7908_v23, %v7943_v13  ;;  %v8026_v23 = vadd.f32 %v7913_v31, %v7957_v54  ;;  %6073 = verf.f32 %v2437_v61 }
 0x26f   :  { %4640 = vmatprep.subr.bf16.mxu0 %v5865_v57  ;;  %4833 = vmatprep.subr.bf16.mxu1 %v5868_v39  ;;  %v8017_v57 = vpop.f32.mrf.mxu1  ;;  %v8021_v39 = vadd.f32 %v7910_v33, %v7948_v20  ;;  %v2445_v6 = vmul.f32 0.70710677, %v8008_v32  ;;  %v8031_v33 = vadd.f32 %v7919_v50, %v7943_v13  ;;  %v8038_v31 = vadd.f32 %v7921_v41, %v7948_v20 }
 0x270   :  { %6075 = verf.f32 %v2444_v53  ;;  %v2451_v41 = vmul.f32 0.70710677, %v8026_v23  ;;  %v5886_v53 = vld [vmem:[#allocation10 + $0x1b4] ss:$8 sps:$4 sm:$0xff]   ;;  %v8090_v62 = vmul.f32 0.5, %v8013_v44 }
 0x271   :  { %v8042_v61 = vpop.f32.mrf.mxu1  ;;  %v2452_v50 = vmul.f32 0.70710677, %v8021_v39  ;;  %6077 = verf.f32 %v2443_v8  ;;  %v8115_v42 = vmul.f32 0.5, %v8038_v31 }
 0x272   :  { %4641 = vmatpush2.bf16.msra.mxu0 %v5863_v17  ;;  %4834 = vmatpush2.bf16.msra.mxu1 %v5866_v10  ;;  %v2450_v17 = vmul.f32 0.70710677, %v8013_v44  ;;  %v5878_v10 = vld [vmem:[#allocation10 + $0x1c0] ss:$8 sps:$4 sm:$0xff]   ;;  %6079 = verf.f32 %v2445_v6  ;;  %v5884_v6 = vld [vmem:[#allocation10 + $0x1b0] ss:$8 sps:$4 sm:$0xff]  }
 0x273   :  { %4642 = vmatprep.subr.bf16.mxu0 %v5871_v49  ;;  %4835 = vmatprep.subr.bf16.mxu1 %v5874_v52  ;;  %v8040_v52 = vpop.f32.mrf.mxu0  ;;  %v5875_v49 = vld [vmem:[#allocation10 + $0xc0] ss:$8 sps:$4 sm:$0xff]   ;;  %v8062_v8 = vpop.f32.mrf.mxu1 }
 0x274   :  { %2131 = vmatmul.mubr.bf16.gmra.mxu0 %v7686_v58  ;;  %2324 = vmatmul.mubr.bf16.gmra.mxu1 %v7686_v58  ;;  %v8049_v58 = vadd.f32 %v7915_v38, %v7963_v16  ;;  %v8057_v38 = vmul.f32 0.5, %v7967_v30  ;;  %6081 = verf.f32 %v2450_v17  ;;  %v8069_v30 = vmul.f32 0.5, %v7984_v1  ;;  %v6066_v1 = vpop.eup %6065  ;;  %v5887_v44 = vld [vmem:[#allocation10 + $0xa0] ss:$8 sps:$4 sm:$0xff]  }
 0x275   :  { %2140 = vmatprep.mubr.bf16.mxu0 %v7702_v7  ;;  %2333 = vmatprep.mubr.bf16.mxu1 %v7702_v7  ;;  %v2458_v7 = vmul.f32 0.70710677, %v8031_v33  ;;  %6083 = verf.f32 %v2452_v50  ;;  %v1713_v17 = vadd.f32 %v7925_v4, %v7957_v54  ;;  %v5892_v50 = vld [vmem:[#allocation10 + $0x1a4] ss:$8 sps:$4 sm:$0xff]   ;;  %v8084_v4 = vmul.f32 0.5, %v8003_v24 }
 0x276   :  { %4643 = vmatpush2.bf16.msra.mxu0 %v5869_v14  ;;  %4836 = vmatpush2.bf16.msra.mxu1 %v5872_v51  ;;  %v2460_v14 = vmul.f32 0.70710677, %v8038_v31  ;;  %v8060_v51 = vpop.f32.mrf.mxu0  ;;  %6085 = verf.f32 %v2451_v41  ;;  %v8094_v41 = vpop.f32.mrf.mxu1  ;;  %v8102_v24 = vmul.f32 0.5, %v8026_v23  ;;  %v8110_v23 = vmul.f32 0.5, %v8031_v33 }
 0x277   :  { %4644 = vmatprep.subr.bf16.mxu0 %v5877_v35  ;;  %4837 = vmatprep.subr.bf16.mxu1 %v5880_v56  ;;  %v2453_v56 = vmul.f32 0.70710677, %v8049_v58  ;;  %v5881_v35 = vld [vmem:[#allocation10 + $0xb0] ss:$8 sps:$4 sm:$0xff]   ;;  %6087 = verf.f32 %v2458_v7  ;;  %12077 = vst [vmem:[#allocation26_spill] sm:$0xff] %v8094_v41  ;;  %v1719_v33 = vadd.f32 %v7938_v5, %v7957_v54  ;;  %v8129_v31 = vadd.f32 %v7950_v27, %v7943_v13 }
 0x278   :  { %6089 = verf.f32 %v2460_v14  ;;  %v2459_v14 = vmul.f32 0.70710677, %v1713_v17  ;;  %v8121_v15 = vpop.f32.mrf.mxu1 }
 0x279   :  { %6091 = verf.f32 %v2453_v56  ;;  %v2461_v56 = vmul.f32 0.70710677, %v1906_v11  ;;  %12081 = vst [vmem:[#allocation36_spill] sm:$0xff] %v8121_v15  ;;  %v5904_v15 = vld [vmem:[#allocation10 + $0x184] ss:$8 sps:$4 sm:$0xff]  }
 0x27a   :  { %4645 = vmatpush2.bf16.msra.mxu0 %v5875_v49  ;;  %4838 = vmatpush2.bf16.msra.mxu1 %v5878_v10  ;;  %v8077_v49 = vmul.f32 0.5, %v7991_v55  ;;  %v8087_v10 = vmul.f32 0.5, %v8008_v32  ;;  %v8092_v55 = vpop.f32.mrf.mxu0  ;;  %v1717_v32 = vadd.f32 %v7931_v21, %v7943_v13  ;;  %v1910_v21 = vadd.f32 %v7933_v48, %v7948_v20  ;;  %v5893_v48 = vld [vmem:[#allocation10 + $0x90] ss:$8 sps:$4 sm:$0xff]  }
 0x27b   :  { %4646 = vmatprep.subr.bf16.mxu0 %v5883_v22  ;;  %4839 = vmatprep.subr.bf16.mxu1 %v5886_v53  ;;  %12076 = vst [vmem:[#allocation29_spill] sm:$0xff] %v8092_v55  ;;  %v8099_v22 = vmul.f32 0.5, %v8021_v39  ;;  %v5890_v53 = vld [vmem:[#allocation10 + $0x1a0] ss:$8 sps:$4 sm:$0xff]   ;;  %v8107_v39 = vmul.f32 0.5, %v8049_v58  ;;  %6093 = verf.f32 %v2459_v14 }
 0x27c   :  { %2141 = vmatmul.mubr.bf16.gmra.mxu0 %v7711_v9  ;;  %2334 = vmatmul.mubr.bf16.gmra.mxu1 %v7711_v9  ;;  %v6068_v9 = vpop.eup %6067  ;;  %v2466_v41 = vmul.f32 0.70710677, %v1717_v32  ;;  %v5896_v55 = vld [vmem:[#allocation10 + $0x190] ss:$8 sps:$4 sm:$0xff]   ;;  %6095 = verf.f32 %v2461_v56  ;;  %v8131_v5 = vmul.f32 0.5, %v1717_v32  ;;  %v8135_v14 = vmul.f32 0.5, %v1910_v21 }
 0x27d   :  { %2150 = vmatprep.mubr.bf16.mxu0 %v12078_v28  ;;  %2343 = vmatprep.mubr.bf16.mxu1 %v12078_v28  ;;  %v6070_v7 = vpop.eup %6069  ;;  %v5895_v28 = vld [vmem:[#allocation10 + $0x94] ss:$8 sps:$4 sm:$0xff]   ;;  %v3204_v36 = vadd.f32 1.0, %v6068_v9  ;;  %v8125_v9 = vmul.f32 0.5, %v1906_v11  ;;  %v5902_v56 = vld [vmem:[#allocation10 + $0x180] ss:$8 sps:$4 sm:$0xff]  }
 0x27e   :  { %4647 = vmatpush2.bf16.msra.mxu0 %v5881_v35  ;;  %4840 = vmatpush2.bf16.msra.mxu1 %v5884_v6  ;;  %v6072_v45 = vpop.eup %6071  ;;  %v3202_v6 = vadd.f32 1.0, %v6066_v1  ;;  %12082 = vst [vmem:[#allocation31_spill] sm:$0xff] %v8135_v14  ;;  %6097 = verf.f32 %v2466_v41  ;;  %v5910_v41 = vld [vmem:[#allocation10 + $0x374] ss:$8 sps:$4 sm:$0xff]  }
 0x27f   :  { %4648 = vmatprep.subr.bf16.mxu0 %v5889_v63  ;;  %4841 = vmatprep.subr.bf16.mxu1 %v5892_v50  ;;  %v6074_v35 = vpop.eup %6073  ;;  %v8117_v63 = vmul.f32 0.5, %v1713_v17  ;;  %v8119_v50 = vpop.f32.mrf.mxu0  ;;  %v3210_v1 = vadd.f32 1.0, %v6072_v45  ;;  %v5901_v17 = vld [vmem:[#allocation10 + $0x84] ss:$8 sps:$4 sm:$0xff]  }
 0x280   :  { %12080 = vst [vmem:[#allocation32_spill] sm:$0xff] %v8119_v50  ;;  %v6076_v58 = vpop.eup %6075  ;;  %v3205_v11 = vadd.f32 1.0, %v6074_v35  ;;  %v8146_v35 = vmul.f32 %v3202_v6, %v8054_v18  ;;  %v1914_v18 = vadd.f32 %v7952_v40, %v7948_v20  ;;  %v8166_v6 = vmul.f32 0.5, %v1719_v33 }
 0x281   :  { %12079 = vst [vmem:[#allocation28_spill] sm:$0xff] %v8117_v63  ;;  %v6078_v50 = vpop.eup %6077  ;;  %v3203_v63 = vadd.f32 1.0, %v6070_v7  ;;  %v8139_v27 = vpop.f32.mrf.mxu0  ;;  %v2467_v7 = vmul.f32 0.70710677, %v1719_v33  ;;  %v1723_v40 = vadd.f32 %v7969_v46, %v7957_v54 }
 0x282   :  { %4649 = vmatpush2.bf16.msra.mxu0 %v5887_v44  ;;  %4842 = vmatpush2.bf16.msra.mxu1 %v5890_v53  ;;  %v2468_v44 = vmul.f32 0.70710677, %v1910_v21  ;;  %v6080_v45 = vpop.eup %6079  ;;  %v3212_v53 = vadd.f32 1.0, %v6076_v58  ;;  %12084 = vst [vmem:[#allocation68_spill] sm:$0xff] %v8146_v35  ;;  %v8152_v58 = vmul.f32 %v3210_v1, %v8074_v26  ;;  %v3211_v14 = vadd.f32 1.0, %v6078_v50 }
 0x283   :  { %4650 = vmatprep.subr.bf16.mxu0 %v5895_v28  ;;  %4843 = vmatprep.subr.bf16.mxu1 %v5898_v60  ;;  %v1912_v60 = vadd.f32 %v7940_v47, %v7963_v16  ;;  %v8141_v28 = vpop.f32.mrf.mxu1  ;;  %v6082_v32 = vpop.eup %6081  ;;  %v8149_v47 = vmul.f32 %v3204_v36, %v8057_v38  ;;  %v8161_v38 = vmul.f32 %v3205_v11, %v8069_v30 }
 0x284   :  { %2151 = vmatmul.mubr.bf16.gmra.mxu0 %v7732_v25  ;;  %2344 = vmatmul.mubr.bf16.gmra.mxu1 %v7732_v25  ;;  %12083 = vst [vmem:[#allocation35_spill] sm:$0xff] %v8141_v28  ;;  %v5899_v25 = vld [vmem:[#allocation10 + $0x80] ss:$8 sps:$4 sm:$0xff]   ;;  %v6084_v21 = vpop.eup %6083  ;;  %12086 = vst [vmem:[#allocation37_spill] sm:$0xff] %v8152_v58  ;;  %v2474_v28 = vmul.f32 0.70710677, %v8129_v31  ;;  %6099 = verf.f32 %v2468_v44  ;;  %v8164_v26 = vmul.f32 %v3212_v53, %v8077_v49  ;;  %v8168_v1 = vpop.f32.mrf.mxu0 }
 0x285   :  { %2160 = vmatprep.mubr.bf16.mxu0 %v7736_v34  ;;  %2353 = vmatprep.mubr.bf16.mxu1 %v7736_v34  ;;  %12085 = vst [vmem:[#allocation38_spill] sm:$0xff] %v8149_v47  ;;  %v5907_v34 = vld [vmem:[#allocation10 + $0x274] ss:$8 sps:$4 sm:$0xff]   ;;  %6101 = verf.f32 %v2467_v7  ;;  %v8172_v50 = vmul.f32 0.5, %v1912_v60  ;;  %v3218_v33 = vadd.f32 1.0, %v6082_v32  ;;  %v3220_v44 = vadd.f32 1.0, %v6084_v21 }
 0x286   :  { %4651 = vmatpush2.bf16.msra.mxu0 %v5893_v48  ;;  %4844 = vmatpush2.bf16.msra.mxu1 %v5896_v55  ;;  %v6086_v48 = vpop.eup %6085  ;;  %v8156_v55 = vmul.f32 %v3203_v63, %v8066_v29  ;;  %12087 = vst [vmem:[#allocation40_spill] sm:$0xff] %v8164_v26  ;;  %v3213_v63 = vadd.f32 1.0, %v6080_v45  ;;  %6103 = verf.f32 %v2474_v28  ;;  %v8179_v11 = vmul.f32 %v3211_v14, %v8084_v4  ;;  %v8187_v32 = vpop.f32.mrf.mxu0 }
 0x287   :  { %4652 = vmatprep.subr.bf16.mxu0 %v5901_v17  ;;  %4845 = vmatprep.subr.bf16.mxu1 %v5904_v15  ;;  %v6088_v36 = vpop.eup %6087  ;;  %v2469_v15 = vmul.f32 0.70710677, %v1912_v60  ;;  %v8170_v17 = vpop.f32.mrf.mxu1  ;;  %v3219_v45 = vadd.f32 1.0, %v6086_v48  ;;  %v2476_v60 = vmul.f32 0.70710677, %v1914_v18  ;;  %v1916_v28 = vadd.f32 %v7971_v37, %v7963_v16 }
 0x288   :  { %v6090_v29 = vpop.eup %6089  ;;  %v3226_v53 = vadd.f32 1.0, %v6088_v36  ;;  %v8194_v4 = vmul.f32 %v3213_v63, %v8087_v10  ;;  %v2475_v14 = vmul.f32 0.70710677, %v1723_v40  ;;  %v8199_v21 = vmul.f32 %v3218_v33, %v8090_v62 }
 0x289   :  { %v6092_v30 = vpop.eup %6091  ;;  %v3228_v7 = vadd.f32 1.0, %v6090_v29  ;;  %6105 = verf.f32 %v2469_v15  ;;  %v8202_v37 = vmul.f32 %v3220_v44, %v8099_v22  ;;  %v8228_v36 = vadd.f32 %v8040_v52, %v7943_v13 }
 0x28a   :  { %4653 = vmatpush2.bf16.msra.mxu0 %v5899_v25  ;;  %4846 = vmatpush2.bf16.msra.mxu1 %v5902_v56  ;;  %v8189_v25 = vpop.f32.mrf.mxu1  ;;  %v1727_v56 = vadd.f32 %v7993_v3, %v7943_v13  ;;  %12088 = vst [vmem:[#allocation39_spill] sm:$0xff] %v8199_v21  ;;  %v6094_v10 = vpop.eup %6093  ;;  %v8215_v48 = vmul.f32 %v3226_v53, %v8110_v23  ;;  %6107 = verf.f32 %v2476_v60  ;;  %v8241_v63 = vmul.f32 0.5, %v1723_v40 }
 0x28b   :  { %5008 = vmatprep.subr.bf16.mxu0 %v5907_v34  ;;  %5201 = vmatprep.subr.bf16.mxu1 %v5910_v41  ;;  %12089 = vst [vmem:[#allocation42_spill] sm:$0xff] %v8202_v37  ;;  %v8205_v34 = vmul.f32 0.5, %v8129_v31  ;;  %v8212_v41 = vmul.f32 %v3219_v45, %v8102_v24  ;;  %v8219_v3 = vadd.f32 %v8015_v59, %v7957_v54  ;;  %v6096_v62 = vpop.eup %6095  ;;  %v8224_v31 = vmul.f32 0.5, %v1914_v18  ;;  %v8230_v24 = vpop.f32.mrf.mxu0  ;;  %v12100_v37 = vld [vmem:[#allocation31_spill] sm:$0xff] }
 0x28c   :  { %2161 = vmatmul.mubr.bf16.gmra.mxu0 %v7751_v12  ;;  %2354 = vmatmul.mubr.bf16.gmra.mxu1 %v7751_v12  ;;  %v3221_v12 = vadd.f32 1.0, %v6092_v30  ;;  %12090 = vst [vmem:[#allocation41_spill] sm:$0xff] %v8215_v48  ;;  %v8222_v22 = vmul.f32 %v3228_v7, %v8115_v42  ;;  %v8232_v23 = vpop.f32.mrf.mxu1  ;;  %6109 = verf.f32 %v2475_v14  ;;  %v2482_v59 = vmul.f32 0.70710677, %v1727_v56  ;;  %v6098_v18 = vpop.eup %6097  ;;  %v12104_v48 = vld [vmem:[#allocation17_spill] sm:$0xff] }
 0x28d   :  { %2170 = vmatprep.mubr.bf16.mxu0 %v7754_v0  ;;  %2363 = vmatprep.mubr.bf16.mxu1 %v7754_v0  ;;  %v8209_v0 = vadd.f32 %v7995_v2, %v7948_v20  ;;  %v2477_v2 = vmul.f32 0.70710677, %v1916_v28  ;;  %v8239_v42 = vadd.f32 %v8042_v61, %v7948_v20  ;;  %v3227_v29 = vadd.f32 1.0, %v6094_v10  ;;  %v8260_v60 = vpop.f32.mrf.mxu0  ;;  %v12093_v10 = vld [vmem:[#allocation28_spill] sm:$0xff] }
 0x28e   :  { %12091 = vst [vmem:[#allocation44_spill] sm:$0xff] %v8222_v22  ;;  %v8235_v15 = vmul.f32 %v3221_v12, %v8107_v39  ;;  %v1922_v30 = vadd.f32 %v8017_v57, %v7963_v16  ;;  %v3229_v39 = vadd.f32 1.0, %v6096_v62  ;;  %v8248_v44 = vmul.f32 0.5, %v1916_v28  ;;  %v8262_v7 = vpop.f32.mrf.mxu1 }
 0x28f   :  { %v2484_v52 = vmul.f32 0.70710677, %v8209_v0  ;;  %v2483_v45 = vmul.f32 0.70710677, %v8219_v3  ;;  %6111 = verf.f32 %v2477_v2  ;;  %v2490_v53 = vmul.f32 0.70710677, %v8228_v36 }
 0x290   :  { %12092 = vst [vmem:[#allocation43_spill] sm:$0xff] %v8235_v15  ;;  %v8258_v57 = vadd.f32 %v8060_v51, %v7957_v54  ;;  %6113 = verf.f32 %v2482_v59  ;;  %v2492_v28 = vmul.f32 0.70710677, %v8239_v42  ;;  %v8269_v12 = vadd.f32 %v8062_v8, %v7963_v16  ;;  %v12094_v2 = vld [vmem:[#allocation29_spill] sm:$0xff]  ;;  %v8294_v49 = vpop.f32.mrf.mxu1 }
 0x291   :  { %v6100_v61 = vpop.eup %6099  ;;  %v8272_v51 = vmul.f32 %v3227_v29, %v12093_v10  ;;  %6115 = verf.f32 %v2484_v52  ;;  %v2485_v62 = vmul.f32 0.70710677, %v1922_v30  ;;  %v8276_v40 = vadd.f32 %v12094_v2, %v7943_v13  ;;  %v12097_v52 = vld [vmem:[#allocation32_spill] sm:$0xff]  ;;  %v8292_v2 = vpop.f32.mrf.mxu0 }
 0x292   :  { %v6102_v14 = vpop.eup %6101  ;;  %v3236_v59 = vadd.f32 1.0, %v6100_v61  ;;  %6117 = verf.f32 %v2483_v45  ;;  %v8285_v46 = vmul.f32 0.5, %v1727_v56  ;;  %v2491_v29 = vmul.f32 0.70710677, %v8258_v57  ;;  %v12099_v56 = vld [vmem:[#allocation36_spill] sm:$0xff] }
 0x293   :  { %v6104_v33 = vpop.eup %6103  ;;  %6119 = verf.f32 %v2490_v53  ;;  %v8290_v10 = vadd.f32 %v12097_v52, %v7957_v54  ;;  %v2493_v45 = vmul.f32 0.70710677, %v8269_v12  ;;  %v8302_v61 = vadd.f32 %v12099_v56, %v7963_v16 }
 0x294   :  { %2171 = vmatmul.mubr.bf16.gmra.mxu0 %v7763_v19  ;;  %2364 = vmatmul.mubr.bf16.gmra.mxu1 %v7763_v19  ;;  %v3234_v19 = vadd.f32 1.0, %v6098_v18  ;;  %v12096_v18 = vld [vmem:[#allocation26_spill] sm:$0xff]  ;;  %6121 = verf.f32 %v2492_v28  ;;  %v3242_v53 = vadd.f32 1.0, %v6104_v33  ;;  %v8307_v52 = vadd.f32 %v8139_v27, %v7943_v13  ;;  %v12102_v28 = vld [vmem:[#allocation35_spill] sm:$0xff] }
 0x295   :  { %2180 = vmatprep.mubr.bf16.mxu0 %v7781_v43  ;;  %2373 = vmatprep.mubr.bf16.mxu1 %v7781_v43  ;;  %v8279_v43 = vmul.f32 %v3229_v39, %v8125_v9  ;;  %v8283_v8 = vadd.f32 %v12096_v18, %v7948_v20  ;;  %6123 = verf.f32 %v2485_v62  ;;  %v2498_v18 = vmul.f32 0.70710677, %v8276_v40  ;;  %v12103_v33 = vld [vmem:[#allocation30_spill] sm:$0xff] }
 0x296   :  { %v6106_v9 = vpop.eup %6105  ;;  %v8297_v39 = vmul.f32 %v3234_v19, %v8131_v5  ;;  %v8310_v22 = vmul.f32 %v3236_v59, %v12100_v37  ;;  %v8313_v5 = vmul.f32 0.5, %v8209_v0  ;;  %v8318_v56 = vadd.f32 %v12102_v28, %v7948_v20  ;;  %v8326_v0 = vpop.f32.mrf.mxu0 }
 0x297   :  { %12095 = vst [vmem:[#allocation46_spill] sm:$0xff] %v8279_v43  ;;  %v2500_v19 = vmul.f32 0.70710677, %v8283_v8  ;;  %v6108_v62 = vpop.eup %6107  ;;  %v3235_v21 = vadd.f32 1.0, %v6102_v14  ;;  %v8323_v27 = vmul.f32 0.5, %v8219_v3  ;;  %6125 = verf.f32 %v2491_v29  ;;  %v8328_v59 = vpop.f32.mrf.mxu1 }
 0x298   :  { %12098 = vst [vmem:[#allocation48_spill] sm:$0xff] %v8297_v39  ;;  %12101 = vst [vmem:[#allocation47_spill] sm:$0xff] %v8310_v22  ;;  %v2499_v37 = vmul.f32 0.70710677, %v8290_v10  ;;  %v3237_v28 = vadd.f32 1.0, %v6106_v9  ;;  %v8332_v43 = vmul.f32 0.5, %v1922_v30  ;;  %6127 = verf.f32 %v2493_v45 }
 0x299   :  { %v2501_v14 = vmul.f32 0.70710677, %v8302_v61  ;;  %v8336_v3 = vmul.f32 %v3242_v53, %v8205_v34  ;;  %6129 = verf.f32 %v2498_v18  ;;  %v2506_v29 = vmul.f32 0.70710677, %v8307_v52  ;;  %v8360_v53 = vpop.f32.mrf.mxu1  ;;  %v12115_v22 = vld [vmem:[#allocation20_spill] sm:$0xff] }
 0x29a   :  { %v8341_v15 = vadd.f32 %v8168_v1, %v7957_v54  ;;  %v3244_v47 = vadd.f32 1.0, %v6108_v62  ;;  %6131 = verf.f32 %v2500_v19  ;;  %v8346_v30 = vadd.f32 %v8170_v17, %v7963_v16  ;;  %v8358_v1 = vpop.f32.mrf.mxu0 }
 0x29b   :  { %12105 = vst [vmem:[#allocation45_spill] sm:$0xff] %v8336_v3  ;;  %v8349_v9 = vmul.f32 %v3235_v21, %v8166_v6  ;;  %v8352_v34 = vmul.f32 0.5, %v8228_v36  ;;  %6133 = verf.f32 %v2499_v37  ;;  %v8356_v45 = vadd.f32 %v8187_v32, %v7943_v13 }
 0x29c   :  { %2181 = vmatmul.mubr.bf16.gmra.mxu0 %v12103_v33  ;;  %2374 = vmatmul.mubr.bf16.gmra.mxu1 %v12103_v33  ;;  %v6110_v33 = vpop.eup %6109  ;;  %v8363_v19 = vmul.f32 %v3237_v28, %v8172_v50  ;;  %v8366_v6 = vmul.f32 0.5, %v8239_v42  ;;  %6135 = verf.f32 %v2501_v14  ;;  %v2507_v32 = vmul.f32 0.70710677, %v8341_v15  ;;  %v12109_v14 = vld [vmem:[#allocation16_spill] sm:$0xff] }
 0x29d   :  { %2190 = vmatprep.mubr.bf16.mxu0 %v12104_v48  ;;  %2383 = vmatprep.mubr.bf16.mxu1 %v12104_v48  ;;  %v2508_v48 = vmul.f32 0.70710677, %v8318_v56  ;;  %12106 = vst [vmem:[#allocation50_spill] sm:$0xff] %v8349_v9  ;;  %v6112_v18 = vpop.eup %6111  ;;  %v3243_v17 = vadd.f32 1.0, %v6110_v33  ;;  %6137 = verf.f32 %v2506_v29  ;;  %v8373_v62 = vadd.f32 %v8189_v25, %v7948_v20 }
 0x29e   :  { %12107 = vst [vmem:[#allocation52_spill] sm:$0xff] %v8363_v19  ;;  %v6114_v21 = vpop.eup %6113  ;;  %v8376_v50 = vmul.f32 %v3244_v47, %v8224_v31  ;;  %v8379_v28 = vmul.f32 0.5, %v8258_v57  ;;  %v2509_v42 = vmul.f32 0.70710677, %v8346_v30  ;;  %v3245_v29 = vadd.f32 1.0, %v6112_v18  ;;  %v8392_v31 = vpop.f32.mrf.mxu0 }
 0x29f   :  { %v6116_v37 = vpop.eup %6115  ;;  %6139 = verf.f32 %v2508_v48  ;;  %v8385_v36 = vmul.f32 0.5, %v8269_v12  ;;  %v2514_v25 = vmul.f32 0.70710677, %v8356_v45  ;;  %v8390_v47 = vadd.f32 %v8230_v24, %v7957_v54  ;;  %v8394_v57 = vpop.f32.mrf.mxu1  ;;  %v12110_v48 = vld [vmem:[#allocation21_spill] sm:$0xff] }
 0x2a0   :  { %12108 = vst [vmem:[#allocation51_spill] sm:$0xff] %v8376_v50  ;;  %v6118_v33 = vpop.eup %6117  ;;  %v8399_v18 = vmul.f32 %v3243_v17, %v8241_v63  ;;  %v8402_v12 = vmul.f32 0.5, %v8276_v40  ;;  %v8405_v39 = vmul.f32 0.5, %v8283_v8  ;;  %v8409_v24 = vadd.f32 %v8260_v60, %v7943_v13 }
 0x2a1   :  { %v8412_v19 = vmul.f32 0.5, %v8290_v10  ;;  %6141 = verf.f32 %v2507_v32  ;;  %v8417_v63 = vadd.f32 %v8232_v23, %v7963_v16  ;;  %v3250_v17 = vadd.f32 1.0, %v6114_v21  ;;  %v8425_v32 = vpop.f32.mrf.mxu0  ;;  %v8427_v26 = vpop.f32.mrf.mxu1 }
 0x2a2   :  { %12111 = vst [vmem:[#allocation56_spill] sm:$0xff] %v8399_v18  ;;  %v3252_v18 = vadd.f32 1.0, %v6116_v37  ;;  %6143 = verf.f32 %v2509_v42  ;;  %v8422_v60 = vmul.f32 %v3245_v29, %v8248_v44  ;;  %v2515_v10 = vmul.f32 0.70710677, %v8390_v47 }
 0x2a3   :  { %6145 = verf.f32 %v2514_v25  ;;  %v8430_v58 = vmul.f32 0.5, %v8302_v61  ;;  %v2522_v21 = vmul.f32 0.70710677, %v8409_v24  ;;  %v8435_v37 = vadd.f32 %v8262_v7, %v7948_v20 }
 0x2a4   :  { %2191 = vmatmul.mubr.bf16.gmra.mxu0 %v12109_v14  ;;  %2384 = vmatmul.mubr.bf16.gmra.mxu1 %v12109_v14  ;;  %v6120_v14 = vpop.eup %6119  ;;  %12112 = vst [vmem:[#allocation49_spill] sm:$0xff] %v8422_v60  ;;  %v3251_v42 = vadd.f32 1.0, %v6118_v33  ;;  %v2517_v25 = vmul.f32 0.70710677, %v8417_v63  ;;  %v8439_v8 = vmul.f32 %v3250_v17, %v8285_v46  ;;  %v8445_v61 = vmul.f32 0.5, %v8307_v52  ;;  %v8462_v52 = vpop.f32.mrf.mxu0  ;;  %v12121_v60 = vld [vmem:[#allocation34_spill] sm:$0xff] }
 0x2a5   :  { %2200 = vmatprep.mubr.bf16.mxu0 %v12110_v48  ;;  %2393 = vmatprep.mubr.bf16.mxu1 %v12110_v48  ;;  %v6122_v3 = vpop.eup %6121  ;;  %v2516_v48 = vmul.f32 0.70710677, %v8373_v62  ;;  %v3258_v9 = vadd.f32 1.0, %v6120_v14  ;;  %v8449_v7 = vadd.f32 %v8292_v2, %v7957_v54  ;;  %v8457_v46 = vmul.f32 0.5, %v8318_v56  ;;  %v12117_v2 = vld [vmem:[#allocation33_spill] sm:$0xff] }
 0x2a6   :  { %v6124_v40 = vpop.eup %6123  ;;  %v3260_v35 = vadd.f32 1.0, %v6122_v3  ;;  %12113 = vst [vmem:[#allocation54_spill] sm:$0xff] %v8439_v8  ;;  %v8442_v3 = vmul.f32 %v3252_v18, %v8313_v5  ;;  %v8460_v5 = vmul.f32 0.5, %v8341_v15  ;;  %v8464_v18 = vpop.f32.mrf.mxu1  ;;  %v2524_v15 = vmul.f32 0.70710677, %v8435_v37 }
 0x2a7   :  { %v6126_v23 = vpop.eup %6125  ;;  %v3253_v29 = vadd.f32 1.0, %v6124_v40  ;;  %6147 = verf.f32 %v2516_v48  ;;  %v8454_v48 = vmul.f32 %v3258_v9, %v8352_v34  ;;  %v8472_v9 = vmul.f32 0.5, %v8346_v30 }
 0x2a8   :  { %v6128_v44 = vpop.eup %6127  ;;  %12114 = vst [vmem:[#allocation55_spill] sm:$0xff] %v8442_v3  ;;  %6149 = verf.f32 %v2515_v10  ;;  %v8469_v40 = vmul.f32 %v3260_v35, %v8366_v6  ;;  %v8476_v34 = vmul.f32 %v3251_v42, %v8323_v27  ;;  %v1946_v10 = vadd.f32 %v8294_v49, %v7963_v16  ;;  %v8494_v49 = vpop.f32.mrf.mxu0 }
 0x2a9   :  { %v6130_v14 = vpop.eup %6129  ;;  %12116 = vst [vmem:[#allocation53_spill] sm:$0xff] %v8454_v48  ;;  %6151 = verf.f32 %v2522_v21  ;;  %v8479_v17 = vmul.f32 %v3253_v29, %v8332_v43  ;;  %v3259_v35 = vadd.f32 1.0, %v6126_v23  ;;  %v8484_v6 = vmul.f32 0.5, %v8356_v45  ;;  %v8496_v23 = vpop.f32.mrf.mxu1 }
 0x2aa   :  { %v6132_v33 = vpop.eup %6131  ;;  %12118 = vst [vmem:[#allocation61_spill] sm:$0xff] %v8469_v40  ;;  %12119 = vst [vmem:[#allocation60_spill] sm:$0xff] %v8476_v34  ;;  %6153 = verf.f32 %v2517_v25  ;;  %v8487_v30 = vmul.f32 0.5, %v8373_v62  ;;  %v2523_v21 = vmul.f32 0.70710677, %v8449_v7  ;;  %v3261_v43 = vadd.f32 1.0, %v6128_v44 }
 0x2ab   :  { %12120 = vst [vmem:[#allocation63_spill] sm:$0xff] %v8479_v17  ;;  %v3266_v42 = vadd.f32 1.0, %v6130_v14  ;;  %v1757_v29 = vadd.f32 %v8326_v0, %v7943_v13  ;;  %v3268_v62 = vadd.f32 1.0, %v6132_v33  ;;  %6155 = verf.f32 %v2524_v15  ;;  %v12155_v40 = vld [vmem:[#allocation39_spill] sm:$0xff] }
 0x2ac   :  { %2201 = vmatmul.mubr.bf16.gmra.mxu0 %v12115_v22  ;;  %2394 = vmatmul.mubr.bf16.gmra.mxu1 %v12115_v22  ;;  %v6134_v22 = vpop.eup %6133  ;;  %v8501_v34 = vmul.f32 0.5, %v8390_v47  ;;  %v2525_v27 = vmul.f32 0.70710677, %v1946_v10  ;;  %v1950_v44 = vadd.f32 %v8328_v59, %v7948_v20  ;;  %v8506_v0 = vmul.f32 %v3259_v35, %v8379_v28  ;;  %v8519_v28 = vpop.f32.mrf.mxu0 }
 0x2ad   :  { %2210 = vmatprep.mubr.bf16.mxu0 %v12117_v2  ;;  %2403 = vmatprep.mubr.bf16.mxu1 %v12117_v2  ;;  %v6136_v56 = vpop.eup %6135  ;;  %v3267_v25 = vadd.f32 1.0, %v6134_v22  ;;  %6157 = verf.f32 %v2523_v21  ;;  %v8511_v22 = vmul.f32 %v3261_v43, %v8385_v36  ;;  %v8514_v47 = vmul.f32 %v3266_v42, %v8402_v12 }
 0x2ae   :  { %v6138_v2 = vpop.eup %6137  ;;  %v3269_v8 = vadd.f32 1.0, %v6136_v56  ;;  %v8517_v59 = vmul.f32 0.5, %v8417_v63  ;;  %v2530_v15 = vmul.f32 0.70710677, %v1757_v29  ;;  %v8521_v56 = vpop.f32.mrf.mxu1  ;;  %v3034_v12 = vmul.f32 0.5, %v8409_v24 }
 0x2af   :  { %v6140_v50 = vpop.eup %6139  ;;  %v3274_v17 = vadd.f32 1.0, %v6138_v2  ;;  %12122 = vst [vmem:[#allocation62_spill] sm:$0xff] %v8514_v47  ;;  %v8526_v2 = vmul.f32 %v3268_v62, %v8405_v39  ;;  %v8529_v36 = vmul.f32 %v3267_v25, %v8412_v19  ;;  %v8533_v63 = vmul.f32 0.5, %v8435_v37 }
 0x2b0   :  { %v6142_v14 = vpop.eup %6141  ;;  %v3276_v48 = vadd.f32 1.0, %v6140_v50  ;;  %v12123_v50 = vld [vmem:[#allocation23_spill] sm:$0xff]  ;;  %6159 = verf.f32 %v2525_v27  ;;  %v2532_v21 = vmul.f32 0.70710677, %v1950_v44  ;;  %v1759_v43 = vadd.f32 %v8358_v1, %v7957_v54  ;;  %v8552_v1 = vpop.f32.mrf.mxu1 }
 0x2b1   :  { %v6144_v33 = vpop.eup %6143  ;;  %12124 = vst [vmem:[#allocation65_spill] sm:$0xff] %v8526_v2  ;;  %v8536_v35 = vmul.f32 %v3274_v17, %v8445_v61  ;;  %v8541_v39 = vmul.f32 %v3269_v8, %v8430_v58  ;;  %v3275_v62 = vadd.f32 1.0, %v6142_v14  ;;  %v1952_v24 = vadd.f32 %v8360_v53, %v7963_v16  ;;  %v8550_v17 = vpop.f32.mrf.mxu0 }
 0x2b2   :  { %v8544_v19 = vmul.f32 %v3276_v48, %v8457_v46  ;;  %v3277_v37 = vadd.f32 1.0, %v6144_v33  ;;  %6161 = verf.f32 %v2530_v15  ;;  %v1761_v61 = vadd.f32 %v8392_v31, %v7943_v13 }
 0x2b3   :  { %12125 = vst [vmem:[#allocation64_spill] sm:$0xff] %v8536_v35  ;;  %12126 = vst [vmem:[#allocation67_spill] sm:$0xff] %v8541_v39  ;;  %v8555_v58 = vmul.f32 0.5, %v8449_v7  ;;  %v8557_v8 = vmul.f32 0.5, %v1946_v10  ;;  %v8559_v48 = vmul.f32 0.5, %v1757_v29  ;;  %v1954_v53 = vadd.f32 %v8394_v57, %v7948_v20  ;;  %v8582_v14 = vpop.f32.mrf.mxu0  ;;  %v12147_v35 = vld [vmem:[#allocation46_spill] sm:$0xff] }
 0x2b4   :  { %2211 = vmatmul.mubr.bf16.gmra.mxu0 %v12121_v60  ;;  %2404 = vmatmul.mubr.bf16.gmra.mxu1 %v12121_v60  ;;  %v6146_v60 = vpop.eup %6145  ;;  %12127 = vst [vmem:[#allocation66_spill] sm:$0xff] %v8544_v19  ;;  %6163 = verf.f32 %v2532_v21  ;;  %v2531_v33 = vmul.f32 0.70710677, %v1759_v43  ;;  %v8568_v7 = vmul.f32 %v3275_v62, %v8460_v5  ;;  %v8570_v10 = vmul.f32 0.5, %v1950_v44  ;;  %v8584_v5 = vpop.f32.mrf.mxu1  ;;  %v12131_v44 = vld [vmem:[#allocation22_spill] sm:$0xff] }
 0x2b5   :  { %2220 = vmatprep.mubr.bf16.mxu0 %v12123_v50  ;;  %2413 = vmatprep.mubr.bf16.mxu1 %v12123_v50  ;;  %v6148_v42 = vpop.eup %6147  ;;  %v3282_v25 = vadd.f32 1.0, %v6146_v60  ;;  %v2533_v29 = vmul.f32 0.70710677, %v1952_v24  ;;  %v12128_v60 = vld [vmem:[#allocation25_spill] sm:$0xff]  ;;  %v8575_v57 = vmul.f32 %v3277_v37, %v8472_v9  ;;  %v1763_v50 = vadd.f32 %v8425_v32, %v7957_v54 }
 0x2b6   :  { %v6150_v27 = vpop.eup %6149  ;;  %v3284_v31 = vadd.f32 1.0, %v6148_v42  ;;  %v2538_v42 = vmul.f32 0.70710677, %v1761_v61  ;;  %v2540_v9 = vmul.f32 0.70710677, %v1954_v53  ;;  %6165 = verf.f32 %v2531_v33 }
 0x2b7   :  { %v6152_v46 = vpop.eup %6151  ;;  %12129 = vst [vmem:[#allocation70_spill] sm:$0xff] %v8575_v57  ;;  %v8578_v21 = vmul.f32 %v3282_v25, %v8484_v6  ;;  %v1956_v6 = vadd.f32 %v8427_v26, %v7963_v16  ;;  %v3283_v32 = vadd.f32 1.0, %v6150_v27  ;;  %6167 = verf.f32 %v2533_v29  ;;  %v8607_v27 = vpop.f32.mrf.mxu1 }
 0x2b8   :  { %v6154_v15 = vpop.eup %6153  ;;  %v3290_v62 = vadd.f32 1.0, %v6152_v46  ;;  %v8593_v25 = vmul.f32 %v3284_v31, %v8487_v30  ;;  %v8595_v2 = vmul.f32 0.5, %v1952_v24  ;;  %v8597_v19 = vmul.f32 0.5, %v1761_v61  ;;  %v8605_v31 = vpop.f32.mrf.mxu0 }
 0x2b9   :  { %12130 = vst [vmem:[#allocation69_spill] sm:$0xff] %v8578_v21  ;;  %v6156_v37 = vpop.eup %6155  ;;  %v3285_v45 = vadd.f32 1.0, %v6154_v15  ;;  %6169 = verf.f32 %v2538_v42  ;;  %v2539_v26 = vmul.f32 0.70710677, %v1763_v50  ;;  %v1960_v30 = vadd.f32 %v8464_v18, %v7948_v20 }
 0x2ba   :  { %12132 = vst [vmem:[#allocation19_spill] sm:$0xff] %v8593_v25  ;;  %v6158_v46 = vpop.eup %6157  ;;  %v8609_v33 = vmul.f32 %v3290_v62, %v3034_v12  ;;  %v3292_v24 = vadd.f32 1.0, %v6156_v37  ;;  %6171 = verf.f32 %v2540_v9  ;;  %v2541_v61 = vmul.f32 0.70710677, %v1956_v6  ;;  %v12136_v9 = vld [vmem:[#allocation24_spill] sm:$0xff] }
 0x2bb   :  { %v8612_v15 = vmul.f32 %v3283_v32, %v8501_v34  ;;  %v3717_v18 = vpack.c.bf16 %v8194_v4, %v8161_v38  ;;  %v3291_v42 = vadd.f32 1.0, %v6158_v46  ;;  %v8621_v47 = vmul.f32 0.5, %v1763_v50  ;;  %v1780_v38 = vpop.f32.mrf.mxu0  ;;  %v12141_v25 = vld [vmem:[#allocation68_spill] sm:$0xff] }
 0x2bc   :  { %2221 = vmatmul.mubr.bf16.gmra.mxu0 %v12128_v60  ;;  %2414 = vmatmul.mubr.bf16.gmra.mxu1 %v12128_v60  ;;  %v8588_v60 = vmul.f32 0.5, %v1759_v43  ;;  %v1767_v43 = vadd.f32 %v8462_v52, %v7943_v13  ;;  %12133 = vst [vmem:[#allocation18_spill] sm:$0xff] %v8609_v33  ;;  %v8615_v52 = vmul.f32 %v3285_v45, %v8517_v59  ;;  %6173 = verf.f32 %v2539_v26  ;;  %v5916_v59 = vld [vmem:[#allocation10 + $0x364] ss:$8 sps:$4 sm:$0xff]   ;;  %v12146_v33 = vld [vmem:[#allocation43_spill] sm:$0xff] }
 0x2bd   :  { %2230 = vmatprep.mubr.bf16.mxu0 %v12131_v44  ;;  %2423 = vmatprep.mubr.bf16.mxu1 %v12131_v44  ;;  %v8601_v44 = vmul.f32 0.5, %v1954_v53  ;;  %12134 = vst [vmem:[#allocation28_spill] sm:$0xff] %v8612_v15  ;;  %v3715_v53 = vpack.c.bf16 %v8179_v11, %v8156_v55  ;;  %v6160_v29 = vpop.eup %6159  ;;  %v1769_v62 = vadd.f32 %v8494_v49, %v7957_v54  ;;  %v8627_v34 = vmul.f32 0.5, %v1956_v6  ;;  %v1973_v11 = vpop.f32.mrf.mxu1  ;;  %v5925_v15 = vld [vmem:[#allocation10 + $0x244] ss:$8 sps:$4 sm:$0xff]  }
 0x2be   :  { %12135 = vst [vmem:[#allocation29_spill] sm:$0xff] %v8615_v52  ;;  %v2546_v12 = vmul.f32 0.70710677, %v1767_v43  ;;  %v2548_v45 = vmul.f32 0.70710677, %v1960_v30  ;;  %v1962_v55 = vadd.f32 %v8496_v23, %v7963_v16  ;;  %v8634_v49 = vmul.f32 %v3292_v24, %v8533_v63 }
 0x2bf   :  { %v6162_v4 = vpop.eup %6161  ;;  %6175 = verf.f32 %v2541_v61  ;;  %v1771_v50 = vadd.f32 %v8519_v28, %v7943_v13  ;;  %v3293_v6 = vadd.f32 1.0, %v6160_v29  ;;  %v8638_v37 = vmul.f32 0.5, %v1767_v43  ;;  %v5905_v28 = vld [vmem:[#allocation10 + $0x270] ss:$8 sps:$4 sm:$0xff]  }
 0x2c0   :  { %12137 = vst [vmem:[#allocation26_spill] sm:$0xff] %v8634_v49  ;;  %v8640_v32 = vmul.f32 0.5, %v1960_v30  ;;  %v8644_v23 = vadd.f32 %v8521_v56, %v7948_v20  ;;  %v8647_v26 = vmul.f32 %v3291_v42, %v8555_v58  ;;  %6177 = verf.f32 %v2546_v12  ;;  %v8657_v56 = vpop.f32.mrf.mxu0  ;;  %v5908_v58 = vld [vmem:[#allocation10 + $0x370] ss:$8 sps:$4 sm:$0xff]   ;;  %v5913_v12 = vld [vmem:[#allocation10 + $0x264] ss:$8 sps:$4 sm:$0xff]  }
 0x2c1   :  { %v6164_v46 = vpop.eup %6163  ;;  %v2547_v63 = vmul.f32 0.70710677, %v1769_v62  ;;  %v8651_v24 = vadd.f32 %v8550_v17, %v7957_v54  ;;  %v3298_v61 = vadd.f32 1.0, %v6162_v4  ;;  %6179 = verf.f32 %v2548_v45 }
 0x2c2   :  { %12138 = vst [vmem:[#allocation32_spill] sm:$0xff] %v8647_v26  ;;  %v2549_v43 = vmul.f32 0.70710677, %v1962_v55  ;;  %v8655_v30 = vadd.f32 %v8552_v1, %v7963_v16  ;;  %v8663_v29 = vmul.f32 0.5, %v1769_v62  ;;  %v2554_v17 = vmul.f32 0.70710677, %v1771_v50  ;;  %v8694_v52 = vpop.f32.mrf.mxu0 }
 0x2c3   :  { %v8667_v42 = vadd.f32 %v8582_v14, %v7943_v13  ;;  %v3300_v1 = vadd.f32 1.0, %v6164_v46  ;;  %v2556_v45 = vmul.f32 0.70710677, %v8644_v23  ;;  %v3723_v4 = vpack.c.bf16 %v8272_v51, %v8212_v41  ;;  %v6166_v21 = vpop.eup %6165  ;;  %v12140_v14 = vld [vmem:[#allocation37_spill] sm:$0xff] }
 0x2c4   :  { %2231 = vmatmul.mubr.bf16.gmra.mxu0 %v12136_v9  ;;  %2424 = vmatmul.mubr.bf16.gmra.mxu1 %v12136_v9  ;;  %v8670_v9 = vmul.f32 %v3293_v6, %v8557_v8  ;;  %6181 = verf.f32 %v2547_v63  ;;  %v2555_v62 = vmul.f32 0.70710677, %v8651_v24  ;;  %v12142_v49 = vpack.c.bf16 %v12140_v14, %v12141_v25  ;;  %v12143_v8 = vld [vmem:[#allocation40_spill] sm:$0xff]  ;;  %v12144_v6 = vld [vmem:[#allocation38_spill] sm:$0xff]  ;;  %v6168_v41 = vpop.eup %6167 }
 0x2c5   :  { %4654 = vmatprep.mubr.bf16.mxu0 %v3715_v53  ;;  %4847 = vmatprep.mubr.bf16.mxu1 %v3717_v18  ;;  %v8659_v53 = vpop.f32.mrf.mxu1  ;;  %v8677_v18 = vadd.f32 %v1780_v38, %v7943_v13  ;;  %v12145_v46 = vpack.c.bf16 %v12143_v8, %v12144_v6  ;;  %v8688_v51 = vmul.f32 %v3298_v61, %v8559_v48  ;;  %6183 = verf.f32 %v2549_v43  ;;  %v5914_v14 = vld [vmem:[#allocation10 + $0x360] ss:$8 sps:$4 sm:$0xff]  }
 0x2c6   :  { %12139 = vst [vmem:[#allocation36_spill] sm:$0xff] %v8670_v9  ;;  %v3725_v9 = vpack.c.bf16 %v12147_v35, %v12146_v33  ;;  %v2557_v63 = vmul.f32 0.70710677, %v8655_v30  ;;  %v8692_v38 = vadd.f32 %v1973_v11, %v7948_v20  ;;  %v6170_v8 = vpop.eup %6169  ;;  %v8698_v35 = vmul.f32 0.5, %v1962_v55  ;;  %v5919_v11 = vld [vmem:[#allocation10 + $0x254] ss:$8 sps:$4 sm:$0xff]  }
 0x2c7   :  { %12148 = vst [vmem:[#allocation31_spill] sm:$0xff] %v8688_v51  ;;  %v8696_v25 = vpop.f32.mrf.mxu1  ;;  %6185 = verf.f32 %v2554_v17  ;;  %v2562_v48 = vmul.f32 0.70710677, %v8667_v42  ;;  %v8703_v33 = vadd.f32 %v8584_v5, %v7948_v20  ;;  %v6172_v61 = vpop.eup %6171  ;;  %v8706_v43 = vmul.f32 %v3300_v1, %v8570_v10  ;;  %v5922_v17 = vld [vmem:[#allocation10 + $0x354] ss:$8 sps:$4 sm:$0xff]   ;;  %v12164_v51 = vld [vmem:[#allocation45_spill] sm:$0xff] }
 0x2c8   :  { %6187 = verf.f32 %v2556_v45  ;;  %v8712_v55 = vadd.f32 %v8605_v31, %v7957_v54  ;;  %v8716_v5 = vadd.f32 %v8607_v27, %v7963_v16  ;;  %v3301_v10 = vadd.f32 1.0, %v6168_v41  ;;  %v1788_v1 = vpop.f32.mrf.mxu0  ;;  %v5917_v31 = vld [vmem:[#allocation10 + $0x250] ss:$8 sps:$4 sm:$0xff]  }
 0x2c9   :  { %12149 = vst [vmem:[#allocation35_spill] sm:$0xff] %v8706_v43  ;;  %6189 = verf.f32 %v2555_v62  ;;  %v8720_v45 = vpop.f32.mrf.mxu1  ;;  %v8725_v27 = vadd.f32 %v8657_v56, %v7957_v54  ;;  %v5920_v62 = vld [vmem:[#allocation10 + $0x350] ss:$8 sps:$4 sm:$0xff]   ;;  %v8730_v41 = vadd.f32 %v8659_v53, %v7963_v16  ;;  %v5928_v56 = vld [vmem:[#allocation10 + $0x344] ss:$8 sps:$4 sm:$0xff]  }
 0x2ca   :  { %6191 = verf.f32 %v2557_v63  ;;  %v12150_v63 = vld [vmem:[#allocation50_spill] sm:$0xff]  ;;  %v2565_v3 = vmul.f32 0.70710677, %v8716_v5  ;;  %v12154_v53 = vld [vmem:[#allocation41_spill] sm:$0xff]  ;;  %v8808_v43 = vmul.f32 0.5, %v8712_v55 }
 0x2cb   :  { %6193 = verf.f32 %v2562_v48  ;;  %v12152_v48 = vld [vmem:[#allocation52_spill] sm:$0xff]  ;;  %v12156_v57 = vpack.c.bf16 %v12154_v53, %v12155_v40 }
 0x2cc   :  { %4655 = vmatmul.mubr.bf16.vlgmr.msra.gmra.mxu0 %v12142_v49  ;;  %4848 = vmatmul.mubr.bf16.vlgmr.msra.gmra.mxu1 %v12145_v46  ;;  %v5911_v49 = vld [vmem:[#allocation10 + $0x260] ss:$8 sps:$4 sm:$0xff]   ;;  %v2563_v46 = vmul.f32 0.70710677, %v8712_v55 }
 0x2cd   :  { %5009 = vmatpush1.bf16.msra.mxu0 %v5905_v28  ;;  %4664 = vmatprep.mubr.bf16.mxu0 %v3723_v4  ;;  %v8708_v28 = vmul.f32 0.5, %v1771_v50  ;;  %v3299_v4 = vadd.f32 1.0, %v6166_v21  ;;  %v2572_v50 = vmul.f32 0.70710677, %v8692_v38  ;;  %v2564_v21 = vmul.f32 0.70710677, %v8703_v33 }
 0x2ce   :  { %4857 = vmatprep.mubr.bf16.mxu1 %v3725_v9  ;;  %5202 = vmatpush1.bf16.msra.mxu1 %v5908_v58  ;;  %v2570_v58 = vmul.f32 0.70710677, %v8677_v18  ;;  %v3306_v9 = vadd.f32 1.0, %v6170_v8 }
 0x2cf   :  { %5010 = vmatprep.subr.bf16.mxu0 %v5913_v12  ;;  %5203 = vmatprep.subr.bf16.mxu1 %v5916_v59  ;;  %v6174_v59 = vpop.eup %6173  ;;  %v3308_v12 = vadd.f32 1.0, %v6172_v61  ;;  %v12153_v61 = vld [vmem:[#allocation49_spill] sm:$0xff] }
 0x2d0   :  { %v6176_v6 = vpop.eup %6175  ;;  %v3733_v26 = vpack.c.bf16 %v12153_v61, %v12152_v48  ;;  %6195 = verf.f32 %v2570_v58  ;;  %v8750_v48 = vmul.f32 %v3299_v4, %v8588_v60  ;;  %v1790_v58 = vpop.f32.mrf.mxu0  ;;  %v5923_v60 = vld [vmem:[#allocation10 + $0x240] ss:$8 sps:$4 sm:$0xff]   ;;  %v8769_v4 = vmul.f32 %v3301_v10, %v8595_v2  ;;  %v12163_v10 = vld [vmem:[#allocation63_spill] sm:$0xff] }
 0x2d1   :  { %5011 = vmatpush1.bf16.msra.mxu0 %v5911_v49  ;;  %v12151_v49 = vld [vmem:[#allocation56_spill] sm:$0xff]  ;;  %6197 = verf.f32 %v2572_v50  ;;  %v8758_v61 = vpop.f32.mrf.mxu1  ;;  %v5934_v50 = vld [vmem:[#allocation10 + $0x334] ss:$8 sps:$4 sm:$0xff]  }
 0x2d2   :  { %5204 = vmatpush1.bf16.msra.mxu1 %v5914_v14  ;;  %5012 = vmatprep.subr.bf16.mxu0 %v5919_v11  ;;  %v3731_v8 = vpack.c.bf16 %v12151_v49, %v12150_v63  ;;  %v8737_v14 = vmul.f32 0.5, %v8644_v23  ;;  %v8740_v11 = vmul.f32 0.5, %v8651_v24  ;;  %v12157_v63 = vld [vmem:[#allocation44_spill] sm:$0xff]  ;;  %v12158_v49 = vld [vmem:[#allocation42_spill] sm:$0xff]  ;;  %v8753_v23 = vmul.f32 %v3306_v9, %v8597_v19 }
 0x2d3   :  { %5205 = vmatprep.subr.bf16.mxu1 %v5922_v17  ;;  %v12159_v39 = vpack.c.bf16 %v12157_v63, %v12158_v49  ;;  %v6178_v17 = vpop.eup %6177  ;;  %v8756_v24 = vmul.f32 0.5, %v8655_v30  ;;  %6199 = verf.f32 %v2564_v21  ;;  %v8766_v19 = vadd.f32 %v8694_v52, %v7943_v13  ;;  %v5926_v30 = vld [vmem:[#allocation10 + $0x340] ss:$8 sps:$4 sm:$0xff]   ;;  %v5931_v9 = vld [vmem:[#allocation10 + $0x234] ss:$8 sps:$4 sm:$0xff]  }
 0x2d4   :  { %4665 = vmatmul.mubr.bf16.gmra.mxu0 %v12156_v57  ;;  %12160 = vst [vmem:[#allocation30_spill] sm:$0xff] %v8753_v23  ;;  %v6180_v40 = vpop.eup %6179  ;;  %v8761_v57 = vmul.f32 %v3308_v12, %v8601_v44  ;;  %6201 = verf.f32 %v2563_v46  ;;  %v8774_v44 = vadd.f32 %v8696_v25, %v7948_v20  ;;  %v3307_v52 = vadd.f32 1.0, %v6174_v59  ;;  %v8790_v59 = vpop.f32.mrf.mxu1  ;;  %v12162_v49 = vld [vmem:[#allocation60_spill] sm:$0xff] }
 0x2d5   :  { %4858 = vmatmul.mubr.bf16.gmra.mxu1 %v12159_v39  ;;  %4674 = vmatprep.mubr.bf16.mxu0 %v3731_v8  ;;  %v2571_v39 = vmul.f32 0.70710677, %v8725_v27  ;;  %6203 = verf.f32 %v2565_v3  ;;  %v8780_v12 = vadd.f32 %v1788_v1, %v7957_v54  ;;  %v6182_v2 = vpop.eup %6181  ;;  %v3309_v21 = vadd.f32 1.0, %v6176_v6  ;;  %v5932_v6 = vld [vmem:[#allocation10 + $0x330] ss:$8 sps:$4 sm:$0xff]   ;;  %v12165_v23 = vld [vmem:[#allocation48_spill] sm:$0xff] }
 0x2d6   :  { %4867 = vmatprep.mubr.bf16.mxu1 %v3733_v26  ;;  %12161 = vst [vmem:[#allocation17_spill] sm:$0xff] %v8761_v57  ;;  %5013 = vmatpush1.bf16.msra.mxu0 %v5917_v31  ;;  %v2573_v26 = vmul.f32 0.70710677, %v8730_v41  ;;  %v8777_v31 = vmul.f32 0.5, %v8667_v42  ;;  %v8785_v25 = vmul.f32 0.5, %v8703_v33  ;;  %v6184_v46 = vpop.eup %6183  ;;  %v3314_v1 = vadd.f32 1.0, %v6178_v17  ;;  %v8798_v63 = vpop.f32.mrf.mxu1 }
 0x2d7   :  { %5206 = vmatpush1.bf16.msra.mxu1 %v5920_v62  ;;  %5014 = vmatprep.subr.bf16.mxu0 %v5925_v15  ;;  %v8788_v15 = vadd.f32 %v1790_v58, %v7943_v13  ;;  %v1792_v62 = vpop.f32.mrf.mxu0  ;;  %v5929_v42 = vld [vmem:[#allocation10 + $0x230] ss:$8 sps:$4 sm:$0xff]   ;;  %6205 = verf.f32 %v2571_v39  ;;  %v2578_v8 = vmul.f32 0.70710677, %v8766_v19  ;;  %v6186_v33 = vpop.eup %6185  ;;  %v3739_v58 = vpack.c.bf16 %v8506_v0, %v12162_v49  ;;  %v5937_v39 = vld [vmem:[#allocation10 + $0x224] ss:$8 sps:$4 sm:$0xff]  }
 0x2d8   :  { %5207 = vmatprep.subr.bf16.mxu1 %v5928_v56  ;;  %6207 = verf.f32 %v2573_v26  ;;  %v2580_v56 = vmul.f32 0.70710677, %v8774_v44  ;;  %v3741_v17 = vpack.c.bf16 %v8511_v22, %v12163_v10  ;;  %v8805_v3 = vmul.f32 %v3307_v52, %v8621_v47  ;;  %v12167_v49 = vld [vmem:[#allocation51_spill] sm:$0xff] }
 0x2d9   :  { %v8796_v53 = vpop.f32.mrf.mxu0  ;;  %v3316_v26 = vadd.f32 1.0, %v6180_v40  ;;  %v2579_v57 = vmul.f32 0.70710677, %v8780_v12  ;;  %v12166_v0 = vpack.c.bf16 %v12164_v51, %v12165_v23  ;;  %v12168_v22 = vld [vmem:[#allocation47_spill] sm:$0xff]  ;;  %v8818_v10 = vmul.f32 %v3309_v21, %v8627_v34  ;;  %v8827_v51 = vpop.f32.mrf.mxu1 }
 0x2da   :  { %5015 = vmatpush1.bf16.msra.mxu0 %v5923_v60  ;;  %v5940_v60 = vld [vmem:[#allocation10 + $0x324] ss:$8 sps:$4 sm:$0xff]   ;;  %v3315_v47 = vadd.f32 1.0, %v6182_v2  ;;  %v8822_v40 = vadd.f32 %v8720_v45, %v7963_v16  ;;  %v2586_v55 = vmul.f32 0.70710677, %v8788_v15  ;;  %12170 = vst [vmem:[#allocation16_spill] sm:$0xff] %v8827_v51  ;;  %6209 = verf.f32 %v2578_v8 }
 0x2db   :  { %5208 = vmatpush1.bf16.msra.mxu1 %v5926_v30  ;;  %5016 = vmatprep.subr.bf16.mxu0 %v5931_v9  ;;  %v6188_v30 = vpop.eup %6187  ;;  %v12169_v9 = vpack.c.bf16 %v12167_v49, %v12168_v22  ;;  %v8825_v52 = vpop.f32.mrf.mxu0  ;;  %v3317_v49 = vadd.f32 1.0, %v6184_v46  ;;  %v3322_v34 = vadd.f32 1.0, %v6186_v33  ;;  %v5935_v2 = vld [vmem:[#allocation10 + $0x220] ss:$8 sps:$4 sm:$0xff]   ;;  %6211 = verf.f32 %v2580_v56  ;;  %v5946_v46 = vld [vmem:[#allocation10 + $0x314] ss:$8 sps:$4 sm:$0xff]  }
 0x2dc   :  { %5209 = vmatprep.subr.bf16.mxu1 %v5934_v50  ;;  %4675 = vmatmul.mubr.bf16.gmra.mxu0 %v12166_v0  ;;  %v6190_v50 = vpop.eup %6189  ;;  %v8830_v0 = vmul.f32 %v3314_v1, %v8638_v37  ;;  %v5938_v45 = vld [vmem:[#allocation10 + $0x320] ss:$8 sps:$4 sm:$0xff]   ;;  %v3324_v22 = vadd.f32 1.0, %v6188_v30  ;;  %v8841_v37 = vpop.f32.mrf.mxu1  ;;  %v8844_v1 = vmul.f32 %v3316_v26, %v8640_v32  ;;  %v8847_v8 = vmul.f32 0.5, %v8677_v18  ;;  %v5941_v30 = vld [vmem:[#allocation10 + $0x210] ss:$8 sps:$4 sm:$0xff]  }
 0x2dd   :  { %4868 = vmatmul.mubr.bf16.gmra.mxu1 %v12169_v9  ;;  %4684 = vmatprep.mubr.bf16.mxu0 %v3739_v58  ;;  %v6192_v23 = vpop.eup %6191  ;;  %v8833_v58 = vmul.f32 0.5, %v8716_v5  ;;  %v8839_v9 = vpop.f32.mrf.mxu0  ;;  %12171 = vst [vmem:[#allocation21_spill] sm:$0xff] %v8841_v37  ;;  %6213 = verf.f32 %v2579_v57  ;;  %v8850_v5 = vadd.f32 %v1792_v62, %v7957_v54  ;;  %v2581_v33 = vmul.f32 0.70710677, %v8822_v40  ;;  %v5944_v26 = vld [vmem:[#allocation10 + $0x310] ss:$8 sps:$4 sm:$0xff]  }
 0x2de   :  { %4877 = vmatprep.mubr.bf16.mxu1 %v3741_v17  ;;  %5017 = vmatpush1.bf16.msra.mxu0 %v5929_v42  ;;  %v6194_v21 = vpop.eup %6193  ;;  %v8837_v17 = vadd.f32 %v8758_v61, %v7948_v20  ;;  %v5943_v42 = vld [vmem:[#allocation10 + $0x214] ss:$8 sps:$4 sm:$0xff]   ;;  %12172 = vst [vmem:[#allocation20_spill] sm:$0xff] %v8844_v1  ;;  %6215 = verf.f32 %v2586_v55  ;;  %v8858_v56 = vadd.f32 %v8790_v59, %v7963_v16 }
 0x2df   :  { %5210 = vmatpush1.bf16.msra.mxu1 %v5932_v6  ;;  %5018 = vmatprep.subr.bf16.mxu0 %v5937_v39  ;;  %v6196_v61 = vpop.eup %6195  ;;  %v8853_v6 = vmul.f32 %v3315_v47, %v8663_v29  ;;  %v8860_v32 = vpop.f32.mrf.mxu0  ;;  %v8865_v57 = vmul.f32 %v3317_v49, %v8698_v35  ;;  %v8868_v62 = vmul.f32 %v3322_v34, %v8708_v28  ;;  %v3323_v29 = vadd.f32 1.0, %v6190_v50  ;;  %v12178_v50 = vld [vmem:[#allocation67_spill] sm:$0xff]  ;;  %v12179_v49 = vld [vmem:[#allocation70_spill] sm:$0xff]  ;;  %v5949_v34 = vld [vmem:[#allocation10 + $0x204] ss:$8 sps:$4 sm:$0xff]  }
 0x2e0   :  { %5211 = vmatprep.subr.bf16.mxu1 %v5940_v60  ;;  %12173 = vst [vmem:[#allocation33_spill] sm:$0xff] %v8860_v32  ;;  %v8862_v39 = vpop.f32.mrf.mxu1  ;;  %v6198_v18 = vpop.eup %6197  ;;  %v3084_v60 = vmul.f32 0.5, %v8692_v38  ;;  %v8872_v47 = vmul.f32 %v3324_v22, %v8737_v14  ;;  %v2588_v55 = vmul.f32 0.70710677, %v8837_v17  ;;  %v3747_v28 = vpack.c.bf16 %v8568_v7, %v8529_v36  ;;  %v12183_v36 = vld [vmem:[#allocation61_spill] sm:$0xff]  ;;  %v12184_v7 = vld [vmem:[#allocation55_spill] sm:$0xff] }
 0x2e1   :  { %12174 = vst [vmem:[#allocation34_spill] sm:$0xff] %v8862_v39  ;;  %12175 = vst [vmem:[#allocation23_spill] sm:$0xff] %v8865_v57  ;;  %v6200_v59 = vpop.eup %6199  ;;  %v8875_v39 = vpop.f32.mrf.mxu0  ;;  %v3749_v38 = vpack.c.bf16 %v12179_v49, %v12178_v50  ;;  %v3325_v32 = vadd.f32 1.0, %v6192_v23  ;;  %v3330_v14 = vadd.f32 1.0, %v6194_v21  ;;  %v8884_v22 = vmul.f32 0.5, %v8725_v27  ;;  %v12180_v57 = vld [vmem:[#allocation53_spill] sm:$0xff] }
 0x2e2   :  { %5019 = vmatpush1.bf16.msra.mxu0 %v5935_v2  ;;  %12176 = vst [vmem:[#allocation25_spill] sm:$0xff] %v8875_v39  ;;  %v8877_v35 = vpop.f32.mrf.mxu1  ;;  %v5952_v2 = vld [vmem:[#allocation10 + $0x304] ss:$8 sps:$4 sm:$0xff]   ;;  %v2587_v39 = vmul.f32 0.70710677, %v8850_v5  ;;  %v12185_v16 = vpack.c.bf16 %v12183_v36, %v12184_v7  ;;  %v3340_v50 = vadd.f32 1.0, %v6198_v18  ;;  %6217 = verf.f32 %v2581_v33 }
 0x2e3   :  { %5212 = vmatpush1.bf16.msra.mxu1 %v5938_v45  ;;  %12177 = vst [vmem:[#allocation22_spill] sm:$0xff] %v8877_v35  ;;  %5020 = vmatprep.subr.bf16.mxu0 %v5943_v42  ;;  %v6202_v45 = vpop.eup %6201  ;;  %v12181_v35 = vld [vmem:[#allocation54_spill] sm:$0xff]  ;;  %v2589_v23 = vmul.f32 0.70710677, %v8858_v56  ;;  %v8894_v27 = vpop.f32.mrf.mxu0  ;;  %v5947_v49 = vld [vmem:[#allocation10 + $0x200] ss:$8 sps:$4 sm:$0xff]   ;;  %6219 = verf.f32 %v2588_v55  ;;  %v8922_v7 = vmul.f32 %v3330_v14, %v8777_v31 }
 0x2e4   :  { %5213 = vmatprep.subr.bf16.mxu1 %v5946_v46  ;;  %v12182_v51 = vpack.c.bf16 %v12180_v57, %v12181_v35  ;;  %v6204_v42 = vpop.eup %6203  ;;  %v3338_v46 = vadd.f32 1.0, %v6196_v61  ;;  %v8896_v21 = vpop.f32.mrf.mxu1  ;;  %v3332_v37 = vadd.f32 1.0, %v6200_v59  ;;  %v8902_v57 = vmul.f32 0.5, %v8766_v19  ;;  %v5950_v61 = vld [vmem:[#allocation10 + $0x300] ss:$8 sps:$4 sm:$0xff]  }
 0x2e5   :  { %4878 = vmatmul.mubr.bf16.gmra.mxu1 %v12185_v16  ;;  %v8905_v16 = vmul.f32 0.5, %v8774_v44  ;;  %v6206_v33 = vpop.eup %6205  ;;  %v8912_v59 = vmul.f32 %v3323_v29, %v8740_v11  ;;  %v5955_v44 = vld [vmem:[#allocation10 + $0x2f4] ss:$8 sps:$4 sm:$0xff]   ;;  %v3333_v36 = vadd.f32 1.0, %v6204_v42  ;;  %6221 = verf.f32 %v2587_v39  ;;  %12186 = vst [vmem:[#allocation24_spill] sm:$0xff] %v8922_v7 }
 0x2e6   :  { %4685 = vmatmul.mubr.bf16.gmra.mxu0 %v12182_v51  ;;  %4887 = vmatprep.mubr.bf16.mxu1 %v3749_v38  ;;  %v8899_v51 = vmul.f32 0.5, %v8730_v41  ;;  %v8914_v41 = vpop.f32.mrf.mxu0  ;;  %v8916_v19 = vpop.f32.mrf.mxu1  ;;  %v3331_v38 = vadd.f32 1.0, %v6202_v45  ;;  %v8925_v11 = vmul.f32 %v3338_v46, %v8847_v8  ;;  %v8927_v29 = vmul.f32 %v3340_v50, %v3084_v60  ;;  %v5956_v8 = vld [vmem:[#allocation10 + $0x3f0] ss:$8 sps:$4 sm:$0xff]  }
 0x2e7   :  { %4694 = vmatprep.mubr.bf16.mxu0 %v3747_v28  ;;  %5021 = vmatpush1.bf16.msra.mxu0 %v5941_v30  ;;  %v5958_v30 = vld [vmem:[#allocation10 + $0x3f4] ss:$8 sps:$4 sm:$0xff]   ;;  %v8919_v28 = vmul.f32 %v3325_v32, %v8756_v24  ;;  %6223 = verf.f32 %v2589_v23  ;;  %v8934_v24 = vmul.f32 %v3332_v37, %v8785_v25  ;;  %v3339_v32 = vadd.f32 1.0, %v6206_v33  ;;  %v12190_v25 = vld [vmem:[#allocation28_spill] sm:$0xff]  ;;  %v5968_v7 = vld [vmem:[#allocation10 + $0x3d0] ss:$8 sps:$4 sm:$0xff]  }
 0x2e8   :  { %5214 = vmatpush1.bf16.msra.mxu1 %v5944_v26  ;;  %5022 = vmatprep.subr.bf16.mxu0 %v5949_v34  ;;  %v6208_v26 = vpop.eup %6207  ;;  %12187 = vst [vmem:[#allocation37_spill] sm:$0xff] %v8925_v11  ;;  %12188 = vst [vmem:[#allocation68_spill] sm:$0xff] %v8927_v29  ;;  %v8929_v55 = vpop.f32.mrf.mxu0  ;;  %v8937_v39 = vmul.f32 0.5, %v8780_v12  ;;  %v8940_v31 = vmul.f32 0.5, %v8822_v40  ;;  %v8943_v14 = vmul.f32 0.5, %v8788_v15  ;;  %v12191_v37 = vld [vmem:[#allocation32_spill] sm:$0xff]  ;;  %v8957_v15 = vmul.f32 %v3333_v36, %v8833_v58 }
 0x2e9   :  { %5215 = vmatprep.subr.bf16.mxu1 %v5952_v2  ;;  %v8931_v34 = vpop.f32.mrf.mxu1  ;;  %v5953_v2 = vld [vmem:[#allocation10 + $0x2f0] ss:$8 sps:$4 sm:$0xff]   ;;  %12189 = vst [vmem:[#allocation40_spill] sm:$0xff] %v8934_v24  ;;  %v6210_v60 = vpop.eup %6209  ;;  %v3341_v45 = vadd.f32 1.0, %v6208_v26  ;;  %v3755_v50 = vpack.c.bf16 %v12191_v37, %v12190_v25  ;;  %v12192_v12 = vld [vmem:[#allocation29_spill] sm:$0xff]  ;;  %v12193_v23 = vld [vmem:[#allocation36_spill] sm:$0xff]  ;;  %v8954_v26 = vmul.f32 %v3331_v38, %v8808_v43 }
 0x2ea   :  { %v8945_v42 = vpop.f32.mrf.mxu0  ;;  %v3757_v33 = vpack.c.bf16 %v12193_v23, %v12192_v12  ;;  %v5961_v40 = vld [vmem:[#allocation10 + $0x2e4] ss:$8 sps:$4 sm:$0xff]   ;;  %12195 = vst [vmem:[#allocation43_spill] sm:$0xff] %v8957_v15  ;;  %v8960_v35 = vmul.f32 0.5, %v8837_v17  ;;  %v8963_v18 = vmul.f32 0.5, %v8850_v5  ;;  %v12197_v37 = vld [vmem:[#allocation62_spill] sm:$0xff]  ;;  %v8980_v5 = vadd.f32 %v8796_v53, %v7943_v13 }
 0x2eb   :  { %5023 = vmatpush1.bf16.msra.mxu0 %v5947_v49  ;;  %v8947_v46 = vpop.f32.mrf.mxu1  ;;  %v5964_v49 = vld [vmem:[#allocation10 + $0x3e4] ss:$8 sps:$4 sm:$0xff]   ;;  %12194 = vst [vmem:[#allocation38_spill] sm:$0xff] %v8954_v26  ;;  %v8976_v17 = vmul.f32 0.5, %v8858_v56  ;;  %v3763_v56 = vpack.c.bf16 %v8805_v3, %v8750_v48  ;;  %v5959_v53 = vld [vmem:[#allocation10 + $0x2e0] ss:$8 sps:$4 sm:$0xff]  }
 0x2ec   :  { %5216 = vmatpush1.bf16.msra.mxu1 %v5950_v61  ;;  %5024 = vmatprep.subr.bf16.mxu0 %v5955_v44  ;;  %v6212_v61 = vpop.eup %6211  ;;  %v12196_v25 = vld [vmem:[#allocation64_spill] sm:$0xff]  ;;  %v12199_v44 = vld [vmem:[#allocation66_spill] sm:$0xff]  ;;  %v8982_v38 = vpop.f32.mrf.mxu0  ;;  %v12212_v29 = vld [vmem:[#allocation23_spill] sm:$0xff] }
 0x2ed   :  { %5217 = vmatprep.subr.bf16.mxu1 %v5958_v30  ;;  %v12198_v12 = vpack.c.bf16 %v12196_v25, %v12197_v37  ;;  %v12200_v30 = vld [vmem:[#allocation65_spill] sm:$0xff]  ;;  %v6214_v1 = vpop.eup %6213  ;;  %12202 = vst [vmem:[#allocation46_spill] sm:$0xff] %v8982_v38  ;;  %v8984_v36 = vpop.f32.mrf.mxu1  ;;  %v8987_v37 = vmul.f32 %v3339_v32, %v8884_v22  ;;  %v9000_v22 = vadd.f32 %v8839_v9, %v7943_v13  ;;  %v5967_v48 = vld [vmem:[#allocation10 + $0x2d4] ss:$8 sps:$4 sm:$0xff]  }
 0x2ee   :  { %v12201_v23 = vpack.c.bf16 %v12199_v44, %v12200_v30  ;;  %12203 = vst [vmem:[#allocation50_spill] sm:$0xff] %v8984_v36  ;;  %v6216_v25 = vpop.eup %6215  ;;  %v8991_v44 = vadd.f32 %v8798_v63, %v7948_v20  ;;  %v3348_v30 = vadd.f32 1.0, %v6212_v61  ;;  %v9002_v32 = vpop.f32.mrf.mxu0  ;;  %v3765_v63 = vpack.c.bf16 %v8818_v10, %v8769_v4  ;;  %v5970_v3 = vld [vmem:[#allocation10 + $0x3d4] ss:$8 sps:$4 sm:$0xff]   ;;  %v12207_v4 = vld [vmem:[#allocation21_spill] sm:$0xff] }
 0x2ef   :  { %4695 = vmatmul.mubr.bf16.gmra.mxu0 %v12198_v12  ;;  %v3346_v12 = vadd.f32 1.0, %v6210_v60  ;;  %v9004_v60 = vpop.f32.mrf.mxu1  ;;  %v3354_v61 = vadd.f32 1.0, %v6216_v25  ;;  %v9020_v10 = vadd.f32 %v12207_v4, %v7948_v20  ;;  %v12210_v9 = vld [vmem:[#allocation27_spill] sm:$0xff]  ;;  %v12211_v25 = vld [vmem:[#allocation16_spill] sm:$0xff]  ;;  %v12218_v36 = vld [vmem:[#allocation69_spill] sm:$0xff] }
 0x2f0   :  { %4888 = vmatmul.mubr.bf16.gmra.mxu1 %v12201_v23  ;;  %4704 = vmatprep.mubr.bf16.mxu0 %v3755_v50  ;;  %v5962_v50 = vld [vmem:[#allocation10 + $0x3e0] ss:$8 sps:$4 sm:$0xff]   ;;  %12205 = vst [vmem:[#allocation52_spill] sm:$0xff] %v9004_v60  ;;  %v2594_v23 = vmul.f32 0.70710677, %v8980_v5  ;;  %v9033_v24 = vadd.f32 %v12211_v25, %v12210_v9  ;;  %v12220_v38 = vld [vmem:[#allocation26_spill] sm:$0xff] }
 0x2f1   :  { %4897 = vmatprep.mubr.bf16.mxu1 %v3757_v33  ;;  %5025 = vmatpush2.bf16.msra.mxu0 %v5953_v2  ;;  %v8996_v33 = vmul.f32 %v3341_v45, %v8899_v51  ;;  %v9008_v2 = vadd.f32 1.0, %v6214_v1  ;;  %v9012_v51 = vadd.f32 %v8825_v52, %v7957_v54  ;;  %v9024_v1 = vpop.f32.mrf.mxu1  ;;  %v6218_v52 = vpop.eup %6217  ;;  %v9028_v58 = vmul.f32 %v3346_v12, %v8902_v57  ;;  %v12221_v25 = vld [vmem:[#allocation19_spill] sm:$0xff] }
 0x2f2   :  { %5218 = vmatpush2.bf16.msra.mxu1 %v5956_v8  ;;  %5026 = vmatprep.subr.bf16.mxu0 %v5961_v40  ;;  %v12206_v8 = vld [vmem:[#allocation57_spill] sm:$0xff]  ;;  %v9022_v40 = vpop.f32.mrf.mxu0  ;;  %12209 = vst [vmem:[#allocation41_spill] sm:$0xff] %v9024_v1  ;;  %v2596_v43 = vmul.f32 0.70710677, %v8991_v44  ;;  %v9038_v1 = vmul.f32 %v3348_v30, %v8905_v16  ;;  %v6220_v4 = vpop.eup %6219  ;;  %v3349_v15 = vadd.f32 1.0, %v6218_v52  ;;  %6225 = verf.f32 %v2594_v23  ;;  %v6577_v23 = vld [vmem:[#allocation8] sm:$0xff] }
 0x2f3   :  { %12204 = vst [vmem:[#allocation56_spill] sm:$0xff] %v8996_v33  ;;  %5219 = vmatprep.subr.bf16.mxu1 %v5964_v49  ;;  %v1000_v45 = vsub.s32 4, %v12206_v8  ;;  %12208 = vst [vmem:[#allocation49_spill] sm:$0xff] %v9022_v40  ;;  %v5965_v40 = vld [vmem:[#allocation10 + $0x2d0] ss:$8 sps:$4 sm:$0xff]   ;;  %v9043_v12 = vpop.f32.mrf.mxu1  ;;  %v12216_v30 = vld [vmem:[#allocation33_spill] sm:$0xff]  ;;  %v6222_v11 = vpop.eup %6221 }
 0x2f4   :  { %12213 = vst [vmem:[#allocation39_spill] sm:$0xff] %v9038_v1  ;;  %v2602_v49 = vmul.f32 0.70710677, %v9000_v22  ;;  %v9041_v57 = vpop.f32.mrf.mxu0  ;;  %12215 = vst [vmem:[#allocation42_spill] sm:$0xff] %v9043_v12  ;;  %v2595_v16 = vmul.f32 0.70710677, %v9012_v51  ;;  %v9052_v60 = vadd.f32 %v12216_v30, %v7957_v54  ;;  %v12222_v1 = vpack.c.bf16 %v12220_v38, %v12221_v25  ;;  %v6224_v38 = vpop.eup %6223 }
 0x2f5   :  { %5027 = vmatpush2.bf16.msra.mxu0 %v5959_v53  ;;  %12214 = vst [vmem:[#allocation44_spill] sm:$0xff] %v9041_v57  ;;  %v5973_v53 = vld [vmem:[#allocation10 + $0x2c4] ss:$8 sps:$4 sm:$0xff]   ;;  %v12217_v57 = vld [vmem:[#allocation18_spill] sm:$0xff]  ;;  %v2604_v33 = vmul.f32 0.70710677, %v9020_v10  ;;  %6227 = verf.f32 %v2596_v43  ;;  %v9076_v25 = vrot.slane %v6577_v23, %v1000_v45 }
 0x2f6   :  { %5220 = vmatpush2.bf16.msra.mxu1 %v5962_v50  ;;  %5028 = vmatprep.subr.bf16.mxu0 %v5967_v48  ;;  %v5976_v50 = vld [vmem:[#allocation10 + $0x3c4] ss:$8 sps:$4 sm:$0xff]   ;;  %v12219_v12 = vpack.c.bf16 %v12217_v57, %v12218_v36  ;;  %v1004_v48 = vsub.s32 5, %v12206_v8  ;;  %v12223_v30 = vld [vmem:[#allocation34_spill] sm:$0xff]  ;;  %v9067_v36 = vpop.f32.mrf.mxu0  ;;  %v9069_v57 = vpop.f32.mrf.mxu1  ;;  %6229 = verf.f32 %v2602_v49 }
 0x2f7   :  { %5221 = vmatprep.subr.bf16.mxu1 %v5970_v3  ;;  %v9065_v26 = vadd.f32 %v12223_v30, %v12210_v9  ;;  %12224 = vst [vmem:[#allocation60_spill] sm:$0xff] %v9067_v36  ;;  %12225 = vst [vmem:[#allocation63_spill] sm:$0xff] %v9069_v57  ;;  %v5971_v30 = vld [vmem:[#allocation10 + $0x2c0] ss:$8 sps:$4 sm:$0xff]   ;;  %v3356_v3 = vadd.f32 1.0, %v6220_v4  ;;  %v12228_v43 = vld [vmem:[#allocation22_spill] sm:$0xff]  ;;  %6231 = verf.f32 %v2595_v16  ;;  %v9097_v4 = vadd.f32 %v8914_v41, %v7943_v13 }
 0x2f8   :  { %4705 = vmatmul.mubr.bf16.gmra.mxu0 %v12219_v12  ;;  %4898 = vmatmul.mubr.bf16.gmra.mxu1 %v12222_v1  ;;  %v2597_v1 = vmul.f32 0.70710677, %v9033_v24  ;;  %v12226_v12 = vld [vmem:[#allocation25_spill] sm:$0xff]  ;;  %12227 = vst [vmem:[#allocation45_spill] sm:$0xff] %v9076_v25  ;;  %v9083_v57 = vadd.f32 %v12228_v43, %v7948_v20  ;;  %v9085_v36 = vpop.f32.mrf.mxu0  ;;  %v5979_v45 = vld [vmem:[#allocation10 + $0x2b4] ss:$8 sps:$4 sm:$0xff]   ;;  %6233 = verf.f32 %v2604_v33  ;;  %v9110_v33 = vadd.f32 %v8896_v21, %v12210_v9 }
 0x2f9   :  { %4714 = vmatprep.mubr.bf16.mxu0 %v3763_v56  ;;  %4907 = vmatprep.mubr.bf16.mxu1 %v3765_v63  ;;  %v9074_v52 = vadd.f32 %v12226_v12, %v7943_v13  ;;  %v5974_v56 = vld [vmem:[#allocation10 + $0x3c0] ss:$8 sps:$4 sm:$0xff]   ;;  %v9079_v63 = vmul.f32 %v3354_v61, %v8943_v14  ;;  %12229 = vst [vmem:[#allocation48_spill] sm:$0xff] %v9085_v36  ;;  %v9087_v12 = vpop.f32.mrf.mxu1  ;;  %v2603_v25 = vmul.f32 0.70710677, %v9052_v60  ;;  %v3357_v61 = vadd.f32 1.0, %v6224_v38 }
 0x2fa   :  { %5029 = vmatpush2.bf16.msra.mxu0 %v5965_v40  ;;  %5222 = vmatpush2.bf16.msra.mxu1 %v5968_v7  ;;  %12230 = vst [vmem:[#allocation51_spill] sm:$0xff] %v9087_v12  ;;  %v5982_v40 = vld [vmem:[#allocation10 + $0x3b4] ss:$8 sps:$4 sm:$0xff]   ;;  %v3355_v7 = vadd.f32 1.0, %v6222_v11  ;;  %v9092_v14 = vadd.f32 %v8894_v27, %v7957_v54  ;;  %v2605_v49 = vmul.f32 0.70710677, %v9065_v26  ;;  %v9105_v11 = vmul.f32 %v9008_v2, %v8937_v39 }
 0x2fb   :  { %5030 = vmatprep.subr.bf16.mxu0 %v5973_v53  ;;  %5223 = vmatprep.subr.bf16.mxu1 %v5976_v50  ;;  %v9099_v53 = vpop.f32.mrf.mxu0  ;;  %v9101_v50 = vpop.f32.mrf.mxu1  ;;  %6235 = verf.f32 %v2597_v1  ;;  %v2610_v27 = vmul.f32 0.70710677, %v9074_v52  ;;  %v5977_v16 = vld [vmem:[#allocation10 + $0x2b0] ss:$8 sps:$4 sm:$0xff]   ;;  %v2612_v38 = vmul.f32 0.70710677, %v9083_v57  ;;  %v9115_v43 = vadd.f32 %v8916_v19, %v7948_v20 }
 0x2fc   :  { %12231 = vst [vmem:[#allocation47_spill] sm:$0xff] %v9099_v53  ;;  %12232 = vst [vmem:[#allocation67_spill] sm:$0xff] %v9101_v50  ;;  %v5980_v41 = vld [vmem:[#allocation10 + $0x3b0] ss:$8 sps:$4 sm:$0xff]   ;;  %v12233_v39 = vsub.s32 6, %v12206_v8  ;;  %v9121_v1 = vrot.slane %v6577_v23, %v1004_v48  ;;  %6237 = verf.f32 %v2603_v25  ;;  %v12239_v48 = vld [vmem:[#allocation17_spill] sm:$0xff] }
 0x2fd   :  { %v5985_v21 = vld [vmem:[#allocation10 + $0x2a4] ss:$8 sps:$4 sm:$0xff]   ;;  %v9127_v53 = vpop.f32.mrf.mxu0  ;;  %v9129_v19 = vpop.f32.mrf.mxu1  ;;  %v12236_v12 = vld [vmem:[#allocation30_spill] sm:$0xff]  ;;  %v12237_v36 = vld [vmem:[#allocation31_spill] sm:$0xff]  ;;  %6239 = verf.f32 %v2605_v49  ;;  %v2618_v25 = vmul.f32 0.70710677, %v9097_v4 }
 0x2fe   :  { %5031 = vmatpush2.bf16.msra.mxu0 %v5971_v30  ;;  %5224 = vmatpush2.bf16.msra.mxu1 %v5974_v56  ;;  %v9119_v2 = vrot.slane %v6577_v23, %v12233_v39  ;;  %12235 = vst [vmem:[#allocation53_spill] sm:$0xff] %v9121_v1  ;;  %v5988_v50 = vld [vmem:[#allocation10 + $0x3a4] ss:$8 sps:$4 sm:$0xff]   ;;  %v9124_v30 = vmul.f32 %v3349_v15, %v8940_v31  ;;  %v2611_v56 = vmul.f32 0.70710677, %v9092_v14  ;;  %v12240_v1 = vld [vmem:[#allocation35_spill] sm:$0xff]  ;;  %6241 = verf.f32 %v2610_v27 }
 0x2ff   :  { %5032 = vmatprep.subr.bf16.mxu0 %v5979_v45  ;;  %5225 = vmatprep.subr.bf16.mxu1 %v5982_v40  ;;  %v12238_v39 = vpack.c.bf16 %v12236_v12, %v12237_v36  ;;  %v12241_v45 = vpack.c.bf16 %v12239_v48, %v12240_v1  ;;  %v12242_v40 = vsub.s32 7, %v12206_v8  ;;  %v9144_v15 = vmul.f32 %v3356_v3, %v8960_v35  ;;  %v9160_v3 = vpop.f32.mrf.mxu0  ;;  %v9162_v49 = vpop.f32.mrf.mxu1 }
 0x300   :  { %12234 = vst [vmem:[#allocation70_spill] sm:$0xff] %v9119_v2  ;;  %v12244_v36 = vpack.c.bf16 %v8912_v59, %v8853_v6  ;;  %v12245_v12 = vpack.c.bf16 %v8919_v28, %v12212_v29  ;;  %v9154_v8 = vmul.f32 %v3355_v7, %v8963_v18  ;;  %v2613_v35 = vmul.f32 0.70710677, %v9110_v33  ;;  %v5983_v6 = vld [vmem:[#allocation10 + $0x2a0] ss:$8 sps:$4 sm:$0xff]  }
 0x301   :  { %4715 = vmatmul.mubr.bf16.gmra.mxu0 %v12238_v39  ;;  %4908 = vmatmul.mubr.bf16.gmra.mxu1 %v12241_v45  ;;  %v9139_v2 = vrot.slane %v6577_v23, %v12242_v40  ;;  %v9157_v23 = vmul.f32 %v3357_v61, %v8976_v17  ;;  %v5986_v59 = vld [vmem:[#allocation10 + $0x3a0] ss:$8 sps:$4 sm:$0xff]   ;;  %v9165_v28 = vmul.f32 0.5, %v8980_v5  ;;  %6243 = verf.f32 %v2612_v38  ;;  %v9180_v5 = vpop.f32.mrf.mxu0  ;;  %v9182_v27 = vpop.f32.mrf.mxu1 }
 0x302   :  { %4724 = vmatprep.mubr.bf16.mxu0 %v12244_v36  ;;  %4917 = vmatprep.mubr.bf16.mxu1 %v12245_v12  ;;  %v2620_v18 = vmul.f32 0.70710677, %v9115_v43  ;;  %v1813_v29 = vadd.f32 %v8929_v55, %v7957_v54  ;;  %v9171_v17 = vmul.f32 0.5, %v8991_v44  ;;  %v9174_v7 = vmul.f32 0.5, %v9012_v51  ;;  %v6226_v51 = vpop.eup %6225 }
 0x303   :  { %12243 = vst [vmem:[#allocation54_spill] sm:$0xff] %v9139_v2  ;;  %5033 = vmatpush2.bf16.msra.mxu0 %v5977_v16  ;;  %5226 = vmatpush2.bf16.msra.mxu1 %v5980_v41  ;;  %6245 = verf.f32 %v2611_v56  ;;  %v9178_v61 = vadd.f32 %v8931_v34, %v12210_v9  ;;  %v9185_v16 = vmul.f32 0.5, %v9033_v24  ;;  %v9188_v55 = vmul.f32 0.5, %v9000_v22  ;;  %v9203_v24 = vpop.f32.mrf.mxu0  ;;  %v9205_v22 = vpop.f32.mrf.mxu1 }
 0x304   :  { %5034 = vmatprep.subr.bf16.mxu0 %v5985_v21  ;;  %5227 = vmatprep.subr.bf16.mxu1 %v5988_v50  ;;  %v9191_v44 = vmul.f32 0.5, %v9020_v10  ;;  %6247 = verf.f32 %v2618_v25  ;;  %v9194_v50 = vmul.f32 0.5, %v9052_v60  ;;  %v9197_v34 = vmul.f32 0.5, %v9065_v26  ;;  %v5991_v10 = vld [vmem:[#allocation10 + $0x294] ss:$8 sps:$4 sm:$0xff]   ;;  %v6228_v38 = vpop.eup %6227  ;;  %v12248_v25 = vld [vmem:[#allocation20_spill] sm:$0xff] }
 0x305   :  { %6249 = verf.f32 %v2613_v35  ;;  %v9201_v41 = vadd.f32 %v8945_v42, %v7943_v13  ;;  %v9208_v1 = vmul.f32 0.5, %v9074_v52  ;;  %v9211_v60 = vmul.f32 0.5, %v9083_v57  ;;  %v5989_v21 = vld [vmem:[#allocation10 + $0x290] ss:$8 sps:$4 sm:$0xff]   ;;  %v6230_v56 = vpop.eup %6229  ;;  %v9222_v52 = vpop.f32.mrf.mxu0 }
 0x306   :  { %6251 = verf.f32 %v2620_v18  ;;  %v2619_v26 = vmul.f32 0.70710677, %v1813_v29  ;;  %v9214_v42 = vmul.f32 0.5, %v9092_v14  ;;  %v9217_v39 = vmul.f32 0.5, %v9110_v33  ;;  %v9224_v40 = vpop.f32.mrf.mxu1  ;;  %v6232_v36 = vpop.eup %6231 }
 0x307   :  { %5035 = vmatpush2.bf16.msra.mxu0 %v5983_v6  ;;  %5228 = vmatpush2.bf16.msra.mxu1 %v5986_v59  ;;  %v2621_v48 = vmul.f32 0.70710677, %v9178_v61  ;;  %v2010_v45 = vadd.f32 %v8947_v46, %v7948_v20  ;;  %12246 = vst [vmem:[#allocation61_spill] sm:$0xff] %v9224_v40  ;;  %v12247_v57 = vpack.c.bf16 %v8868_v62, %v8830_v0  ;;  %v3362_v33 = vadd.f32 1.0, %v6226_v51  ;;  %v12250_v6 = vld [vmem:[#allocation38_spill] sm:$0xff]  ;;  %v12252_v62 = vld [vmem:[#allocation56_spill] sm:$0xff]  ;;  %v6234_v18 = vpop.eup %6233 }
 0x308   :  { %v12249_v14 = vpack.c.bf16 %v8872_v47, %v12248_v25  ;;  %v9233_v12 = vmul.f32 0.5, %v9097_v4  ;;  %v9236_v35 = vmul.f32 0.5, %v9115_v43  ;;  %v9240_v46 = vadd.f32 %v9002_v32, %v7943_v13  ;;  %v12253_v59 = vld [vmem:[#allocation43_spill] sm:$0xff]  ;;  %v9251_v43 = vpop.f32.mrf.mxu0  ;;  %v9253_v25 = vpop.f32.mrf.mxu1  ;;  %5036 = vmatprep.subr.bf16.mxu0 %v5991_v10 }
 0x309   :  { %4725 = vmatmul.mubr.bf16.gmra.mxu0 %v12247_v57  ;;  %v12251_v0 = vpack.c.bf16 %v8987_v37, %v12250_v6  ;;  %v12254_v47 = vpack.c.bf16 %v12252_v62, %v12253_v59  ;;  %v12255_v51 = vld [vmem:[#allocation39_spill] sm:$0xff]  ;;  %v2626_v57 = vmul.f32 0.70710677, %v9201_v41  ;;  %12256 = vst [vmem:[#allocation55_spill] sm:$0xff] %v9251_v43  ;;  %12257 = vst [vmem:[#allocation28_spill] sm:$0xff] %v9253_v25  ;;  %v3364_v62 = vadd.f32 1.0, %v6228_v38 }
 0x30a   :  { %4918 = vmatmul.mubr.bf16.gmra.mxu1 %v12249_v14  ;;  %v3787_v32 = vpack.c.bf16 %v9154_v8, %v9105_v11  ;;  %v3789_v37 = vpack.c.bf16 %v9157_v23, %v9124_v30  ;;  %v5992_v14 = vld [vmem:[#allocation10 + $0x390] ss:$8 sps:$4 sm:$0xff]   ;;  %v5994_v6 = vld [vmem:[#allocation10 + $0x394] ss:$8 sps:$4 sm:$0xff]   ;;  %v3370_v59 = vadd.f32 1.0, %v6230_v56  ;;  %6253 = verf.f32 %v2619_v26  ;;  %v9265_v25 = vpop.f32.mrf.mxu0  ;;  %v9267_v30 = vpop.f32.mrf.mxu1 }
 0x30b   :  { %4734 = vmatprep.mubr.bf16.mxu0 %v12251_v0  ;;  %4927 = vmatprep.mubr.bf16.mxu1 %v12254_v47  ;;  %v6236_v0 = vpop.eup %6235  ;;  %v12258_v47 = vld [vmem:[#allocation46_spill] sm:$0xff]  ;;  %v9261_v31 = vmul.f32 0.5, %v1813_v29  ;;  %6255 = verf.f32 %v2621_v48  ;;  %v2628_v2 = vmul.f32 0.70710677, %v2010_v45  ;;  %12260 = vst [vmem:[#allocation32_spill] sm:$0xff] %v9265_v25  ;;  %12261 = vst [vmem:[#allocation29_spill] sm:$0xff] %v9267_v30  ;;  %v9274_v56 = vmul.f32 %v3362_v33, %v9165_v28 }
 0x30c   :  { %v1819_v4 = vadd.f32 %v12258_v47, %v7957_v54  ;;  %5037 = vmatpush2.bf16.msra.mxu0 %v5989_v21  ;;  %v12259_v11 = vld [vmem:[#allocation50_spill] sm:$0xff]  ;;  %5229 = vmatprep.subr.bf16.mxu1 %v5994_v6  ;;  %v6238_v23 = vpop.eup %6237  ;;  %v3363_v10 = vadd.f32 1.0, %v6232_v36  ;;  %v3372_v38 = vadd.f32 1.0, %v6234_v18  ;;  %v9270_v26 = vmul.f32 0.5, %v9178_v61  ;;  %v12262_v47 = vld [vmem:[#allocation52_spill] sm:$0xff]  ;;  %v9280_v6 = vpop.f32.mrf.mxu0  ;;  %v12266_v25 = vld [vmem:[#allocation37_spill] sm:$0xff] }
 0x30d   :  { %v2012_v8 = vadd.f32 %v12259_v11, %v12210_v9  ;;  %v2634_v21 = vmul.f32 0.70710677, %v9240_v46  ;;  %5230 = vmatpush2.bf16.msra.mxu1 %v5992_v14  ;;  %v6240_v29 = vpop.eup %6239  ;;  %v3365_v48 = vadd.f32 1.0, %v6236_v0  ;;  %6257 = verf.f32 %v2626_v57  ;;  %12263 = vst [vmem:[#allocation36_spill] sm:$0xff] %v9280_v6  ;;  %v9282_v36 = vpop.f32.mrf.mxu1 }
 0x30e   :  { %v9278_v11 = vadd.f32 %v12262_v47, %v7948_v20  ;;  %12264 = vst [vmem:[#allocation64_spill] sm:$0xff] %v9282_v36  ;;  %v6242_v18 = vpop.eup %6241  ;;  %v9285_v61 = vmul.f32 %v3364_v62, %v9171_v17  ;;  %v9288_v14 = vmul.f32 %v3370_v59, %v9188_v55  ;;  %v9291_v28 = vmul.f32 0.5, %v9201_v41  ;;  %v9295_v6 = vpop.f32.mrf.mxu0  ;;  %v12267_v17 = vld [vmem:[#allocation24_spill] sm:$0xff] }
 0x30f   :  { %v2627_v33 = vmul.f32 0.70710677, %v1819_v4  ;;  %v6244_v57 = vpop.eup %6243  ;;  %v3371_v0 = vadd.f32 1.0, %v6238_v23  ;;  %6259 = verf.f32 %v2628_v2  ;;  %v9293_v47 = vmul.f32 0.5, %v2010_v45  ;;  %v9297_v36 = vpop.f32.mrf.mxu1  ;;  %v12269_v55 = vld [vmem:[#allocation68_spill] sm:$0xff]  ;;  %v12272_v45 = vld [vmem:[#allocation49_spill] sm:$0xff] }
 0x310   :  { %v2629_v30 = vmul.f32 0.70710677, %v2012_v8  ;;  %12265 = vst [vmem:[#allocation62_spill] sm:$0xff] %v9297_v36  ;;  %v12268_v62 = vpack.c.bf16 %v12266_v25, %v12267_v17  ;;  %v12270_v59 = vld [vmem:[#allocation40_spill] sm:$0xff]  ;;  %v6246_v41 = vpop.eup %6245  ;;  %v9306_v40 = vmul.f32 %v3363_v10, %v9174_v7  ;;  %v9309_v2 = vmul.f32 %v3372_v38, %v9191_v44  ;;  %v9321_v10 = vpop.f32.mrf.mxu0 }
 0x311   :  { %v12271_v43 = vpack.c.bf16 %v12269_v55, %v12270_v59  ;;  %6261 = verf.f32 %v2634_v21  ;;  %v9313_v23 = vadd.f32 %v12272_v45, %v7957_v54  ;;  %v6248_v25 = vpop.eup %6247  ;;  %v9316_v17 = vmul.f32 %v3365_v48, %v9185_v16  ;;  %12273 = vst [vmem:[#allocation66_spill] sm:$0xff] %v9321_v10  ;;  %v9323_v44 = vpop.f32.mrf.mxu1  ;;  %v5997_v16 = vld [vmem:[#allocation10 + $0x284] ss:$8 sps:$4 sm:$0xff]  }
 0x312   :  { %4735 = vmatmul.mubr.bf16.gmra.mxu0 %v12268_v62  ;;  %v3373_v62 = vadd.f32 1.0, %v6240_v29  ;;  %v2636_v7 = vmul.f32 0.70710677, %v9278_v11  ;;  %12274 = vst [vmem:[#allocation65_spill] sm:$0xff] %v9323_v44  ;;  %v6250_v38 = vpop.eup %6249  ;;  %v3378_v55 = vadd.f32 1.0, %v6242_v18  ;;  %6263 = verf.f32 %v2627_v33  ;;  %v12275_v59 = vld [vmem:[#allocation41_spill] sm:$0xff]  ;;  %v9334_v44 = vpop.f32.mrf.mxu0  ;;  %5038 = vmatprep.subr.bf16.mxu0 %v5997_v16 }
 0x313   :  { %4928 = vmatmul.mubr.bf16.gmra.mxu1 %v12271_v43  ;;  %4744 = vmatprep.mubr.bf16.mxu0 %v3787_v32  ;;  %v9318_v43 = vmul.f32 0.5, %v1819_v4  ;;  %v9327_v32 = vmul.f32 0.5, %v2012_v8  ;;  %v6252_v48 = vpop.eup %6251  ;;  %v9330_v4 = vmul.f32 %v3371_v0, %v9194_v50  ;;  %v3380_v29 = vadd.f32 1.0, %v6244_v57  ;;  %12276 = vst [vmem:[#allocation57_spill] sm:$0xff] %v9334_v44  ;;  %v9336_v10 = vpop.f32.mrf.mxu1  ;;  %v12278_v21 = vld [vmem:[#allocation44_spill] sm:$0xff]  ;;  %v12279_v57 = vld [vmem:[#allocation42_spill] sm:$0xff] }
 0x314   :  { %4937 = vmatprep.mubr.bf16.mxu1 %v3789_v37  ;;  %v5995_v37 = vld [vmem:[#allocation10 + $0x280] ss:$8 sps:$4 sm:$0xff]   ;;  %6265 = verf.f32 %v2629_v30  ;;  %v2016_v45 = vadd.f32 %v12275_v59, %v12210_v9  ;;  %12277 = vst [vmem:[#allocation21_spill] sm:$0xff] %v9336_v10  ;;  %v3386_v8 = vadd.f32 1.0, %v6248_v25  ;;  %v2635_v33 = vmul.f32 0.70710677, %v9313_v23  ;;  %v9352_v59 = vpop.f32.mrf.mxu0 }
 0x315   :  { %v9343_v36 = vadd.f32 %v12278_v21, %v7943_v13  ;;  %v9346_v50 = vmul.f32 %v3373_v62, %v9197_v34  ;;  %v3379_v30 = vadd.f32 1.0, %v6246_v41  ;;  %6267 = verf.f32 %v2636_v7  ;;  %12280 = vst [vmem:[#allocation27_spill] sm:$0xff] %v9352_v59  ;;  %v9354_v18 = vpop.f32.mrf.mxu1  ;;  %5039 = vmatpush2.bf16.msra.mxu0 %v5995_v37  ;;  %v5998_v25 = vld [vmem:[#allocation10 + $0x380] ss:$8 sps:$4 sm:$0xff]   ;;  %v6000_v10 = vld [vmem:[#allocation10 + $0x384] ss:$8 sps:$4 sm:$0xff]  }
 0x316   :  { %v9350_v0 = vadd.f32 %v12279_v57, %v7948_v20  ;;  %12281 = vst [vmem:[#allocation16_spill] sm:$0xff] %v9354_v18  ;;  %v9357_v21 = vmul.f32 %v3378_v55, %v9208_v1  ;;  %v3381_v16 = vadd.f32 1.0, %v6250_v38  ;;  %v3388_v44 = vadd.f32 1.0, %v6252_v48  ;;  %v12282_v34 = vld [vmem:[#allocation48_spill] sm:$0xff]  ;;  %v9373_v1 = vpop.f32.mrf.mxu0  ;;  %5231 = vmatprep.subr.bf16.mxu1 %v6000_v10 }
 0x317   :  { %v9361_v41 = vadd.f32 %v12282_v34, %v7943_v13  ;;  %v6254_v62 = vpop.eup %6253  ;;  %v9364_v7 = vmul.f32 %v3380_v29, %v9211_v60  ;;  %v9367_v57 = vmul.f32 0.5, %v9240_v46  ;;  %v2637_v18 = vmul.f32 0.70710677, %v2016_v45  ;;  %v12283_v37 = vld [vmem:[#allocation60_spill] sm:$0xff]  ;;  %v9375_v38 = vpop.f32.mrf.mxu1  ;;  %v12287_v34 = vld [vmem:[#allocation63_spill] sm:$0xff]  ;;  %5232 = vmatpush2.bf16.msra.mxu1 %v5998_v25 }
 0x318   :  { %v9371_v59 = vadd.f32 %v12283_v37, %v7957_v54  ;;  %12284 = vst [vmem:[#allocation23_spill] sm:$0xff] %v9375_v38  ;;  %v12285_v55 = vpack.c.bf16 %v9079_v63, %v9028_v58  ;;  %v12286_v60 = vpack.c.bf16 %v9144_v15, %v12255_v51  ;;  %v6256_v48 = vpop.eup %6255  ;;  %v9384_v46 = vmul.f32 %v3386_v8, %v9233_v12  ;;  %v12288_v15 = vld [vmem:[#allocation51_spill] sm:$0xff]  ;;  %v9402_v51 = vpop.f32.mrf.mxu0 }
 0x319   :  { %6269 = verf.f32 %v2635_v33  ;;  %v2642_v29 = vmul.f32 0.70710677, %v9343_v36  ;;  %v9389_v37 = vadd.f32 %v12287_v34, %v12210_v9  ;;  %v9392_v38 = vmul.f32 %v3379_v30, %v9214_v42  ;;  %12289 = vst [vmem:[#allocation33_spill] sm:$0xff] %v9402_v51  ;;  %v9404_v8 = vpop.f32.mrf.mxu1 }
 0x31a   :  { %4745 = vmatmul.mubr.bf16.gmra.mxu0 %v12285_v55  ;;  %v9395_v58 = vmul.f32 0.5, %v9278_v11  ;;  %v2644_v63 = vmul.f32 0.70710677, %v9350_v0  ;;  %v9400_v12 = vadd.f32 %v12288_v15, %v7948_v20  ;;  %12290 = vst [vmem:[#allocation18_spill] sm:$0xff] %v9404_v8  ;;  %v6258_v33 = vpop.eup %6257  ;;  %v9407_v10 = vmul.f32 %v3381_v16, %v9217_v39  ;;  %v9417_v15 = vpop.f32.mrf.mxu0 }
 0x31b   :  { %4938 = vmatmul.mubr.bf16.gmra.mxu1 %v12286_v60  ;;  %v9410_v42 = vmul.f32 %v3388_v44, %v9236_v35  ;;  %v3387_v11 = vadd.f32 1.0, %v6254_v62  ;;  %v2650_v30 = vmul.f32 0.70710677, %v9361_v41  ;;  %v3389_v55 = vadd.f32 1.0, %v6256_v48  ;;  %12291 = vst [vmem:[#allocation69_spill] sm:$0xff] %v9417_v15  ;;  %v9419_v25 = vpop.f32.mrf.mxu1 }
 0x31c   :  { %v9414_v60 = vmul.f32 0.5, %v9313_v23  ;;  %6271 = verf.f32 %v2637_v18  ;;  %v2643_v34 = vmul.f32 0.70710677, %v9371_v59  ;;  %12292 = vst [vmem:[#allocation26_spill] sm:$0xff] %v9419_v25  ;;  %v6260_v8 = vpop.eup %6259  ;;  %v9423_v35 = vmul.f32 0.5, %v2016_v45  ;;  %v12293_v18 = vld [vmem:[#allocation47_spill] sm:$0xff]  ;;  %v9431_v15 = vpop.f32.mrf.mxu0 }
 0x31d   :  { %6273 = verf.f32 %v2642_v29  ;;  %v2645_v44 = vmul.f32 0.70710677, %v9389_v37  ;;  %v3394_v62 = vadd.f32 1.0, %v6258_v33  ;;  %v2652_v23 = vmul.f32 0.70710677, %v9400_v12  ;;  %12294 = vst [vmem:[#allocation19_spill] sm:$0xff] %v9431_v15  ;;  %v9433_v25 = vpop.f32.mrf.mxu1 }
 0x31e   :  { %v6262_v16 = vpop.eup %6261  ;;  %6275 = verf.f32 %v2644_v63  ;;  %v9429_v48 = vadd.f32 %v12293_v18, %v7957_v54  ;;  %12295 = vst [vmem:[#allocation34_spill] sm:$0xff] %v9433_v25  ;;  %v9438_v29 = vmul.f32 %v3387_v11, %v9261_v31  ;;  %v12296_v33 = vld [vmem:[#allocation67_spill] sm:$0xff]  ;;  %v9445_v51 = vmul.f32 %v3389_v55, %v9270_v26  ;;  %v9451_v15 = vpop.f32.mrf.mxu0 }
 0x31f   :  { %6277 = verf.f32 %v2650_v30  ;;  %v9442_v63 = vadd.f32 %v12296_v33, %v12210_v9  ;;  %v6264_v39 = vpop.eup %6263  ;;  %v3396_v18 = vadd.f32 1.0, %v6260_v8  ;;  %v9449_v25 = vadd.f32 %v9127_v53, %v7943_v13  ;;  %12297 = vst [vmem:[#allocation25_spill] sm:$0xff] %v9451_v15  ;;  %v9453_v45 = vpop.f32.mrf.mxu1 }
 0x320   :  { %6279 = verf.f32 %v2643_v34  ;;  %12298 = vst [vmem:[#allocation22_spill] sm:$0xff] %v9453_v45  ;;  %v3402_v11 = vadd.f32 1.0, %v6262_v16  ;;  %v9456_v30 = vmul.f32 0.5, %v9343_v36  ;;  %v2030_v26 = vadd.f32 %v9129_v19, %v7948_v20  ;;  %v9466_v34 = vpop.f32.mrf.mxu0 }
 0x321   :  { %v6266_v31 = vpop.eup %6265  ;;  %6281 = verf.f32 %v2645_v44  ;;  %v9461_v8 = vmul.f32 %v3394_v62, %v9291_v28  ;;  %v2651_v53 = vmul.f32 0.70710677, %v9429_v48  ;;  %v1839_v55 = vadd.f32 %v9160_v3, %v7957_v54  ;;  %12300 = vst [vmem:[#allocation31_spill] sm:$0xff] %v9466_v34  ;;  %v9468_v33 = vpop.f32.mrf.mxu1 }
 0x322   :  { %6283 = verf.f32 %v2652_v23  ;;  %12301 = vst [vmem:[#allocation17_spill] sm:$0xff] %v9468_v33  ;;  %v6268_v16 = vpop.eup %6267  ;;  %v3395_v36 = vadd.f32 1.0, %v6264_v39  ;;  %v9471_v44 = vmul.f32 0.5, %v9350_v0  ;;  %v2653_v19 = vmul.f32 0.70710677, %v9442_v63  ;;  %v9486_v39 = vpop.f32.mrf.mxu0 }
 0x323   :  { %12299 = vst [vmem:[#allocation30_spill] sm:$0xff] %v9461_v8  ;;  %v9476_v28 = vadd.f32 %v9162_v49, %v12210_v9  ;;  %v9479_v62 = vmul.f32 %v3396_v18, %v9293_v47  ;;  %v3397_v23 = vadd.f32 1.0, %v6266_v31  ;;  %v2658_v3 = vmul.f32 0.70710677, %v9449_v25  ;;  %12303 = vst [vmem:[#allocation20_spill] sm:$0xff] %v9486_v39  ;;  %v9488_v0 = vpop.f32.mrf.mxu1 }
 0x324   :  { %v9484_v33 = vadd.f32 %v9180_v5, %v7943_v13  ;;  %12304 = vst [vmem:[#allocation38_spill] sm:$0xff] %v9488_v0  ;;  %v9491_v34 = vmul.f32 %v3402_v11, %v9367_v57  ;;  %v9494_v49 = vmul.f32 0.5, %v9371_v59  ;;  %v9497_v47 = vmul.f32 0.5, %v9389_v37  ;;  %v9503_v39 = vpop.f32.mrf.mxu0 }
 0x325   :  { %12302 = vst [vmem:[#allocation35_spill] sm:$0xff] %v9479_v62  ;;  %v2660_v18 = vmul.f32 0.70710677, %v2030_v26  ;;  %v3404_v45 = vadd.f32 1.0, %v6268_v16  ;;  %6285 = verf.f32 %v2651_v53  ;;  %v2659_v15 = vmul.f32 0.70710677, %v1839_v55  ;;  %v9505_v0 = vpop.f32.mrf.mxu1 }
 0x326   :  { %12305 = vst [vmem:[#allocation56_spill] sm:$0xff] %v9491_v34  ;;  %v6270_v31 = vpop.eup %6269  ;;  %v9501_v5 = vadd.f32 %v9182_v27, %v7948_v20  ;;  %12306 = vst [vmem:[#allocation43_spill] sm:$0xff] %v9503_v39  ;;  %v9508_v57 = vmul.f32 %v3395_v36, %v9318_v43  ;;  %v9511_v59 = vmul.f32 0.5, %v9361_v41  ;;  %6287 = verf.f32 %v2653_v19  ;;  %v9521_v16 = vpop.f32.mrf.mxu0  ;;  %v12319_v34 = vld [vmem:[#allocation55_spill] sm:$0xff] }
 0x327   :  { %12307 = vst [vmem:[#allocation39_spill] sm:$0xff] %v9505_v0  ;;  %v2661_v37 = vmul.f32 0.70710677, %v9476_v28  ;;  %v9515_v11 = vmul.f32 %v3397_v23, %v9327_v32  ;;  %v9518_v53 = vmul.f32 0.5, %v9400_v12  ;;  %6289 = verf.f32 %v2658_v3  ;;  %12309 = vst [vmem:[#allocation50_spill] sm:$0xff] %v9521_v16  ;;  %v9523_v0 = vpop.f32.mrf.mxu1 }
 0x328   :  { %v2666_v27 = vmul.f32 0.70710677, %v9484_v33  ;;  %12310 = vst [vmem:[#allocation52_spill] sm:$0xff] %v9523_v0  ;;  %v3403_v36 = vadd.f32 1.0, %v6270_v31  ;;  %6291 = verf.f32 %v2660_v18  ;;  %v9529_v32 = vadd.f32 %v9203_v24, %v7957_v54  ;;  %v9537_v0 = vpop.f32.mrf.mxu0 }
 0x329   :  { %12308 = vst [vmem:[#allocation46_spill] sm:$0xff] %v9515_v11  ;;  %v6272_v43 = vpop.eup %6271  ;;  %v9532_v12 = vmul.f32 %v3404_v45, %v9395_v58  ;;  %6293 = verf.f32 %v2659_v15  ;;  %v2668_v23 = vmul.f32 0.70710677, %v9501_v5  ;;  %v2036_v3 = vadd.f32 %v9205_v22, %v12210_v9  ;;  %12312 = vst [vmem:[#allocation24_spill] sm:$0xff] %v9537_v0  ;;  %v9539_v16 = vpop.f32.mrf.mxu1 }
 0x32a   :  { %v6274_v19 = vpop.eup %6273  ;;  %12313 = vst [vmem:[#allocation68_spill] sm:$0xff] %v9539_v16  ;;  %v9542_v18 = vmul.f32 0.5, %v9429_v48  ;;  %v9545_v24 = vmul.f32 0.5, %v9442_v63  ;;  %6295 = verf.f32 %v2661_v37  ;;  %v9549_v58 = vadd.f32 %v9222_v52, %v7943_v13  ;;  %v9556_v16 = vpop.f32.mrf.mxu0 }
 0x32b   :  { %12311 = vst [vmem:[#allocation37_spill] sm:$0xff] %v9532_v12  ;;  %v6276_v31 = vpop.eup %6275  ;;  %v3405_v45 = vadd.f32 1.0, %v6272_v43  ;;  %v9552_v22 = vmul.f32 0.5, %v9449_v25  ;;  %v9554_v41 = vmul.f32 0.5, %v2030_v26  ;;  %6297 = verf.f32 %v2666_v27  ;;  %12314 = vst [vmem:[#allocation40_spill] sm:$0xff] %v9556_v16  ;;  %v9558_v48 = vpop.f32.mrf.mxu1  ;;  %v12316_v27 = vld [vmem:[#allocation61_spill] sm:$0xff] }
 0x32c   :  { %v6278_v15 = vpop.eup %6277  ;;  %12315 = vst [vmem:[#allocation49_spill] sm:$0xff] %v9558_v48  ;;  %v9561_v63 = vmul.f32 %v3403_v36, %v9414_v60  ;;  %v3410_v37 = vadd.f32 1.0, %v6274_v19  ;;  %v9563_v39 = vmul.f32 0.5, %v1839_v55  ;;  %v2667_v52 = vmul.f32 0.70710677, %v9529_v32  ;;  %v9570_v8 = vpop.f32.mrf.mxu0 }
 0x32d   :  { %v6280_v0 = vpop.eup %6279  ;;  %6299 = verf.f32 %v2668_v23  ;;  %v2669_v26 = vmul.f32 0.70710677, %v2036_v3  ;;  %v2040_v16 = vadd.f32 %v12316_v27, %v7948_v20  ;;  %12317 = vst [vmem:[#allocation41_spill] sm:$0xff] %v9570_v8  ;;  %v9572_v48 = vpop.f32.mrf.mxu1  ;;  %v3412_v36 = vadd.f32 1.0, %v6276_v31 }
 0x32e   :  { %v6282_v43 = vpop.eup %6281  ;;  %12318 = vst [vmem:[#allocation44_spill] sm:$0xff] %v9572_v48  ;;  %v3418_v19 = vadd.f32 1.0, %v6278_v15  ;;  %v2674_v55 = vmul.f32 0.70710677, %v9549_v58  ;;  %v9577_v11 = vadd.f32 %v12319_v34, %v7957_v54  ;;  %v9580_v25 = vmul.f32 %v3405_v45, %v9423_v35  ;;  %v12321_v48 = vld [vmem:[#allocation28_spill] sm:$0xff]  ;;  %v9592_v31 = vpop.f32.mrf.mxu0 }
 0x32f   :  { %v6284_v60 = vpop.eup %6283  ;;  %v9583_v23 = vmul.f32 0.5, %v9476_v28  ;;  %v9586_v27 = vmul.f32 0.5, %v9484_v33  ;;  %v9590_v8 = vadd.f32 %v12321_v48, %v12210_v9  ;;  %12322 = vst [vmem:[#allocation48_spill] sm:$0xff] %v9592_v31  ;;  %v9594_v15 = vpop.f32.mrf.mxu1  ;;  %v9597_v34 = vmul.f32 %v3410_v37, %v9456_v30  ;;  %v12324_v35 = vld [vmem:[#allocation32_spill] sm:$0xff] }
 0x330   :  { %12320 = vst [vmem:[#allocation42_spill] sm:$0xff] %v9580_v25  ;;  %12323 = vst [vmem:[#allocation60_spill] sm:$0xff] %v9594_v15  ;;  %v3411_v62 = vadd.f32 1.0, %v6280_v0  ;;  %6301 = verf.f32 %v2667_v52  ;;  %v9601_v28 = vadd.f32 %v12324_v35, %v7943_v13  ;;  %v3413_v45 = vadd.f32 1.0, %v6282_v43  ;;  %v9603_v25 = vpop.f32.mrf.mxu0  ;;  %v12327_v52 = vld [vmem:[#allocation29_spill] sm:$0xff] }
 0x331   :  { %v3420_v33 = vadd.f32 1.0, %v6284_v60  ;;  %6303 = verf.f32 %v2669_v26  ;;  %v2676_v12 = vmul.f32 0.70710677, %v2040_v16  ;;  %12325 = vst [vmem:[#allocation63_spill] sm:$0xff] %v9603_v25  ;;  %v9605_v48 = vpop.f32.mrf.mxu1  ;;  %v9608_v15 = vmul.f32 %v3412_v36, %v9471_v44  ;;  %v12359_v25 = vld [vmem:[#allocation27_spill] sm:$0xff] }
 0x332   :  { %12326 = vst [vmem:[#allocation51_spill] sm:$0xff] %v9605_v48  ;;  %v6286_v31 = vpop.eup %6285  ;;  %v9611_v30 = vmul.f32 %v3418_v19, %v9511_v59  ;;  %6305 = verf.f32 %v2674_v55  ;;  %v2675_v0 = vmul.f32 0.70710677, %v9577_v11  ;;  %v2677_v37 = vmul.f32 0.70710677, %v9590_v8  ;;  %v9623_v60 = vpop.f32.mrf.mxu0 }
 0x333   :  { %v6288_v13 = vpop.eup %6287  ;;  %v9617_v43 = vadd.f32 %v12327_v52, %v7948_v20  ;;  %v3795_v26 = vpack.c.bf16 %v9330_v4, %v9306_v40  ;;  %v3797_v44 = vpack.c.bf16 %v9346_v50, %v9316_v17  ;;  %12328 = vst [vmem:[#allocation47_spill] sm:$0xff] %v9623_v60  ;;  %v9625_v59 = vpop.f32.mrf.mxu1  ;;  %v9628_v19 = vmul.f32 0.5, %v9501_v5 }
 0x334   :  { %12329 = vst [vmem:[#allocation67_spill] sm:$0xff] %v9625_v59  ;;  %v6290_v36 = vpop.eup %6289  ;;  %v9631_v55 = vmul.f32 0.5, %v9529_v32  ;;  %v9633_v35 = vmul.f32 0.5, %v2036_v3  ;;  %v2682_v20 = vmul.f32 0.70710677, %v9601_v28  ;;  %v9637_v40 = vmul.f32 %v3411_v62, %v9494_v49  ;;  %v9645_v50 = vpop.f32.mrf.mxu0  ;;  %v12332_v62 = vld [vmem:[#allocation36_spill] sm:$0xff] }
 0x335   :  { %v6292_v52 = vpop.eup %6291  ;;  %v9640_v17 = vmul.f32 %v3413_v45, %v9497_v47  ;;  %v9643_v4 = vmul.f32 %v3420_v33, %v9518_v53  ;;  %6307 = verf.f32 %v2676_v12  ;;  %4754 = vmatprep.mubr.bf16.mxu0 %v3795_v26  ;;  %4947 = vmatprep.mubr.bf16.mxu1 %v3797_v44  ;;  %12330 = vst [vmem:[#allocation61_spill] sm:$0xff] %v9645_v50  ;;  %v9647_v5 = vpop.f32.mrf.mxu1  ;;  %v3419_v3 = vadd.f32 1.0, %v6286_v31  ;;  %v12342_v45 = vld [vmem:[#allocation62_spill] sm:$0xff] }
 0x336   :  { %12331 = vst [vmem:[#allocation55_spill] sm:$0xff] %v9647_v5  ;;  %v6294_v32 = vpop.eup %6293  ;;  %v9650_v59 = vmul.f32 0.5, %v9549_v58  ;;  %6309 = verf.f32 %v2675_v0  ;;  %v1853_v49 = vadd.f32 %v12332_v62, %v7957_v54  ;;  %v12333_v47 = vpack.c.bf16 %v9288_v14, %v9274_v56  ;;  %v9665_v33 = vpop.f32.mrf.mxu0  ;;  %v12350_v5 = vld [vmem:[#allocation65_spill] sm:$0xff] }
 0x337   :  { %v12334_v53 = vpack.c.bf16 %v9309_v2, %v9285_v61  ;;  %v6296_v12 = vpop.eup %6295  ;;  %v9662_v31 = vmul.f32 0.5, %v2040_v16  ;;  %6311 = verf.f32 %v2677_v37  ;;  %v2684_v58 = vmul.f32 0.70710677, %v9617_v43  ;;  %12335 = vst [vmem:[#allocation28_spill] sm:$0xff] %v9665_v33  ;;  %v9667_v54 = vpop.f32.mrf.mxu1  ;;  %v12337_v61 = vld [vmem:[#allocation64_spill] sm:$0xff]  ;;  %v12338_v37 = vld [vmem:[#allocation45_spill] sm:$0xff] }
 0x338   :  { %4755 = vmatmul.mubr.bf16.gmra.mxu0 %v12333_v47  ;;  %12336 = vst [vmem:[#allocation32_spill] sm:$0xff] %v9667_v54  ;;  %v6298_v0 = vpop.eup %6297  ;;  %v3421_v56 = vadd.f32 1.0, %v6288_v13  ;;  %v3426_v14 = vadd.f32 1.0, %v6290_v36  ;;  %6313 = verf.f32 %v2682_v20  ;;  %v2046_v2 = vadd.f32 %v12337_v61, %v12210_v9  ;;  %v9678_v47 = vpop.f32.mrf.mxu0  ;;  %v12341_v61 = vld [vmem:[#allocation70_spill] sm:$0xff] }
 0x339   :  { %4948 = vmatmul.mubr.bf16.gmra.mxu1 %v12334_v53  ;;  %v3428_v44 = vadd.f32 1.0, %v6292_v52  ;;  %v9674_v16 = vmul.f32 0.5, %v9577_v11  ;;  %v2083_v62 = vadd.f32 %v9295_v6, %v12338_v37  ;;  %12339 = vst [vmem:[#allocation29_spill] sm:$0xff] %v9678_v47  ;;  %v9680_v53 = vpop.f32.mrf.mxu1  ;;  %v9683_v36 = vmul.f32 %v3419_v3, %v9542_v18 }
 0x33a   :  { %12340 = vst [vmem:[#allocation36_spill] sm:$0xff] %v9680_v53  ;;  %v6300_v13 = vpop.eup %6299  ;;  %v3427_v20 = vadd.f32 1.0, %v6294_v32  ;;  %v2683_v9 = vmul.f32 0.70710677, %v1853_v49  ;;  %v2276_v26 = vadd.f32 %v12342_v45, %v12341_v61  ;;  %v3429_v52 = vadd.f32 1.0, %v6296_v12  ;;  %v9690_v6 = vpop.f32.mrf.mxu0 }
 0x33b   :  { %v3434_v54 = vadd.f32 1.0, %v6298_v0  ;;  %v9688_v11 = vmul.f32 0.5, %v9590_v8  ;;  %6315 = verf.f32 %v2684_v58  ;;  %12343 = vst [vmem:[#allocation64_spill] sm:$0xff] %v9690_v6  ;;  %v9692_v47 = vpop.f32.mrf.mxu1  ;;  %v9695_v53 = vmul.f32 %v3421_v56, %v9545_v24  ;;  %v12345_v0 = vld [vmem:[#allocation53_spill] sm:$0xff]  ;;  %v12346_v6 = vld [vmem:[#allocation66_spill] sm:$0xff] }
 0x33c   :  { %12344 = vst [vmem:[#allocation45_spill] sm:$0xff] %v9692_v47  ;;  %v9698_v18 = vmul.f32 %v3426_v14, %v9552_v22  ;;  %v9701_v32 = vmul.f32 0.5, %v9601_v28  ;;  %v2685_v3 = vmul.f32 0.70710677, %v2046_v2  ;;  %v9704_v45 = vmul.f32 %v3428_v44, %v9554_v41  ;;  %v9710_v47 = vpop.f32.mrf.mxu0  ;;  %v12349_v14 = vld [vmem:[#allocation54_spill] sm:$0xff] }
 0x33d   :  { %v6302_v12 = vpop.eup %6301  ;;  %v3436_v8 = vadd.f32 1.0, %v6300_v13  ;;  %v2438_v58 = vmul.f32 0.70710677, %v2083_v62  ;;  %v9708_v33 = vadd.f32 %v12346_v6, %v12345_v0  ;;  %12347 = vst [vmem:[#allocation70_spill] sm:$0xff] %v9710_v47  ;;  %v9712_v24 = vpop.f32.mrf.mxu1  ;;  %v9715_v56 = vmul.f32 %v3427_v20, %v9563_v39 }
 0x33e   :  { %12348 = vst [vmem:[#allocation62_spill] sm:$0xff] %v9712_v24  ;;  %v6304_v22 = vpop.eup %6303  ;;  %6317 = verf.f32 %v2683_v9  ;;  %v2440_v28 = vmul.f32 0.70710677, %v2276_v26  ;;  %v2278_v41 = vadd.f32 %v12350_v5, %v12349_v14  ;;  %v9720_v13 = vmul.f32 %v3429_v52, %v9583_v23  ;;  %v12351_v24 = vld [vmem:[#allocation57_spill] sm:$0xff]  ;;  %v9730_v39 = vpop.f32.mrf.mxu0 }
 0x33f   :  { %v6306_v44 = vpop.eup %6305  ;;  %v9723_v6 = vmul.f32 %v3434_v54, %v9586_v27  ;;  %v9726_v47 = vmul.f32 0.5, %v9617_v43  ;;  %v2087_v50 = vadd.f32 %v12351_v24, %v12338_v37  ;;  %12352 = vst [vmem:[#allocation53_spill] sm:$0xff] %v9730_v39  ;;  %v9732_v20 = vpop.f32.mrf.mxu1  ;;  %v3435_v9 = vadd.f32 1.0, %v6302_v12  ;;  %v12354_v23 = vld [vmem:[#allocation21_spill] sm:$0xff] }
 0x340   :  { %12353 = vst [vmem:[#allocation66_spill] sm:$0xff] %v9732_v20  ;;  %v9734_v60 = vmul.f32 0.5, %v1853_v49  ;;  %6319 = verf.f32 %v2685_v3  ;;  %v2280_v5 = vadd.f32 %v12354_v23, %v12341_v61  ;;  %v9739_v27 = vmul.f32 %v3436_v8, %v9628_v19  ;;  %v9744_v52 = vpop.f32.mrf.mxu0 }
 0x341   :  { %v9741_v54 = vmul.f32 0.5, %v2046_v2  ;;  %6321 = verf.f32 %v2438_v58  ;;  %v2439_v43 = vmul.f32 0.70710677, %v9708_v33  ;;  %12355 = vst [vmem:[#allocation54_spill] sm:$0xff] %v9744_v52  ;;  %v9746_v24 = vpop.f32.mrf.mxu1  ;;  %v3437_v12 = vadd.f32 1.0, %v6304_v22 }
 0x342   :  { %12356 = vst [vmem:[#allocation65_spill] sm:$0xff] %v9746_v24  ;;  %v6308_v39 = vpop.eup %6307  ;;  %6323 = verf.f32 %v2440_v28  ;;  %v2441_v49 = vmul.f32 0.70710677, %v2278_v41  ;;  %v3803_v3 = vpack.c.bf16 %v9438_v29, %v9392_v38  ;;  %v3442_v2 = vadd.f32 1.0, %v6306_v44  ;;  %v9754_v48 = vpop.f32.mrf.mxu0 }
 0x343   :  { %v6310_v23 = vpop.eup %6309  ;;  %v9752_v8 = vmul.f32 0.5, %v2083_v62  ;;  %v2446_v58 = vmul.f32 0.70710677, %v2087_v50  ;;  %12357 = vst [vmem:[#allocation57_spill] sm:$0xff] %v9754_v48  ;;  %v9756_v52 = vpop.f32.mrf.mxu1  ;;  %v9759_v22 = vmul.f32 %v3435_v9, %v9631_v55  ;;  %v2448_v28 = vmul.f32 0.70710677, %v2280_v5 }
 0x344   :  { %12358 = vst [vmem:[#allocation21_spill] sm:$0xff] %v9756_v52  ;;  %v6312_v24 = vpop.eup %6311  ;;  %v2089_v38 = vadd.f32 %v12359_v25, %v12345_v0  ;;  %4764 = vmatprep.mubr.bf16.mxu0 %v3803_v3  ;;  %v3805_v29 = vpack.c.bf16 %v9445_v51, %v9407_v10  ;;  %v3444_v62 = vadd.f32 1.0, %v6308_v39  ;;  %v9765_v19 = vmul.f32 0.5, %v2276_v26  ;;  %v12360_v48 = vld [vmem:[#allocation16_spill] sm:$0xff]  ;;  %v9772_v9 = vpop.f32.mrf.mxu0 }
 0x345   :  { %v6314_v44 = vpop.eup %6313  ;;  %6325 = verf.f32 %v2439_v43  ;;  %v2282_v52 = vadd.f32 %v12360_v48, %v12349_v14  ;;  %v12361_v55 = vpack.c.bf16 %v9384_v46, %v9357_v21  ;;  %12362 = vst [vmem:[#allocation27_spill] sm:$0xff] %v9772_v9  ;;  %v9774_v20 = vpop.f32.mrf.mxu1  ;;  %v9779_v51 = vmul.f32 %v3437_v12, %v9633_v35  ;;  %v12365_v46 = vld [vmem:[#allocation23_spill] sm:$0xff] }
 0x346   :  { %12363 = vst [vmem:[#allocation16_spill] sm:$0xff] %v9774_v20  ;;  %6327 = verf.f32 %v2441_v49  ;;  %v2093_v10 = vadd.f32 %v9373_v1, %v12338_v37  ;;  %4957 = vmatprep.mubr.bf16.mxu1 %v3805_v29  ;;  %v9784_v48 = vmul.f32 %v3442_v2, %v9650_v59  ;;  %v3443_v21 = vadd.f32 1.0, %v6310_v23  ;;  %v9791_v43 = vpop.f32.mrf.mxu0 }
 0x347   :  { %4765 = vmatmul.mubr.bf16.gmra.mxu0 %v12361_v55  ;;  %6329 = verf.f32 %v2446_v58  ;;  %v2286_v26 = vadd.f32 %v12365_v46, %v12341_v61  ;;  %v12366_v39 = vpack.c.bf16 %v9410_v42, %v9364_v7  ;;  %12367 = vst [vmem:[#allocation23_spill] sm:$0xff] %v9791_v43  ;;  %v9793_v35 = vpop.f32.mrf.mxu1  ;;  %v3445_v49 = vadd.f32 1.0, %v6312_v24  ;;  %v12373_v46 = vld [vmem:[#allocation69_spill] sm:$0xff] }
 0x348   :  { %12364 = vst [vmem:[#allocation71_spill] sm:$0xff] %v9784_v48  ;;  %12368 = vst [vmem:[#allocation72_spill] sm:$0xff] %v9793_v35  ;;  %v6316_v12 = vpop.eup %6315  ;;  %v3450_v1 = vadd.f32 1.0, %v6314_v44  ;;  %6331 = verf.f32 %v2448_v28  ;;  %v2447_v3 = vmul.f32 0.70710677, %v2089_v38  ;;  %v9796_v59 = vmul.f32 %v3444_v62, %v9662_v31  ;;  %v9803_v7 = vpop.f32.mrf.mxu0  ;;  %v12372_v28 = vld [vmem:[#allocation33_spill] sm:$0xff] }
 0x349   :  { %4958 = vmatmul.mubr.bf16.gmra.mxu1 %v12366_v39  ;;  %v9799_v23 = vmul.f32 0.5, %v9708_v33  ;;  %v9801_v2 = vmul.f32 0.5, %v2278_v41  ;;  %v2449_v58 = vmul.f32 0.70710677, %v2282_v52  ;;  %12370 = vst [vmem:[#allocation74_spill] sm:$0xff] %v9803_v7  ;;  %v9805_v42 = vpop.f32.mrf.mxu1  ;;  %v9807_v29 = vmul.f32 0.5, %v2087_v50 }
 0x34a   :  { %12369 = vst [vmem:[#allocation73_spill] sm:$0xff] %v9796_v59  ;;  %12371 = vst [vmem:[#allocation75_spill] sm:$0xff] %v9805_v42  ;;  %v9809_v55 = vmul.f32 0.5, %v2280_v5  ;;  %v2454_v24 = vmul.f32 0.70710677, %v2093_v10  ;;  %v2095_v44 = vadd.f32 %v12372_v28, %v12345_v0  ;;  %v9814_v62 = vmul.f32 %v3443_v21, %v9674_v16  ;;  %v9820_v25 = vpop.f32.mrf.mxu0  ;;  %v12377_v16 = vld [vmem:[#allocation18_spill] sm:$0xff] }
 0x34b   :  { %v6318_v31 = vpop.eup %6317  ;;  %v3452_v33 = vadd.f32 1.0, %v6316_v12  ;;  %v2456_v41 = vmul.f32 0.70710677, %v2286_v26  ;;  %v9818_v39 = vadd.f32 %v12373_v46, %v12338_v37  ;;  %12374 = vst [vmem:[#allocation33_spill] sm:$0xff] %v9820_v25  ;;  %v9822_v50 = vpop.f32.mrf.mxu1  ;;  %v9825_v5 = vmul.f32 %v3445_v49, %v9688_v11  ;;  %v12378_v7 = vld [vmem:[#allocation26_spill] sm:$0xff]  ;;  %v12387_v35 = vld [vmem:[#allocation56_spill] sm:$0xff] }
 0x34c   :  { %12375 = vst [vmem:[#allocation69_spill] sm:$0xff] %v9822_v50  ;;  %v9828_v42 = vmul.f32 %v3450_v1, %v9701_v32  ;;  %6333 = verf.f32 %v2447_v3  ;;  %v2288_v21 = vadd.f32 %v12377_v16, %v12349_v14  ;;  %v9832_v28 = vmul.f32 0.5, %v2089_v38  ;;  %v9840_v9 = vpop.f32.mrf.mxu0  ;;  %v12386_v25 = vld [vmem:[#allocation42_spill] sm:$0xff]  ;;  %v12408_v59 = vld [vmem:[#allocation17_spill] sm:$0xff] }
 0x34d   :  { %12376 = vst [vmem:[#allocation76_spill] sm:$0xff] %v9825_v5  ;;  %v6320_v12 = vpop.eup %6319  ;;  %6335 = verf.f32 %v2449_v58  ;;  %v9834_v46 = vmul.f32 0.5, %v2282_v52  ;;  %v9838_v20 = vadd.f32 %v12378_v7, %v12341_v61  ;;  %12379 = vst [vmem:[#allocation18_spill] sm:$0xff] %v9840_v9  ;;  %v9842_v11 = vpop.f32.mrf.mxu1  ;;  %v3451_v49 = vadd.f32 1.0, %v6318_v31  ;;  %v12382_v7 = vld [vmem:[#allocation19_spill] sm:$0xff] }
 0x34e   :  { %12380 = vst [vmem:[#allocation26_spill] sm:$0xff] %v9842_v11  ;;  %v6322_v32 = vpop.eup %6321  ;;  %6337 = verf.f32 %v2454_v24  ;;  %v2455_v1 = vmul.f32 0.70710677, %v2095_v44  ;;  %v3811_v3 = vpack.c.bf16 %v9561_v63, %v9508_v57  ;;  %v9847_v58 = vmul.f32 %v3452_v33, %v9726_v47  ;;  %v9852_v9 = vpop.f32.mrf.mxu0 }
 0x34f   :  { %v6324_v38 = vpop.eup %6323  ;;  %6339 = verf.f32 %v2456_v41  ;;  %v2462_v52 = vmul.f32 0.70710677, %v9818_v39  ;;  %v2099_v16 = vadd.f32 %v12382_v7, %v12345_v0  ;;  %12383 = vst [vmem:[#allocation19_spill] sm:$0xff] %v9852_v9  ;;  %v9854_v11 = vpop.f32.mrf.mxu1  ;;  %v3453_v31 = vadd.f32 1.0, %v6320_v12  ;;  %v12385_v41 = vld [vmem:[#allocation46_spill] sm:$0xff] }
 0x350   :  { %12381 = vst [vmem:[#allocation77_spill] sm:$0xff] %v9847_v58  ;;  %12384 = vst [vmem:[#allocation78_spill] sm:$0xff] %v9854_v11  ;;  %v9858_v50 = vmul.f32 0.5, %v2093_v10  ;;  %v2457_v57 = vmul.f32 0.70710677, %v2288_v21  ;;  %4774 = vmatprep.mubr.bf16.mxu0 %v3811_v3  ;;  %v3206_v63 = vadd.f32 1.0, %v6322_v32  ;;  %v3813_v7 = vpack.c.bf16 %v12386_v25, %v12385_v41  ;;  %v9868_v11 = vpop.f32.mrf.mxu0 }
 0x351   :  { %v9860_v47 = vmul.f32 0.5, %v2286_v26  ;;  %v2464_v33 = vmul.f32 0.70710677, %v9838_v20  ;;  %v12388_v9 = vld [vmem:[#allocation30_spill] sm:$0xff]  ;;  %12390 = vst [vmem:[#allocation46_spill] sm:$0xff] %v9868_v11  ;;  %v9870_v24 = vpop.f32.mrf.mxu1  ;;  %v9873_v12 = vmul.f32 %v3451_v49, %v9734_v60  ;;  %v3208_v32 = vadd.f32 1.0, %v6324_v38 }
 0x352   :  { %v12389_v43 = vpack.c.bf16 %v12387_v35, %v12388_v9  ;;  %12391 = vst [vmem:[#allocation42_spill] sm:$0xff] %v9870_v24  ;;  %v6326_v10 = vpop.eup %6325  ;;  %6341 = verf.f32 %v2455_v1  ;;  %v12392_v26 = vld [vmem:[#allocation34_spill] sm:$0xff]  ;;  %v2463_v9 = vmul.f32 0.70710677, %v2099_v16  ;;  %4967 = vmatprep.mubr.bf16.mxu1 %v3813_v7  ;;  %v9885_v41 = vpop.f32.mrf.mxu0  ;;  %v9890_v1 = vmul.f32 %v3453_v31, %v9741_v54  ;;  %v12398_v25 = vld [vmem:[#allocation37_spill] sm:$0xff]  ;;  %v12399_v24 = vld [vmem:[#allocation35_spill] sm:$0xff] }
 0x353   :  { %v9877_v3 = vadd.f32 %v12392_v26, %v12349_v14  ;;  %v6328_v5 = vpop.eup %6327  ;;  %6343 = verf.f32 %v2462_v52  ;;  %12394 = vst [vmem:[#allocation56_spill] sm:$0xff] %v9885_v41  ;;  %v9887_v60 = vpop.f32.mrf.mxu1  ;;  %v9892_v38 = vmul.f32 0.5, %v2095_v44  ;;  %v12397_v26 = vld [vmem:[#allocation22_spill] sm:$0xff]  ;;  %v9902_v11 = vmul.f32 %v3206_v63, %v9752_v8  ;;  %v12401_v54 = vld [vmem:[#allocation31_spill] sm:$0xff]  ;;  %v12404_v8 = vld [vmem:[#allocation20_spill] sm:$0xff] }
 0x354   :  { %4775 = vmatmul.mubr.bf16.gmra.mxu0 %v12389_v43  ;;  %v12393_v43 = vld [vmem:[#allocation25_spill] sm:$0xff]  ;;  %12395 = vst [vmem:[#allocation30_spill] sm:$0xff] %v9887_v60  ;;  %v6330_v49 = vpop.eup %6329  ;;  %12396 = vst [vmem:[#allocation34_spill] sm:$0xff] %v9890_v1  ;;  %6345 = verf.f32 %v2457_v57  ;;  %v9896_v52 = vadd.f32 %v12397_v26, %v12341_v61  ;;  %v9904_v60 = vmul.f32 0.5, %v2288_v21  ;;  %v9908_v44 = vadd.f32 %v12401_v54, %v12345_v0  ;;  %v9910_v31 = vpop.f32.mrf.mxu0 }
 0x355   :  { %v9883_v35 = vadd.f32 %v12393_v43, %v12338_v37  ;;  %v12400_v43 = vpack.c.bf16 %v12398_v25, %v12399_v24  ;;  %v6332_v7 = vpop.eup %6331  ;;  %6347 = verf.f32 %v2464_v33  ;;  %12402 = vst [vmem:[#allocation25_spill] sm:$0xff] %v9910_v31  ;;  %v9912_v57 = vpop.f32.mrf.mxu1  ;;  %v9915_v26 = vmul.f32 %v3208_v32, %v9765_v19 }
 0x356   :  { %12403 = vst [vmem:[#allocation22_spill] sm:$0xff] %v9912_v57  ;;  %v3207_v24 = vadd.f32 1.0, %v6326_v10  ;;  %v2465_v25 = vmul.f32 0.70710677, %v9877_v3  ;;  %v9920_v63 = vadd.f32 %v12404_v8, %v12338_v37  ;;  %v3214_v21 = vadd.f32 1.0, %v6330_v49  ;;  %v9927_v31 = vpop.f32.mrf.mxu0 }
 0x357   :  { %4968 = vmatmul.mubr.bf16.gmra.mxu1 %v12400_v43  ;;  %6349 = verf.f32 %v2463_v9  ;;  %v2470_v33 = vmul.f32 0.70710677, %v9883_v35  ;;  %v12405_v43 = vld [vmem:[#allocation38_spill] sm:$0xff]  ;;  %12406 = vst [vmem:[#allocation37_spill] sm:$0xff] %v9927_v31  ;;  %v9929_v57 = vpop.f32.mrf.mxu1  ;;  %v3209_v19 = vadd.f32 1.0, %v6328_v5  ;;  %v3216_v10 = vadd.f32 1.0, %v6332_v7 }
 0x358   :  { %v9925_v54 = vadd.f32 %v12405_v43, %v12341_v61  ;;  %12407 = vst [vmem:[#allocation35_spill] sm:$0xff] %v9929_v57  ;;  %v9932_v32 = vmul.f32 0.5, %v9818_v39  ;;  %v2472_v8 = vmul.f32 0.70710677, %v9896_v52  ;;  %v9936_v9 = vmul.f32 0.5, %v9838_v20  ;;  %v9945_v57 = vpop.f32.mrf.mxu0 }
 0x359   :  { %v6334_v41 = vpop.eup %6333  ;;  %v9938_v49 = vmul.f32 0.5, %v2099_v16  ;;  %v2471_v43 = vmul.f32 0.70710677, %v9908_v44  ;;  %v9943_v31 = vadd.f32 %v12408_v59, %v12349_v14  ;;  %12409 = vst [vmem:[#allocation31_spill] sm:$0xff] %v9945_v57  ;;  %v9947_v5 = vpop.f32.mrf.mxu1  ;;  %v9950_v7 = vmul.f32 %v3207_v24, %v9799_v23  ;;  %v12411_v57 = vld [vmem:[#allocation43_spill] sm:$0xff] }
 0x35a   :  { %12410 = vst [vmem:[#allocation20_spill] sm:$0xff] %v9947_v5  ;;  %v6336_v39 = vpop.eup %6335  ;;  %6351 = verf.f32 %v2465_v25  ;;  %v2478_v20 = vmul.f32 0.70710677, %v9920_v63  ;;  %v3819_v16 = vpack.c.bf16 %v9683_v36, %v9637_v40  ;;  %v9956_v1 = vmul.f32 %v3214_v21, %v9807_v29  ;;  %v9963_v48 = vpop.f32.mrf.mxu0  ;;  %v12414_v36 = vld [vmem:[#allocation39_spill] sm:$0xff] }
 0x35b   :  { %v6338_v58 = vpop.eup %6337  ;;  %6353 = verf.f32 %v2470_v33  ;;  %v2480_v59 = vmul.f32 0.70710677, %v9925_v54  ;;  %v9961_v5 = vadd.f32 %v12411_v57, %v12345_v0  ;;  %12412 = vst [vmem:[#allocation38_spill] sm:$0xff] %v9963_v48  ;;  %v9965_v23 = vpop.f32.mrf.mxu1  ;;  %v9968_v25 = vmul.f32 %v3216_v10, %v9809_v55  ;;  %v12415_v33 = vld [vmem:[#allocation50_spill] sm:$0xff] }
 0x35c   :  { %12413 = vst [vmem:[#allocation17_spill] sm:$0xff] %v9965_v23  ;;  %v6340_v24 = vpop.eup %6339  ;;  %v3215_v40 = vadd.f32 1.0, %v6334_v41  ;;  %6355 = verf.f32 %v2472_v8  ;;  %v9972_v29 = vadd.f32 %v12414_v36, %v12349_v14  ;;  %4784 = vmatprep.mubr.bf16.mxu0 %v3819_v16  ;;  %v3217_v21 = vadd.f32 1.0, %v6336_v39  ;;  %v9982_v55 = vpop.f32.mrf.mxu0  ;;  %v12419_v8 = vld [vmem:[#allocation52_spill] sm:$0xff] }
 0x35d   :  { %6357 = verf.f32 %v2471_v43  ;;  %v2473_v57 = vmul.f32 0.70710677, %v9943_v31  ;;  %v9977_v48 = vadd.f32 %v12415_v33, %v12338_v37  ;;  %v12416_v23 = vpack.c.bf16 %v9611_v30, %v9597_v34  ;;  %12417 = vst [vmem:[#allocation43_spill] sm:$0xff] %v9982_v55  ;;  %v9984_v41 = vpop.f32.mrf.mxu1 }
 0x35e   :  { %12418 = vst [vmem:[#allocation39_spill] sm:$0xff] %v9984_v41  ;;  %v3222_v10 = vadd.f32 1.0, %v6338_v58  ;;  %6359 = verf.f32 %v2478_v20  ;;  %v9988_v39 = vadd.f32 %v12419_v8, %v12341_v61  ;;  %v3821_v43 = vpack.c.bf16 %v9695_v53, %v9640_v17  ;;  %v9996_v30 = vpop.f32.mrf.mxu0 }
 0x35f   :  { %4785 = vmatmul.mubr.bf16.gmra.mxu0 %v12416_v23  ;;  %v6342_v16 = vpop.eup %6341  ;;  %v9993_v36 = vmul.f32 %v3209_v19, %v9801_v2  ;;  %v3224_v33 = vadd.f32 1.0, %v6340_v24  ;;  %6361 = verf.f32 %v2480_v59  ;;  %v2479_v34 = vmul.f32 0.70710677, %v9961_v5  ;;  %12420 = vst [vmem:[#allocation50_spill] sm:$0xff] %v9996_v30  ;;  %v9998_v23 = vpop.f32.mrf.mxu1 }
 0x360   :  { %12421 = vst [vmem:[#allocation52_spill] sm:$0xff] %v9998_v23  ;;  %v6344_v58 = vpop.eup %6343  ;;  %v10003_v8 = vmul.f32 0.5, %v9877_v3  ;;  %v10006_v17 = vmul.f32 0.5, %v9883_v35  ;;  %v2481_v53 = vmul.f32 0.70710677, %v9972_v29  ;;  %4977 = vmatprep.mubr.bf16.mxu1 %v3821_v43  ;;  %v10012_v59 = vmul.f32 %v3215_v40, %v9832_v28  ;;  %v10018_v20 = vpop.f32.mrf.mxu0 }
 0x361   :  { %v6346_v2 = vpop.eup %6345  ;;  %6363 = verf.f32 %v2473_v57  ;;  %v2486_v24 = vmul.f32 0.70710677, %v9977_v48  ;;  %v12422_v3 = vpack.c.bf16 %v9643_v4, %v9608_v15  ;;  %12423 = vst [vmem:[#allocation79_spill] sm:$0xff] %v10018_v20  ;;  %v10020_v35 = vpop.f32.mrf.mxu1  ;;  %v10023_v43 = vmul.f32 %v3217_v21, %v9834_v46 }
 0x362   :  { %12424 = vst [vmem:[#allocation80_spill] sm:$0xff] %v10020_v35  ;;  %v6348_v23 = vpop.eup %6347  ;;  %v10026_v19 = vmul.f32 %v3222_v10, %v9858_v50  ;;  %v10029_v28 = vmul.f32 0.5, %v9896_v52  ;;  %v2488_v40 = vmul.f32 0.70710677, %v9988_v39  ;;  %v10033_v57 = vmul.f32 %v3224_v33, %v9860_v47  ;;  %v12427_v52 = vld [vmem:[#allocation24_spill] sm:$0xff] }
 0x363   :  { %4978 = vmatmul.mubr.bf16.gmra.mxu1 %v12422_v3  ;;  %v3230_v15 = vadd.f32 1.0, %v6344_v58  ;;  %v10036_v4 = vmul.f32 0.5, %v9908_v44  ;;  %6365 = verf.f32 %v2479_v34  ;;  %v10038_v3 = vpop.f32.mrf.mxu0  ;;  %v10040_v46 = vpop.f32.mrf.mxu1  ;;  %v3223_v50 = vadd.f32 1.0, %v6342_v16  ;;  %v12428_v44 = vld [vmem:[#allocation40_spill] sm:$0xff] }
 0x364   :  { %12425 = vst [vmem:[#allocation81_spill] sm:$0xff] %v10038_v3  ;;  %12426 = vst [vmem:[#allocation82_spill] sm:$0xff] %v10040_v46  ;;  %v6350_v21 = vpop.eup %6349  ;;  %v3225_v10 = vadd.f32 1.0, %v6346_v2  ;;  %6367 = verf.f32 %v2481_v53  ;;  %v10044_v35 = vadd.f32 %v12427_v52, %v12345_v0  ;;  %v3232_v20 = vadd.f32 1.0, %v6348_v23  ;;  %v12431_v53 = vld [vmem:[#allocation68_spill] sm:$0xff] }
 0x365   :  { %v10047_v47 = vmul.f32 0.5, %v9943_v31  ;;  %6369 = verf.f32 %v2486_v24  ;;  %v10051_v33 = vadd.f32 %v12428_v44, %v12338_v37  ;;  %v10053_v34 = vpop.f32.mrf.mxu0  ;;  %v10055_v58 = vpop.f32.mrf.mxu1  ;;  %v10058_v16 = vmul.f32 0.5, %v9920_v63 }
 0x366   :  { %12429 = vst [vmem:[#allocation24_spill] sm:$0xff] %v10053_v34  ;;  %12430 = vst [vmem:[#allocation40_spill] sm:$0xff] %v10055_v58  ;;  %6371 = verf.f32 %v2488_v40  ;;  %v2308_v2 = vadd.f32 %v12431_v53, %v12349_v14  ;;  %v3827_v31 = vpack.c.bf16 %v9759_v22, %v9715_v56  ;;  %v10065_v24 = vmul.f32 %v3230_v15, %v9932_v32  ;;  %v12432_v58 = vld [vmem:[#allocation49_spill] sm:$0xff] }
 0x367   :  { %v6352_v23 = vpop.eup %6351  ;;  %v3231_v52 = vadd.f32 1.0, %v6350_v21  ;;  %v10068_v44 = vmul.f32 0.5, %v9925_v54  ;;  %v10072_v34 = vadd.f32 %v12432_v58, %v12341_v61  ;;  %v10074_v63 = vpop.f32.mrf.mxu0  ;;  %v10079_v46 = vmul.f32 %v3223_v50, %v9892_v38  ;;  %v12435_v38 = vld [vmem:[#allocation41_spill] sm:$0xff] }
 0x368   :  { %12433 = vst [vmem:[#allocation68_spill] sm:$0xff] %v10074_v63  ;;  %v10076_v40 = vpop.f32.mrf.mxu1  ;;  %v6354_v53 = vpop.eup %6353  ;;  %v10082_v56 = vmul.f32 %v3225_v10, %v9904_v60  ;;  %v10085_v22 = vmul.f32 0.5, %v9961_v5  ;;  %v2487_v54 = vmul.f32 0.70710677, %v10044_v35  ;;  %4794 = vmatprep.mubr.bf16.mxu0 %v3827_v31  ;;  %v10089_v15 = vmul.f32 %v3232_v20, %v9936_v9 }
 0x369   :  { %12434 = vst [vmem:[#allocation49_spill] sm:$0xff] %v10076_v40  ;;  %v6356_v32 = vpop.eup %6355  ;;  %v10092_v21 = vmul.f32 0.5, %v9972_v29  ;;  %v2494_v58 = vmul.f32 0.70710677, %v10051_v33  ;;  %v2119_v50 = vadd.f32 %v12435_v38, %v12345_v0  ;;  %v12436_v60 = vpack.c.bf16 %v9723_v6, %v9698_v18  ;;  %v10100_v5 = vpop.f32.mrf.mxu0 }
 0x36a   :  { %12437 = vst [vmem:[#allocation41_spill] sm:$0xff] %v10100_v5  ;;  %v10102_v10 = vpop.f32.mrf.mxu1  ;;  %v6358_v31 = vpop.eup %6357  ;;  %v3233_v40 = vadd.f32 1.0, %v6352_v23  ;;  %v10105_v9 = vmul.f32 0.5, %v9977_v48  ;;  %v2489_v29 = vmul.f32 0.70710677, %v2308_v2  ;;  %v3829_v20 = vpack.c.bf16 %v9779_v51, %v9720_v13  ;;  %v12441_v13 = vld [vmem:[#allocation44_spill] sm:$0xff] }
 0x36b   :  { %4795 = vmatmul.mubr.bf16.gmra.mxu0 %v12436_v60  ;;  %12438 = vst [vmem:[#allocation83_spill] sm:$0xff] %v10102_v10  ;;  %v6360_v63 = vpop.eup %6359  ;;  %v10112_v18 = vmul.f32 %v3231_v52, %v9938_v49  ;;  %v3238_v6 = vadd.f32 1.0, %v6354_v53  ;;  %v2496_v60 = vmul.f32 0.70710677, %v10072_v34  ;;  %v10115_v10 = vpop.f32.mrf.mxu0  ;;  %v3240_v5 = vadd.f32 1.0, %v6356_v32  ;;  %v12442_v53 = vld [vmem:[#allocation48_spill] sm:$0xff] }
 0x36c   :  { %12439 = vst [vmem:[#allocation84_spill] sm:$0xff] %v10115_v10  ;;  %v10117_v23 = vpop.f32.mrf.mxu1  ;;  %v6362_v48 = vpop.eup %6361  ;;  %v10120_v3 = vmul.f32 0.5, %v9988_v39  ;;  %6373 = verf.f32 %v2487_v54  ;;  %v2312_v51 = vadd.f32 %v12441_v13, %v12349_v14  ;;  %4987 = vmatprep.mubr.bf16.mxu1 %v3829_v20  ;;  %v2495_v52 = vmul.f32 0.70710677, %v2119_v50 }
 0x36d   :  { %12440 = vst [vmem:[#allocation85_spill] sm:$0xff] %v10117_v23  ;;  %6375 = verf.f32 %v2494_v58  ;;  %v2123_v38 = vadd.f32 %v12442_v53, %v12338_v37  ;;  %v12443_v23 = vpack.c.bf16 %v9739_v27, %v9704_v45  ;;  %v10131_v32 = vpop.f32.mrf.mxu0  ;;  %v10136_v13 = vmul.f32 %v3233_v40, %v10003_v8  ;;  %v12446_v58 = vld [vmem:[#allocation60_spill] sm:$0xff] }
 0x36e   :  { %12444 = vst [vmem:[#allocation44_spill] sm:$0xff] %v10131_v32  ;;  %v10133_v39 = vpop.f32.mrf.mxu1  ;;  %v6364_v54 = vpop.eup %6363  ;;  %v3246_v20 = vadd.f32 1.0, %v6360_v63  ;;  %6377 = verf.f32 %v2489_v29  ;;  %v2316_v49 = vadd.f32 %v12446_v58, %v12341_v61  ;;  %v10141_v10 = vmul.f32 %v3238_v6, %v10006_v17  ;;  %v12477_v32 = vld [vmem:[#allocation77_spill] sm:$0xff] }
 0x36f   :  { %4988 = vmatmul.mubr.bf16.gmra.mxu1 %v12443_v23  ;;  %12445 = vst [vmem:[#allocation48_spill] sm:$0xff] %v10133_v39  ;;  %v3239_v53 = vadd.f32 1.0, %v6358_v31  ;;  %v3248_v30 = vadd.f32 1.0, %v6362_v48  ;;  %6379 = verf.f32 %v2496_v60  ;;  %v10143_v45 = vpop.f32.mrf.mxu0  ;;  %v10148_v39 = vmul.f32 %v3240_v5, %v10029_v28 }
 0x370   :  { %12447 = vst [vmem:[#allocation60_spill] sm:$0xff] %v10141_v10  ;;  %12448 = vst [vmem:[#allocation86_spill] sm:$0xff] %v10143_v45  ;;  %v10145_v27 = vpop.f32.mrf.mxu1  ;;  %v6366_v23 = vpop.eup %6365  ;;  %v10151_v8 = vmul.f32 0.5, %v10044_v35  ;;  %v10153_v63 = vmul.f32 0.5, %v2308_v2  ;;  %v2497_v40 = vmul.f32 0.70710677, %v2312_v51  ;;  %6381 = verf.f32 %v2495_v52 }
 0x371   :  { %12449 = vst [vmem:[#allocation87_spill] sm:$0xff] %v10145_v27  ;;  %12450 = vst [vmem:[#allocation88_spill] sm:$0xff] %v10148_v39  ;;  %v6368_v29 = vpop.eup %6367  ;;  %v3241_v17 = vadd.f32 1.0, %v6364_v54  ;;  %v10156_v31 = vmul.f32 0.5, %v10051_v33  ;;  %v2502_v6 = vmul.f32 0.70710677, %v2123_v38  ;;  %v10158_v60 = vpop.f32.mrf.mxu0  ;;  %v10163_v28 = vmul.f32 %v3246_v20, %v10058_v16 }
 0x372   :  { %12451 = vst [vmem:[#allocation89_spill] sm:$0xff] %v10158_v60  ;;  %v10160_v48 = vpop.f32.mrf.mxu1  ;;  %v6370_v58 = vpop.eup %6369  ;;  %v10166_v35 = vmul.f32 0.5, %v10072_v34  ;;  %v10168_v2 = vmul.f32 0.5, %v2119_v50  ;;  %v2504_v5 = vmul.f32 0.70710677, %v2316_v49  ;;  %v10171_v33 = vmul.f32 %v3239_v53, %v10036_v4  ;;  %v12456_v20 = vld [vmem:[#allocation66_spill] sm:$0xff] }
 0x373   :  { %12452 = vst [vmem:[#allocation90_spill] sm:$0xff] %v10160_v48  ;;  %v6372_v54 = vpop.eup %6371  ;;  %v10174_v52 = vmul.f32 %v3248_v30, %v10068_v44  ;;  %v3247_v60 = vadd.f32 1.0, %v6366_v23  ;;  %v3835_v48 = vpack.c.bf16 %v9873_v12, %v9814_v62  ;;  %v10178_v27 = vpop.f32.mrf.mxu0  ;;  %v3249_v34 = vadd.f32 1.0, %v6368_v29  ;;  %v12458_v44 = vld [vmem:[#allocation63_spill] sm:$0xff] }
 0x374   :  { %12454 = vst [vmem:[#allocation92_spill] sm:$0xff] %v10178_v27  ;;  %v10180_v16 = vpop.f32.mrf.mxu1  ;;  %6383 = verf.f32 %v2497_v40  ;;  %v10182_v50 = vmul.f32 0.5, %v2312_v51  ;;  %v10186_v45 = vadd.f32 %v12456_v20, %v12341_v61  ;;  %v10189_v4 = vmul.f32 %v3241_v17, %v10047_v47  ;;  %v12461_v40 = vld [vmem:[#allocation51_spill] sm:$0xff] }
 0x375   :  { %12453 = vst [vmem:[#allocation91_spill] sm:$0xff] %v10174_v52  ;;  %12455 = vst [vmem:[#allocation93_spill] sm:$0xff] %v10180_v16  ;;  %v3254_v30 = vadd.f32 1.0, %v6370_v58  ;;  %6385 = verf.f32 %v2502_v6  ;;  %v2125_v62 = vadd.f32 %v12458_v44, %v12345_v0  ;;  %4804 = vmatprep.mubr.bf16.mxu0 %v3835_v48  ;;  %v10193_v12 = vpop.f32.mrf.mxu0  ;;  %v3256_v23 = vadd.f32 1.0, %v6372_v54  ;;  %v12462_v47 = vld [vmem:[#allocation71_spill] sm:$0xff]  ;;  %v12469_v6 = vld [vmem:[#allocation76_spill] sm:$0xff] }
 0x376   :  { %12457 = vst [vmem:[#allocation66_spill] sm:$0xff] %v10189_v4  ;;  %12459 = vst [vmem:[#allocation63_spill] sm:$0xff] %v10193_v12  ;;  %v10195_v53 = vpop.f32.mrf.mxu1  ;;  %6387 = verf.f32 %v2504_v5  ;;  %v2318_v29 = vadd.f32 %v12461_v40, %v12349_v14  ;;  %v12463_v17 = vpack.c.bf16 %v9828_v42, %v12462_v47  ;;  %v10207_v48 = vmul.f32 %v3247_v60, %v10085_v22  ;;  %v12464_v20 = vld [vmem:[#allocation47_spill] sm:$0xff]  ;;  %v12470_v22 = vld [vmem:[#allocation34_spill] sm:$0xff] }
 0x377   :  { %12460 = vst [vmem:[#allocation94_spill] sm:$0xff] %v10195_v53  ;;  %v10209_v58 = vmul.f32 0.5, %v2123_v38  ;;  %v2127_v44 = vadd.f32 %v12464_v20, %v12338_v37  ;;  %v10213_v54 = vpop.f32.mrf.mxu0  ;;  %v10218_v40 = vmul.f32 %v3249_v34, %v10092_v21  ;;  %v12468_v42 = vld [vmem:[#allocation67_spill] sm:$0xff]  ;;  %v3837_v60 = vpack.c.bf16 %v12470_v22, %v12469_v6 }
 0x378   :  { %4805 = vmatmul.mubr.bf16.gmra.mxu0 %v12463_v17  ;;  %12465 = vst [vmem:[#allocation51_spill] sm:$0xff] %v10213_v54  ;;  %v10215_v5 = vpop.f32.mrf.mxu1  ;;  %v2320_v47 = vadd.f32 %v12468_v42, %v12341_v61  ;;  %v2536_v17 = vmul.f32 0.70710677, %v10186_v45  ;;  %v10226_v51 = vmul.f32 %v3254_v30, %v10105_v9  ;;  %v10228_v20 = vmul.f32 0.5, %v2316_v49  ;;  %v12475_v6 = vld [vmem:[#allocation55_spill] sm:$0xff]  ;;  %v12476_v9 = vld [vmem:[#allocation21_spill] sm:$0xff] }
 0x379   :  { %12466 = vst [vmem:[#allocation71_spill] sm:$0xff] %v10215_v5  ;;  %12467 = vst [vmem:[#allocation47_spill] sm:$0xff] %v10218_v40  ;;  %v6374_v38 = vpop.eup %6373  ;;  %v2503_v54 = vmul.f32 0.70710677, %v2125_v62  ;;  %v12471_v5 = vld [vmem:[#allocation61_spill] sm:$0xff]  ;;  %v10232_v21 = vpop.f32.mrf.mxu0  ;;  %v10237_v12 = vmul.f32 %v3256_v23, %v10120_v3  ;;  %v2322_v22 = vadd.f32 %v12475_v6, %v12349_v14  ;;  %4997 = vmatprep.mubr.bf16.mxu1 %v3837_v60  ;;  %v10245_v27 = vmul.f32 0.5, %v2125_v62 }
 0x37a   :  { %v2129_v53 = vadd.f32 %v12471_v5, %v12345_v0  ;;  %12472 = vst [vmem:[#allocation67_spill] sm:$0xff] %v10232_v21  ;;  %v10234_v34 = vpop.f32.mrf.mxu1  ;;  %v6376_v42 = vpop.eup %6375  ;;  %v2505_v16 = vmul.f32 0.70710677, %v2318_v29  ;;  %v10243_v49 = vadd.f32 %v12476_v9, %v12341_v61  ;;  %v10247_v5 = vmul.f32 0.5, %v2318_v29  ;;  %v12478_v3 = vld [vmem:[#allocation73_spill] sm:$0xff]  ;;  %v12482_v9 = vld [vmem:[#allocation28_spill] sm:$0xff] }
 0x37b   :  { %12473 = vst [vmem:[#allocation76_spill] sm:$0xff] %v10234_v34  ;;  %12474 = vst [vmem:[#allocation34_spill] sm:$0xff] %v10237_v12  ;;  %v6378_v30 = vpop.eup %6377  ;;  %v2510_v21 = vmul.f32 0.70710677, %v2127_v44  ;;  %v10249_v34 = vmul.f32 0.5, %v2127_v44  ;;  %v12479_v23 = vpack.c.bf16 %v12477_v32, %v12478_v3  ;;  %v10254_v41 = vpop.f32.mrf.mxu0  ;;  %v2133_v39 = vadd.f32 %v12482_v9, %v12338_v37 }
 0x37c   :  { %12480 = vst [vmem:[#allocation61_spill] sm:$0xff] %v10254_v41  ;;  %v10256_v6 = vpop.f32.mrf.mxu1  ;;  %v6380_v60 = vpop.eup %6379  ;;  %v2512_v55 = vmul.f32 0.70710677, %v2320_v47  ;;  %6389 = verf.f32 %v2536_v17  ;;  %v2544_v62 = vmul.f32 0.70710677, %v10243_v49  ;;  %v3262_v29 = vadd.f32 1.0, %v6376_v42 }
 0x37d   :  { %4998 = vmatmul.mubr.bf16.gmra.mxu1 %v12479_v23  ;;  %12481 = vst [vmem:[#allocation55_spill] sm:$0xff] %v10256_v6  ;;  %6391 = verf.f32 %v2503_v54  ;;  %v10261_v44 = vmul.f32 0.5, %v2320_v47  ;;  %v2511_v52 = vmul.f32 0.70710677, %v2129_v53  ;;  %v10263_v40 = vpop.f32.mrf.mxu0  ;;  %v6382_v3 = vpop.eup %6381  ;;  %v3255_v23 = vadd.f32 1.0, %v6374_v38  ;;  %v12485_v41 = vld [vmem:[#allocation32_spill] sm:$0xff] }
 0x37e   :  { %12483 = vst [vmem:[#allocation21_spill] sm:$0xff] %v10263_v40  ;;  %v10265_v32 = vpop.f32.mrf.mxu1  ;;  %6393 = verf.f32 %v2505_v16  ;;  %v10267_v6 = vmul.f32 0.5, %v2129_v53  ;;  %v2326_v9 = vadd.f32 %v12485_v41, %v12341_v61  ;;  %v3257_v17 = vadd.f32 1.0, %v6378_v30 }
 0x37f   :  { %12484 = vst [vmem:[#allocation77_spill] sm:$0xff] %v10265_v32  ;;  %v3264_v4 = vadd.f32 1.0, %v6380_v60  ;;  %6395 = verf.f32 %v2510_v21  ;;  %v2513_v42 = vmul.f32 0.70710677, %v2322_v22  ;;  %v10271_v54 = vpop.f32.mrf.mxu0  ;;  %v2518_v10 = vmul.f32 0.70710677, %v2133_v39 }
 0x380   :  { %12486 = vst [vmem:[#allocation73_spill] sm:$0xff] %v10271_v54  ;;  %v10273_v47 = vpop.f32.mrf.mxu1  ;;  %6397 = verf.f32 %v2544_v62  ;;  %v12488_v32 = vld [vmem:[#allocation23_spill] sm:$0xff]  ;;  %v3719_v16 = vpack.c.bf16 %v10012_v59, %v9950_v7  ;;  %v10282_v41 = vmul.f32 %v3262_v29, %v10156_v31  ;;  %v3263_v38 = vadd.f32 1.0, %v6382_v3  ;;  %v12489_v21 = vld [vmem:[#allocation72_spill] sm:$0xff]  ;;  %v12492_v3 = vld [vmem:[#allocation29_spill] sm:$0xff] }
 0x381   :  { %12487 = vst [vmem:[#allocation28_spill] sm:$0xff] %v10273_v47  ;;  %v10277_v40 = vadd.f32 %v12488_v32, %v12338_v37  ;;  %v6384_v53 = vpop.eup %6383  ;;  %6399 = verf.f32 %v2512_v55  ;;  %v10286_v30 = vadd.f32 %v12489_v21, %v12341_v61  ;;  %v10288_v60 = vpop.f32.mrf.mxu0  ;;  %v10293_v32 = vmul.f32 %v3255_v23, %v10151_v8  ;;  %v12517_v54 = vld [vmem:[#allocation78_spill] sm:$0xff] }
 0x382   :  { %12490 = vst [vmem:[#allocation32_spill] sm:$0xff] %v10288_v60  ;;  %v10290_v62 = vpop.f32.mrf.mxu1  ;;  %v6386_v47 = vpop.eup %6385  ;;  %6401 = verf.f32 %v2511_v52  ;;  %v10295_v7 = vmul.f32 0.5, %v2322_v22  ;;  %v2520_v59 = vmul.f32 0.70710677, %v2326_v9  ;;  %5040 = vmatprep.mubr.bf16.mxu0 %v3719_v16  ;;  %v10298_v55 = vmul.f32 %v3257_v17, %v10153_v63 }
 0x383   :  { %12491 = vst [vmem:[#allocation23_spill] sm:$0xff] %v10290_v62  ;;  %v6388_v31 = vpop.eup %6387  ;;  %6403 = verf.f32 %v2513_v42  ;;  %v10300_v29 = vmul.f32 0.5, %v2133_v39  ;;  %v2135_v21 = vadd.f32 %v12492_v3, %v12345_v0  ;;  %v12493_v62 = vpack.c.bf16 %v9956_v1, %v9902_v11  ;;  %v10307_v8 = vpop.f32.mrf.mxu0 }
 0x384   :  { %12494 = vst [vmem:[#allocation72_spill] sm:$0xff] %v10307_v8  ;;  %v10309_v52 = vpop.f32.mrf.mxu1  ;;  %v10312_v22 = vmul.f32 %v3264_v4, %v10166_v35  ;;  %v3265_v23 = vadd.f32 1.0, %v6384_v53  ;;  %6405 = verf.f32 %v2518_v10  ;;  %v2550_v63 = vmul.f32 0.70710677, %v10277_v40 }
 0x385   :  { %5041 = vmatmul.mubr.bf16.vlgmr.msra.gmra.mxu0 %v12493_v62  ;;  %12495 = vst [vmem:[#allocation29_spill] sm:$0xff] %v10309_v52  ;;  %v10318_v17 = vmul.f32 %v3263_v38, %v10168_v2  ;;  %v2552_v11 = vmul.f32 0.70710677, %v10286_v30  ;;  %v3721_v1 = vpack.c.bf16 %v10023_v43, %v9993_v36  ;;  %v10323_v42 = vpop.f32.mrf.mxu0  ;;  %v3270_v35 = vadd.f32 1.0, %v6386_v47  ;;  %v12499_v62 = vld [vmem:[#allocation36_spill] sm:$0xff]  ;;  %v12500_v2 = vld [vmem:[#allocation33_spill] sm:$0xff] }
 0x386   :  { %12496 = vst [vmem:[#allocation95_spill] sm:$0xff] %v10312_v22  ;;  %12497 = vst [vmem:[#allocation96_spill] sm:$0xff] %v10323_v42  ;;  %v10325_v16 = vpop.f32.mrf.mxu1  ;;  %v3272_v4 = vadd.f32 1.0, %v6388_v31  ;;  %6407 = verf.f32 %v2520_v59  ;;  %v10327_v10 = vmul.f32 0.5, %v2326_v9  ;;  %v2519_v53 = vmul.f32 0.70710677, %v2135_v21 }
 0x387   :  { %12498 = vst [vmem:[#allocation97_spill] sm:$0xff] %v10325_v16  ;;  %v2328_v3 = vadd.f32 %v12499_v62, %v12349_v14  ;;  %5233 = vmatprep.mubr.bf16.mxu1 %v3721_v1  ;;  %v10333_v38 = vadd.f32 %v12500_v2, %v12338_v37  ;;  %v12501_v36 = vld [vmem:[#allocation69_spill] sm:$0xff]  ;;  %v10339_v39 = vpop.f32.mrf.mxu0  ;;  %v10346_v59 = vmul.f32 %v3265_v23, %v10182_v50  ;;  %v12504_v31 = vld [vmem:[#allocation64_spill] sm:$0xff]  ;;  %6409 = verf.f32 %v2550_v63 }
 0x388   :  { %v10337_v43 = vadd.f32 %v12501_v36, %v12341_v61  ;;  %12502 = vst [vmem:[#allocation36_spill] sm:$0xff] %v10339_v39  ;;  %v10341_v47 = vpop.f32.mrf.mxu1  ;;  %v2137_v1 = vadd.f32 %v12504_v31, %v12338_v37  ;;  %v12505_v62 = vpack.c.bf16 %v9968_v25, %v9915_v26  ;;  %v12506_v36 = vld [vmem:[#allocation45_spill] sm:$0xff]  ;;  %6411 = verf.f32 %v2552_v11  ;;  %v12509_v25 = vld [vmem:[#allocation70_spill] sm:$0xff] }
 0x389   :  { %12503 = vst [vmem:[#allocation33_spill] sm:$0xff] %v10341_v47  ;;  %v6390_v2 = vpop.eup %6389  ;;  %v2330_v39 = vadd.f32 %v12506_v36, %v12341_v61  ;;  %v2558_v47 = vmul.f32 0.70710677, %v10333_v38  ;;  %v10357_v52 = vpop.f32.mrf.mxu0  ;;  %v10362_v63 = vmul.f32 %v3270_v35, %v10209_v58  ;;  %v10365_v26 = vmul.f32 %v3272_v4, %v10228_v20  ;;  %v12510_v11 = vld [vmem:[#allocation62_spill] sm:$0xff] }
 0x38a   :  { %5234 = vmatmul.mubr.bf16.vlgmr.msra.gmra.mxu1 %v12505_v62  ;;  %v2560_v9 = vmul.f32 0.70710677, %v10337_v43  ;;  %12507 = vst [vmem:[#allocation69_spill] sm:$0xff] %v10357_v52  ;;  %v10359_v50 = vpop.f32.mrf.mxu1  ;;  %v6392_v23 = vpop.eup %6391  ;;  %v2139_v31 = vadd.f32 %v12509_v25, %v12345_v0  ;;  %v2332_v62 = vadd.f32 %v12510_v11, %v12349_v14  ;;  %6413 = verf.f32 %v2519_v53  ;;  %v12514_v53 = vld [vmem:[#allocation19_spill] sm:$0xff] }
 0x38b   :  { %12508 = vst [vmem:[#allocation64_spill] sm:$0xff] %v10359_v50  ;;  %v6394_v36 = vpop.eup %6393  ;;  %v10371_v16 = vmul.f32 0.5, %v2135_v21  ;;  %v2521_v52 = vmul.f32 0.70710677, %v2328_v3  ;;  %v10373_v8 = vmul.f32 0.5, %v2328_v3  ;;  %v10375_v50 = vpop.f32.mrf.mxu0  ;;  %v10379_v4 = vmul.f32 0.5, %v2137_v1 }
 0x38c   :  { %12512 = vst [vmem:[#allocation70_spill] sm:$0xff] %v10375_v50  ;;  %v10377_v58 = vpop.f32.mrf.mxu1  ;;  %v6396_v35 = vpop.eup %6395  ;;  %v2526_v20 = vmul.f32 0.70710677, %v2137_v1  ;;  %v3304_v42 = vadd.f32 1.0, %v6390_v2  ;;  %6415 = verf.f32 %v2558_v47  ;;  %v2528_v60 = vmul.f32 0.70710677, %v2330_v39 }
 0x38d   :  { %12511 = vst [vmem:[#allocation45_spill] sm:$0xff] %v10373_v8  ;;  %12513 = vst [vmem:[#allocation62_spill] sm:$0xff] %v10377_v58  ;;  %v6398_v25 = vpop.eup %6397  ;;  %6417 = verf.f32 %v2560_v9  ;;  %v10383_v21 = vadd.f32 %v12514_v53, %v12338_v37  ;;  %v3727_v3 = vpack.c.bf16 %v10112_v18, %v10079_v46  ;;  %v10387_v11 = vpop.f32.mrf.mxu0  ;;  %v3048_v1 = vmul.f32 0.5, %v10186_v45 }
 0x38e   :  { %12515 = vst [vmem:[#allocation19_spill] sm:$0xff] %v10387_v11  ;;  %v10389_v50 = vpop.f32.mrf.mxu1  ;;  %v6400_v58 = vpop.eup %6399  ;;  %v3056_v2 = vmul.f32 0.5, %v10243_v49  ;;  %v3312_v47 = vadd.f32 1.0, %v6398_v25  ;;  %v10395_v9 = vadd.f32 %v12517_v54, %v12341_v61  ;;  %v3271_v53 = vadd.f32 1.0, %v6392_v23  ;;  %v12520_v49 = vld [vmem:[#allocation53_spill] sm:$0xff] }
 0x38f   :  { %12516 = vst [vmem:[#allocation98_spill] sm:$0xff] %v10389_v50  ;;  %v6402_v12 = vpop.eup %6401  ;;  %v10397_v22 = vmul.f32 0.5, %v2330_v39  ;;  %v2527_v8 = vmul.f32 0.70710677, %v2139_v31  ;;  %v10399_v46 = vmul.f32 0.5, %v2139_v31  ;;  %5050 = vmatprep.mubr.bf16.mxu0 %v3727_v3  ;;  %v10401_v18 = vpop.f32.mrf.mxu0  ;;  %6419 = verf.f32 %v2521_v52 }
 0x390   :  { %12518 = vst [vmem:[#allocation78_spill] sm:$0xff] %v10401_v18  ;;  %v10403_v50 = vpop.f32.mrf.mxu1  ;;  %v6404_v45 = vpop.eup %6403  ;;  %v2143_v25 = vadd.f32 %v12520_v49, %v12338_v37  ;;  %v10407_v11 = vmul.f32 %v3304_v42, %v3048_v1  ;;  %v10409_v54 = vmul.f32 %v3312_v47, %v3056_v2  ;;  %v12521_v39 = vpack.c.bf16 %v10065_v24, %v10026_v19  ;;  %v12526_v42 = vld [vmem:[#allocation56_spill] sm:$0xff] }
 0x391   :  { %12519 = vst [vmem:[#allocation99_spill] sm:$0xff] %v10403_v50  ;;  %v10414_v23 = vpop.eup %6405  ;;  %v3273_v31 = vadd.f32 1.0, %v6394_v36  ;;  %v3278_v3 = vadd.f32 1.0, %v6396_v35  ;;  %6421 = verf.f32 %v2526_v20  ;;  %v2566_v50 = vmul.f32 0.70710677, %v10383_v21  ;;  %v10417_v18 = vpop.f32.mrf.mxu0 }
 0x392   :  { %5051 = vmatmul.mubr.bf16.gmra.mxu0 %v12521_v39  ;;  %12522 = vst [vmem:[#allocation53_spill] sm:$0xff] %v10417_v18  ;;  %v10419_v52 = vpop.f32.mrf.mxu1  ;;  %v2529_v49 = vmul.f32 0.70710677, %v2332_v62  ;;  %v2568_v1 = vmul.f32 0.70710677, %v10395_v9  ;;  %v3729_v19 = vpack.c.bf16 %v10136_v13, %v10082_v56  ;;  %v10427_v36 = vmul.f32 %v3271_v53, %v10245_v27  ;;  %v12527_v56 = vld [vmem:[#allocation30_spill] sm:$0xff] }
 0x393   :  { %12523 = vst [vmem:[#allocation100_spill] sm:$0xff] %v10419_v52  ;;  %v6408_v24 = vpop.eup %6407  ;;  %v3280_v35 = vadd.f32 1.0, %v6400_v58  ;;  %6423 = verf.f32 %v2528_v60  ;;  %v10429_v20 = vmul.f32 0.5, %v2332_v62  ;;  %v10431_v2 = vpop.f32.mrf.mxu0  ;;  %v2534_v39 = vmul.f32 0.70710677, %v2143_v25  ;;  %v12528_v58 = vld [vmem:[#allocation57_spill] sm:$0xff] }
 0x394   :  { %12524 = vst [vmem:[#allocation101_spill] sm:$0xff] %v10431_v2  ;;  %v10433_v47 = vpop.f32.mrf.mxu1  ;;  %6425 = verf.f32 %v2527_v8  ;;  %5243 = vmatprep.mubr.bf16.mxu1 %v3729_v19  ;;  %v10437_v52 = vadd.f32 %v12526_v42, %v12338_v37  ;;  %v10441_v13 = vadd.f32 %v12527_v56, %v12341_v61  ;;  %v6410_v27 = vpop.eup %6409  ;;  %v10444_v60 = vmul.f32 %v3273_v31, %v10247_v5 }
 0x395   :  { %12525 = vst [vmem:[#allocation102_spill] sm:$0xff] %v10433_v47  ;;  %v10447_v62 = vmul.f32 %v3278_v3, %v10249_v34  ;;  %v10451_v8 = vadd.f32 %v12528_v58, %v12338_v37  ;;  %6427 = verf.f32 %v2566_v50  ;;  %v12529_v53 = vpack.c.bf16 %v10089_v15, %v10033_v57  ;;  %v10456_v42 = vpop.f32.mrf.mxu0  ;;  %v6412_v56 = vpop.eup %6411 }
 0x396   :  { %12530 = vst [vmem:[#allocation56_spill] sm:$0xff] %v10456_v42  ;;  %v10458_v19 = vpop.f32.mrf.mxu1  ;;  %v3279_v47 = vadd.f32 1.0, %v6402_v12  ;;  %6429 = verf.f32 %v2568_v1  ;;  %v2574_v5 = vmul.f32 0.70710677, %v10437_v52  ;;  %v2576_v34 = vmul.f32 0.70710677, %v10441_v13 }
 0x397   :  { %5244 = vmatmul.mubr.bf16.gmra.mxu1 %v12529_v53  ;;  %12531 = vst [vmem:[#allocation30_spill] sm:$0xff] %v10458_v19  ;;  %v10463_v31 = vmul.f32 %v3280_v35, %v10261_v44  ;;  %v3281_v3 = vadd.f32 1.0, %v6404_v45  ;;  %6431 = verf.f32 %v2529_v49  ;;  %v10465_v50 = vmul.f32 0.5, %v2143_v25  ;;  %v10467_v57 = vpop.f32.mrf.mxu0  ;;  %v10471_v58 = vpop.eup %6413  ;;  %v12534_v12 = vld [vmem:[#allocation54_spill] sm:$0xff]  ;;  %v12535_v53 = vld [vmem:[#allocation65_spill] sm:$0xff] }
 0x398   :  { %12532 = vst [vmem:[#allocation57_spill] sm:$0xff] %v10467_v57  ;;  %v10469_v15 = vpop.f32.mrf.mxu1  ;;  %6433 = verf.f32 %v2534_v39  ;;  %v10475_v1 = vadd.f32 %v12534_v12, %v12345_v0  ;;  %v10479_v19 = vadd.f32 %v12535_v53, %v12349_v14  ;;  %v3318_v44 = vadd.f32 1.0, %v6410_v27  ;;  %v12538_v27 = vld [vmem:[#allocation27_spill] sm:$0xff] }
 0x399   :  { %12533 = vst [vmem:[#allocation103_spill] sm:$0xff] %v10469_v15  ;;  %v6416_v45 = vpop.eup %6415  ;;  %v2542_v25 = vmul.f32 0.70710677, %v10451_v8  ;;  %v3062_v49 = vmul.f32 0.5, %v10277_v40  ;;  %v3320_v35 = vadd.f32 1.0, %v6412_v56  ;;  %6435 = verf.f32 %v2574_v5  ;;  %v10483_v15 = vpop.f32.mrf.mxu0 }
 0x39a   :  { %12536 = vst [vmem:[#allocation54_spill] sm:$0xff] %v10483_v15  ;;  %v10485_v57 = vpop.f32.mrf.mxu1  ;;  %v6418_v39 = vpop.eup %6417  ;;  %v3070_v12 = vmul.f32 0.5, %v10333_v38  ;;  %v3326_v42 = vadd.f32 1.0, %v6416_v45  ;;  %6437 = verf.f32 %v2576_v34  ;;  %v3735_v53 = vpack.c.bf16 %v10207_v48, %v10171_v33  ;;  %v12541_v34 = vld [vmem:[#allocation16_spill] sm:$0xff] }
 0x39b   :  { %12537 = vst [vmem:[#allocation65_spill] sm:$0xff] %v10485_v57  ;;  %v10492_v2 = vadd.f32 %v12538_v27, %v12345_v0  ;;  %v3064_v40 = vmul.f32 0.5, %v10286_v30  ;;  %v3072_v56 = vmul.f32 0.5, %v10337_v43  ;;  %v3328_v5 = vadd.f32 1.0, %v6418_v39  ;;  %v10496_v15 = vpop.f32.mrf.mxu0 }
 0x39c   :  { %12539 = vst [vmem:[#allocation27_spill] sm:$0xff] %v10496_v15  ;;  %v10498_v57 = vpop.f32.mrf.mxu1  ;;  %v3286_v38 = vadd.f32 1.0, %v10414_v23  ;;  %v10503_v45 = vadd.f32 %v12541_v34, %v12349_v14  ;;  %v10505_v33 = vmul.f32 %v3318_v44, %v3062_v49  ;;  %v10507_v48 = vmul.f32 %v3326_v42, %v3070_v12  ;;  %5060 = vmatprep.mubr.bf16.mxu0 %v3735_v53  ;;  %v6420_v27 = vpop.eup %6419  ;;  %v12551_v53 = vld [vmem:[#allocation66_spill] sm:$0xff] }
 0x39d   :  { %12540 = vst [vmem:[#allocation104_spill] sm:$0xff] %v10498_v57  ;;  %v3288_v30 = vadd.f32 1.0, %v6408_v24  ;;  %v2535_v43 = vmul.f32 0.70710677, %v10475_v1  ;;  %v10510_v39 = vmul.f32 %v3320_v35, %v3064_v40  ;;  %v10512_v15 = vmul.f32 %v3328_v5, %v3072_v56  ;;  %v12546_v57 = vld [vmem:[#allocation60_spill] sm:$0xff]  ;;  %v10517_v18 = vpop.f32.mrf.mxu0  ;;  %v12550_v24 = vld [vmem:[#allocation74_spill] sm:$0xff] }
 0x39e   :  { %12542 = vst [vmem:[#allocation16_spill] sm:$0xff] %v10505_v33  ;;  %12543 = vst [vmem:[#allocation105_spill] sm:$0xff] %v10507_v48  ;;  %v12547_v23 = vpack.c.bf16 %v10163_v28, %v12546_v57  ;;  %v10519_v34 = vpop.f32.mrf.mxu1  ;;  %v6422_v44 = vpop.eup %6421  ;;  %v2537_v42 = vmul.f32 0.70710677, %v10479_v19  ;;  %6439 = verf.f32 %v2542_v25  ;;  %v10524_v49 = vadd.f32 %v12550_v24, %v12345_v0  ;;  %v12552_v40 = vld [vmem:[#allocation47_spill] sm:$0xff] }
 0x39f   :  { %12544 = vst [vmem:[#allocation106_spill] sm:$0xff] %v10510_v39  ;;  %12545 = vst [vmem:[#allocation107_spill] sm:$0xff] %v10512_v15  ;;  %v2543_v28 = vmul.f32 0.70710677, %v10492_v2  ;;  %v3737_v56 = vpack.c.bf16 %v12552_v40, %v12551_v53  ;;  %v10535_v5 = vpop.f32.mrf.mxu0  ;;  %v10542_v35 = vmul.f32 %v3279_v47, %v10267_v6  ;;  %v10545_v12 = vmul.f32 %v3281_v3, %v10295_v7  ;;  %v12555_v40 = vld [vmem:[#allocation75_spill] sm:$0xff] }
 0x3a0   :  { %5061 = vmatmul.mubr.bf16.gmra.mxu0 %v12547_v23  ;;  %12548 = vst [vmem:[#allocation60_spill] sm:$0xff] %v10517_v18  ;;  %12549 = vst [vmem:[#allocation108_spill] sm:$0xff] %v10519_v34  ;;  %v10537_v25 = vpop.f32.mrf.mxu1  ;;  %v6424_v23 = vpop.eup %6423  ;;  %v2545_v34 = vmul.f32 0.70710677, %v10503_v45  ;;  %v10549_v18 = vmul.f32 %v3286_v38, %v10300_v29  ;;  %v3294_v53 = vadd.f32 1.0, %v6422_v44  ;;  %6441 = verf.f32 %v2535_v43  ;;  %v12558_v29 = vld [vmem:[#allocation18_spill] sm:$0xff] }
 0x3a1   :  { %12553 = vst [vmem:[#allocation74_spill] sm:$0xff] %v10535_v5  ;;  %12554 = vst [vmem:[#allocation66_spill] sm:$0xff] %v10537_v25  ;;  %v6426_v57 = vpop.eup %6425  ;;  %v10553_v25 = vadd.f32 %v12555_v40, %v12349_v14  ;;  %5253 = vmatprep.mubr.bf16.mxu1 %v3737_v56  ;;  %v10555_v24 = vpop.f32.mrf.mxu0  ;;  %v10560_v7 = vmul.f32 %v3288_v30, %v10327_v10  ;;  %6443 = verf.f32 %v2537_v42  ;;  %v2551_v3 = vmul.f32 0.70710677, %v10524_v49  ;;  %v12559_v43 = vld [vmem:[#allocation91_spill] sm:$0xff]  ;;  %v12560_v44 = vld [vmem:[#allocation88_spill] sm:$0xff] }
 0x3a2   :  { %12556 = vst [vmem:[#allocation47_spill] sm:$0xff] %v10555_v24  ;;  %v10557_v6 = vpop.f32.mrf.mxu1  ;;  %v6428_v47 = vpop.eup %6427  ;;  %v10565_v38 = vadd.f32 %v12558_v29, %v12345_v0  ;;  %v12561_v40 = vpack.c.bf16 %v12559_v43, %v12560_v44  ;;  %v10571_v24 = vmul.f32 0.5, %v10475_v1  ;;  %v10577_v10 = vmul.f32 0.5, %v10451_v8  ;;  %v12564_v44 = vld [vmem:[#allocation26_spill] sm:$0xff] }
 0x3a3   :  { %12557 = vst [vmem:[#allocation75_spill] sm:$0xff] %v10557_v6  ;;  %v6430_v56 = vpop.eup %6429  ;;  %v10574_v6 = vmul.f32 0.5, %v10479_v19  ;;  %6445 = verf.f32 %v2543_v28  ;;  %v10579_v30 = vpop.f32.mrf.mxu0  ;;  %v3287_v5 = vadd.f32 1.0, %v10471_v58  ;;  %v3289_v43 = vadd.f32 1.0, %v6420_v27 }
 0x3a4   :  { %5254 = vmatmul.mubr.bf16.gmra.mxu1 %v12561_v40  ;;  %12562 = vst [vmem:[#allocation18_spill] sm:$0xff] %v10579_v30  ;;  %v10581_v42 = vpop.f32.mrf.mxu1  ;;  %v6432_v29 = vpop.eup %6431  ;;  %6447 = verf.f32 %v2545_v34  ;;  %v10586_v1 = vadd.f32 %v12564_v44, %v12349_v14  ;;  %v10589_v19 = vmul.f32 %v3294_v53, %v10379_v4  ;;  %v3296_v8 = vadd.f32 1.0, %v6424_v23 }
 0x3a5   :  { %12563 = vst [vmem:[#allocation91_spill] sm:$0xff] %v10581_v42  ;;  %v6434_v40 = vpop.eup %6433  ;;  %v2553_v28 = vmul.f32 0.70710677, %v10553_v25  ;;  %v3334_v39 = vadd.f32 1.0, %v6428_v47  ;;  %v10592_v30 = vpop.f32.mrf.mxu0  ;;  %v3295_v58 = vadd.f32 1.0, %v6426_v57  ;;  %6449 = verf.f32 %v2551_v3 }
 0x3a6   :  { %12565 = vst [vmem:[#allocation88_spill] sm:$0xff] %v10592_v30  ;;  %v10594_v42 = vpop.f32.mrf.mxu1  ;;  %v6436_v15 = vpop.eup %6435  ;;  %v2559_v27 = vmul.f32 0.70710677, %v10565_v38  ;;  %v3336_v34 = vadd.f32 1.0, %v6430_v56  ;;  %v3078_v33 = vmul.f32 0.5, %v10383_v21  ;;  %v3086_v4 = vmul.f32 0.5, %v10437_v52 }
 0x3a7   :  { %12566 = vst [vmem:[#allocation26_spill] sm:$0xff] %v10594_v42  ;;  %v6438_v44 = vpop.eup %6437  ;;  %v3342_v53 = vadd.f32 1.0, %v6436_v15  ;;  %v3743_v23 = vpack.c.bf16 %v10318_v17, %v10293_v32  ;;  %v10601_v47 = vpop.f32.mrf.mxu0  ;;  %v2561_v42 = vmul.f32 0.70710677, %v10586_v1  ;;  %v3080_v57 = vmul.f32 0.5, %v10395_v9  ;;  %v12572_v9 = vld [vmem:[#allocation46_spill] sm:$0xff] }
 0x3a8   :  { %12567 = vst [vmem:[#allocation109_spill] sm:$0xff] %v10601_v47  ;;  %v10603_v30 = vpop.f32.mrf.mxu1  ;;  %v3088_v3 = vmul.f32 0.5, %v10441_v13  ;;  %v3344_v56 = vadd.f32 1.0, %v6438_v44  ;;  %v10609_v48 = vmul.f32 %v3296_v8, %v10397_v22  ;;  %6451 = verf.f32 %v2553_v28  ;;  %v12575_v8 = vld [vmem:[#allocation42_spill] sm:$0xff] }
 0x3a9   :  { %12568 = vst [vmem:[#allocation110_spill] sm:$0xff] %v10603_v30  ;;  %v10611_v21 = vmul.f32 %v3334_v39, %v3078_v33  ;;  %v10613_v52 = vmul.f32 %v3342_v53, %v3086_v4  ;;  %5070 = vmatprep.mubr.bf16.mxu0 %v3743_v23  ;;  %v10615_v32 = vpop.f32.mrf.mxu0  ;;  %v3297_v15 = vadd.f32 1.0, %v6432_v29  ;;  %v10619_v30 = vmul.f32 %v3336_v34, %v3080_v57  ;;  %v12586_v29 = vld [vmem:[#allocation34_spill] sm:$0xff] }
 0x3aa   :  { %12569 = vst [vmem:[#allocation111_spill] sm:$0xff] %v10615_v32  ;;  %v10617_v17 = vpop.f32.mrf.mxu1  ;;  %v10623_v13 = vadd.f32 %v12572_v9, %v12345_v0  ;;  %v10625_v44 = vmul.f32 %v3344_v56, %v3088_v3  ;;  %v12574_v22 = vpack.c.bf16 %v10282_v41, %v10226_v51  ;;  %v3302_v39 = vadd.f32 1.0, %v6434_v40  ;;  %v12578_v51 = vld [vmem:[#allocation25_spill] sm:$0xff] }
 0x3ab   :  { %12570 = vst [vmem:[#allocation112_spill] sm:$0xff] %v10617_v17  ;;  %12571 = vst [vmem:[#allocation113_spill] sm:$0xff] %v10619_v30  ;;  %v6440_v33 = vpop.eup %6439  ;;  %6453 = verf.f32 %v2559_v27  ;;  %v10632_v28 = vadd.f32 %v12575_v8, %v12349_v14  ;;  %v10636_v34 = vpop.f32.mrf.mxu0  ;;  %v10644_v41 = vadd.f32 %v12578_v51, %v12345_v0  ;;  %v3745_v40 = vpack.c.bf16 %v10346_v59, %v10298_v55  ;;  %v12582_v8 = vld [vmem:[#allocation45_spill] sm:$0xff] }
 0x3ac   :  { %12573 = vst [vmem:[#allocation46_spill] sm:$0xff] %v10625_v44  ;;  %5071 = vmatmul.mubr.bf16.gmra.mxu0 %v12574_v22  ;;  %12576 = vst [vmem:[#allocation42_spill] sm:$0xff] %v10636_v34  ;;  %v10638_v4 = vpop.f32.mrf.mxu1  ;;  %6455 = verf.f32 %v2561_v42  ;;  %v10649_v27 = vmul.f32 %v3287_v5, %v10371_v16  ;;  %v3055_v23 = vmul.f32 0.5, %v10492_v2  ;;  %v10653_v57 = vmul.f32 0.5, %v10503_v45  ;;  %v12579_v42 = vld [vmem:[#allocation22_spill] sm:$0xff]  ;;  %v12583_v59 = vld [vmem:[#allocation37_spill] sm:$0xff] }
 0x3ad   :  { %12577 = vst [vmem:[#allocation114_spill] sm:$0xff] %v10638_v4  ;;  %v10657_v3 = vadd.f32 %v12579_v42, %v12349_v14  ;;  %v10659_v56 = vpop.f32.mrf.mxu0  ;;  %v6442_v22 = vpop.eup %6441  ;;  %v10664_v51 = vmul.f32 %v3289_v43, %v12582_v8  ;;  %v3310_v55 = vadd.f32 1.0, %v6440_v33  ;;  %v2567_v16 = vmul.f32 0.70710677, %v10623_v13  ;;  %5263 = vmatprep.mubr.bf16.mxu1 %v3745_v40  ;;  %v12584_v43 = vld [vmem:[#allocation35_spill] sm:$0xff] }
 0x3ae   :  { %12580 = vst [vmem:[#allocation25_spill] sm:$0xff] %v10659_v56  ;;  %v10661_v9 = vpop.f32.mrf.mxu1  ;;  %v10669_v2 = vadd.f32 %v12583_v59, %v12338_v37  ;;  %v6444_v45 = vpop.eup %6443  ;;  %v10674_v42 = vmul.f32 %v3295_v58, %v10399_v46  ;;  %v2569_v53 = vmul.f32 0.70710677, %v10632_v28  ;;  %v10679_v8 = vadd.f32 %v12584_v43, %v12341_v61  ;;  %v12585_v33 = vld [vmem:[#allocation95_spill] sm:$0xff] }
 0x3af   :  { %12581 = vst [vmem:[#allocation22_spill] sm:$0xff] %v10661_v9  ;;  %v12587_v9 = vpack.c.bf16 %v12585_v33, %v12586_v29  ;;  %v10684_v59 = vpop.f32.mrf.mxu0  ;;  %v10691_v46 = vmul.f32 %v3297_v15, %v10429_v20  ;;  %v10694_v58 = vmul.f32 %v3302_v39, %v10465_v50  ;;  %v2575_v43 = vmul.f32 0.70710677, %v10644_v41 }
 0x3b0   :  { %12588 = vst [vmem:[#allocation45_spill] sm:$0xff] %v10684_v59  ;;  %v10686_v40 = vpop.f32.mrf.mxu1  ;;  %v6446_v4 = vpop.eup %6445  ;;  %v3303_v17 = vadd.f32 1.0, %v6442_v22  ;;  %v10698_v29 = vmul.f32 0.5, %v10524_v49  ;;  %v2577_v33 = vmul.f32 0.70710677, %v10657_v3  ;;  %v3305_v20 = vadd.f32 1.0, %v6444_v45 }
 0x3b1   :  { %5264 = vmatmul.mubr.bf16.gmra.mxu1 %v12587_v9  ;;  %12589 = vst [vmem:[#allocation37_spill] sm:$0xff] %v10686_v40  ;;  %v6448_v56 = vpop.eup %6447  ;;  %v10701_v9 = vmul.f32 0.5, %v10553_v25  ;;  %v10704_v40 = vpop.f32.mrf.mxu0  ;;  %v10709_v50 = vmul.f32 %v3310_v55, %v10577_v10  ;;  %6457 = verf.f32 %v2567_v16  ;;  %v2582_v15 = vmul.f32 0.70710677, %v10669_v2  ;;  %v12592_v25 = vld [vmem:[#allocation31_spill] sm:$0xff]  ;;  %v12595_v10 = vld [vmem:[#allocation38_spill] sm:$0xff] }
 0x3b2   :  { %12590 = vst [vmem:[#allocation35_spill] sm:$0xff] %v10704_v40  ;;  %v10706_v5 = vpop.f32.mrf.mxu1  ;;  %v6450_v39 = vpop.eup %6449  ;;  %v3311_v22 = vadd.f32 1.0, %v6446_v4  ;;  %6459 = verf.f32 %v2569_v53  ;;  %v2584_v49 = vmul.f32 0.70710677, %v10679_v8  ;;  %v10715_v59 = vadd.f32 %v12592_v25, %v12345_v0  ;;  %v12596_v25 = vld [vmem:[#allocation20_spill] sm:$0xff] }
 0x3b3   :  { %12591 = vst [vmem:[#allocation95_spill] sm:$0xff] %v10706_v5  ;;  %v10717_v34 = vpop.f32.mrf.mxu0  ;;  %v3313_v45 = vadd.f32 1.0, %v6448_v56  ;;  %6461 = verf.f32 %v2575_v43  ;;  %v10723_v55 = vadd.f32 %v12595_v10, %v12338_v37  ;;  %v3751_v4 = vpack.c.bf16 %v10542_v35, %v10427_v36  ;;  %v12599_v35 = vld [vmem:[#allocation17_spill] sm:$0xff] }
 0x3b4   :  { %12593 = vst [vmem:[#allocation34_spill] sm:$0xff] %v10717_v34  ;;  %v10719_v40 = vpop.f32.mrf.mxu1  ;;  %v3071_v53 = vmul.f32 0.5, %v10565_v38  ;;  %v10729_v16 = vmul.f32 0.5, %v10586_v1  ;;  %6463 = verf.f32 %v2577_v33  ;;  %v10733_v5 = vadd.f32 %v12596_v25, %v12349_v14 }
 0x3b5   :  { %12594 = vst [vmem:[#allocation31_spill] sm:$0xff] %v10719_v40  ;;  %v10735_v40 = vpop.f32.mrf.mxu0  ;;  %v6452_v43 = vpop.eup %6451  ;;  %v10740_v10 = vmul.f32 %v3303_v17, %v10571_v24  ;;  %v10743_v36 = vmul.f32 %v3305_v20, %v10574_v6  ;;  %6465 = verf.f32 %v2582_v15  ;;  %v10747_v38 = vadd.f32 %v12599_v35, %v12341_v61  ;;  %5080 = vmatprep.mubr.bf16.mxu0 %v3751_v4 }
 0x3b6   :  { %12597 = vst [vmem:[#allocation38_spill] sm:$0xff] %v10735_v40  ;;  %v10737_v56 = vpop.f32.mrf.mxu1  ;;  %v10751_v33 = vmul.f32 %v3311_v22, %v3055_v23  ;;  %6467 = verf.f32 %v2584_v49  ;;  %v2583_v25 = vmul.f32 0.70710677, %v10715_v59  ;;  %v12600_v24 = vpack.c.bf16 %v10447_v62, %v10362_v63  ;;  %v12603_v23 = vld [vmem:[#allocation43_spill] sm:$0xff] }
 0x3b7   :  { %12598 = vst [vmem:[#allocation20_spill] sm:$0xff] %v10737_v56  ;;  %v10762_v15 = vmul.f32 %v3313_v45, %v10653_v57  ;;  %v3319_v4 = vadd.f32 1.0, %v6450_v39  ;;  %v2590_v35 = vmul.f32 0.70710677, %v10723_v55  ;;  %v2179_v22 = vadd.f32 %v12603_v23, %v12345_v0  ;;  %v12604_v63 = vld [vmem:[#allocation39_spill] sm:$0xff]  ;;  %v12607_v23 = vld [vmem:[#allocation50_spill] sm:$0xff] }
 0x3b8   :  { %5081 = vmatmul.mubr.bf16.gmra.mxu0 %v12600_v24  ;;  %v10757_v6 = vpop.f32.mrf.mxu0  ;;  %v10759_v17 = vpop.f32.mrf.mxu1  ;;  %v3321_v1 = vadd.f32 1.0, %v6452_v43  ;;  %v2585_v56 = vmul.f32 0.70710677, %v10733_v5  ;;  %v10770_v62 = vadd.f32 %v12604_v63, %v12349_v14  ;;  %v3753_v24 = vpack.c.bf16 %v10545_v12, %v10444_v60  ;;  %v12608_v60 = vld [vmem:[#allocation52_spill] sm:$0xff] }
 0x3b9   :  { %12601 = vst [vmem:[#allocation17_spill] sm:$0xff] %v10757_v6  ;;  %12602 = vst [vmem:[#allocation115_spill] sm:$0xff] %v10759_v17  ;;  %v6454_v20 = vpop.eup %6453  ;;  %v10779_v39 = vmul.f32 0.5, %v10623_v13  ;;  %v10782_v45 = vmul.f32 0.5, %v10632_v28  ;;  %v2592_v43 = vmul.f32 0.70710677, %v10747_v38  ;;  %v10787_v6 = vadd.f32 %v12607_v23, %v12338_v37 }
 0x3ba   :  { %v6456_v49 = vpop.eup %6455  ;;  %v10774_v17 = vpop.f32.mrf.mxu0  ;;  %v3327_v63 = vadd.f32 1.0, %v6454_v20  ;;  %v10790_v40 = vmul.f32 0.5, %v10644_v41  ;;  %6469 = verf.f32 %v2583_v25  ;;  %v10794_v12 = vadd.f32 %v12608_v60, %v12341_v61  ;;  %5273 = vmatprep.mubr.bf16.mxu1 %v3753_v24 }
 0x3bb   :  { %12605 = vst [vmem:[#allocation43_spill] sm:$0xff] %v10774_v17  ;;  %v10776_v57 = vpop.f32.mrf.mxu1  ;;  %v10801_v17 = vmul.f32 0.5, %v10657_v3  ;;  %6471 = verf.f32 %v2590_v35  ;;  %v2591_v23 = vmul.f32 0.70710677, %v2179_v22  ;;  %v12611_v41 = vpack.c.bf16 %v10463_v31, %v10365_v26  ;;  %v12614_v31 = vld [vmem:[#allocation81_spill] sm:$0xff]  ;;  %v12615_v35 = vld [vmem:[#allocation79_spill] sm:$0xff] }
 0x3bc   :  { %12606 = vst [vmem:[#allocation39_spill] sm:$0xff] %v10776_v57  ;;  %v10796_v13 = vpop.f32.mrf.mxu0  ;;  %v3329_v57 = vadd.f32 1.0, %v6456_v49  ;;  %v10807_v25 = vmul.f32 %v3319_v4, %v10698_v29  ;;  %v10810_v20 = vmul.f32 %v3321_v1, %v10701_v9  ;;  %6473 = verf.f32 %v2585_v56 }
 0x3bd   :  { %12609 = vst [vmem:[#allocation50_spill] sm:$0xff] %v10796_v13  ;;  %v10798_v28 = vpop.f32.mrf.mxu1  ;;  %5274 = vmatmul.mubr.bf16.gmra.mxu1 %v12611_v41  ;;  %v2593_v24 = vmul.f32 0.70710677, %v10770_v62  ;;  %v10818_v3 = vmul.f32 0.5, %v10669_v2  ;;  %6475 = verf.f32 %v2592_v43  ;;  %v2598_v26 = vmul.f32 0.70710677, %v10787_v6 }
 0x3be   :  { %12610 = vst [vmem:[#allocation52_spill] sm:$0xff] %v10798_v28  ;;  %v10813_v60 = vpop.f32.mrf.mxu0  ;;  %v10823_v29 = vadd.f32 %v12614_v31, %v12338_v37  ;;  %v6458_v4 = vpop.eup %6457  ;;  %v10825_v9 = vmul.f32 %v3327_v63, %v3071_v53  ;;  %v10828_v56 = vmul.f32 0.5, %v10679_v8  ;;  %v2600_v1 = vmul.f32 0.70710677, %v10794_v12  ;;  %v12618_v8 = vld [vmem:[#allocation80_spill] sm:$0xff] }
 0x3bf   :  { %12612 = vst [vmem:[#allocation116_spill] sm:$0xff] %v10813_v60  ;;  %v10815_v49 = vpop.f32.mrf.mxu1  ;;  %v10833_v41 = vadd.f32 %v12615_v35, %v12345_v0  ;;  %v10840_v31 = vmul.f32 %v3329_v57, %v10729_v16  ;;  %v10843_v53 = vmul.f32 0.5, %v10715_v59  ;;  %6477 = verf.f32 %v2591_v23 }
 0x3c0   :  { %12613 = vst [vmem:[#allocation117_spill] sm:$0xff] %v10815_v49  ;;  %v6460_v49 = vpop.eup %6459  ;;  %v10847_v63 = vadd.f32 %v12618_v8, %v12349_v14  ;;  %v10850_v35 = vmul.f32 0.5, %v10733_v5  ;;  %6479 = verf.f32 %v2593_v24  ;;  %v3759_v16 = vpack.c.bf16 %v10674_v42, %v10649_v27  ;;  %v12622_v42 = vld [vmem:[#allocation24_spill] sm:$0xff] }
 0x3c1   :  { %v10835_v2 = vpop.f32.mrf.mxu0  ;;  %v10837_v43 = vpop.f32.mrf.mxu1  ;;  %v10863_v8 = vmul.f32 0.5, %v10723_v55  ;;  %v10866_v60 = vmul.f32 0.5, %v10747_v38  ;;  %6481 = verf.f32 %v2598_v26  ;;  %v2606_v5 = vmul.f32 0.70710677, %v10823_v29 }
 0x3c2   :  { %12616 = vst [vmem:[#allocation81_spill] sm:$0xff] %v10835_v2  ;;  %12617 = vst [vmem:[#allocation79_spill] sm:$0xff] %v10837_v43  ;;  %v6462_v28 = vpop.eup %6461  ;;  %v12619_v2 = vld [vmem:[#allocation82_spill] sm:$0xff]  ;;  %6483 = verf.f32 %v2600_v1  ;;  %v2599_v27 = vmul.f32 0.70710677, %v10833_v41  ;;  %5090 = vmatprep.mubr.bf16.mxu0 %v3759_v16  ;;  %v3335_v13 = vadd.f32 1.0, %v6458_v4  ;;  %v12626_v1 = vpack.c.bf16 %v10589_v19, %v10549_v18 }
 0x3c3   :  { %v10854_v43 = vadd.f32 %v12619_v2, %v12341_v61  ;;  %v10858_v57 = vpop.f32.mrf.mxu0  ;;  %v10860_v59 = vpop.f32.mrf.mxu1  ;;  %v10869_v2 = vmul.f32 0.5, %v2179_v22  ;;  %v3337_v26 = vadd.f32 1.0, %v6460_v49  ;;  %v2601_v34 = vmul.f32 0.70710677, %v10847_v63  ;;  %v12625_v22 = vld [vmem:[#allocation40_spill] sm:$0xff] }
 0x3c4   :  { %12620 = vst [vmem:[#allocation80_spill] sm:$0xff] %v10858_v57  ;;  %12621 = vst [vmem:[#allocation82_spill] sm:$0xff] %v10860_v59  ;;  %v6464_v23 = vpop.eup %6463  ;;  %v10874_v57 = vadd.f32 %v12622_v42, %v12345_v0  ;;  %v10883_v32 = vadd.f32 %v12625_v22, %v12349_v14  ;;  %5091 = vmatmul.mubr.bf16.gmra.mxu0 %v12626_v1  ;;  %v3343_v42 = vadd.f32 1.0, %v6462_v28  ;;  %6485 = verf.f32 %v2606_v5  ;;  %v12630_v22 = vld [vmem:[#allocation49_spill] sm:$0xff] }
 0x3c5   :  { %v6466_v24 = vpop.eup %6465  ;;  %v10876_v59 = vpop.f32.mrf.mxu0  ;;  %v3345_v47 = vadd.f32 1.0, %v6464_v23  ;;  %v2608_v16 = vmul.f32 0.70710677, %v10854_v43  ;;  %v10899_v44 = vadd.f32 %v12630_v22, %v12341_v61  ;;  %v3761_v18 = vpack.c.bf16 %v10691_v46, %v10664_v51 }
 0x3c6   :  { %12623 = vst [vmem:[#allocation24_spill] sm:$0xff] %v10876_v59  ;;  %v10878_v55 = vpop.f32.mrf.mxu1  ;;  %v6468_v38 = vpop.eup %6467  ;;  %v12627_v59 = vld [vmem:[#allocation68_spill] sm:$0xff]  ;;  %v3350_v30 = vadd.f32 1.0, %v6466_v24  ;;  %v10904_v28 = vmul.f32 0.5, %v10770_v62  ;;  %6487 = verf.f32 %v2599_v27  ;;  %v10912_v5 = vmul.f32 %v3335_v13, %v10779_v39 }
 0x3c7   :  { %12624 = vst [vmem:[#allocation118_spill] sm:$0xff] %v10878_v55  ;;  %v10891_v55 = vadd.f32 %v12627_v59, %v12338_v37  ;;  %v10893_v4 = vpop.f32.mrf.mxu0  ;;  %v3352_v19 = vadd.f32 1.0, %v6468_v38  ;;  %v2607_v59 = vmul.f32 0.70710677, %v10874_v57  ;;  %v6470_v24 = vpop.eup %6469  ;;  %v10915_v22 = vmul.f32 %v3337_v26, %v10782_v45  ;;  %5283 = vmatprep.mubr.bf16.mxu1 %v3761_v18 }
 0x3c8   :  { %12628 = vst [vmem:[#allocation40_spill] sm:$0xff] %v10893_v4  ;;  %v10895_v49 = vpop.f32.mrf.mxu1  ;;  %6489 = verf.f32 %v2601_v34  ;;  %v2609_v51 = vmul.f32 0.70710677, %v10883_v32  ;;  %v6472_v46 = vpop.eup %6471  ;;  %v10919_v62 = vmul.f32 %v3343_v42, %v10790_v40  ;;  %v10922_v27 = vmul.f32 0.5, %v10787_v6 }
 0x3c9   :  { %12629 = vst [vmem:[#allocation68_spill] sm:$0xff] %v10895_v49  ;;  %v10907_v23 = vpop.f32.mrf.mxu0  ;;  %6491 = verf.f32 %v2608_v16  ;;  %v2614_v38 = vmul.f32 0.70710677, %v10891_v55  ;;  %v12633_v39 = vpack.c.bf16 %v10609_v48, %v10560_v7  ;;  %v6474_v45 = vpop.eup %6473  ;;  %v10929_v34 = vmul.f32 %v3345_v47, %v10801_v17  ;;  %v12635_v7 = vld [vmem:[#allocation41_spill] sm:$0xff] }
 0x3ca   :  { %12631 = vst [vmem:[#allocation49_spill] sm:$0xff] %v10907_v23  ;;  %v10909_v1 = vpop.f32.mrf.mxu1  ;;  %v10932_v13 = vmul.f32 %v3350_v30, %v10818_v3  ;;  %v10935_v40 = vmul.f32 0.5, %v10794_v12  ;;  %v2616_v6 = vmul.f32 0.70710677, %v10899_v44  ;;  %v6476_v42 = vpop.eup %6475  ;;  %v10941_v16 = vmul.f32 %v3352_v19, %v10828_v56  ;;  %v12637_v3 = vld [vmem:[#allocation84_spill] sm:$0xff] }
 0x3cb   :  { %12632 = vst [vmem:[#allocation119_spill] sm:$0xff] %v10909_v1  ;;  %5284 = vmatmul.mubr.bf16.gmra.mxu1 %v12633_v39  ;;  %v10938_v26 = vpop.f32.mrf.mxu0  ;;  %v10944_v48 = vmul.f32 0.5, %v10833_v41  ;;  %6493 = verf.f32 %v2607_v59  ;;  %v10948_v47 = vadd.f32 %v12635_v7, %v12345_v0  ;;  %v3358_v17 = vadd.f32 1.0, %v6472_v46  ;;  %v12638_v59 = vld [vmem:[#allocation83_spill] sm:$0xff]  ;;  %v12639_v46 = vld [vmem:[#allocation85_spill] sm:$0xff] }
 0x3cc   :  { %12634 = vst [vmem:[#allocation120_spill] sm:$0xff] %v10938_v26  ;;  %v10950_v30 = vpop.f32.mrf.mxu1  ;;  %v10953_v12 = vmul.f32 0.5, %v10847_v63  ;;  %6495 = verf.f32 %v2609_v51  ;;  %v10957_v18 = vadd.f32 %v12637_v3, %v12338_v37  ;;  %v6478_v56 = vpop.eup %6477  ;;  %v3351_v19 = vadd.f32 1.0, %v6470_v24 }
 0x3cd   :  { %12636 = vst [vmem:[#allocation41_spill] sm:$0xff] %v10950_v30  ;;  %v3353_v41 = vadd.f32 1.0, %v6474_v45  ;;  %6497 = verf.f32 %v2614_v38  ;;  %v10961_v39 = vadd.f32 %v12638_v59, %v12349_v14  ;;  %v6480_v7 = vpop.eup %6479  ;;  %v3360_v1 = vadd.f32 1.0, %v6476_v42  ;;  %v10969_v3 = vpop.f32.mrf.mxu0 }
 0x3ce   :  { %6499 = verf.f32 %v2616_v6  ;;  %v10965_v63 = vadd.f32 %v12639_v46, %v12341_v61  ;;  %v3767_v51 = vpack.c.bf16 %v10751_v33, %v10740_v10  ;;  %12640 = vst [vmem:[#allocation84_spill] sm:$0xff] %v10969_v3  ;;  %v6482_v30 = vpop.eup %6481  ;;  %v3118_v24 = vmul.f32 0.5, %v10823_v29  ;;  %v10979_v42 = vpop.f32.mrf.mxu1  ;;  %v12642_v29 = vld [vmem:[#allocation44_spill] sm:$0xff] }
 0x3cf   :  { %v10973_v38 = vmul.f32 0.5, %v10854_v43  ;;  %v10976_v45 = vmul.f32 0.5, %v10874_v57  ;;  %v2615_v6 = vmul.f32 0.70710677, %v10948_v47  ;;  %12641 = vst [vmem:[#allocation83_spill] sm:$0xff] %v10979_v42  ;;  %v6484_v59 = vpop.eup %6483  ;;  %v10982_v46 = vmul.f32 %v3358_v17, %v10863_v8 }
 0x3d0   :  { %v10985_v10 = vmul.f32 0.5, %v10883_v32  ;;  %v2622_v33 = vmul.f32 0.70710677, %v10957_v18  ;;  %v2199_v43 = vadd.f32 %v12642_v29, %v12345_v0  ;;  %5100 = vmatprep.mubr.bf16.mxu0 %v3767_v51  ;;  %v10991_v57 = vmul.f32 %v3351_v19, %v10843_v53  ;;  %v11004_v29 = vpop.f32.mrf.mxu0 }
 0x3d1   :  { %v10994_v3 = vmul.f32 %v3353_v41, %v10850_v35  ;;  %v3359_v42 = vadd.f32 1.0, %v6478_v56  ;;  %v2617_v26 = vmul.f32 0.70710677, %v10961_v39  ;;  %v12643_v8 = vpack.c.bf16 %v10709_v50, %v10694_v58  ;;  %12644 = vst [vmem:[#allocation85_spill] sm:$0xff] %v11004_v29  ;;  %v6486_v53 = vpop.eup %6485  ;;  %v12645_v35 = vld [vmem:[#allocation48_spill] sm:$0xff]  ;;  %v11010_v58 = vpop.f32.mrf.mxu1 }
 0x3d2   :  { %v11001_v32 = vmul.f32 %v3360_v1, %v10866_v60  ;;  %v3361_v17 = vadd.f32 1.0, %v6480_v7  ;;  %v3366_v23 = vadd.f32 1.0, %v6482_v30  ;;  %v2624_v51 = vmul.f32 0.70710677, %v10965_v63  ;;  %12646 = vst [vmem:[#allocation44_spill] sm:$0xff] %v11010_v58 }
 0x3d3   :  { %5101 = vmatmul.mubr.bf16.gmra.mxu0 %v12643_v8  ;;  %v3368_v19 = vadd.f32 1.0, %v6484_v59  ;;  %6501 = verf.f32 %v2615_v6  ;;  %v2392_v56 = vadd.f32 %v12645_v35, %v12349_v14  ;;  %v3769_v41 = vpack.c.bf16 %v10762_v15, %v10743_v36  ;;  %v6488_v50 = vpop.eup %6487  ;;  %v12647_v36 = vld [vmem:[#allocation86_spill] sm:$0xff] }
 0x3d4   :  { %v11015_v1 = vmul.f32 0.5, %v10891_v55  ;;  %6503 = verf.f32 %v2622_v33  ;;  %v2623_v30 = vmul.f32 0.70710677, %v2199_v43  ;;  %v11018_v6 = vmul.f32 %v3359_v42, %v10869_v2 }
 0x3d5   :  { %v6490_v7 = vpop.eup %6489  ;;  %v11021_v59 = vmul.f32 0.5, %v10899_v44  ;;  %6505 = verf.f32 %v2617_v26  ;;  %v2203_v15 = vadd.f32 %v12647_v36, %v12338_v37  ;;  %5293 = vmatprep.mubr.bf16.mxu1 %v3769_v41  ;;  %v11028_v55 = vmul.f32 %v3361_v17, %v10904_v28  ;;  %v11033_v44 = vpop.f32.mrf.mxu0  ;;  %v12650_v36 = vld [vmem:[#allocation87_spill] sm:$0xff] }
 0x3d6   :  { %v6492_v8 = vpop.eup %6491  ;;  %v3374_v33 = vadd.f32 1.0, %v6486_v53  ;;  %6507 = verf.f32 %v2624_v51  ;;  %v12648_v2 = vpack.c.bf16 %v10409_v54, %v10407_v11  ;;  %12649 = vst [vmem:[#allocation48_spill] sm:$0xff] %v11033_v44  ;;  %v11036_v26 = vmul.f32 %v3366_v23, %v10922_v27  ;;  %v11043_v28 = vpop.f32.mrf.mxu1 }
 0x3d7   :  { %v11039_v42 = vmul.f32 %v3368_v19, %v10935_v40  ;;  %v2625_v41 = vmul.f32 0.70710677, %v2392_v56  ;;  %v2396_v35 = vadd.f32 %v12650_v36, %v12341_v61  ;;  %12651 = vst [vmem:[#allocation86_spill] sm:$0xff] %v11043_v28  ;;  %v3367_v51 = vadd.f32 1.0, %v6488_v50 }
 0x3d8   :  { %5294 = vmatmul.mubr.bf16.gmra.mxu1 %v12648_v2  ;;  %v6494_v17 = vpop.eup %6493  ;;  %v3369_v53 = vadd.f32 1.0, %v6490_v7  ;;  %v11046_v11 = vmul.f32 0.5, %v10948_v47  ;;  %6509 = verf.f32 %v2623_v30  ;;  %v3376_v2 = vadd.f32 1.0, %v6492_v8  ;;  %v11063_v30 = vpop.f32.mrf.mxu0  ;;  %v12653_v8 = vld [vmem:[#allocation89_spill] sm:$0xff] }
 0x3d9   :  { %v6496_v54 = vpop.eup %6495  ;;  %v11049_v23 = vmul.f32 0.5, %v10961_v39  ;;  %v11052_v27 = vmul.f32 0.5, %v10957_v18  ;;  %v2630_v40 = vmul.f32 0.70710677, %v2203_v15  ;;  %v11054_v36 = vmul.f32 %v3374_v33, %v3118_v24  ;;  %12652 = vst [vmem:[#allocation87_spill] sm:$0xff] %v11063_v30  ;;  %v11069_v24 = vpop.f32.mrf.mxu1  ;;  %v12655_v33 = vld [vmem:[#allocation90_spill] sm:$0xff] }
 0x3da   :  { %v6498_v19 = vpop.eup %6497  ;;  %v11057_v60 = vmul.f32 0.5, %v10965_v63  ;;  %v11059_v50 = vmul.f32 0.5, %v2199_v43  ;;  %v11061_v47 = vmul.f32 0.5, %v2392_v56  ;;  %6511 = verf.f32 %v2625_v41  ;;  %12654 = vst [vmem:[#allocation89_spill] sm:$0xff] %v11069_v24  ;;  %v12669_v24 = vld [vmem:[#allocation107_spill] sm:$0xff] }
 0x3db   :  { %v6500_v7 = vpop.eup %6499  ;;  %v2632_v39 = vmul.f32 0.70710677, %v2396_v35  ;;  %v2205_v18 = vadd.f32 %v12653_v8, %v12345_v0  ;;  %v3775_v28 = vpack.c.bf16 %v10825_v9, %v10807_v25  ;;  %v11072_v63 = vmul.f32 %v3367_v51, %v10944_v48  ;;  %v12656_v8 = vld [vmem:[#allocation92_spill] sm:$0xff] }
 0x3dc   :  { %v11075_v43 = vmul.f32 %v3369_v53, %v10953_v12  ;;  %v3375_v56 = vadd.f32 1.0, %v6494_v17  ;;  %v2398_v44 = vadd.f32 %v12655_v33, %v12349_v14  ;;  %v11080_v41 = vmul.f32 %v3376_v2, %v10973_v38  ;;  %v12657_v12 = vld [vmem:[#allocation93_spill] sm:$0xff]  ;;  %v12659_v53 = vld [vmem:[#allocation16_spill] sm:$0xff]  ;;  %v11091_v33 = vpop.f32.mrf.mxu0 }
 0x3dd   :  { %v3377_v58 = vadd.f32 1.0, %v6496_v54  ;;  %6513 = verf.f32 %v2630_v40  ;;  %v2207_v25 = vadd.f32 %v12656_v8, %v12338_v37  ;;  %5110 = vmatprep.mubr.bf16.mxu0 %v3775_v28  ;;  %v3382_v9 = vadd.f32 1.0, %v6498_v19  ;;  %v12658_v17 = vld [vmem:[#allocation105_spill] sm:$0xff]  ;;  %12661 = vst [vmem:[#allocation90_spill] sm:$0xff] %v11091_v33  ;;  %v12662_v28 = vld [vmem:[#allocation63_spill] sm:$0xff]  ;;  %v11097_v40 = vpop.f32.mrf.mxu1 }
 0x3de   :  { %v3384_v29 = vadd.f32 1.0, %v6500_v7  ;;  %v11084_v48 = vmul.f32 0.5, %v2203_v15  ;;  %v2400_v51 = vadd.f32 %v12657_v12, %v12341_v61  ;;  %v12660_v49 = vpack.c.bf16 %v12658_v17, %v12659_v53  ;;  %12663 = vst [vmem:[#allocation92_spill] sm:$0xff] %v11097_v40 }
 0x3df   :  { %6515 = verf.f32 %v2632_v39  ;;  %v2631_v54 = vmul.f32 0.70710677, %v2205_v18  ;;  %v2209_v2 = vadd.f32 %v12662_v28, %v12345_v0  ;;  %v11100_v19 = vmul.f32 %v3375_v56, %v10976_v45  ;;  %v12664_v28 = vld [vmem:[#allocation94_spill] sm:$0xff] }
 0x3e0   :  { %5111 = vmatmul.mubr.bf16.gmra.mxu0 %v12660_v49  ;;  %v6502_v15 = vpop.eup %6501  ;;  %v11102_v7 = vmul.f32 0.5, %v2396_v35  ;;  %v2633_v8 = vmul.f32 0.70710677, %v2398_v44  ;;  %v3777_v49 = vpack.c.bf16 %v10840_v31, %v10810_v20  ;;  %v11109_v17 = vmul.f32 %v3377_v58, %v10985_v10  ;;  %v11121_v31 = vpop.f32.mrf.mxu0 }
 0x3e1   :  { %v6504_v12 = vpop.eup %6503  ;;  %v2638_v53 = vmul.f32 0.70710677, %v2207_v25  ;;  %v2402_v38 = vadd.f32 %v12664_v28, %v12349_v14  ;;  %v11114_v45 = vmul.f32 %v3382_v9, %v11015_v1  ;;  %v11117_v35 = vmul.f32 %v3384_v29, %v11021_v59  ;;  %12667 = vst [vmem:[#allocation16_spill] sm:$0xff] %v11121_v31  ;;  %v12668_v28 = vld [vmem:[#allocation51_spill] sm:$0xff]  ;;  %v12670_v1 = vld [vmem:[#allocation106_spill] sm:$0xff]  ;;  %v11130_v29 = vpop.f32.mrf.mxu1 }
 0x3e2   :  { %v6506_v4 = vpop.eup %6505  ;;  %v11119_v56 = vmul.f32 0.5, %v2205_v18  ;;  %v2640_v20 = vmul.f32 0.70710677, %v2400_v51  ;;  %5303 = vmatprep.mubr.bf16.mxu1 %v3777_v49  ;;  %6517 = verf.f32 %v2631_v54  ;;  %v11123_v10 = vmul.f32 0.5, %v2398_v44  ;;  %12672 = vst [vmem:[#allocation63_spill] sm:$0xff] %v11130_v29 }
 0x3e3   :  { %12665 = vst [vmem:[#allocation93_spill] sm:$0xff] %v11114_v45  ;;  %12666 = vst [vmem:[#allocation105_spill] sm:$0xff] %v11117_v35  ;;  %v6508_v39 = vpop.eup %6507  ;;  %v2639_v58 = vmul.f32 0.70710677, %v2209_v2  ;;  %v2213_v40 = vadd.f32 %v12668_v28, %v12338_v37  ;;  %v12671_v9 = vpack.c.bf16 %v12669_v24, %v12670_v1  ;;  %v3390_v59 = vadd.f32 1.0, %v6504_v12  ;;  %v12673_v24 = vld [vmem:[#allocation71_spill] sm:$0xff] }
 0x3e4   :  { %6519 = verf.f32 %v2633_v8  ;;  %v11132_v18 = vmul.f32 0.5, %v2207_v25  ;;  %v11134_v49 = vmul.f32 0.5, %v2400_v51  ;;  %v3383_v54 = vadd.f32 1.0, %v6502_v15  ;;  %v12675_v51 = vld [vmem:[#allocation67_spill] sm:$0xff] }
 0x3e5   :  { %5304 = vmatmul.mubr.bf16.gmra.mxu1 %v12671_v9  ;;  %v6510_v31 = vpop.eup %6509  ;;  %v3385_v44 = vadd.f32 1.0, %v6506_v4  ;;  %6521 = verf.f32 %v2638_v53  ;;  %v2641_v33 = vmul.f32 0.70710677, %v2402_v38  ;;  %v3392_v30 = vadd.f32 1.0, %v6508_v39  ;;  %v11140_v9 = vpop.f32.mrf.mxu0  ;;  %v12678_v53 = vld [vmem:[#allocation76_spill] sm:$0xff] }
 0x3e6   :  { %6523 = verf.f32 %v2640_v20  ;;  %v11136_v28 = vmul.f32 0.5, %v2209_v2  ;;  %v2406_v1 = vadd.f32 %v12673_v24, %v12341_v61  ;;  %12674 = vst [vmem:[#allocation94_spill] sm:$0xff] %v11140_v9  ;;  %v11142_v8 = vmul.f32 0.5, %v2402_v38  ;;  %v11148_v4 = vpop.f32.mrf.mxu1 }
 0x3e7   :  { %6525 = verf.f32 %v2639_v58  ;;  %v2646_v25 = vmul.f32 0.70710677, %v2213_v40  ;;  %v11146_v12 = vadd.f32 %v12675_v51, %v12345_v0  ;;  %12676 = vst [vmem:[#allocation51_spill] sm:$0xff] %v11148_v4  ;;  %v6512_v15 = vpop.eup %6511  ;;  %v11151_v39 = vmul.f32 %v3390_v59, %v11052_v27  ;;  %v12679_v51 = vld [vmem:[#allocation61_spill] sm:$0xff] }
 0x3e8   :  { %v3391_v2 = vadd.f32 1.0, %v6510_v31  ;;  %v11155_v20 = vadd.f32 %v12678_v53, %v12349_v14  ;;  %v3783_v38 = vpack.c.bf16 %v10919_v62, %v10912_v5  ;;  %v11160_v58 = vmul.f32 %v3383_v54, %v11046_v11  ;;  %v12681_v5 = vld [vmem:[#allocation55_spill] sm:$0xff]  ;;  %v11178_v11 = vpop.f32.mrf.mxu0  ;;  %v12683_v54 = vld [vmem:[#allocation21_spill] sm:$0xff] }
 0x3e9   :  { %12677 = vst [vmem:[#allocation107_spill] sm:$0xff] %v11151_v39  ;;  %v11163_v24 = vmul.f32 %v3385_v44, %v11049_v23  ;;  %6527 = verf.f32 %v2641_v33  ;;  %v11167_v4 = vadd.f32 %v12679_v51, %v12338_v37  ;;  %v11170_v31 = vmul.f32 %v3392_v30, %v11057_v60  ;;  %12682 = vst [vmem:[#allocation71_spill] sm:$0xff] %v11178_v11  ;;  %v11188_v30 = vpop.f32.mrf.mxu1  ;;  %v12702_v39 = vld [vmem:[#allocation29_spill] sm:$0xff] }
 0x3ea   :  { %v6514_v27 = vpop.eup %6513  ;;  %v11172_v59 = vmul.f32 0.5, %v2213_v40  ;;  %v2648_v53 = vmul.f32 0.70710677, %v2406_v1  ;;  %v11176_v62 = vadd.f32 %v12681_v5, %v12341_v61  ;;  %5120 = vmatprep.mubr.bf16.mxu0 %v3783_v38  ;;  %v3393_v23 = vadd.f32 1.0, %v6512_v15  ;;  %12685 = vst [vmem:[#allocation67_spill] sm:$0xff] %v11188_v30  ;;  %v12686_v15 = vld [vmem:[#allocation77_spill] sm:$0xff] }
 0x3eb   :  { %12680 = vst [vmem:[#allocation106_spill] sm:$0xff] %v11170_v31  ;;  %6529 = verf.f32 %v2646_v25  ;;  %v2647_v33 = vmul.f32 0.70710677, %v11146_v12  ;;  %v11183_v44 = vadd.f32 %v12683_v54, %v12345_v0  ;;  %v12684_v60 = vpack.c.bf16 %v10613_v52, %v10611_v21  ;;  %v12687_v21 = vld [vmem:[#allocation73_spill] sm:$0xff] }
 0x3ec   :  { %v6516_v40 = vpop.eup %6515  ;;  %v11193_v51 = vmul.f32 %v3391_v2, %v11059_v50  ;;  %v2649_v25 = vmul.f32 0.70710677, %v11155_v20  ;;  %v11198_v5 = vadd.f32 %v12686_v15, %v12349_v14  ;;  %v3398_v54 = vadd.f32 1.0, %v6514_v27  ;;  %v12688_v2 = vld [vmem:[#allocation28_spill] sm:$0xff]  ;;  %v11214_v15 = vpop.f32.mrf.mxu0 }
 0x3ed   :  { %5121 = vmatmul.mubr.bf16.gmra.mxu0 %v12684_v60  ;;  %v2654_v29 = vmul.f32 0.70710677, %v11167_v4  ;;  %v11203_v52 = vadd.f32 %v12687_v21, %v12338_v37  ;;  %v3785_v60 = vpack.c.bf16 %v10929_v34, %v10915_v22  ;;  %6531 = verf.f32 %v2648_v53  ;;  %12689 = vst [vmem:[#allocation76_spill] sm:$0xff] %v11214_v15  ;;  %v12690_v21 = vld [vmem:[#allocation32_spill] sm:$0xff]  ;;  %v11221_v22 = vpop.f32.mrf.mxu1  ;;  %v12695_v15 = vld [vmem:[#allocation113_spill] sm:$0xff] }
 0x3ee   :  { %v11207_v38 = vmul.f32 0.5, %v2406_v1  ;;  %v2656_v50 = vmul.f32 0.70710677, %v11176_v62  ;;  %v11212_v30 = vadd.f32 %v12688_v2, %v12341_v61  ;;  %v3400_v27 = vadd.f32 1.0, %v6516_v40  ;;  %12691 = vst [vmem:[#allocation61_spill] sm:$0xff] %v11221_v22  ;;  %v12692_v2 = vld [vmem:[#allocation23_spill] sm:$0xff] }
 0x3ef   :  { %6533 = verf.f32 %v2647_v33  ;;  %v2655_v11 = vmul.f32 0.70710677, %v11183_v44  ;;  %v11219_v9 = vadd.f32 %v12690_v21, %v12345_v0  ;;  %5313 = vmatprep.mubr.bf16.mxu1 %v3785_v60  ;;  %v6518_v34 = vpop.eup %6517  ;;  %v2657_v53 = vmul.f32 0.70710677, %v11198_v5  ;;  %v12694_v33 = vld [vmem:[#allocation46_spill] sm:$0xff]  ;;  %v12697_v1 = vld [vmem:[#allocation96_spill] sm:$0xff] }
 0x3f0   :  { %6535 = verf.f32 %v2649_v25  ;;  %v11228_v40 = vadd.f32 %v12692_v2, %v12349_v14  ;;  %v12696_v45 = vpack.c.bf16 %v12694_v33, %v12695_v15  ;;  %v11234_v60 = vmul.f32 %v3393_v23, %v11061_v47  ;;  %v11249_v47 = vpop.f32.mrf.mxu0  ;;  %v12700_v33 = vld [vmem:[#allocation97_spill] sm:$0xff] }
 0x3f1   :  { %v6520_v21 = vpop.eup %6519  ;;  %6537 = verf.f32 %v2654_v29  ;;  %v2662_v22 = vmul.f32 0.70710677, %v11203_v52  ;;  %v11239_v25 = vadd.f32 %v12697_v1, %v12345_v0  ;;  %v11242_v31 = vmul.f32 %v3398_v54, %v11084_v48  ;;  %12699 = vst [vmem:[#allocation21_spill] sm:$0xff] %v11249_v47  ;;  %v11259_v54 = vpop.f32.mrf.mxu1 }
 0x3f2   :  { %12693 = vst [vmem:[#allocation55_spill] sm:$0xff] %v11228_v40  ;;  %5314 = vmatmul.mubr.bf16.gmra.mxu1 %v12696_v45  ;;  %v6522_v35 = vpop.eup %6521  ;;  %6539 = verf.f32 %v2656_v50  ;;  %v2664_v2 = vmul.f32 0.70710677, %v11212_v30  ;;  %v12698_v45 = vld [vmem:[#allocation72_spill] sm:$0xff]  ;;  %v11252_v23 = vmul.f32 %v3400_v27, %v11102_v7  ;;  %v2663_v1 = vmul.f32 0.70710677, %v11219_v9 }
 0x3f3   :  { %v11247_v15 = vadd.f32 %v12698_v45, %v12338_v37  ;;  %v6524_v29 = vpop.eup %6523  ;;  %6541 = verf.f32 %v2655_v11  ;;  %v11257_v48 = vadd.f32 %v12700_v33, %v12349_v14  ;;  %12701 = vst [vmem:[#allocation77_spill] sm:$0xff] %v11259_v54  ;;  %v2665_v45 = vmul.f32 0.70710677, %v11228_v40 }
 0x3f4   :  { %v6526_v50 = vpop.eup %6525  ;;  %6543 = verf.f32 %v2657_v53  ;;  %v11264_v47 = vadd.f32 %v12702_v39, %v12341_v61  ;;  %v3791_v7 = vpack.c.bf16 %v11018_v6, %v10991_v57  ;;  %v11269_v11 = vmul.f32 0.5, %v11146_v12 }
 0x3f5   :  { %6545 = verf.f32 %v2662_v22  ;;  %v2671_v27 = vmul.f32 0.70710677, %v11239_v25  ;;  %v3793_v33 = vpack.c.bf16 %v11028_v55, %v10994_v3  ;;  %v11275_v53 = vmul.f32 0.5, %v11155_v20  ;;  %v12704_v22 = vld [vmem:[#allocation69_spill] sm:$0xff] }
 0x3f6   :  { %v6528_v54 = vpop.eup %6527  ;;  %v11278_v40 = vmul.f32 0.5, %v11167_v4  ;;  %6547 = verf.f32 %v2664_v2  ;;  %v2670_v39 = vmul.f32 0.70710677, %v11247_v15  ;;  %5130 = vmatprep.mubr.bf16.mxu0 %v3791_v7  ;;  %v3406_v6 = vadd.f32 1.0, %v6522_v35  ;;  %v12706_v35 = vld [vmem:[#allocation19_spill] sm:$0xff] }
 0x3f7   :  { %6549 = verf.f32 %v2663_v1  ;;  %v2673_v12 = vmul.f32 0.70710677, %v11257_v48  ;;  %v11286_v3 = vadd.f32 %v12704_v22, %v12345_v0  ;;  %5323 = vmatprep.mubr.bf16.mxu1 %v3793_v33  ;;  %v12705_v55 = vpack.c.bf16 %v10982_v46, %v10932_v13  ;;  %v12708_v13 = vld [vmem:[#allocation98_spill] sm:$0xff] }
 0x3f8   :  { %v11281_v57 = vpop.f32.mrf.mxu0  ;;  %v6530_v20 = vpop.eup %6529  ;;  %v3399_v2 = vadd.f32 1.0, %v6518_v34  ;;  %6551 = verf.f32 %v2665_v45  ;;  %v2672_v7 = vmul.f32 0.70710677, %v11264_v47  ;;  %v11296_v1 = vadd.f32 %v12706_v35, %v12345_v0 }
 0x3f9   :  { %12703 = vst [vmem:[#allocation73_spill] sm:$0xff] %v11281_v57  ;;  %5131 = vmatmul.mubr.bf16.gmra.mxu0 %v12705_v55  ;;  %v11291_v4 = vpop.f32.mrf.mxu1  ;;  %v12707_v22 = vpack.c.bf16 %v11001_v32, %v10941_v16  ;;  %v3401_v33 = vadd.f32 1.0, %v6520_v21  ;;  %v3408_v57 = vadd.f32 1.0, %v6524_v29  ;;  %6553 = verf.f32 %v2671_v27 }
 0x3fa   :  { %v11303_v46 = vadd.f32 %v12708_v13, %v12349_v14  ;;  %v11305_v55 = vpop.f32.mrf.mxu0  ;;  %v11308_v34 = vmul.f32 0.5, %v11176_v62  ;;  %v11311_v45 = vmul.f32 0.5, %v11183_v44  ;;  %v11314_v0 = vmul.f32 0.5, %v11198_v5  ;;  %v6532_v16 = vpop.eup %6531 }
 0x3fb   :  { %5324 = vmatmul.mubr.bf16.gmra.mxu1 %v12707_v22  ;;  %6555 = verf.f32 %v2670_v39  ;;  %v11317_v32 = vmul.f32 %v3406_v6, %v11132_v18  ;;  %v3407_v21 = vadd.f32 1.0, %v6526_v50  ;;  %v2679_v29 = vmul.f32 0.70710677, %v11286_v3  ;;  %v11320_v27 = vpop.f32.mrf.mxu1 }
 0x3fc   :  { %6557 = verf.f32 %v2673_v12  ;;  %v6534_v35 = vpop.eup %6533  ;;  %v2687_v62 = vmul.f32 0.70710677, %v11296_v1  ;;  %v3799_v44 = vpack.c.bf16 %v11100_v19, %v11072_v63  ;;  %v3801_v5 = vpack.c.bf16 %v11109_v17, %v11075_v43 }
 0x3fd   :  { %6559 = verf.f32 %v2672_v7  ;;  %v6536_v39 = vpop.eup %6535  ;;  %v11328_v18 = vmul.f32 %v3399_v2, %v11119_v56  ;;  %v11331_v50 = vmul.f32 %v3401_v33, %v11123_v10  ;;  %v11334_v6 = vmul.f32 %v3408_v57, %v11134_v49  ;;  %v11337_v7 = vpop.f32.mrf.mxu0  ;;  %v12710_v2 = vld [vmem:[#allocation64_spill] sm:$0xff] }
 0x3fe   :  { %v2689_v12 = vmul.f32 0.70710677, %v11303_v46  ;;  %v6538_v22 = vpop.eup %6537  ;;  %v3409_v13 = vadd.f32 1.0, %v6528_v54  ;;  %v3414_v63 = vadd.f32 1.0, %v6530_v20  ;;  %v3416_v19 = vadd.f32 1.0, %v6532_v16  ;;  %5140 = vmatprep.mubr.bf16.mxu0 %v3799_v44  ;;  %5333 = vmatprep.mubr.bf16.mxu1 %v3801_v5  ;;  %v11351_v57 = vpop.f32.mrf.mxu1  ;;  %v12713_v44 = vld [vmem:[#allocation55_spill] sm:$0xff] }
 0x3ff   :  { %v3807_v43 = vpack.c.bf16 %v11193_v51, %v11160_v58  ;;  %v6540_v17 = vpop.eup %6539  ;;  %v11344_v10 = vmul.f32 0.5, %v11203_v52  ;;  %6561 = verf.f32 %v2679_v29  ;;  %v12709_v49 = vpack.c.bf16 %v11054_v36, %v11036_v26 }
 0x400   :  { %v3809_v54 = vpack.c.bf16 %v11234_v60, %v11163_v24  ;;  %v6542_v20 = vpop.eup %6541  ;;  %v3663_v58 = vmul.f32 %v3407_v21, %v11136_v28  ;;  %v11355_v51 = vmul.f32 0.5, %v11212_v30  ;;  %v11359_v52 = vadd.f32 %v12710_v2, %v12349_v14  ;;  %v12712_v28 = vld [vmem:[#allocation36_spill] sm:$0xff]  ;;  %v11370_v30 = vpop.f32.mrf.mxu0  ;;  %v12719_v24 = vld [vmem:[#allocation93_spill] sm:$0xff] }
 0x401   :  { %5141 = vmatmul.mubr.bf16.gmra.mxu0 %v12709_v49  ;;  %6563 = verf.f32 %v2687_v62  ;;  %v12711_v26 = vpack.c.bf16 %v11080_v41, %v11039_v42  ;;  %v6544_v36 = vpop.eup %6543  ;;  %v3422_v60 = vadd.f32 1.0, %v6538_v22  ;;  %v11368_v33 = vadd.f32 %v12712_v28, %v12338_v37  ;;  %v12714_v22 = vld [vmem:[#allocation33_spill] sm:$0xff]  ;;  %v12717_v28 = vld [vmem:[#allocation62_spill] sm:$0xff] }
 0x402   :  { %5150 = vmatprep.mubr.bf16.mxu0 %v3807_v43  ;;  %6565 = verf.f32 %v2689_v12  ;;  %v6546_v14 = vpop.eup %6545  ;;  %v3665_v16 = vmul.f32 %v3409_v13, %v11142_v8  ;;  %v11374_v42 = vmul.f32 %v3414_v63, %v11172_v59  ;;  %v11377_v41 = vmul.f32 %v3416_v19, %v11207_v38  ;;  %v11392_v59 = vpop.f32.mrf.mxu1 }
 0x403   :  { %5334 = vmatmul.mubr.bf16.gmra.mxu1 %v12711_v26  ;;  %v3424_v21 = vadd.f32 1.0, %v6540_v17  ;;  %v6548_v29 = vpop.eup %6547  ;;  %v11380_v62 = vmul.f32 0.5, %v11219_v9  ;;  %v11383_v5 = vmul.f32 0.5, %v12713_v44  ;;  %v11386_v12 = vmul.f32 0.5, %v11247_v15 }
 0x404   :  { %5343 = vmatprep.mubr.bf16.mxu1 %v3809_v54  ;;  %v11390_v8 = vadd.f32 %v12714_v22, %v12341_v61  ;;  %v6550_v13 = vpop.eup %6549  ;;  %v3415_v38 = vadd.f32 1.0, %v6534_v35  ;;  %v3417_v63 = vadd.f32 1.0, %v6536_v39  ;;  %v11395_v19 = vmul.f32 0.5, %v11264_v47  ;;  %v12716_v54 = vld [vmem:[#allocation70_spill] sm:$0xff] }
 0x405   :  { %v2681_v9 = vmul.f32 0.70710677, %v11359_v52  ;;  %v6552_v43 = vpop.eup %6551  ;;  %v11399_v17 = vmul.f32 %v3422_v60, %v11278_v40  ;;  %v3423_v15 = vadd.f32 1.0, %v6542_v20  ;;  %v2678_v49 = vmul.f32 0.70710677, %v11368_v33 }
 0x406   :  { %12715 = vst [vmem:[#allocation28_spill] sm:$0xff] %v11390_v8  ;;  %v11404_v2 = vadd.f32 %v12716_v54, %v12338_v37  ;;  %v6554_v35 = vpop.eup %6553  ;;  %v11409_v39 = vmul.f32 %v3424_v21, %v11308_v34  ;;  %v3425_v47 = vadd.f32 1.0, %v6544_v36  ;;  %v11413_v44 = vadd.f32 %v12717_v28, %v12341_v61  ;;  %v12718_v54 = vld [vmem:[#allocation107_spill] sm:$0xff] }
 0x407   :  { %v11406_v26 = vpop.f32.mrf.mxu0  ;;  %v3815_v40 = vpack.c.bf16 %v3663_v58, %v11328_v18  ;;  %v3430_v60 = vadd.f32 1.0, %v6546_v14  ;;  %v3183_v22 = vmul.f32 0.5, %v11239_v25  ;;  %v2680_v37 = vmul.f32 0.70710677, %v11390_v8  ;;  %v12721_v25 = vld [vmem:[#allocation106_spill] sm:$0xff]  ;;  %v12722_v14 = vld [vmem:[#allocation105_spill] sm:$0xff] }
 0x408   :  { %v6556_v20 = vpop.eup %6555  ;;  %v12720_v56 = vpack.c.bf16 %v12718_v54, %v12719_v24  ;;  %v3817_v34 = vpack.c.bf16 %v3665_v16, %v11331_v50  ;;  %v3671_v28 = vmul.f32 %v3415_v38, %v11269_v11  ;;  %v3673_v18 = vmul.f32 %v3417_v63, %v11275_v53 }
 0x409   :  { %v11422_v21 = vpop.f32.mrf.mxu1  ;;  %v11424_v36 = vpop.f32.mrf.mxu0  ;;  %v3185_v58 = vmul.f32 0.5, %v11257_v48  ;;  %6567 = verf.f32 %v2681_v9  ;;  %v12723_v8 = vpack.c.bf16 %v12721_v25, %v12722_v14  ;;  %v3822_v50 = vpack.c.bf16 %v11399_v17, %v11374_v42 }
 0x40a   :  { %5151 = vmatmul.mubr.bf16.gmra.mxu0 %v12720_v56  ;;  %v6558_v61 = vpop.eup %6557  ;;  %v3439_v24 = vadd.f32 1.0, %v6554_v35  ;;  %6569 = verf.f32 %v2678_v49  ;;  %v2686_v16 = vmul.f32 0.70710677, %v11404_v2  ;;  %v3824_v48 = vpack.c.bf16 %v11409_v39, %v11377_v41 }
 0x40b   :  { %5344 = vmatmul.mubr.bf16.gmra.mxu1 %v12723_v8  ;;  %5160 = vmatprep.mubr.bf16.mxu0 %v3815_v40  ;;  %v6560_v56 = vpop.eup %6559  ;;  %v11435_v11 = vpop.f32.mrf.mxu1  ;;  %v3679_v38 = vmul.f32 %v3423_v15, %v11311_v45  ;;  %v3681_v8 = vmul.f32 %v3425_v47, %v11314_v0  ;;  %v2688_v63 = vmul.f32 0.70710677, %v11413_v44  ;;  %v11445_v9 = vmul.f32 %v3430_v60, %v11344_v10  ;;  %v3970_v40 = vld [vmem:[%s11771_s6] sm:$0x3]  ;;  %s6781_s6 = smov [#allocation11]  }
 0x40c   :  { %5353 = vmatprep.mubr.bf16.mxu1 %v3817_v34  ;;  %v11437_v53 = vpop.f32.mrf.mxu0  ;;  %v3431_v49 = vadd.f32 1.0, %v6550_v13  ;;  %v3441_v35 = vadd.f32 1.0, %v6558_v61  ;;  %6571 = verf.f32 %v2680_v37  ;;  %v6562_v54 = vpop.eup %6561  ;;  %v11450_v34 = vadd.f32 1.0, %v6548_v29  ;;  %s5527_s30 = sshll.u32 %s6781_s6, 4  ;;  %s5528_s30 = int_to_ptr.vmem [resolvable:$true] %s5527_s30 }
 0x40d   :  { %v3433_v25 = vadd.f32 1.0, %v6552_v43  ;;  %v3438_v14 = vadd.f32 1.0, %v6556_v20  ;;  %v3440_v45 = vadd.f32 1.0, %v6560_v56  ;;  %v11452_v15 = vpop.f32.mrf.mxu1  ;;  %v11454_v47 = vmul.f32 %v3439_v24, %v3183_v22  ;;  %v12724_v43 = vld [vmem:[#allocation59_spill] sm:$0xff]  ;;  %v12725_v24 = vld [vmem:[#allocation58_spill] sm:$0xff]  ;;  %s6742_s8 = scalar_lea.vmem %s5528_s30, 8192  ;;  %p6747_p12 = scmp.lt.s32.totalorder %s5528_s30, %s5528_s30 }
 0x40e   :  { %v6564_v0 = vpop.eup %6563  ;;  %v11457_v10 = vmul.f32 0.5, %v11286_v3  ;;  %6573 = verf.f32 %v2686_v16  ;;  %v11460_v13 = vmul.f32 0.5, %v11296_v1  ;;  %v4772_v60 = vpop.f32.mrf.mxu0  ;;  %v11463_v29 = vmul.f32 0.5, %v11303_v46  ;;  %p6743_p11 = scmp.ne.s32.totalorder %s5528_s30, %s6742_s8  ;;  %p6748_p13 = scmp.lt.s32.totalorder %s6742_s8, %s6742_s8 }
 0x40f   :  { %v6566_v37 = vpop.eup %6565  ;;  %6575 = verf.f32 %v2688_v63  ;;  %v11466_v20 = vrot.slane %v3970_v40, %v12724_v43  ;;  %v3823_v61 = vpack.c.bf16 %v3679_v38, %v3671_v28  ;;  %v3687_v22 = vmul.f32 %v3431_v49, %v11380_v62  ;;  %v12730_v49 = vld [vmem:[#allocation16_spill] sm:$0xff] }
 0x410   :  { %v3697_v56 = vmul.f32 %v3441_v35, %v3185_v58  ;;  %v11470_v3 = vrot.slane %v3970_v40, %v12725_v24  ;;  %v12726_v1 = vpack.c.bf16 %v11317_v32, %v11242_v31  ;;  %v3825_v16 = vpack.c.bf16 %v3681_v8, %v3673_v18  ;;  %v4965_v58 = vpop.f32.mrf.mxu1  ;;  %v12732_v40 = vld [vmem:[#allocation71_spill] sm:$0xff]  ;;  %v12736_v24 = vld [vmem:[#allocation92_spill] sm:$0xff]  ;;  %p6749_p0 = por %p6748_p13, %p6747_p12 }
 0x411   :  { %v3689_v63 = vmul.f32 %v3433_v25, %v11383_v5  ;;  %v11477_v46 = vmul.f32 %v3438_v14, %v11386_v12  ;;  %v11480_v43 = vmul.f32 %v3440_v45, %v11395_v19  ;;  %v11482_v28 = vadd.f32 1.0, %v6562_v54  ;;  %v12728_v5 = vld [vmem:[#allocation87_spill] sm:$0xff]  ;;  %v12729_v19 = vld [vmem:[#allocation90_spill] sm:$0xff]  ;;  %v12733_v14 = vld [vmem:[#allocation89_spill] sm:$0xff] }
 0x412   :  { %5161 = vmatmul.mubr.bf16.gmra.mxu0 %v12726_v1  ;;  %v12727_v62 = vpack.c.bf16 %v11334_v6, %v11252_v23  ;;  %v3455_v38 = vadd.f32 1.0, %v6564_v0  ;;  %v3457_v31 = vadd.f32 1.0, %v6566_v37  ;;  %v3831_v32 = vpack.c.bf16 %v11454_v47, %v3687_v22  ;;  %v12731_v23 = vld [vmem:[#allocation94_spill] sm:$0xff]  ;;  %v12734_v0 = vld [vmem:[#allocation76_spill] sm:$0xff]  ;;  %v12735_v37 = vld [vmem:[#allocation21_spill] sm:$0xff]  ;;  %p6750_p1 = pnand %p6749_p0, %p6743_p11 }
 0x413   :  { %5170 = vmatprep.mubr.bf16.mxu0 %v3823_v61  ;;  %v4739_v12 = vadd.f32 %v12728_v5, %v11470_v3  ;;  %v4741_v8 = vadd.f32 %v12729_v19, %v11466_v20  ;;  %v4743_v35 = vadd.f32 %v12730_v49, %v11470_v3  ;;  %v4747_v6 = vadd.f32 %v12731_v23, %v11466_v20  ;;  %v12738_v5 = vld [vmem:[#allocation51_spill] sm:$0xff]  ;;  %v12740_v23 = vld [vmem:[#allocation61_spill] sm:$0xff] }
 0x414   :  { %5354 = vmatmul.mubr.bf16.gmra.mxu1 %v12727_v62  ;;  %v4776_v18 = vpop.f32.mrf.mxu0  ;;  %v4749_v54 = vadd.f32 %v12732_v40, %v11470_v3  ;;  %v3833_v25 = vpack.c.bf16 %v3697_v56, %v3689_v63  ;;  %v4751_v47 = vadd.f32 %v12734_v0, %v11466_v20  ;;  %v4753_v61 = vadd.f32 %v12735_v37, %v11470_v3  ;;  %v12739_v56 = vld [vmem:[#allocation67_spill] sm:$0xff] }
 0x415   :  { %5363 = vmatprep.mubr.bf16.mxu1 %v3825_v16  ;;  %v11499_v45 = vadd.f32 %v12733_v14, %v4739_v12  ;;  %v11506_v1 = vadd.f32 %v12736_v24, %v4741_v8  ;;  %v12737_v16 = vld [vmem:[#allocation63_spill] sm:$0xff]  ;;  %v11512_v19 = vadd.f32 %v12738_v5, %v4747_v6  ;;  %v12741_v14 = vld [vmem:[#allocation77_spill] sm:$0xff]  ;;  %v4777_v39 = vadd.f32 %v4776_v18, %v11466_v20 }
 0x416   :  { %v4778_v22 = vpop.f32.mrf.mxu0  ;;  %v11509_v62 = vadd.f32 %v12737_v16, %v4743_v35  ;;  %v11515_v63 = vadd.f32 %v12739_v56, %v4749_v54  ;;  %v6568_v49 = vpop.eup %6567  ;;  %v11518_v40 = vadd.f32 %v12740_v23, %v4751_v47  ;;  %v11521_v0 = vadd.f32 %v12741_v14, %v4753_v61  ;;  %v12742_v8 = vld [vmem:[#allocation73_spill] sm:$0xff] }
 0x417   :  { %v4969_v12 = vpop.f32.mrf.mxu1  ;;  %v4757_v37 = vadd.f32 %v12742_v8, %v11466_v20  ;;  %v4759_v35 = vadd.f32 %v11305_v55, %v11470_v3  ;;  %v6570_v6 = vpop.eup %6569  ;;  %v4761_v54 = vadd.f32 %v11337_v7, %v11466_v20  ;;  %v4763_v16 = vadd.f32 %v11370_v30, %v11470_v3 }
 0x418   :  { %v4780_v24 = vpop.f32.mrf.mxu0  ;;  %v4767_v47 = vadd.f32 %v11406_v26, %v11466_v20  ;;  %v4769_v61 = vadd.f32 %v11424_v36, %v11470_v3  ;;  %v4771_v7 = vadd.f32 %v11437_v53, %v11466_v20  ;;  %v4773_v30 = vadd.f32 %v4772_v60, %v11470_v3 }
 0x419   :  { %v4971_v5 = vpop.f32.mrf.mxu1  ;;  %v11539_v55 = vadd.f32 %v11291_v4, %v4757_v37  ;;  %v11542_v56 = vadd.f32 %v11320_v27, %v4759_v35  ;;  %v6572_v23 = vpop.eup %6571  ;;  %v3449_v14 = vadd.f32 1.0, %v6568_v49  ;;  %v11551_v42 = vadd.f32 %v11351_v57, %v4761_v54 }
 0x41a   :  { %5171 = vmatmul.mubr.bf16.gmra.mxu0 %v3822_v50  ;;  %v4782_v26 = vpop.f32.mrf.mxu0  ;;  %v11554_v4 = vadd.f32 %v11392_v59, %v4763_v16  ;;  %v11557_v27 = vadd.f32 %v11422_v21, %v4767_v47  ;;  %v11560_v36 = vadd.f32 %v11435_v11, %v4769_v61  ;;  %v11563_v50 = vadd.f32 %v11452_v15, %v4771_v7  ;;  %v12743_v61 = vld [vmem:[#allocation28_spill] sm:$0xff] }
 0x41b   :  { %5180 = vmatprep.mubr.bf16.mxu0 %v3831_v32  ;;  %v4973_v17 = vpop.f32.mrf.mxu1  ;;  %v11565_v41 = vadd.f32 %v4965_v58, %v4773_v30  ;;  %v6574_v57 = vpop.eup %6573  ;;  %v3711_v53 = vmul.f32 %v3455_v38, %v11460_v13  ;;  %v4779_v59 = vadd.f32 %v4778_v22, %v11470_v3  ;;  %v4781_v21 = vadd.f32 %v4780_v24, %v11466_v20 }
 0x41c   :  { %5364 = vmatmul.mubr.bf16.gmra.mxu1 %v3824_v48  ;;  %v4783_v48 = vadd.f32 %v4782_v26, %v11470_v3  ;;  %v6576_v60 = vpop.eup %6575  ;;  %v3688_v11 = vmul.f32 %v11450_v34, %v11355_v51  ;;  %v3193_v15 = vmul.f32 0.5, %v11359_v52  ;;  %v3713_v58 = vmul.f32 %v3457_v31, %v11463_v29 }
 0x41d   :  { %5373 = vmatprep.mubr.bf16.mxu1 %v3833_v25  ;;  %v11576_v32 = vadd.f32 %v4969_v12, %v4777_v39  ;;  %v4975_v18 = vpop.f32.mrf.mxu1  ;;  %v3703_v13 = vmul.f32 %v11482_v28, %v11457_v10  ;;  %v11580_v38 = vadd.f32 %v4971_v5, %v4779_v59  ;;  %v11582_v25 = vadd.f32 %v4973_v17, %v4781_v21 }
 0x41e   :  { %v11584_v22 = vadd.f32 %v4975_v18, %v4783_v48  ;;  %v3830_v49 = vpack.c.bf16 %v11477_v46, %v11445_v9  ;;  %v3705_v51 = vmul.f32 %v3449_v14, %v3193_v15  ;;  %v3454_v34 = vadd.f32 1.0, %v6574_v57 }
 0x41f   :  { %v4786_v52 = vpop.f32.mrf.mxu0  ;;  %v3832_v29 = vpack.c.bf16 %v11480_v43, %v3688_v11  ;;  %v3456_v31 = vadd.f32 1.0, %v6576_v60  ;;  %v3839_v12 = vpack.c.bf16 %v3711_v53, %v3703_v13  ;;  %v3446_v37 = vadd.f32 1.0, %v6570_v6 }
 0x420   :  { %v4787_v8 = vadd.f32 %v4786_v52, %v11466_v20  ;;  %v3198_v10 = vmul.f32 0.5, %v11404_v2  ;;  %v3841_v28 = vpack.c.bf16 %v3713_v58, %v3705_v51  ;;  %v3448_v24 = vadd.f32 1.0, %v6572_v23 }
 0x421   :  { %v4788_v35 = vpop.f32.mrf.mxu0  ;;  %v3200_v54 = vmul.f32 0.5, %v11413_v44  ;;  %v3190_v46 = vmul.f32 0.5, %v11368_v33  ;;  %v3192_v6 = vmul.f32 0.5, %v12743_v61 }
 0x422   :  { %5181 = vmatmul.mubr.bf16.gmra.mxu0 %v3830_v49  ;;  %v4789_v9 = vadd.f32 %v4788_v35, %v11470_v3  ;;  %v3710_v43 = vmul.f32 %v3454_v34, %v3198_v10 }
 0x423   :  { %5190 = vmatprep.mubr.bf16.mxu0 %v3839_v12  ;;  %v4979_v16 = vpop.f32.mrf.mxu1  ;;  %v4790_v47 = vpop.f32.mrf.mxu0  ;;  %v3712_v5 = vmul.f32 %v3456_v31, %v3200_v54  ;;  %v3702_v30 = vmul.f32 %v3446_v37, %v3190_v46  ;;  %v3704_v23 = vmul.f32 %v3448_v24, %v3192_v6 }
 0x424   :  { %5374 = vmatmul.mubr.bf16.gmra.mxu1 %v3832_v29  ;;  %v11595_v2 = vadd.f32 %v4979_v16, %v4787_v8  ;;  %v4791_v7 = vadd.f32 %v4790_v47, %v11466_v20 }
 0x425   :  { %5383 = vmatprep.mubr.bf16.mxu1 %v3841_v28  ;;  %v4981_v26 = vpop.f32.mrf.mxu1  ;;  %v4792_v44 = vpop.f32.mrf.mxu0  ;;  %v3838_v33 = vpack.c.bf16 %v3710_v43, %v3702_v30  ;;  %v3840_v57 = vpack.c.bf16 %v3712_v5, %v3704_v23  ;;  %v12744_v5 = vld [vmem:[#allocation78_spill] sm:$0xff] }
 0x426   :  { %v11598_v14 = vadd.f32 %v4981_v26, %v4789_v9  ;;  %v4793_v17 = vadd.f32 %v4792_v44, %v11470_v3  ;;  %v12745_v44 = vld [vmem:[#allocation53_spill] sm:$0xff] }
 0x427   :  { %v4983_v39 = vpop.f32.mrf.mxu1  ;;  %v4659_v23 = vadd.f32 %v12745_v44, %v11470_v3 }
 0x428   :  { %v11601_v53 = vadd.f32 %v4983_v39, %v4791_v7  ;;  %v4657_v7 = vadd.f32 %v12744_v5, %v11466_v20  ;;  %v12746_v39 = vld [vmem:[#allocation99_spill] sm:$0xff] }
 0x429   :  { %v4985_v59 = vpop.f32.mrf.mxu1 }
 0x42a   :  { %5191 = vmatmul.mubr.bf16.gmra.mxu0 %v3838_v33  ;;  %v11603_v21 = vadd.f32 %v4985_v59, %v4793_v17  ;;  %v12747_v59 = vld [vmem:[#allocation101_spill] sm:$0xff] }
 0x42b   :  { %v4796_v48 = vpop.f32.mrf.mxu0 }
 0x42c   :  { %5384 = vmatmul.mubr.bf16.gmra.mxu1 %v3840_v57  ;;  %v4797_v60 = vadd.f32 %v4796_v48, %v11466_v20  ;;  %v4850_v57 = vadd.f32 %v12746_v39, %v4657_v7  ;;  %v4661_v48 = vadd.f32 %v12747_v59, %v11466_v20  ;;  %v12752_v7 = vld [vmem:[#allocation57_spill] sm:$0xff] }
 0x42d   :  { %v4798_v11 = vpop.f32.mrf.mxu0 }
 0x42e   :  { %v4799_v15 = vadd.f32 %v4798_v11, %v11470_v3  ;;  %v12748_v11 = vld [vmem:[#allocation100_spill] sm:$0xff] }
 0x42f   :  { %v4989_v58 = vpop.f32.mrf.mxu1  ;;  %v4800_v18 = vpop.f32.mrf.mxu0 }
 0x430   :  { %v11607_v13 = vadd.f32 %v4989_v58, %v4797_v60  ;;  %v4801_v49 = vadd.f32 %v4800_v18, %v11466_v20  ;;  %v12749_v58 = vld [vmem:[#allocation56_spill] sm:$0xff] }
 0x431   :  { %v4991_v51 = vpop.f32.mrf.mxu1  ;;  %v4802_v34 = vpop.f32.mrf.mxu0  ;;  %v4663_v18 = vadd.f32 %v12749_v58, %v11470_v3  ;;  %v12754_v58 = vld [vmem:[#allocation103_spill] sm:$0xff] }
 0x432   :  { %v11610_v52 = vadd.f32 %v4991_v51, %v4799_v15  ;;  %v4803_v29 = vadd.f32 %v4802_v34, %v11470_v3  ;;  %v4852_v15 = vadd.f32 %v12748_v11, %v4659_v23  ;;  %v12750_v34 = vld [vmem:[#allocation102_spill] sm:$0xff]  ;;  %v6579_v23 = vld [vmem:[#allocation2 + $0x8] sm:$0xff] }
 0x433   :  { %v4993_v31 = vpop.f32.mrf.mxu1 }
 0x434   :  { %v11613_v12 = vadd.f32 %v4993_v31, %v4801_v49 }
 0x435   :  { %v4995_v8 = vpop.f32.mrf.mxu1 }
 0x436   :  { %v11615_v37 = vadd.f32 %v4995_v8, %v4803_v29  ;;  %v4854_v29 = vadd.f32 %v12750_v34, %v4661_v48 }
 0x438   :  { %v4806_v10 = vpop.f32.mrf.mxu0 }
 0x439   :  { %v4807_v28 = vadd.f32 %v4806_v10, %v11466_v20 }
 0x43a   :  { %v4808_v35 = vpop.f32.mrf.mxu0 }
 0x43b   :  { %v4809_v24 = vadd.f32 %v4808_v35, %v11470_v3 }
 0x43c   :  { %v4810_v54 = vpop.f32.mrf.mxu0 }
 0x43d   :  { %v4999_v9 = vpop.f32.mrf.mxu1  ;;  %v4811_v43 = vadd.f32 %v4810_v54, %v11466_v20 }
 0x43e   :  { %v11619_v46 = vadd.f32 %v4999_v9, %v4807_v28  ;;  %v4812_v16 = vpop.f32.mrf.mxu0  ;;  %v12751_v28 = vld [vmem:[#allocation30_spill] sm:$0xff] }
 0x43f   :  { %v5001_v47 = vpop.f32.mrf.mxu1  ;;  %v4813_v6 = vadd.f32 %v4812_v16, %v11470_v3  ;;  %v4856_v35 = vadd.f32 %v12751_v28, %v4663_v18  ;;  %v6578_v16 = vld [vmem:[#allocation2] sm:$0xff]  ;;  %v12757_v28 = vld [vmem:[#allocation60_spill] sm:$0xff] }
 0x440   :  { %v11622_v61 = vadd.f32 %v5001_v47, %v4809_v24 }
 0x441   :  { %v5003_v30 = vpop.f32.mrf.mxu1 }
 0x442   :  { %v11627_v26 = vadd.f32 %v5003_v30, %v4811_v43  ;;  %v4667_v30 = vadd.f32 %v12752_v7, %v11466_v20 }
 0x443   :  { %v5005_v17 = vpop.f32.mrf.mxu1 }
 0x444   :  { %v11631_v33 = vadd.f32 %v5005_v17, %v4813_v6  ;;  %v4860_v18 = vadd.f32 %v12754_v58, %v4667_v30  ;;  %v6583_v58 = vld [vmem:[#allocation2 + $0x28] sm:$0xff] }
 0x445   :  { %v5042_v60 = vpop.f32.mrf.mxu0 }
 0x446   :  { %v5043_v49 = vadd.f32 %v5042_v60, %v4850_v57  ;;  %v12753_v57 = vld [vmem:[#allocation54_spill] sm:$0xff]  ;;  %v6580_v60 = vld [vmem:[#allocation2 + $0x10] sm:$0xff] }
 0x447   :  { %v5044_v51 = vpop.f32.mrf.mxu0  ;;  %v4669_v59 = vadd.f32 %v12753_v57, %v11470_v3 }
 0x448   :  { %v5045_v31 = vadd.f32 %v5044_v51, %v4852_v15 }
 0x449   :  { %v5046_v8 = vpop.f32.mrf.mxu0 }
 0x44a   :  { %v5235_v10 = vpop.f32.mrf.mxu1  ;;  %v5047_v54 = vadd.f32 %v5046_v8, %v4854_v29  ;;  %v6581_v29 = vld [vmem:[#allocation2 + $0x18] sm:$0xff] }
 0x44b   :  { %v5236_v24 = vadd.f32 %v5235_v10, %v5043_v49  ;;  %v5048_v9 = vpop.f32.mrf.mxu0  ;;  %v12755_v49 = vld [vmem:[#allocation27_spill] sm:$0xff]  ;;  %v12756_v8 = vld [vmem:[#allocation65_spill] sm:$0xff] }
 0x44c   :  { %v5237_v43 = vpop.f32.mrf.mxu1  ;;  %v5049_v5 = vadd.f32 %v5048_v9, %v4856_v35  ;;  %v4671_v51 = vadd.f32 %v12755_v49, %v11466_v20  ;;  %v4862_v10 = vadd.f32 %v12756_v8, %v4669_v59  ;;  %v4673_v35 = vadd.f32 %v12757_v28, %v11470_v3  ;;  %v12758_v9 = vld [vmem:[#allocation104_spill] sm:$0xff]  ;;  %v12762_v28 = vld [vmem:[#allocation66_spill] sm:$0xff] }
 0x44d   :  { %v5394_v47 = vadd.f32 %v6578_v16, %v5236_v24  ;;  %v5238_v6 = vadd.f32 %v5237_v43, %v5045_v31 }
 0x44e   :  { %v5239_v44 = vpop.f32.mrf.mxu1  ;;  %v4864_v43 = vadd.f32 %v12758_v9, %v4671_v51  ;;  %v12761_v51 = vld [vmem:[#allocation47_spill] sm:$0xff] }
 0x44f   :  { %5458 = vst [vmem:[#allocation11] sm:$0xff] %v5394_v47  ;;  %v5395_v17 = vadd.f32 %v6579_v23, %v5238_v6  ;;  %v5240_v39 = vadd.f32 %v5239_v44, %v5047_v54 }
 0x450   :  { %v5241_v48 = vpop.f32.mrf.mxu1 }
 0x451   :  { %5459 = vst [vmem:[#allocation11 + $0x8] sm:$0xff] %v5395_v17  ;;  %v5396_v11 = vadd.f32 %v6580_v60, %v5240_v39  ;;  %v5242_v15 = vadd.f32 %v5241_v48, %v5049_v5  ;;  %v12759_v5 = vld [vmem:[#allocation108_spill] sm:$0xff]  ;;  %v6582_v39 = vld [vmem:[#allocation2 + $0x20] sm:$0xff] }
 0x452   :  { %v5052_v34 = vpop.f32.mrf.mxu0  ;;  %v4866_v7 = vadd.f32 %v12759_v5, %v4673_v35  ;;  %v12760_v60 = vld [vmem:[#allocation74_spill] sm:$0xff]  ;;  %v12765_v5 = vld [vmem:[#allocation88_spill] sm:$0xff] }
 0x453   :  { %5460 = vst [vmem:[#allocation11 + $0x10] sm:$0xff] %v5396_v11  ;;  %v5397_v31 = vadd.f32 %v6581_v29, %v5242_v15  ;;  %v5053_v24 = vadd.f32 %v5052_v34, %v4860_v18  ;;  %v4677_v11 = vadd.f32 %v12760_v60, %v11466_v20  ;;  %v4679_v34 = vadd.f32 %v12761_v51, %v11470_v3 }
 0x454   :  { %v5054_v54 = vpop.f32.mrf.mxu0 }
 0x455   :  { %5461 = vst [vmem:[#allocation11 + $0x18] sm:$0xff] %v5397_v31  ;;  %v5055_v16 = vadd.f32 %v5054_v54, %v4862_v10  ;;  %v6584_v31 = vld [vmem:[#allocation2 + $0x30] sm:$0xff]  ;;  %v4870_v35 = vadd.f32 %v12762_v28, %v4677_v11  ;;  %v6587_v28 = vld [vmem:[#allocation2 + $0x48] sm:$0xff] }
 0x456   :  { %v5056_v47 = vpop.f32.mrf.mxu0 }
 0x457   :  { %v5245_v6 = vpop.f32.mrf.mxu1  ;;  %v5057_v44 = vadd.f32 %v5056_v47, %v4864_v43  ;;  %v6585_v43 = vld [vmem:[#allocation2 + $0x38] sm:$0xff]  ;;  %v12764_v47 = vld [vmem:[#allocation75_spill] sm:$0xff] }
 0x458   :  { %v5246_v30 = vadd.f32 %v5245_v6, %v5053_v24  ;;  %v5058_v23 = vpop.f32.mrf.mxu0  ;;  %v12763_v24 = vld [vmem:[#allocation18_spill] sm:$0xff]  ;;  %v4872_v6 = vadd.f32 %v12764_v47, %v4679_v34 }
 0x459   :  { %v5247_v17 = vpop.f32.mrf.mxu1  ;;  %v5059_v48 = vadd.f32 %v5058_v23, %v4866_v7  ;;  %v4681_v54 = vadd.f32 %v12763_v24, %v11466_v20  ;;  %v4683_v7 = vadd.f32 %v12765_v5, %v11470_v3  ;;  %v12766_v23 = vld [vmem:[#allocation91_spill] sm:$0xff]  ;;  %v12770_v5 = vld [vmem:[#allocation110_spill] sm:$0xff] }
 0x45a   :  { %v5398_v57 = vadd.f32 %v6582_v39, %v5246_v30  ;;  %v5248_v59 = vadd.f32 %v5247_v17, %v5055_v16 }
 0x45b   :  { %v5249_v15 = vpop.f32.mrf.mxu1  ;;  %v4874_v17 = vadd.f32 %v12766_v23, %v4681_v54  ;;  %v12769_v54 = vld [vmem:[#allocation111_spill] sm:$0xff] }
 0x45c   :  { %5462 = vst [vmem:[#allocation11 + $0x20] sm:$0xff] %v5398_v57  ;;  %v5399_v18 = vadd.f32 %v6583_v58, %v5248_v59  ;;  %v5250_v49 = vadd.f32 %v5249_v15, %v5057_v44 }
 0x45d   :  { %v5251_v29 = vpop.f32.mrf.mxu1 }
 0x45e   :  { %5463 = vst [vmem:[#allocation11 + $0x28] sm:$0xff] %v5399_v18  ;;  %v5400_v8 = vadd.f32 %v6584_v31, %v5250_v49  ;;  %v5252_v10 = vadd.f32 %v5251_v29, %v5059_v48  ;;  %v12767_v48 = vld [vmem:[#allocation26_spill] sm:$0xff]  ;;  %v12768_v31 = vld [vmem:[#allocation109_spill] sm:$0xff] }
 0x45f   :  { %v4876_v60 = vadd.f32 %v12767_v48, %v4683_v7  ;;  %v6586_v49 = vld [vmem:[#allocation2 + $0x40] sm:$0xff]  ;;  %v12773_v48 = vld [vmem:[#allocation25_spill] sm:$0xff] }
 0x460   :  { %v5062_v9 = vpop.f32.mrf.mxu0  ;;  %5464 = vst [vmem:[#allocation11 + $0x30] sm:$0xff] %v5400_v8  ;;  %v5401_v16 = vadd.f32 %v6585_v43, %v5252_v10  ;;  %v4687_v8 = vadd.f32 %v12768_v31, %v11466_v20 }
 0x461   :  { %v5063_v30 = vadd.f32 %v5062_v9, %v4870_v35  ;;  %v4689_v9 = vadd.f32 %v12769_v54, %v11470_v3 }
 0x462   :  { %v5064_v44 = vpop.f32.mrf.mxu0  ;;  %5465 = vst [vmem:[#allocation11 + $0x38] sm:$0xff] %v5401_v16  ;;  %v6588_v16 = vld [vmem:[#allocation2 + $0x50] sm:$0xff]  ;;  %v4880_v7 = vadd.f32 %v12770_v5, %v4687_v8  ;;  %v6591_v5 = vld [vmem:[#allocation2 + $0x68] sm:$0xff] }
 0x463   :  { %v5065_v39 = vadd.f32 %v5064_v44, %v4872_v6 }
 0x464   :  { %v5066_v57 = vpop.f32.mrf.mxu0  ;;  %v5255_v59 = vpop.f32.mrf.mxu1 }
 0x465   :  { %v5256_v11 = vadd.f32 %v5255_v59, %v5063_v30  ;;  %v5067_v15 = vadd.f32 %v5066_v57, %v4874_v17  ;;  %v12771_v30 = vld [vmem:[#allocation42_spill] sm:$0xff]  ;;  %v12772_v57 = vld [vmem:[#allocation112_spill] sm:$0xff] }
 0x466   :  { %v5068_v58 = vpop.f32.mrf.mxu0  ;;  %v5257_v18 = vpop.f32.mrf.mxu1  ;;  %v4691_v44 = vadd.f32 %v12771_v30, %v11466_v20  ;;  %v6589_v17 = vld [vmem:[#allocation2 + $0x58] sm:$0xff]  ;;  %v4882_v59 = vadd.f32 %v12772_v57, %v4689_v9 }
 0x467   :  { %v5402_v51 = vadd.f32 %v6586_v49, %v5256_v11  ;;  %v5258_v34 = vadd.f32 %v5257_v18, %v5065_v39  ;;  %v5069_v29 = vadd.f32 %v5068_v58, %v4876_v60  ;;  %v4693_v60 = vadd.f32 %v12773_v48, %v11470_v3  ;;  %v12774_v58 = vld [vmem:[#allocation114_spill] sm:$0xff]  ;;  %v12778_v48 = vld [vmem:[#allocation37_spill] sm:$0xff] }
 0x468   :  { %v5259_v10 = vpop.f32.mrf.mxu1  ;;  %v4884_v18 = vadd.f32 %v12774_v58, %v4691_v44  ;;  %v12777_v44 = vld [vmem:[#allocation35_spill] sm:$0xff] }
 0x469   :  { %5466 = vst [vmem:[#allocation11 + $0x40] sm:$0xff] %v5402_v51  ;;  %v5403_v35 = vadd.f32 %v6587_v28, %v5258_v34  ;;  %v5260_v24 = vadd.f32 %v5259_v10, %v5067_v15 }
 0x46a   :  { %v5261_v43 = vpop.f32.mrf.mxu1 }
 0x46b   :  { %5467 = vst [vmem:[#allocation11 + $0x48] sm:$0xff] %v5403_v35  ;;  %v5404_v47 = vadd.f32 %v6588_v16, %v5260_v24  ;;  %v5262_v6 = vadd.f32 %v5261_v43, %v5069_v29  ;;  %v12775_v29 = vld [vmem:[#allocation22_spill] sm:$0xff]  ;;  %v12776_v16 = vld [vmem:[#allocation45_spill] sm:$0xff] }
 0x46c   :  { %v5072_v23 = vpop.f32.mrf.mxu0  ;;  %v4886_v31 = vadd.f32 %v12775_v29, %v4693_v60  ;;  %v6590_v24 = vld [vmem:[#allocation2 + $0x60] sm:$0xff] }
 0x46d   :  { %5468 = vst [vmem:[#allocation11 + $0x50] sm:$0xff] %v5404_v47  ;;  %v5405_v39 = vadd.f32 %v6589_v17, %v5262_v6  ;;  %v5073_v11 = vadd.f32 %v5072_v23, %v4880_v7  ;;  %v4697_v47 = vadd.f32 %v12776_v16, %v11466_v20  ;;  %v4699_v23 = vadd.f32 %v12777_v44, %v11470_v3  ;;  %v12781_v29 = vld [vmem:[#allocation38_spill] sm:$0xff] }
 0x46e   :  { %v5074_v15 = vpop.f32.mrf.mxu0 }
 0x46f   :  { %5469 = vst [vmem:[#allocation11 + $0x58] sm:$0xff] %v5405_v39  ;;  %v5075_v49 = vadd.f32 %v5074_v15, %v4882_v59  ;;  %v6592_v39 = vld [vmem:[#allocation2 + $0x70] sm:$0xff]  ;;  %v4890_v60 = vadd.f32 %v12778_v48, %v4697_v47  ;;  %v6595_v48 = vld [vmem:[#allocation2 + $0x88] sm:$0xff] }
 0x470   :  { %v5076_v51 = vpop.f32.mrf.mxu0 }
 0x471   :  { %v5265_v34 = vpop.f32.mrf.mxu1  ;;  %v5077_v10 = vadd.f32 %v5076_v51, %v4884_v18  ;;  %v6593_v18 = vld [vmem:[#allocation2 + $0x78] sm:$0xff]  ;;  %v12780_v51 = vld [vmem:[#allocation95_spill] sm:$0xff] }
 0x472   :  { %v5266_v8 = vadd.f32 %v5265_v34, %v5073_v11  ;;  %v5078_v28 = vpop.f32.mrf.mxu0  ;;  %v12779_v11 = vld [vmem:[#allocation34_spill] sm:$0xff]  ;;  %v4892_v34 = vadd.f32 %v12780_v51, %v4699_v23 }
 0x473   :  { %v5267_v35 = vpop.f32.mrf.mxu1  ;;  %v5079_v43 = vadd.f32 %v5078_v28, %v4886_v31  ;;  %v4701_v15 = vadd.f32 %v12779_v11, %v11466_v20  ;;  %v4703_v31 = vadd.f32 %v12781_v29, %v11470_v3  ;;  %v12782_v28 = vld [vmem:[#allocation31_spill] sm:$0xff] }
 0x474   :  { %v5406_v54 = vadd.f32 %v6590_v24, %v5266_v8  ;;  %v5268_v9 = vadd.f32 %v5267_v35, %v5075_v49  ;;  %v12786_v29 = vld [vmem:[#allocation115_spill] sm:$0xff] }
 0x475   :  { %v5269_v6 = vpop.f32.mrf.mxu1  ;;  %v4894_v35 = vadd.f32 %v12782_v28, %v4701_v15  ;;  %v12785_v15 = vld [vmem:[#allocation43_spill] sm:$0xff] }
 0x476   :  { %5470 = vst [vmem:[#allocation11 + $0x60] sm:$0xff] %v5406_v54  ;;  %v5407_v7 = vadd.f32 %v6591_v5, %v5268_v9  ;;  %v5270_v30 = vadd.f32 %v5269_v6, %v5077_v10 }
 0x477   :  { %v5271_v17 = vpop.f32.mrf.mxu1 }
 0x478   :  { %5471 = vst [vmem:[#allocation11 + $0x68] sm:$0xff] %v5407_v7  ;;  %v5408_v57 = vadd.f32 %v6592_v39, %v5270_v30  ;;  %v5272_v59 = vadd.f32 %v5271_v17, %v5079_v43  ;;  %v5082_v58 = vpop.f32.mrf.mxu0  ;;  %v12783_v43 = vld [vmem:[#allocation20_spill] sm:$0xff]  ;;  %v6594_v30 = vld [vmem:[#allocation2 + $0x80] sm:$0xff]  ;;  %v12784_v39 = vld [vmem:[#allocation17_spill] sm:$0xff] }
 0x479   :  { %v5083_v8 = vadd.f32 %v5082_v58, %v4890_v60  ;;  %v4896_v16 = vadd.f32 %v12783_v43, %v4703_v31  ;;  %v4709_v58 = vadd.f32 %v12785_v15, %v11470_v3  ;;  %v12789_v43 = vld [vmem:[#allocation116_spill] sm:$0xff] }
 0x47a   :  { %5472 = vst [vmem:[#allocation11 + $0x70] sm:$0xff] %v5408_v57  ;;  %v5409_v49 = vadd.f32 %v6593_v18, %v5272_v59  ;;  %v5084_v10 = vpop.f32.mrf.mxu0  ;;  %v4707_v57 = vadd.f32 %v12784_v39, %v11466_v20 }
 0x47b   :  { %v5085_v24 = vadd.f32 %v5084_v10, %v4892_v34 }
 0x47c   :  { %5473 = vst [vmem:[#allocation11 + $0x78] sm:$0xff] %v5409_v49  ;;  %v5086_v54 = vpop.f32.mrf.mxu0  ;;  %v6596_v49 = vld [vmem:[#allocation2 + $0x90] sm:$0xff]  ;;  %v4900_v31 = vadd.f32 %v12786_v29, %v4707_v57  ;;  %v6599_v29 = vld [vmem:[#allocation2 + $0xa8] sm:$0xff] }
 0x47d   :  { %v5275_v9 = vpop.f32.mrf.mxu1  ;;  %v5087_v6 = vadd.f32 %v5086_v54, %v4894_v35  ;;  %v6597_v35 = vld [vmem:[#allocation2 + $0x98] sm:$0xff]  ;;  %v12788_v54 = vld [vmem:[#allocation39_spill] sm:$0xff] }
 0x47e   :  { %v5276_v47 = vadd.f32 %v5275_v9, %v5083_v8  ;;  %v5088_v5 = vpop.f32.mrf.mxu0  ;;  %v12787_v8 = vld [vmem:[#allocation50_spill] sm:$0xff]  ;;  %v4902_v9 = vadd.f32 %v12788_v54, %v4709_v58 }
 0x47f   :  { %v5277_v7 = vpop.f32.mrf.mxu1  ;;  %v5089_v17 = vadd.f32 %v5088_v5, %v4896_v16  ;;  %v4711_v10 = vadd.f32 %v12787_v8, %v11466_v20  ;;  %v4713_v16 = vadd.f32 %v12789_v43, %v11470_v3  ;;  %v12790_v5 = vld [vmem:[#allocation52_spill] sm:$0xff]  ;;  %v12794_v43 = vld [vmem:[#allocation79_spill] sm:$0xff] }
 0x480   :  { %v5410_v44 = vadd.f32 %v6594_v30, %v5276_v47  ;;  %v5278_v23 = vadd.f32 %v5277_v7, %v5085_v24 }
 0x481   :  { %v5279_v59 = vpop.f32.mrf.mxu1  ;;  %v4904_v7 = vadd.f32 %v12790_v5, %v4711_v10  ;;  %v12793_v10 = vld [vmem:[#allocation80_spill] sm:$0xff] }
 0x482   :  { %5474 = vst [vmem:[#allocation11 + $0x80] sm:$0xff] %v5410_v44  ;;  %v5411_v60 = vadd.f32 %v6595_v48, %v5278_v23  ;;  %v5280_v11 = vadd.f32 %v5279_v59, %v5087_v6 }
 0x483   :  { %v5281_v18 = vpop.f32.mrf.mxu1 }
 0x484   :  { %5475 = vst [vmem:[#allocation11 + $0x88] sm:$0xff] %v5411_v60  ;;  %v5412_v51 = vadd.f32 %v6596_v49, %v5280_v11  ;;  %v5282_v34 = vadd.f32 %v5281_v18, %v5089_v17  ;;  %v5092_v28 = vpop.f32.mrf.mxu0  ;;  %v12791_v17 = vld [vmem:[#allocation117_spill] sm:$0xff]  ;;  %v6598_v11 = vld [vmem:[#allocation2 + $0xa0] sm:$0xff] }
 0x485   :  { %v5093_v47 = vadd.f32 %v5092_v28, %v4900_v31  ;;  %v4906_v39 = vadd.f32 %v12791_v17, %v4713_v16  ;;  %v12792_v49 = vld [vmem:[#allocation81_spill] sm:$0xff]  ;;  %v4719_v28 = vadd.f32 %v12793_v10, %v11470_v3  ;;  %v12797_v17 = vld [vmem:[#allocation40_spill] sm:$0xff] }
 0x486   :  { %5476 = vst [vmem:[#allocation11 + $0x90] sm:$0xff] %v5412_v51  ;;  %v5413_v24 = vadd.f32 %v6597_v35, %v5282_v34  ;;  %v5094_v6 = vpop.f32.mrf.mxu0  ;;  %v4717_v51 = vadd.f32 %v12792_v49, %v11466_v20 }
 0x487   :  { %v5095_v30 = vadd.f32 %v5094_v6, %v4902_v9 }
 0x488   :  { %5477 = vst [vmem:[#allocation11 + $0x98] sm:$0xff] %v5413_v24  ;;  %v5096_v44 = vpop.f32.mrf.mxu0  ;;  %v6600_v24 = vld [vmem:[#allocation2 + $0xb0] sm:$0xff]  ;;  %v4910_v16 = vadd.f32 %v12794_v43, %v4717_v51  ;;  %v6603_v43 = vld [vmem:[#allocation2 + $0xc8] sm:$0xff] }
 0x489   :  { %v5097_v59 = vadd.f32 %v5096_v44, %v4904_v7  ;;  %v6601_v7 = vld [vmem:[#allocation2 + $0xb8] sm:$0xff] }
 0x48a   :  { %v5098_v48 = vpop.f32.mrf.mxu0  ;;  %v12796_v44 = vld [vmem:[#allocation82_spill] sm:$0xff] }
 0x48b   :  { %v5285_v23 = vpop.f32.mrf.mxu1  ;;  %v5099_v18 = vadd.f32 %v5098_v48, %v4906_v39  ;;  %v4723_v39 = vadd.f32 %v12797_v17, %v11470_v3  ;;  %v12798_v48 = vld [vmem:[#allocation118_spill] sm:$0xff]  ;;  %v12802_v17 = vld [vmem:[#allocation119_spill] sm:$0xff] }
 0x48c   :  { %v5286_v57 = vadd.f32 %v5285_v23, %v5093_v47  ;;  %v12795_v47 = vld [vmem:[#allocation24_spill] sm:$0xff]  ;;  %v4912_v23 = vadd.f32 %v12796_v44, %v4719_v28 }
 0x48d   :  { %v5287_v60 = vpop.f32.mrf.mxu1  ;;  %v4721_v6 = vadd.f32 %v12795_v47, %v11466_v20 }
 0x48e   :  { %v5414_v15 = vadd.f32 %v6598_v11, %v5286_v57  ;;  %v5288_v58 = vadd.f32 %v5287_v60, %v5095_v30 }
 0x48f   :  { %v5289_v34 = vpop.f32.mrf.mxu1  ;;  %v4914_v60 = vadd.f32 %v12798_v48, %v4721_v6  ;;  %v12801_v6 = vld [vmem:[#allocation120_spill] sm:$0xff] }
 0x490   :  { %5478 = vst [vmem:[#allocation11 + $0xa0] sm:$0xff] %v5414_v15  ;;  %v5415_v31 = vadd.f32 %v6599_v29, %v5288_v58  ;;  %v5290_v8 = vadd.f32 %v5289_v34, %v5097_v59 }
 0x491   :  { %v5291_v35 = vpop.f32.mrf.mxu1 }
 0x492   :  { %5479 = vst [vmem:[#allocation11 + $0xa8] sm:$0xff] %v5415_v31  ;;  %v5416_v54 = vadd.f32 %v6600_v24, %v5290_v8  ;;  %v5292_v9 = vadd.f32 %v5291_v35, %v5099_v18  ;;  %v12799_v18 = vld [vmem:[#allocation68_spill] sm:$0xff]  ;;  %v6602_v8 = vld [vmem:[#allocation2 + $0xc0] sm:$0xff]  ;;  %v12800_v24 = vld [vmem:[#allocation49_spill] sm:$0xff] }
 0x493   :  { %v5102_v5 = vpop.f32.mrf.mxu0  ;;  %v4916_v49 = vadd.f32 %v12799_v18, %v4723_v39  ;;  %v12805_v18 = vld [vmem:[#allocation85_spill] sm:$0xff] }
 0x494   :  { %5480 = vst [vmem:[#allocation11 + $0xb0] sm:$0xff] %v5416_v54  ;;  %v5417_v30 = vadd.f32 %v6601_v7, %v5292_v9  ;;  %v5103_v57 = vadd.f32 %v5102_v5, %v4910_v16  ;;  %v4727_v54 = vadd.f32 %v12800_v24, %v11466_v20  ;;  %v4729_v5 = vadd.f32 %v12801_v6, %v11470_v3 }
 0x495   :  { %v5104_v59 = vpop.f32.mrf.mxu0 }
 0x496   :  { %5481 = vst [vmem:[#allocation11 + $0xb8] sm:$0xff] %v5417_v30  ;;  %v5105_v11 = vadd.f32 %v5104_v59, %v4912_v23  ;;  %v6604_v30 = vld [vmem:[#allocation2 + $0xd0] sm:$0xff]  ;;  %v4920_v39 = vadd.f32 %v12802_v17, %v4727_v54 }
 0x497   :  { %v5106_v15 = vpop.f32.mrf.mxu0 }
 0x498   :  { %v5295_v58 = vpop.f32.mrf.mxu1  ;;  %v5107_v34 = vadd.f32 %v5106_v15, %v4914_v60  ;;  %v6605_v60 = vld [vmem:[#allocation2 + $0xd8] sm:$0xff] }
 0x499   :  { %v5296_v51 = vadd.f32 %v5295_v58, %v5103_v57  ;;  %v5108_v29 = vpop.f32.mrf.mxu0  ;;  %v12803_v57 = vld [vmem:[#allocation84_spill] sm:$0xff]  ;;  %v12804_v15 = vld [vmem:[#allocation41_spill] sm:$0xff] }
 0x49a   :  { %v5297_v31 = vpop.f32.mrf.mxu1  ;;  %v5109_v35 = vadd.f32 %v5108_v29, %v4916_v49  ;;  %v4731_v59 = vadd.f32 %v12803_v57, %v11466_v20  ;;  %v4922_v58 = vadd.f32 %v12804_v15, %v4729_v5  ;;  %v4733_v49 = vadd.f32 %v12805_v18, %v11470_v3  ;;  %v12806_v29 = vld [vmem:[#allocation83_spill] sm:$0xff]  ;;  %v12808_v3 = vld [vmem:[#allocation48_spill] sm:$0xff]  ;;  %v6609_v18 = vld [vmem:[#allocation2 + $0xf8] sm:$0xff] }
 0x49b   :  { %v5418_v10 = vadd.f32 %v6602_v8, %v5296_v51  ;;  %v5298_v28 = vadd.f32 %v5297_v31, %v5105_v11 }
 0x49c   :  { %v5299_v9 = vpop.f32.mrf.mxu1  ;;  %v4924_v31 = vadd.f32 %v12806_v29, %v4731_v59  ;;  %v6608_v59 = vld [vmem:[#allocation2 + $0xf0] sm:$0xff] }
 0x49d   :  { %5482 = vst [vmem:[#allocation11 + $0xc0] sm:$0xff] %v5418_v10  ;;  %v5419_v16 = vadd.f32 %v6603_v43, %v5298_v28  ;;  %v5300_v47 = vadd.f32 %v5299_v9, %v5107_v34 }
 0x49e   :  { %v5301_v7 = vpop.f32.mrf.mxu1 }
 0x49f   :  { %5483 = vst [vmem:[#allocation11 + $0xc8] sm:$0xff] %v5419_v16  ;;  %v5420_v44 = vadd.f32 %v6604_v30, %v5300_v47  ;;  %v5302_v23 = vadd.f32 %v5301_v7, %v5109_v35  ;;  %v12807_v35 = vld [vmem:[#allocation44_spill] sm:$0xff]  ;;  %v6606_v47 = vld [vmem:[#allocation2 + $0xe0] sm:$0xff]  ;;  %v4737_v30 = vadd.f32 %v12808_v3, %v11466_v20 }
 0x4a0   :  { %v5112_v48 = vpop.f32.mrf.mxu0  ;;  %v4926_v24 = vadd.f32 %v12807_v35, %v4733_v49 }
 0x4a1   :  { %5484 = vst [vmem:[#allocation11 + $0xd0] sm:$0xff] %v5420_v44  ;;  %v5421_v11 = vadd.f32 %v6605_v60, %v5302_v23  ;;  %v5113_v51 = vadd.f32 %v5112_v48, %v4920_v39  ;;  %v6607_v23 = vld [vmem:[#allocation2 + $0xe8] sm:$0xff] }
 0x4a2   :  { %v5114_v34 = vpop.f32.mrf.mxu0 }
 0x4a3   :  { %5485 = vst [vmem:[#allocation11 + $0xd8] sm:$0xff] %v5421_v11  ;;  %v5115_v8 = vadd.f32 %v5114_v34, %v4922_v58  ;;  %v12809_v11 = vld [vmem:[#allocation86_spill] sm:$0xff] }
 0x4a4   :  { %v5116_v10 = vpop.f32.mrf.mxu0  ;;  %v4930_v15 = vadd.f32 %v12809_v11, %v4737_v30  ;;  %v6614_v11 = vld [vmem:[#allocation2 + $0x120] sm:$0xff] }
 0x4a5   :  { %v5305_v28 = vpop.f32.mrf.mxu1  ;;  %v5117_v9 = vadd.f32 %v5116_v10, %v4924_v31 }
 0x4a6   :  { %v5306_v54 = vadd.f32 %v5305_v28, %v5113_v51  ;;  %v5118_v43 = vpop.f32.mrf.mxu0 }
 0x4a7   :  { %v5307_v16 = vpop.f32.mrf.mxu1  ;;  %v5119_v7 = vadd.f32 %v5118_v43, %v4926_v24  ;;  %v6610_v24 = vld [vmem:[#allocation2 + $0x100] sm:$0xff] }
 0x4a8   :  { %v5422_v6 = vadd.f32 %v6606_v47, %v5306_v54  ;;  %v5308_v5 = vadd.f32 %v5307_v16, %v5115_v8  ;;  %v6611_v47 = vld [vmem:[#allocation2 + $0x108] sm:$0xff] }
 0x4a9   :  { %v5309_v44 = vpop.f32.mrf.mxu1 }
 0x4aa   :  { %5486 = vst [vmem:[#allocation11 + $0xe0] sm:$0xff] %v5422_v6  ;;  %v5423_v17 = vadd.f32 %v6607_v23, %v5308_v5  ;;  %v5310_v39 = vadd.f32 %v5309_v44, %v5117_v9 }
 0x4ab   :  { %v5311_v57 = vpop.f32.mrf.mxu1 }
 0x4ac   :  { %5487 = vst [vmem:[#allocation11 + $0xe8] sm:$0xff] %v5423_v17  ;;  %v5424_v48 = vadd.f32 %v6608_v59, %v5310_v39  ;;  %v5312_v60 = vadd.f32 %v5311_v57, %v5119_v7  ;;  %v6613_v17 = vld [vmem:[#allocation2 + $0x118] sm:$0xff] }
 0x4ad   :  { %v5122_v58 = vpop.f32.mrf.mxu0 }
 0x4ae   :  { %5488 = vst [vmem:[#allocation11 + $0xf0] sm:$0xff] %v5424_v48  ;;  %v5425_v49 = vadd.f32 %v6609_v18, %v5312_v60  ;;  %v5123_v51 = vadd.f32 %v5122_v58, %v4930_v15 }
 0x4af   :  { %v5124_v34 = vpop.f32.mrf.mxu0 }
 0x4b0   :  { %5489 = vst [vmem:[#allocation11 + $0xf8] sm:$0xff] %v5425_v49  ;;  %v5125_v20 = vadd.f32 %v5124_v34, %v11499_v45  ;;  %v6612_v45 = vld [vmem:[#allocation2 + $0x110] sm:$0xff] }
 0x4b1   :  { %v5126_v29 = vpop.f32.mrf.mxu0 }
 0x4b2   :  { %v5315_v31 = vpop.f32.mrf.mxu1  ;;  %v5127_v10 = vadd.f32 %v5126_v29, %v11506_v1 }
 0x4b3   :  { %v5316_v8 = vadd.f32 %v5315_v31, %v5123_v51  ;;  %v5128_v28 = vpop.f32.mrf.mxu0 }
 0x4b4   :  { %v5317_v35 = vpop.f32.mrf.mxu1  ;;  %v5129_v43 = vadd.f32 %v5128_v28, %v11509_v62 }
 0x4b5   :  { %v5426_v54 = vadd.f32 %v6610_v24, %v5316_v8  ;;  %v5318_v9 = vadd.f32 %v5317_v35, %v5125_v20 }
 0x4b6   :  { %v5319_v16 = vpop.f32.mrf.mxu1 }
 0x4b7   :  { %5490 = vst [vmem:[#allocation11 + $0x100] sm:$0xff] %v5426_v54  ;;  %v5427_v6 = vadd.f32 %v6611_v47, %v5318_v9  ;;  %v5320_v5 = vadd.f32 %v5319_v16, %v5127_v10 }
 0x4b8   :  { %v5321_v7 = vpop.f32.mrf.mxu1 }
 0x4b9   :  { %5491 = vst [vmem:[#allocation11 + $0x108] sm:$0xff] %v5427_v6  ;;  %v5428_v3 = vadd.f32 %v6612_v45, %v5320_v5  ;;  %v5322_v30 = vadd.f32 %v5321_v7, %v5129_v43  ;;  %v5132_v44 = vpop.f32.mrf.mxu0 }
 0x4ba   :  { %v5133_v1 = vadd.f32 %v5132_v44, %v11512_v19  ;;  %v6615_v19 = vld [vmem:[#allocation2 + $0x128] sm:$0xff] }
 0x4bb   :  { %v5325_v23 = vpop.f32.mrf.mxu1  ;;  %5492 = vst [vmem:[#allocation11 + $0x110] sm:$0xff] %v5428_v3  ;;  %v5429_v39 = vadd.f32 %v6613_v17, %v5322_v30  ;;  %v5134_v57 = vpop.f32.mrf.mxu0 }
 0x4bc   :  { %v5326_v59 = vadd.f32 %v5325_v23, %v5133_v1  ;;  %v5135_v62 = vadd.f32 %v5134_v57, %v11515_v63  ;;  %v6616_v63 = vld [vmem:[#allocation2 + $0x130] sm:$0xff] }
 0x4bd   :  { %v5327_v48 = vpop.f32.mrf.mxu1  ;;  %5493 = vst [vmem:[#allocation11 + $0x118] sm:$0xff] %v5429_v39  ;;  %v5136_v60 = vpop.f32.mrf.mxu0 }
 0x4be   :  { %v5430_v15 = vadd.f32 %v6614_v11, %v5326_v59  ;;  %v5328_v58 = vadd.f32 %v5327_v48, %v5135_v62  ;;  %v5137_v18 = vadd.f32 %v5136_v60, %v11518_v40  ;;  %v6617_v40 = vld [vmem:[#allocation2 + $0x138] sm:$0xff] }
 0x4bf   :  { %v5329_v49 = vpop.f32.mrf.mxu1  ;;  %v5138_v51 = vpop.f32.mrf.mxu0 }
 0x4c0   :  { %5494 = vst [vmem:[#allocation11 + $0x120] sm:$0xff] %v5430_v15  ;;  %v5431_v34 = vadd.f32 %v6615_v19, %v5328_v58  ;;  %v5330_v20 = vadd.f32 %v5329_v49, %v5137_v18  ;;  %v5139_v29 = vadd.f32 %v5138_v51, %v11521_v0  ;;  %v6618_v0 = vld [vmem:[#allocation2 + $0x140] sm:$0xff] }
 0x4c1   :  { %v5331_v31 = vpop.f32.mrf.mxu1  ;;  %v5142_v8 = vpop.f32.mrf.mxu0 }
 0x4c2   :  { %5495 = vst [vmem:[#allocation11 + $0x128] sm:$0xff] %v5431_v34  ;;  %v5432_v10 = vadd.f32 %v6616_v63, %v5330_v20  ;;  %v5332_v28 = vadd.f32 %v5331_v31, %v5139_v29  ;;  %v5143_v35 = vadd.f32 %v5142_v8, %v11539_v55  ;;  %v6619_v55 = vld [vmem:[#allocation2 + $0x148] sm:$0xff] }
 0x4c3   :  { %v5335_v24 = vpop.f32.mrf.mxu1  ;;  %v5144_v54 = vpop.f32.mrf.mxu0 }
 0x4c4   :  { %5496 = vst [vmem:[#allocation11 + $0x130] sm:$0xff] %v5432_v10  ;;  %v5433_v9 = vadd.f32 %v6617_v40, %v5332_v28  ;;  %v5336_v43 = vadd.f32 %v5335_v24, %v5143_v35  ;;  %v5145_v16 = vadd.f32 %v5144_v54, %v11542_v56  ;;  %v6620_v56 = vld [vmem:[#allocation2 + $0x150] sm:$0xff] }
 0x4c5   :  { %v5337_v47 = vpop.f32.mrf.mxu1  ;;  %v5146_v6 = vpop.f32.mrf.mxu0 }
 0x4c6   :  { %5497 = vst [vmem:[#allocation11 + $0x138] sm:$0xff] %v5433_v9  ;;  %v5434_v5 = vadd.f32 %v6618_v0, %v5336_v43  ;;  %v5338_v7 = vadd.f32 %v5337_v47, %v5145_v16  ;;  %v5147_v45 = vadd.f32 %v5146_v6, %v11551_v42  ;;  %v6621_v42 = vld [vmem:[#allocation2 + $0x158] sm:$0xff] }
 0x4c7   :  { %v5339_v3 = vpop.f32.mrf.mxu1  ;;  %v5148_v30 = vpop.f32.mrf.mxu0 }
 0x4c8   :  { %5498 = vst [vmem:[#allocation11 + $0x140] sm:$0xff] %v5434_v5  ;;  %v5435_v44 = vadd.f32 %v6619_v55, %v5338_v7  ;;  %v5340_v1 = vadd.f32 %v5339_v3, %v5147_v45  ;;  %v5149_v23 = vadd.f32 %v5148_v30, %v11554_v4  ;;  %v6622_v4 = vld [vmem:[#allocation2 + $0x160] sm:$0xff] }
 0x4c9   :  { %v5341_v17 = vpop.f32.mrf.mxu1 }
 0x4ca   :  { %v5152_v39 = vpop.f32.mrf.mxu0  ;;  %5499 = vst [vmem:[#allocation11 + $0x148] sm:$0xff] %v5435_v44  ;;  %v5436_v57 = vadd.f32 %v6620_v56, %v5340_v1  ;;  %v5342_v59 = vadd.f32 %v5341_v17, %v5149_v23 }
 0x4cb   :  { %v5153_v62 = vadd.f32 %v5152_v39, %v11557_v27  ;;  %v5345_v48 = vpop.f32.mrf.mxu1  ;;  %v6623_v27 = vld [vmem:[#allocation2 + $0x168] sm:$0xff] }
 0x4cc   :  { %v5154_v60 = vpop.f32.mrf.mxu0  ;;  %5500 = vst [vmem:[#allocation11 + $0x150] sm:$0xff] %v5436_v57  ;;  %v5437_v11 = vadd.f32 %v6621_v42, %v5342_v59 }
 0x4cd   :  { %v5346_v15 = vadd.f32 %v5345_v48, %v5153_v62  ;;  %v5155_v58 = vadd.f32 %v5154_v60, %v11560_v36  ;;  %v5347_v18 = vpop.f32.mrf.mxu1  ;;  %v6624_v36 = vld [vmem:[#allocation2 + $0x170] sm:$0xff] }
 0x4ce   :  { %v5156_v49 = vpop.f32.mrf.mxu0  ;;  %5501 = vst [vmem:[#allocation11 + $0x158] sm:$0xff] %v5437_v11 }
 0x4cf   :  { %v5438_v51 = vadd.f32 %v6622_v4, %v5346_v15  ;;  %v5348_v19 = vadd.f32 %v5347_v18, %v5155_v58  ;;  %v5157_v34 = vadd.f32 %v5156_v49, %v11563_v50  ;;  %v5349_v20 = vpop.f32.mrf.mxu1  ;;  %v6625_v50 = vld [vmem:[#allocation2 + $0x178] sm:$0xff] }
 0x4d0   :  { %v5158_v29 = vpop.f32.mrf.mxu0 }
 0x4d1   :  { %5502 = vst [vmem:[#allocation11 + $0x160] sm:$0xff] %v5438_v51  ;;  %v5439_v31 = vadd.f32 %v6623_v27, %v5348_v19  ;;  %v5350_v8 = vadd.f32 %v5349_v20, %v5157_v34  ;;  %v5159_v63 = vadd.f32 %v5158_v29, %v11565_v41  ;;  %v5351_v10 = vpop.f32.mrf.mxu1  ;;  %v6626_v41 = vld [vmem:[#allocation2 + $0x180] sm:$0xff] }
 0x4d2   :  { %v5162_v28 = vpop.f32.mrf.mxu0 }
 0x4d3   :  { %5503 = vst [vmem:[#allocation11 + $0x168] sm:$0xff] %v5439_v31  ;;  %v5440_v35 = vadd.f32 %v6624_v36, %v5350_v8  ;;  %v5352_v24 = vadd.f32 %v5351_v10, %v5159_v63  ;;  %v5163_v54 = vadd.f32 %v5162_v28, %v11576_v32  ;;  %v6627_v32 = vld [vmem:[#allocation2 + $0x188] sm:$0xff] }
 0x4d4   :  { %v5355_v40 = vpop.f32.mrf.mxu1  ;;  %v5164_v9 = vpop.f32.mrf.mxu0 }
 0x4d5   :  { %5504 = vst [vmem:[#allocation11 + $0x170] sm:$0xff] %v5440_v35  ;;  %v5441_v43 = vadd.f32 %v6625_v50, %v5352_v24  ;;  %v5356_v16 = vadd.f32 %v5355_v40, %v5163_v54  ;;  %v5165_v47 = vadd.f32 %v5164_v9, %v11580_v38  ;;  %v6628_v38 = vld [vmem:[#allocation2 + $0x190] sm:$0xff] }
 0x4d6   :  { %v5357_v6 = vpop.f32.mrf.mxu1  ;;  %v5166_v0 = vpop.f32.mrf.mxu0 }
 0x4d7   :  { %5505 = vst [vmem:[#allocation11 + $0x178] sm:$0xff] %v5441_v43  ;;  %v5442_v5 = vadd.f32 %v6626_v41, %v5356_v16  ;;  %v5358_v7 = vadd.f32 %v5357_v6, %v5165_v47  ;;  %v5167_v45 = vadd.f32 %v5166_v0, %v11582_v25  ;;  %v6629_v25 = vld [vmem:[#allocation2 + $0x198] sm:$0xff] }
 0x4d8   :  { %v5359_v3 = vpop.f32.mrf.mxu1  ;;  %v5168_v30 = vpop.f32.mrf.mxu0 }
 0x4d9   :  { %5506 = vst [vmem:[#allocation11 + $0x180] sm:$0xff] %v5442_v5  ;;  %v5443_v55 = vadd.f32 %v6627_v32, %v5358_v7  ;;  %v5360_v44 = vadd.f32 %v5359_v3, %v5167_v45  ;;  %v5169_v1 = vadd.f32 %v5168_v30, %v11584_v22  ;;  %v6630_v22 = vld [vmem:[#allocation2 + $0x1a0] sm:$0xff] }
 0x4da   :  { %v5361_v23 = vpop.f32.mrf.mxu1  ;;  %v5172_v17 = vpop.f32.mrf.mxu0 }
 0x4db   :  { %5507 = vst [vmem:[#allocation11 + $0x188] sm:$0xff] %v5443_v55  ;;  %v5444_v39 = vadd.f32 %v6628_v38, %v5360_v44  ;;  %v5362_v56 = vadd.f32 %v5361_v23, %v5169_v1  ;;  %v5173_v57 = vadd.f32 %v5172_v17, %v11595_v2  ;;  %v6631_v2 = vld [vmem:[#allocation2 + $0x1a8] sm:$0xff] }
 0x4dc   :  { %v5365_v59 = vpop.f32.mrf.mxu1  ;;  %v5174_v62 = vpop.f32.mrf.mxu0 }
 0x4dd   :  { %5508 = vst [vmem:[#allocation11 + $0x190] sm:$0xff] %v5444_v39  ;;  %v5445_v48 = vadd.f32 %v6629_v25, %v5362_v56  ;;  %v5366_v60 = vadd.f32 %v5365_v59, %v5173_v57  ;;  %v5175_v42 = vadd.f32 %v5174_v62, %v11598_v14  ;;  %v6632_v14 = vld [vmem:[#allocation2 + $0x1b0] sm:$0xff] }
 0x4de   :  { %v5367_v11 = vpop.f32.mrf.mxu1  ;;  %v5176_v15 = vpop.f32.mrf.mxu0 }
 0x4df   :  { %5509 = vst [vmem:[#allocation11 + $0x198] sm:$0xff] %v5445_v48  ;;  %v5446_v58 = vadd.f32 %v6630_v22, %v5366_v60  ;;  %v5368_v18 = vadd.f32 %v5367_v11, %v5175_v42  ;;  %v5177_v49 = vadd.f32 %v5176_v15, %v11601_v53  ;;  %v6633_v53 = vld [vmem:[#allocation2 + $0x1b8] sm:$0xff] }
 0x4e0   :  { %v5369_v4 = vpop.f32.mrf.mxu1  ;;  %v5178_v51 = vpop.f32.mrf.mxu0  ;;  %v6641_v22 = vld [vmem:[#allocation2 + $0x1f8] sm:$0xff] }
 0x4e1   :  { %5510 = vst [vmem:[#allocation11 + $0x1a0] sm:$0xff] %v5446_v58  ;;  %v5447_v19 = vadd.f32 %v6631_v2, %v5368_v18  ;;  %v5370_v34 = vadd.f32 %v5369_v4, %v5177_v49  ;;  %v5179_v20 = vadd.f32 %v5178_v51, %v11603_v21  ;;  %v6634_v21 = vld [vmem:[#allocation2 + $0x1c0] sm:$0xff] }
 0x4e2   :  { %v5371_v29 = vpop.f32.mrf.mxu1  ;;  %v5182_v27 = vpop.f32.mrf.mxu0 }
 0x4e3   :  { %5511 = vst [vmem:[#allocation11 + $0x1a8] sm:$0xff] %v5447_v19  ;;  %v5448_v31 = vadd.f32 %v6632_v14, %v5370_v34  ;;  %v5372_v8 = vadd.f32 %v5371_v29, %v5179_v20  ;;  %v5183_v63 = vadd.f32 %v5182_v27, %v11607_v13  ;;  %v6635_v13 = vld [vmem:[#allocation2 + $0x1c8] sm:$0xff] }
 0x4e4   :  { %v5375_v10 = vpop.f32.mrf.mxu1  ;;  %v5184_v28 = vpop.f32.mrf.mxu0 }
 0x4e5   :  { %5512 = vst [vmem:[#allocation11 + $0x1b0] sm:$0xff] %v5448_v31  ;;  %v5449_v36 = vadd.f32 %v6633_v53, %v5372_v8  ;;  %v5376_v35 = vadd.f32 %v5375_v10, %v5183_v63  ;;  %v5185_v24 = vadd.f32 %v5184_v28, %v11610_v52  ;;  %v6636_v52 = vld [vmem:[#allocation2 + $0x1d0] sm:$0xff] }
 0x4e6   :  { %v5377_v54 = vpop.f32.mrf.mxu1  ;;  %v5186_v40 = vpop.f32.mrf.mxu0 }
 0x4e7   :  { %5513 = vst [vmem:[#allocation11 + $0x1b8] sm:$0xff] %v5449_v36  ;;  %v5450_v9 = vadd.f32 %v6634_v21, %v5376_v35  ;;  %v5378_v50 = vadd.f32 %v5377_v54, %v5185_v24  ;;  %v5187_v43 = vadd.f32 %v5186_v40, %v11613_v12  ;;  %v6637_v12 = vld [vmem:[#allocation2 + $0x1d8] sm:$0xff] }
 0x4e8   :  { %v5379_v16 = vpop.f32.mrf.mxu1  ;;  %v5188_v47 = vpop.f32.mrf.mxu0 }
 0x4e9   :  { %5514 = vst [vmem:[#allocation11 + $0x1c0] sm:$0xff] %v5450_v9  ;;  %v5451_v6 = vadd.f32 %v6635_v13, %v5378_v50  ;;  %v5380_v0 = vadd.f32 %v5379_v16, %v5187_v43  ;;  %v5189_v41 = vadd.f32 %v5188_v47, %v11615_v37  ;;  %v6638_v37 = vld [vmem:[#allocation2 + $0x1e0] sm:$0xff] }
 0x4ea   :  { %v5381_v5 = vpop.f32.mrf.mxu1  ;;  %v5192_v7 = vpop.f32.mrf.mxu0 }
 0x4eb   :  { %5515 = vst [vmem:[#allocation11 + $0x1c8] sm:$0xff] %v5451_v6  ;;  %v5452_v45 = vadd.f32 %v6636_v52, %v5380_v0  ;;  %v5382_v3 = vadd.f32 %v5381_v5, %v5189_v41  ;;  %v5193_v30 = vadd.f32 %v5192_v7, %v11619_v46  ;;  %v6639_v46 = vld [vmem:[#allocation2 + $0x1e8] sm:$0xff] }
 0x4ec   :  { %v5385_v32 = vpop.f32.mrf.mxu1  ;;  %v5194_v55 = vpop.f32.mrf.mxu0 }
 0x4ed   :  { %5516 = vst [vmem:[#allocation11 + $0x1d0] sm:$0xff] %v5452_v45  ;;  %v5453_v44 = vadd.f32 %v6637_v12, %v5382_v3  ;;  %v5386_v1 = vadd.f32 %v5385_v32, %v5193_v30  ;;  %v5195_v23 = vadd.f32 %v5194_v55, %v11622_v61  ;;  %v6640_v61 = vld [vmem:[#allocation2 + $0x1f0] sm:$0xff] }
 0x4ee   :  { %v5387_v17 = vpop.f32.mrf.mxu1  ;;  %v5196_v38 = vpop.f32.mrf.mxu0 }
 0x4ef   :  { %5517 = vst [vmem:[#allocation11 + $0x1d8] sm:$0xff] %v5453_v44  ;;  %v5454_v39 = vadd.f32 %v6638_v37, %v5386_v1  ;;  %v5388_v56 = vadd.f32 %v5387_v17, %v5195_v23  ;;  %v5197_v57 = vadd.f32 %v5196_v38, %v11627_v26 }
 0x4f0   :  { %v5389_v59 = vpop.f32.mrf.mxu1  ;;  %v5198_v62 = vpop.f32.mrf.mxu0 }
 0x4f1   :  { %5518 = vst [vmem:[#allocation11 + $0x1e0] sm:$0xff] %v5454_v39  ;;  %v5455_v25 = vadd.f32 %v6639_v46, %v5388_v56  ;;  %v5390_v48 = vadd.f32 %v5389_v59, %v5197_v57  ;;  %v5199_v60 = vadd.f32 %v5198_v62, %v11631_v33 }
 0x4f2   :  { %v5391_v42 = vpop.f32.mrf.mxu1 }
 0x4f3   :  { %5519 = vst [vmem:[#allocation11 + $0x1e8] sm:$0xff] %v5455_v25  ;;  %v5456_v11 = vadd.f32 %v6640_v61, %v5390_v48  ;;  %v5392_v15 = vadd.f32 %v5391_v42, %v5199_v60 }
 0x4f5   :  { %5520 = vst [vmem:[#allocation11 + $0x1f0] sm:$0xff] %v5456_v11  ;;  %v5457_v58 = vadd.f32 %v6641_v22, %v5392_v15 }
 0x4f7   :  { %5521 = vst [vmem:[#allocation11 + $0x1f8] sm:$0xff] %v5457_v58 }
 0x4f8   :  { %6753 = shalt.err (!%p6750_p1)
}
 0x4f9   :  { %5533 = dma.vmem_to_hbm [thread:$0]  %s5528_s30, 8192, %s11772_s7, [#allocation4], %s6773_s1, %s6773_s1, %s6774_s14  }
 0x4fa   :  { %6768 = dma.done.wait [#allocation4], 8192  }
 0x4fb   :  { %6769 = vsyncadd [#allocation4], 4294959104 }
 0x4fc   :  { %5537 = vsyncpa [#allocation3], 1 }
 0x4fd   :  { %5538 = vsyncpa [#allocation6], 1 }
 0x4fe   :  { %5539 = vsyncpa [#allocation9], 1 }
 0x4ff   :  { %5540 = vsyncpa [#allocation4], 1 }

</bundles_post_ra>
